<compile_context>
chip_gen: v7x
topology: tpu7x:2x2x1
jax: 0.10.0
libtpu: 0.0.40
codegen_flags: <defaults>
</compile_context>

<pallas_src>
import jax
import jax.numpy as jnp
from jax import lax
from jax.experimental import pallas as pl
from jax.experimental.pallas import tpu as pltpu

NM, NP, OD = 78, 33, 128          # mol features, protein features, output_dim
NEG_SLOPE = 0.2
NEG_INF = -1e30


# ----------------------------- in-kernel helpers -----------------------------

def _bdot(a, b):
    """bf16-input matmul with f32 accumulation (MXU single-pass)."""
    return jnp.dot(a.astype(jnp.bfloat16), b.astype(jnp.bfloat16),
                   preferred_element_type=jnp.float32)


def _linear(x, w, b, relu):
    y = _bdot(x, w) + b
    return jnp.maximum(y, 0.0) if relu else y


def _gcn_layer(x, a_hat, w, b):
    """GCNConv: D^-1/2 (A+I) D^-1/2 @ (X W) + b, then ReLU."""
    xw = _bdot(x, w)
    y = _bdot(a_hat, xw) + b
    return jnp.maximum(y, 0.0)


def _gat_layer(x, add_mask, w, att_src, att_dst, b, *, heads, f_out_pad, relu):
    """Dense multi-head GATConv on a 128-lane-padded feature layout.

    x        [N, f_in_pad]        (f32 activations)
    add_mask [N, N]               additive mask: 0 on edges/self-loops, -1e30 else
    w        [f_in_pad, H*Fp]     bf16, pad rows/cols zero
    att_src  [H, H*Fp]            bf16, row h nonzero only in head-h block
    att_dst  [H, H*Fp]            bf16
    b        [1, H*Fp]            f32
    """
    xp = _bdot(x, w)                                              # [N, H*Fp] f32
    xpb = xp.astype(jnp.bfloat16)
    dn = (((1,), (1,)), ((), ()))                                 # contract lanes
    # src / dst logits for ALL heads with two trans_b MXU matmuls -> [H, N]
    s_all = lax.dot_general(att_src, xpb, dn, preferred_element_type=jnp.float32)
    d_all = lax.dot_general(att_dst, xpb, dn, preferred_element_type=jnp.float32)
    # batched attention math over heads: e[h, i, j] = dst[h, i] + src[h, j]
    e = d_all[:, :, None] + s_all[:, None, :]                     # [H, N, N]
    e = jnp.where(e >= 0.0, e, NEG_SLOPE * e)                     # LeakyReLU
    e = e + add_mask[None, :, :]                                  # mask non-edges
    e = e - jnp.max(e, axis=-1, keepdims=True)
    p = jnp.exp(e)
    alpha = (p * pl.reciprocal(jnp.sum(p, axis=-1, keepdims=True), approx=True)
             ).astype(jnp.bfloat16)                               # [H, N, N]
    outs = [jnp.dot(alpha[h], xpb[:, h * f_out_pad:(h + 1) * f_out_pad],
                    preferred_element_type=jnp.float32)
            for h in range(heads)]
    y = outs[0] if heads == 1 else jnp.concatenate(outs, axis=1)  # lane-dense
    y = y + b
    return jnp.maximum(y, 0.0) if relu else y


# ---------------------------------- kernel -----------------------------------

def _dta_gat_kernel(
        # graph tensors (f32, VMEM resident)
        mol_x, mol_mask, mol_pool, pro_x, pro_ahat, pro_mask, pro_pool,
        # small / early weights (VMEM resident; weights bf16, biases f32)
        m1w, m1s, m1d, m1b,
        m2w, m2s, m2d, m2b,
        m3s, m3d, m3b,
        mg1b, mg2b,
        p1w, p1b,
        p2w, p2s, p2d, p2b,
        p3w, p3s, p3d, p3b,
        pg1b, pg2b,
        fc1b, fc2b, outb,
        # large late-use weights left in HBM (bf16, streamed manually)
        m3w_h, mg1w_h, mg2w_h, pg1w_h, pg2w_h, fc1w_h, fc2w_h, outw_h,
        # output: [G, 128] padded prediction (column 0 is the real scalar)
        o_ref,
        # scratch: VMEM landing buffers for streamed weights + DMA semaphores
        m3w, mg1w, mg2w, pg1w, pg2w, fc1w, fc2w, outw, sems):

    # Kick off every HBM->VMEM weight stream up front; the GAT/GCN layers that
    # use the already-resident weights hide (part of) this DMA time.
    def stream(src, dst, i):
        cp = pltpu.make_async_copy(src, dst, sems.at[i])
        cp.start()
        return cp

    cp_m3w = stream(m3w_h, m3w, 0)
    cp_mg1w = stream(mg1w_h, mg1w, 1)
    cp_mg2w = stream(mg2w_h, mg2w, 2)
    cp_pg1w = stream(pg1w_h, pg1w, 3)
    cp_pg2w = stream(pg2w_h, pg2w, 4)
    cp_fc1w = stream(fc1w_h, fc1w, 5)
    cp_fc2w = stream(fc2w_h, fc2w, 6)
    cp_outw = stream(outw_h, outw, 7)

    # ---- molecule branch: 3x GATConv -> mean-pool -> 2x Linear ----
    mmask = mol_mask[...]
    x = _gat_layer(mol_x[...], mmask, m1w[...], m1s[...], m1d[...], m1b[...],
                   heads=2, f_out_pad=128, relu=True)
    x = _gat_layer(x, mmask, m2w[...], m2s[...], m2d[...], m2b[...],
                   heads=2, f_out_pad=256, relu=True)
    cp_m3w.wait()
    x = _gat_layer(x, mmask, m3w[...], m3s[...], m3d[...], m3b[...],
                   heads=1, f_out_pad=384, relu=False)
    g = _bdot(mol_pool[...], x)                                   # mean pool [G, 384]
    cp_mg1w.wait()
    g = _linear(g, mg1w[...], mg1b[...], relu=True)
    cp_mg2w.wait()
    mol_emb = _linear(g, mg2w[...], mg2b[...], relu=False)        # [G, 128]

    # ---- protein branch: GCNConv -> 2x GATConv -> mean-pool -> 2x Linear ----
    pmask = pro_mask[...]
    xt = _gcn_layer(pro_x[...], pro_ahat[...], p1w[...], p1b[...])
    xt = _gat_layer(xt, pmask, p2w[...], p2s[...], p2d[...], p2b[...],
                    heads=2, f_out_pad=128, relu=True)
    xt = _gat_layer(xt, pmask, p3w[...], p3s[...], p3d[...], p3b[...],
                    heads=1, f_out_pad=256, relu=True)
    gt = _bdot(pro_pool[...], xt)                                 # [G, 256]
    cp_pg1w.wait()
    gt = _linear(gt, pg1w[...], pg1b[...], relu=True)
    cp_pg2w.wait()
    pro_emb = _linear(gt, pg2w[...], pg2b[...], relu=False)       # [G, 128]

    # ---- fused prediction head: fc1 -> relu -> fc2 -> relu -> out ----
    xc = jnp.concatenate([mol_emb, pro_emb], axis=1)              # [G, 256]
    cp_fc1w.wait()
    y = _linear(xc, fc1w[...], fc1b[...], relu=True)
    cp_fc2w.wait()
    y = _linear(y, fc2w[...], fc2b[...], relu=True)
    cp_outw.wait()
    o_ref[...] = _linear(y, outw[...], outb[...], relu=False)


# --------------------------------- forward -----------------------------------

def dta_gat_forward(params, mol_x, mol_mask, mol_pool,
                    pro_x, pro_ahat, pro_mask, pro_pool):
    p = params
    n_graphs = mol_pool.shape[0]

    m1w, m1s, m1d, m1b = p["mol_conv1"]
    m2w, m2s, m2d, m2b = p["mol_conv2"]
    m3w, m3s, m3d, m3b = p["mol_conv3"]
    mg1w, mg1b = p["mol_fc_g1"]
    mg2w, mg2b = p["mol_fc_g2"]
    p1w, p1b = p["pro_conv1"]
    p2w, p2s, p2d, p2b = p["pro_conv2"]
    p3w, p3s, p3d, p3b = p["pro_conv3"]
    pg1w, pg1b = p["pro_fc_g1"]
    pg2w, pg2b = p["pro_fc_g2"]
    fc1w, fc1b = p["fc1"]
    fc2w, fc2b = p["fc2"]
    outw, outb = p["out"]

    resident = [
        mol_x, mol_mask, mol_pool, pro_x, pro_ahat, pro_mask, pro_pool,
        m1w, m1s, m1d, m1b,
        m2w, m2s, m2d, m2b,
        m3s, m3d, m3b,
        mg1b, mg2b,
        p1w, p1b,
        p2w, p2s, p2d, p2b,
        p3w, p3s, p3d, p3b,
        pg1b, pg2b,
        fc1b, fc2b, outb,
    ]
    streamed = [m3w, mg1w, mg2w, pg1w, pg2w, fc1w, fc2w, outw]

    vmem = pl.BlockSpec(memory_space=pltpu.MemorySpace.VMEM)
    hbm = pl.BlockSpec(memory_space=pl.ANY)

    out_pad = pl.pallas_call(
        _dta_gat_kernel,
        out_shape=jax.ShapeDtypeStruct((n_graphs, 128), jnp.float32),
        in_specs=[vmem] * len(resident) + [hbm] * len(streamed),
        out_specs=vmem,
        scratch_shapes=[pltpu.VMEM(w.shape, w.dtype) for w in streamed]
        + [pltpu.SemaphoreType.DMA((len(streamed),))],
    )(*resident, *streamed)
    return out_pad[:, :1]          # real scalar prediction lives in column 0


# ------------------------- padded parameter plumbing --------------------------

def _glorot(key, shape):
    lim = jnp.sqrt(6.0 / (shape[0] + shape[1]))
    return jax.random.uniform(key, shape, jnp.float32, -lim, lim)


def _pad_segments(w, in_segs, out_segs):
    rows = sum(pp for _, pp in in_segs)
    cols = sum(pp for _, pp in out_segs)
    out = jnp.zeros((rows, cols), jnp.float32)
    ri = rd = 0
    for r_real, r_pad in in_segs:
        ci = cd = 0
        for c_real, c_pad in out_segs:
            out = out.at[rd:rd + r_real, cd:cd + c_real].set(
                w[ri:ri + r_real, ci:ci + c_real])
            ci += c_real
            cd += c_pad
        ri += r_real
        rd += r_pad
    return out


def _pad_bias(b, out_segs):
    cols = sum(pp for _, pp in out_segs)
    out = jnp.zeros((1, cols), jnp.float32)
    ci = cd = 0
    for c_real, c_pad in out_segs:
        out = out.at[0, cd:cd + c_real].set(b[ci:ci + c_real])
        ci += c_real
        cd += c_pad
    return out


def _pad_att(att, f_out, f_out_pad):
    heads = att.shape[0]
    out = jnp.zeros((heads, heads * f_out_pad), jnp.float32)
    for h in range(heads):
        out = out.at[h, h * f_out_pad:h * f_out_pad + f_out].set(att[h])
    return out


def init_params(key):
    keys = iter(jax.random.split(key, 32))
    nk = lambda: next(keys)
    bf = jnp.bfloat16

    def gat(in_segs, f_out, f_out_pad, heads):
        f_in = sum(r for r, _ in in_segs)
        out_segs = [(f_out, f_out_pad)] * heads
        w = _glorot(nk(), (f_in, heads * f_out))
        att_src = _glorot(nk(), (heads, f_out))
        att_dst = _glorot(nk(), (heads, f_out))
        b = jnp.zeros((heads * f_out,), jnp.float32)
        return (_pad_segments(w, in_segs, out_segs).astype(bf),
                _pad_att(att_src, f_out, f_out_pad).astype(bf),
                _pad_att(att_dst, f_out, f_out_pad).astype(bf),
                _pad_bias(b, out_segs))

    def lin(in_segs, f_out, f_out_pad=None):
        f_out_pad = f_out if f_out_pad is None else f_out_pad
        f_in = sum(r for r, _ in in_segs)
        out_segs = [(f_out, f_out_pad)]
        w = _glorot(nk(), (f_in, f_out))
        b = jnp.zeros((f_out,), jnp.float32)
        return (_pad_segments(w, in_segs, out_segs).astype(bf),
                _pad_bias(b, out_segs))

    mol_in = [(NM, 128)]
    mc1_out = [(NM, 128)] * 2              # 156 real -> 256 padded (2 heads)
    mc2_out = [(2 * NM, 256)] * 2          # 312 real -> 512 padded (2 heads)
    mc3_out = [(4 * NM, 384)]              # 312 real -> 384 padded (1 head)
    pro_in = [(NP, 128)]
    pc1_out = [(NP, 128)]
    pc2_out = [(2 * NP, 128)] * 2          # 132 real -> 256 padded (2 heads)
    pc3_out = [(4 * NP, 256)]              # 132 real -> 256 padded (1 head)

    return {
        "mol_conv1": gat(mol_in, NM, 128, 2),
        "mol_conv2": gat(mc1_out, 2 * NM, 256, 2),
        "mol_conv3": gat(mc2_out, 4 * NM, 384, 1),
        "mol_fc_g1": lin(mc3_out, 1024),
        "mol_fc_g2": lin([(1024, 1024)], OD),
        "pro_conv1": lin(pro_in, NP, 128),             # GCNConv weight / bias
        "pro_conv2": gat(pc1_out, 2 * NP, 128, 2),
        "pro_conv3": gat(pc2_out, 4 * NP, 256, 1),
        "pro_fc_g1": lin(pc3_out, 1024),
        "pro_fc_g2": lin([(1024, 1024)], OD),
        "fc1": lin([(2 * OD, 2 * OD)], 1024),
        "fc2": lin([(1024, 1024)], 512),
        "out": lin([(512, 512)], 1, 128),              # pad 1 -> 128 lanes
    }


# -------------------------------- graph glue ---------------------------------

def ring_edge_index(nodes_per_graph, n_graphs):
    edges = []
    for g in range(n_graphs):
        base = g * nodes_per_graph
        for i in range(nodes_per_graph):
            j = (i + 1) % nodes_per_graph
            edges.append((base + i, base + j))
            edges.append((base + j, base + i))
    return jnp.asarray(edges, dtype=jnp.int32).T                 # [2, E]


def gat_additive_mask(edge_index, num_nodes):
    # Self-loops guarantee at least one unmasked entry per row, which keeps the
    # -1e30 additive mask / softmax well defined.
    src, dst = edge_index[0], edge_index[1]
    adj = jnp.zeros((num_nodes, num_nodes), jnp.float32).at[dst, src].set(1.0)
    adj = jnp.maximum(adj, jnp.eye(num_nodes, dtype=jnp.float32))
    return jnp.where(adj > 0.0, 0.0, jnp.float32(NEG_INF))        # [dst, src]


def gcn_norm_adj(edge_index, edge_weight, num_nodes):
    src, dst = edge_index[0], edge_index[1]
    a = jnp.zeros((num_nodes, num_nodes), jnp.float32).at[dst, src].add(edge_weight)
    a = a + jnp.eye(num_nodes, dtype=jnp.float32)                 # self loops
    deg = jnp.sum(a, axis=1)
    dinv = 1.0 / jnp.sqrt(deg)
    return dinv[:, None] * a * dinv[None, :]                      # D^-1/2 (A+I) D^-1/2


def mean_pool_matrix(batch, num_graphs):
    onehot = (batch[None, :] == jnp.arange(num_graphs)[:, None]).astype(jnp.float32)
    return onehot / jnp.sum(onehot, axis=1, keepdims=True)        # [G, N]


# ----------------------------------- main ------------------------------------

if __name__ == "__main__":
    key = jax.random.PRNGKey(0)
    k_par, k_mx, k_px, k_pw = jax.random.split(key, 4)

    NODES_PER_GRAPH, N_GRAPHS = 8, 2
    N = NODES_PER_GRAPH * N_GRAPHS

    # synthetic PyG-style inputs
    mol_x = jax.random.normal(k_mx, (N, NM), jnp.float32)
    pro_x = jax.random.normal(k_px, (N, NP), jnp.float32)
    mol_edge_index = ring_edge_index(NODES_PER_GRAPH, N_GRAPHS)
    pro_edge_index = ring_edge_index(NODES_PER_GRAPH, N_GRAPHS)
    pro_edge_weight = jax.random.uniform(
        k_pw, (pro_edge_index.shape[1],), jnp.float32, 0.5, 1.5)
    batch = jnp.repeat(jnp.arange(N_GRAPHS, dtype=jnp.int32), NODES_PER_GRAPH)

    # dense graph operators + lane padding (wrapper-side layout plumbing)
    mol_x_pad = jnp.pad(mol_x, ((0, 0), (0, 128 - NM)))
    pro_x_pad = jnp.pad(pro_x, ((0, 0), (0, 128 - NP)))
    mol_mask = gat_additive_mask(mol_edge_index, N)
    pro_mask = gat_additive_mask(pro_edge_index, N)
    pro_ahat = gcn_norm_adj(pro_edge_index, pro_edge_weight, N)
    mol_pool = mean_pool_matrix(batch, N_GRAPHS)
    pro_pool = mean_pool_matrix(batch, N_GRAPHS)

    params = init_params(k_par)

    # TODO(synk): dropout layers are inference-mode identities (no RNG applied).
    fwd = jax.jit(dta_gat_forward)
    out = fwd(params, mol_x_pad, mol_mask, mol_pool,
              pro_x_pad, pro_ahat, pro_mask, pro_pool)
    out = jax.block_until_ready(out)
    assert out.shape == (N_GRAPHS, 1), out.shape
    assert bool(jnp.all(jnp.isfinite(out)))
    print("KERNEL_OK")
</pallas_src>

<mosaic_0001>
module attributes {stable_mosaic.version = 11 : i64} {
  func.func @_dta_gat_kernel(%arg0: memref<16x128xf32, #tpu.memory_space<vmem>>, %arg1: memref<16x16xf32, #tpu.memory_space<vmem>>, %arg2: memref<2x16xf32, #tpu.memory_space<vmem>>, %arg3: memref<16x128xf32, #tpu.memory_space<vmem>>, %arg4: memref<16x16xf32, #tpu.memory_space<vmem>>, %arg5: memref<16x16xf32, #tpu.memory_space<vmem>>, %arg6: memref<2x16xf32, #tpu.memory_space<vmem>>, %arg7: memref<128x256xbf16, #tpu.memory_space<vmem>>, %arg8: memref<2x256xbf16, #tpu.memory_space<vmem>>, %arg9: memref<2x256xbf16, #tpu.memory_space<vmem>>, %arg10: memref<1x256xf32, #tpu.memory_space<vmem>>, %arg11: memref<256x512xbf16, #tpu.memory_space<vmem>>, %arg12: memref<2x512xbf16, #tpu.memory_space<vmem>>, %arg13: memref<2x512xbf16, #tpu.memory_space<vmem>>, %arg14: memref<1x512xf32, #tpu.memory_space<vmem>>, %arg15: memref<1x384xbf16, #tpu.memory_space<vmem>>, %arg16: memref<1x384xbf16, #tpu.memory_space<vmem>>, %arg17: memref<1x384xf32, #tpu.memory_space<vmem>>, %arg18: memref<1x1024xf32, #tpu.memory_space<vmem>>, %arg19: memref<1x128xf32, #tpu.memory_space<vmem>>, %arg20: memref<128x128xbf16, #tpu.memory_space<vmem>>, %arg21: memref<1x128xf32, #tpu.memory_space<vmem>>, %arg22: memref<128x256xbf16, #tpu.memory_space<vmem>>, %arg23: memref<2x256xbf16, #tpu.memory_space<vmem>>, %arg24: memref<2x256xbf16, #tpu.memory_space<vmem>>, %arg25: memref<1x256xf32, #tpu.memory_space<vmem>>, %arg26: memref<256x256xbf16, #tpu.memory_space<vmem>>, %arg27: memref<1x256xbf16, #tpu.memory_space<vmem>>, %arg28: memref<1x256xbf16, #tpu.memory_space<vmem>>, %arg29: memref<1x256xf32, #tpu.memory_space<vmem>>, %arg30: memref<1x1024xf32, #tpu.memory_space<vmem>>, %arg31: memref<1x128xf32, #tpu.memory_space<vmem>>, %arg32: memref<1x1024xf32, #tpu.memory_space<vmem>>, %arg33: memref<1x512xf32, #tpu.memory_space<vmem>>, %arg34: memref<1x128xf32, #tpu.memory_space<vmem>>, %arg35: memref<512x384xbf16, #tpu.memory_space<any>>, %arg36: memref<384x1024xbf16, #tpu.memory_space<any>>, %arg37: memref<1024x128xbf16, #tpu.memory_space<any>>, %arg38: memref<256x1024xbf16, #tpu.memory_space<any>>, %arg39: memref<1024x128xbf16, #tpu.memory_space<any>>, %arg40: memref<256x1024xbf16, #tpu.memory_space<any>>, %arg41: memref<1024x512xbf16, #tpu.memory_space<any>>, %arg42: memref<512x128xbf16, #tpu.memory_space<any>>, %arg43: memref<2x128xf32, #tpu.memory_space<vmem>>, %arg44: memref<512x384xbf16, #tpu.memory_space<vmem>>, %arg45: memref<384x1024xbf16, #tpu.memory_space<vmem>>, %arg46: memref<1024x128xbf16, #tpu.memory_space<vmem>>, %arg47: memref<256x1024xbf16, #tpu.memory_space<vmem>>, %arg48: memref<1024x128xbf16, #tpu.memory_space<vmem>>, %arg49: memref<256x1024xbf16, #tpu.memory_space<vmem>>, %arg50: memref<1024x512xbf16, #tpu.memory_space<vmem>>, %arg51: memref<512x128xbf16, #tpu.memory_space<vmem>>, %arg52: memref<8x!tpu.dma_semaphore, #tpu.memory_space<semaphore_mem>>) attributes {dimension_semantics = [], scalar_prefetch = 0 : i64, scratch_operands = 9 : i64, tpu.core_type = #tpu.core_type<tc>} {
    %c0_i32 = arith.constant 0 : i32
    %0 = tpu.memref_slice %arg52[%c0_i32] : memref<8x!tpu.dma_semaphore, #tpu.memory_space<semaphore_mem>> -> memref<1x!tpu.dma_semaphore, #tpu.memory_space<semaphore_mem>>
    %1 = tpu.memref_squeeze %0 : memref<1x!tpu.dma_semaphore, #tpu.memory_space<semaphore_mem>> -> memref<!tpu.dma_semaphore, #tpu.memory_space<semaphore_mem>>
    tpu.enqueue_dma source(%arg35 : memref<512x384xbf16, #tpu.memory_space<any>>) target(%arg44 : memref<512x384xbf16, #tpu.memory_space<vmem>>) target_semaphore(%1 : memref<!tpu.dma_semaphore, #tpu.memory_space<semaphore_mem>>)
    %c1_i32 = arith.constant 1 : i32
    %2 = tpu.memref_slice %arg52[%c1_i32] : memref<8x!tpu.dma_semaphore, #tpu.memory_space<semaphore_mem>> -> memref<1x!tpu.dma_semaphore, #tpu.memory_space<semaphore_mem>>
    %3 = tpu.memref_squeeze %2 : memref<1x!tpu.dma_semaphore, #tpu.memory_space<semaphore_mem>> -> memref<!tpu.dma_semaphore, #tpu.memory_space<semaphore_mem>>
    tpu.enqueue_dma source(%arg36 : memref<384x1024xbf16, #tpu.memory_space<any>>) target(%arg45 : memref<384x1024xbf16, #tpu.memory_space<vmem>>) target_semaphore(%3 : memref<!tpu.dma_semaphore, #tpu.memory_space<semaphore_mem>>)
    %c2_i32 = arith.constant 2 : i32
    %4 = tpu.memref_slice %arg52[%c2_i32] : memref<8x!tpu.dma_semaphore, #tpu.memory_space<semaphore_mem>> -> memref<1x!tpu.dma_semaphore, #tpu.memory_space<semaphore_mem>>
    %5 = tpu.memref_squeeze %4 : memref<1x!tpu.dma_semaphore, #tpu.memory_space<semaphore_mem>> -> memref<!tpu.dma_semaphore, #tpu.memory_space<semaphore_mem>>
    tpu.enqueue_dma source(%arg37 : memref<1024x128xbf16, #tpu.memory_space<any>>) target(%arg46 : memref<1024x128xbf16, #tpu.memory_space<vmem>>) target_semaphore(%5 : memref<!tpu.dma_semaphore, #tpu.memory_space<semaphore_mem>>)
    %c3_i32 = arith.constant 3 : i32
    %6 = tpu.memref_slice %arg52[%c3_i32] : memref<8x!tpu.dma_semaphore, #tpu.memory_space<semaphore_mem>> -> memref<1x!tpu.dma_semaphore, #tpu.memory_space<semaphore_mem>>
    %7 = tpu.memref_squeeze %6 : memref<1x!tpu.dma_semaphore, #tpu.memory_space<semaphore_mem>> -> memref<!tpu.dma_semaphore, #tpu.memory_space<semaphore_mem>>
    tpu.enqueue_dma source(%arg38 : memref<256x1024xbf16, #tpu.memory_space<any>>) target(%arg47 : memref<256x1024xbf16, #tpu.memory_space<vmem>>) target_semaphore(%7 : memref<!tpu.dma_semaphore, #tpu.memory_space<semaphore_mem>>)
    %c4_i32 = arith.constant 4 : i32
    %8 = tpu.memref_slice %arg52[%c4_i32] : memref<8x!tpu.dma_semaphore, #tpu.memory_space<semaphore_mem>> -> memref<1x!tpu.dma_semaphore, #tpu.memory_space<semaphore_mem>>
    %9 = tpu.memref_squeeze %8 : memref<1x!tpu.dma_semaphore, #tpu.memory_space<semaphore_mem>> -> memref<!tpu.dma_semaphore, #tpu.memory_space<semaphore_mem>>
    tpu.enqueue_dma source(%arg39 : memref<1024x128xbf16, #tpu.memory_space<any>>) target(%arg48 : memref<1024x128xbf16, #tpu.memory_space<vmem>>) target_semaphore(%9 : memref<!tpu.dma_semaphore, #tpu.memory_space<semaphore_mem>>)
    %c5_i32 = arith.constant 5 : i32
    %10 = tpu.memref_slice %arg52[%c5_i32] : memref<8x!tpu.dma_semaphore, #tpu.memory_space<semaphore_mem>> -> memref<1x!tpu.dma_semaphore, #tpu.memory_space<semaphore_mem>>
    %11 = tpu.memref_squeeze %10 : memref<1x!tpu.dma_semaphore, #tpu.memory_space<semaphore_mem>> -> memref<!tpu.dma_semaphore, #tpu.memory_space<semaphore_mem>>
    tpu.enqueue_dma source(%arg40 : memref<256x1024xbf16, #tpu.memory_space<any>>) target(%arg49 : memref<256x1024xbf16, #tpu.memory_space<vmem>>) target_semaphore(%11 : memref<!tpu.dma_semaphore, #tpu.memory_space<semaphore_mem>>)
    %c6_i32 = arith.constant 6 : i32
    %12 = tpu.memref_slice %arg52[%c6_i32] : memref<8x!tpu.dma_semaphore, #tpu.memory_space<semaphore_mem>> -> memref<1x!tpu.dma_semaphore, #tpu.memory_space<semaphore_mem>>
    %13 = tpu.memref_squeeze %12 : memref<1x!tpu.dma_semaphore, #tpu.memory_space<semaphore_mem>> -> memref<!tpu.dma_semaphore, #tpu.memory_space<semaphore_mem>>
    tpu.enqueue_dma source(%arg41 : memref<1024x512xbf16, #tpu.memory_space<any>>) target(%arg50 : memref<1024x512xbf16, #tpu.memory_space<vmem>>) target_semaphore(%13 : memref<!tpu.dma_semaphore, #tpu.memory_space<semaphore_mem>>)
    %c7_i32 = arith.constant 7 : i32
    %14 = tpu.memref_slice %arg52[%c7_i32] : memref<8x!tpu.dma_semaphore, #tpu.memory_space<semaphore_mem>> -> memref<1x!tpu.dma_semaphore, #tpu.memory_space<semaphore_mem>>
    %15 = tpu.memref_squeeze %14 : memref<1x!tpu.dma_semaphore, #tpu.memory_space<semaphore_mem>> -> memref<!tpu.dma_semaphore, #tpu.memory_space<semaphore_mem>>
    tpu.enqueue_dma source(%arg42 : memref<512x128xbf16, #tpu.memory_space<any>>) target(%arg51 : memref<512x128xbf16, #tpu.memory_space<vmem>>) target_semaphore(%15 : memref<!tpu.dma_semaphore, #tpu.memory_space<semaphore_mem>>)
    %c0 = arith.constant 0 : index
    %c0_0 = arith.constant 0 : index
    %16 = vector.load %arg1[%c0, %c0_0] : memref<16x16xf32, #tpu.memory_space<vmem>>, vector<16x16xf32>
    %c0_1 = arith.constant 0 : index
    %c0_2 = arith.constant 0 : index
    %17 = vector.load %arg0[%c0_1, %c0_2] : memref<16x128xf32, #tpu.memory_space<vmem>>, vector<16x128xf32>
    %c0_3 = arith.constant 0 : index
    %c0_4 = arith.constant 0 : index
    %18 = vector.load %arg7[%c0_3, %c0_4] : memref<128x256xbf16, #tpu.memory_space<vmem>>, vector<128x256xbf16>
    %c0_5 = arith.constant 0 : index
    %c0_6 = arith.constant 0 : index
    %19 = vector.load %arg8[%c0_5, %c0_6] : memref<2x256xbf16, #tpu.memory_space<vmem>>, vector<2x256xbf16>
    %c0_7 = arith.constant 0 : index
    %c0_8 = arith.constant 0 : index
    %20 = vector.load %arg9[%c0_7, %c0_8] : memref<2x256xbf16, #tpu.memory_space<vmem>>, vector<2x256xbf16>
    %c0_9 = arith.constant 0 : index
    %c0_10 = arith.constant 0 : index
    %21 = vector.load %arg10[%c0_9, %c0_10] : memref<1x256xf32, #tpu.memory_space<vmem>>, vector<1x256xf32>
    %22 = arith.truncf %17 : vector<16x128xf32> to vector<16x128xbf16>
    %cst = arith.constant dense<0.000000e+00> : vector<16x256xf32>
    %23 = tpu.matmul %22, %18, %cst {dimension_numbers = #tpu.dot_dimension_numbers<[1], [0], [0], [1], [0, 0, 1, 1], [], []>} : vector<16x128xbf16>, vector<128x256xbf16>, vector<16x256xf32> -> vector<16x256xf32>
    %24 = arith.truncf %23 : vector<16x256xf32> to vector<16x256xbf16>
    %cst_11 = arith.constant dense<0.000000e+00> : vector<2x16xf32>
    %25 = tpu.matmul %19, %24, %cst_11 {dimension_numbers = #tpu.dot_dimension_numbers<[1], [1], [0], [0], [0, 0, 1, 0], [], []>} : vector<2x256xbf16>, vector<16x256xbf16>, vector<2x16xf32> -> vector<2x16xf32>
    %cst_12 = arith.constant dense<0.000000e+00> : vector<2x16xf32>
    %26 = tpu.matmul %20, %24, %cst_12 {dimension_numbers = #tpu.dot_dimension_numbers<[1], [1], [0], [0], [0, 0, 1, 0], [], []>} : vector<2x256xbf16>, vector<16x256xbf16>, vector<2x16xf32> -> vector<2x16xf32>
    %27 = vector.shape_cast %26 : vector<2x16xf32> to vector<2x16x1xf32>
    %28 = vector.shape_cast %25 : vector<2x16xf32> to vector<2x1x16xf32>
    %29 = vector.broadcast %27 : vector<2x16x1xf32> to vector<2x16x16xf32>
    %30 = vector.broadcast %28 : vector<2x1x16xf32> to vector<2x16x16xf32>
    %31 = arith.addf %29, %30 : vector<2x16x16xf32>
    %cst_13 = arith.constant 0.000000e+00 : f32
    %32 = vector.broadcast %cst_13 : f32 to vector<2x16x16xf32>
    %33 = arith.cmpf oge, %31, %32 : vector<2x16x16xf32>
    %cst_14 = arith.constant 2.000000e-01 : f32
    %34 = vector.broadcast %cst_14 : f32 to vector<2x16x16xf32>
    %35 = arith.mulf %34, %31 : vector<2x16x16xf32>
    %36 = arith.select %33, %31, %35 : vector<2x16x16xi1>, vector<2x16x16xf32>
    %37 = vector.shape_cast %16 : vector<16x16xf32> to vector<1x16x16xf32>
    %38 = vector.broadcast %37 : vector<1x16x16xf32> to vector<2x16x16xf32>
    %39 = arith.addf %36, %38 : vector<2x16x16xf32>
    %cst_15 = arith.constant dense<0xFF800000> : vector<2x16xf32>
    %40 = vector.multi_reduction <maximumf>, %39, %cst_15 [2] : vector<2x16x16xf32> to vector<2x16xf32>
    %41 = vector.shape_cast %40 : vector<2x16xf32> to vector<2x16x1xf32>
    %42 = vector.broadcast %41 : vector<2x16x1xf32> to vector<2x16x16xf32>
    %43 = arith.subf %39, %42 : vector<2x16x16xf32>
    %44 = math.exp %43 : vector<2x16x16xf32>
    %cst_16 = arith.constant dense<0.000000e+00> : vector<2x16xf32>
    %45 = vector.multi_reduction <add>, %44, %cst_16 [2] : vector<2x16x16xf32> to vector<2x16xf32>
    %46 = vector.shape_cast %45 : vector<2x16xf32> to vector<2x16x1xf32>
    %47 = tpu.reciprocal %46 {approx = true} : vector<2x16x1xf32> -> vector<2x16x1xf32>
    %48 = vector.broadcast %47 : vector<2x16x1xf32> to vector<2x16x16xf32>
    %49 = arith.mulf %44, %48 : vector<2x16x16xf32>
    %50 = arith.truncf %49 : vector<2x16x16xf32> to vector<2x16x16xbf16>
    %51 = vector.extract_strided_slice %50 {offsets = [0, 0, 0], sizes = [1, 16, 16], strides = [1, 1, 1]} : vector<2x16x16xbf16> to vector<1x16x16xbf16>
    %52 = vector.shape_cast %51 : vector<1x16x16xbf16> to vector<16x16xbf16>
    %53 = vector.extract_strided_slice %24 {offsets = [0, 0], sizes = [16, 128], strides = [1, 1]} : vector<16x256xbf16> to vector<16x128xbf16>
    %cst_17 = arith.constant dense<0.000000e+00> : vector<16x128xf32>
    %54 = tpu.matmul %52, %53, %cst_17 {dimension_numbers = #tpu.dot_dimension_numbers<[1], [0], [0], [1], [0, 0, 1, 1], [], []>} : vector<16x16xbf16>, vector<16x128xbf16>, vector<16x128xf32> -> vector<16x128xf32>
    %55 = vector.extract_strided_slice %50 {offsets = [1, 0, 0], sizes = [1, 16, 16], strides = [1, 1, 1]} : vector<2x16x16xbf16> to vector<1x16x16xbf16>
    %56 = vector.shape_cast %55 : vector<1x16x16xbf16> to vector<16x16xbf16>
    %57 = vector.extract_strided_slice %24 {offsets = [0, 128], sizes = [16, 128], strides = [1, 1]} : vector<16x256xbf16> to vector<16x128xbf16>
    %cst_18 = arith.constant dense<0.000000e+00> : vector<16x128xf32>
    %58 = tpu.matmul %56, %57, %cst_18 {dimension_numbers = #tpu.dot_dimension_numbers<[1], [0], [0], [1], [0, 0, 1, 1], [], []>} : vector<16x16xbf16>, vector<16x128xbf16>, vector<16x128xf32> -> vector<16x128xf32>
    %59 = tpu.concatenate %54, %58 in 1 : vector<16x128xf32>, vector<16x128xf32> -> vector<16x256xf32>
    %60 = vector.broadcast %21 : vector<1x256xf32> to vector<16x256xf32>
    %61 = arith.addf %59, %60 : vector<16x256xf32>
    %cst_19 = arith.constant 0.000000e+00 : f32
    %62 = vector.broadcast %cst_19 : f32 to vector<16x256xf32>
    %63 = arith.maximumf %61, %62 : vector<16x256xf32>
    %c0_20 = arith.constant 0 : index
    %c0_21 = arith.constant 0 : index
    %64 = vector.load %arg11[%c0_20, %c0_21] : memref<256x512xbf16, #tpu.memory_space<vmem>>, vector<256x512xbf16>
    %c0_22 = arith.constant 0 : index
    %c0_23 = arith.constant 0 : index
    %65 = vector.load %arg12[%c0_22, %c0_23] : memref<2x512xbf16, #tpu.memory_space<vmem>>, vector<2x512xbf16>
    %c0_24 = arith.constant 0 : index
    %c0_25 = arith.constant 0 : index
    %66 = vector.load %arg13[%c0_24, %c0_25] : memref<2x512xbf16, #tpu.memory_space<vmem>>, vector<2x512xbf16>
    %c0_26 = arith.constant 0 : index
    %c0_27 = arith.constant 0 : index
    %67 = vector.load %arg14[%c0_26, %c0_27] : memref<1x512xf32, #tpu.memory_space<vmem>>, vector<1x512xf32>
    %68 = arith.truncf %63 : vector<16x256xf32> to vector<16x256xbf16>
    %cst_28 = arith.constant dense<0.000000e+00> : vector<16x512xf32>
    %69 = tpu.matmul %68, %64, %cst_28 {dimension_numbers = #tpu.dot_dimension_numbers<[1], [0], [0], [1], [0, 0, 1, 1], [], []>} : vector<16x256xbf16>, vector<256x512xbf16>, vector<16x512xf32> -> vector<16x512xf32>
    %70 = arith.truncf %69 : vector<16x512xf32> to vector<16x512xbf16>
    %cst_29 = arith.constant dense<0.000000e+00> : vector<2x16xf32>
    %71 = tpu.matmul %65, %70, %cst_29 {dimension_numbers = #tpu.dot_dimension_numbers<[1], [1], [0], [0], [0, 0, 1, 0], [], []>} : vector<2x512xbf16>, vector<16x512xbf16>, vector<2x16xf32> -> vector<2x16xf32>
    %cst_30 = arith.constant dense<0.000000e+00> : vector<2x16xf32>
    %72 = tpu.matmul %66, %70, %cst_30 {dimension_numbers = #tpu.dot_dimension_numbers<[1], [1], [0], [0], [0, 0, 1, 0], [], []>} : vector<2x512xbf16>, vector<16x512xbf16>, vector<2x16xf32> -> vector<2x16xf32>
    %73 = vector.shape_cast %72 : vector<2x16xf32> to vector<2x16x1xf32>
    %74 = vector.shape_cast %71 : vector<2x16xf32> to vector<2x1x16xf32>
    %75 = vector.broadcast %73 : vector<2x16x1xf32> to vector<2x16x16xf32>
    %76 = vector.broadcast %74 : vector<2x1x16xf32> to vector<2x16x16xf32>
    %77 = arith.addf %75, %76 : vector<2x16x16xf32>
    %cst_31 = arith.constant 0.000000e+00 : f32
    %78 = vector.broadcast %cst_31 : f32 to vector<2x16x16xf32>
    %79 = arith.cmpf oge, %77, %78 : vector<2x16x16xf32>
    %cst_32 = arith.constant 2.000000e-01 : f32
    %80 = vector.broadcast %cst_32 : f32 to vector<2x16x16xf32>
    %81 = arith.mulf %80, %77 : vector<2x16x16xf32>
    %82 = arith.select %79, %77, %81 : vector<2x16x16xi1>, vector<2x16x16xf32>
    %83 = vector.shape_cast %16 : vector<16x16xf32> to vector<1x16x16xf32>
    %84 = vector.broadcast %83 : vector<1x16x16xf32> to vector<2x16x16xf32>
    %85 = arith.addf %82, %84 : vector<2x16x16xf32>
    %cst_33 = arith.constant dense<0xFF800000> : vector<2x16xf32>
    %86 = vector.multi_reduction <maximumf>, %85, %cst_33 [2] : vector<2x16x16xf32> to vector<2x16xf32>
    %87 = vector.shape_cast %86 : vector<2x16xf32> to vector<2x16x1xf32>
    %88 = vector.broadcast %87 : vector<2x16x1xf32> to vector<2x16x16xf32>
    %89 = arith.subf %85, %88 : vector<2x16x16xf32>
    %90 = math.exp %89 : vector<2x16x16xf32>
    %cst_34 = arith.constant dense<0.000000e+00> : vector<2x16xf32>
    %91 = vector.multi_reduction <add>, %90, %cst_34 [2] : vector<2x16x16xf32> to vector<2x16xf32>
    %92 = vector.shape_cast %91 : vector<2x16xf32> to vector<2x16x1xf32>
    %93 = tpu.reciprocal %92 {approx = true} : vector<2x16x1xf32> -> vector<2x16x1xf32>
    %94 = vector.broadcast %93 : vector<2x16x1xf32> to vector<2x16x16xf32>
    %95 = arith.mulf %90, %94 : vector<2x16x16xf32>
    %96 = arith.truncf %95 : vector<2x16x16xf32> to vector<2x16x16xbf16>
    %97 = vector.extract_strided_slice %96 {offsets = [0, 0, 0], sizes = [1, 16, 16], strides = [1, 1, 1]} : vector<2x16x16xbf16> to vector<1x16x16xbf16>
    %98 = vector.shape_cast %97 : vector<1x16x16xbf16> to vector<16x16xbf16>
    %99 = vector.extract_strided_slice %70 {offsets = [0, 0], sizes = [16, 256], strides = [1, 1]} : vector<16x512xbf16> to vector<16x256xbf16>
    %cst_35 = arith.constant dense<0.000000e+00> : vector<16x256xf32>
    %100 = tpu.matmul %98, %99, %cst_35 {dimension_numbers = #tpu.dot_dimension_numbers<[1], [0], [0], [1], [0, 0, 1, 1], [], []>} : vector<16x16xbf16>, vector<16x256xbf16>, vector<16x256xf32> -> vector<16x256xf32>
    %101 = vector.extract_strided_slice %96 {offsets = [1, 0, 0], sizes = [1, 16, 16], strides = [1, 1, 1]} : vector<2x16x16xbf16> to vector<1x16x16xbf16>
    %102 = vector.shape_cast %101 : vector<1x16x16xbf16> to vector<16x16xbf16>
    %103 = vector.extract_strided_slice %70 {offsets = [0, 256], sizes = [16, 256], strides = [1, 1]} : vector<16x512xbf16> to vector<16x256xbf16>
    %cst_36 = arith.constant dense<0.000000e+00> : vector<16x256xf32>
    %104 = tpu.matmul %102, %103, %cst_36 {dimension_numbers = #tpu.dot_dimension_numbers<[1], [0], [0], [1], [0, 0, 1, 1], [], []>} : vector<16x16xbf16>, vector<16x256xbf16>, vector<16x256xf32> -> vector<16x256xf32>
    %105 = tpu.concatenate %100, %104 in 1 : vector<16x256xf32>, vector<16x256xf32> -> vector<16x512xf32>
    %106 = vector.broadcast %67 : vector<1x512xf32> to vector<16x512xf32>
    %107 = arith.addf %105, %106 : vector<16x512xf32>
    %cst_37 = arith.constant 0.000000e+00 : f32
    %108 = vector.broadcast %cst_37 : f32 to vector<16x512xf32>
    %109 = arith.maximumf %107, %108 : vector<16x512xf32>
    %c0_i32_38 = arith.constant 0 : i32
    %110 = tpu.memref_slice %arg52[%c0_i32_38] : memref<8x!tpu.dma_semaphore, #tpu.memory_space<semaphore_mem>> -> memref<1x!tpu.dma_semaphore, #tpu.memory_space<semaphore_mem>>
    %111 = tpu.memref_squeeze %110 : memref<1x!tpu.dma_semaphore, #tpu.memory_space<semaphore_mem>> -> memref<!tpu.dma_semaphore, #tpu.memory_space<semaphore_mem>>
    tpu.wait_dma2 semaphore(%111 : memref<!tpu.dma_semaphore, #tpu.memory_space<semaphore_mem>>) src(%arg35 : memref<512x384xbf16, #tpu.memory_space<any>>) dst(%arg44 : memref<512x384xbf16, #tpu.memory_space<vmem>>)
    %c0_39 = arith.constant 0 : index
    %c0_40 = arith.constant 0 : index
    %112 = vector.load %arg44[%c0_39, %c0_40] : memref<512x384xbf16, #tpu.memory_space<vmem>>, vector<512x384xbf16>
    %c0_41 = arith.constant 0 : index
    %c0_42 = arith.constant 0 : index
    %113 = vector.load %arg15[%c0_41, %c0_42] : memref<1x384xbf16, #tpu.memory_space<vmem>>, vector<1x384xbf16>
    %c0_43 = arith.constant 0 : index
    %c0_44 = arith.constant 0 : index
    %114 = vector.load %arg16[%c0_43, %c0_44] : memref<1x384xbf16, #tpu.memory_space<vmem>>, vector<1x384xbf16>
    %c0_45 = arith.constant 0 : index
    %c0_46 = arith.constant 0 : index
    %115 = vector.load %arg17[%c0_45, %c0_46] : memref<1x384xf32, #tpu.memory_space<vmem>>, vector<1x384xf32>
    %116 = arith.truncf %109 : vector<16x512xf32> to vector<16x512xbf16>
    %cst_47 = arith.constant dense<0.000000e+00> : vector<16x384xf32>
    %117 = tpu.matmul %116, %112, %cst_47 {dimension_numbers = #tpu.dot_dimension_numbers<[1], [0], [0], [1], [0, 0, 1, 1], [], []>} : vector<16x512xbf16>, vector<512x384xbf16>, vector<16x384xf32> -> vector<16x384xf32>
    %118 = arith.truncf %117 : vector<16x384xf32> to vector<16x384xbf16>
    %cst_48 = arith.constant dense<0.000000e+00> : vector<1x16xf32>
    %119 = tpu.matmul %113, %118, %cst_48 {dimension_numbers = #tpu.dot_dimension_numbers<[1], [1], [0], [0], [0, 0, 1, 0], [], []>} : vector<1x384xbf16>, vector<16x384xbf16>, vector<1x16xf32> -> vector<1x16xf32>
    %cst_49 = arith.constant dense<0.000000e+00> : vector<1x16xf32>
    %120 = tpu.matmul %114, %118, %cst_49 {dimension_numbers = #tpu.dot_dimension_numbers<[1], [1], [0], [0], [0, 0, 1, 0], [], []>} : vector<1x384xbf16>, vector<16x384xbf16>, vector<1x16xf32> -> vector<1x16xf32>
    %121 = vector.shape_cast %120 : vector<1x16xf32> to vector<1x16x1xf32>
    %122 = vector.shape_cast %119 : vector<1x16xf32> to vector<1x1x16xf32>
    %123 = vector.broadcast %121 : vector<1x16x1xf32> to vector<1x16x16xf32>
    %124 = vector.broadcast %122 : vector<1x1x16xf32> to vector<1x16x16xf32>
    %125 = arith.addf %123, %124 : vector<1x16x16xf32>
    %cst_50 = arith.constant 0.000000e+00 : f32
    %126 = vector.broadcast %cst_50 : f32 to vector<1x16x16xf32>
    %127 = arith.cmpf oge, %125, %126 : vector<1x16x16xf32>
    %cst_51 = arith.constant 2.000000e-01 : f32
    %128 = vector.broadcast %cst_51 : f32 to vector<1x16x16xf32>
    %129 = arith.mulf %128, %125 : vector<1x16x16xf32>
    %130 = arith.select %127, %125, %129 : vector<1x16x16xi1>, vector<1x16x16xf32>
    %131 = vector.shape_cast %16 : vector<16x16xf32> to vector<1x16x16xf32>
    %132 = arith.addf %130, %131 : vector<1x16x16xf32>
    %cst_52 = arith.constant dense<0xFF800000> : vector<1x16xf32>
    %133 = vector.multi_reduction <maximumf>, %132, %cst_52 [2] : vector<1x16x16xf32> to vector<1x16xf32>
    %134 = vector.shape_cast %133 : vector<1x16xf32> to vector<1x16x1xf32>
    %135 = vector.broadcast %134 : vector<1x16x1xf32> to vector<1x16x16xf32>
    %136 = arith.subf %132, %135 : vector<1x16x16xf32>
    %137 = math.exp %136 : vector<1x16x16xf32>
    %cst_53 = arith.constant dense<0.000000e+00> : vector<1x16xf32>
    %138 = vector.multi_reduction <add>, %137, %cst_53 [2] : vector<1x16x16xf32> to vector<1x16xf32>
    %139 = vector.shape_cast %138 : vector<1x16xf32> to vector<1x16x1xf32>
    %140 = tpu.reciprocal %139 {approx = true} : vector<1x16x1xf32> -> vector<1x16x1xf32>
    %141 = vector.broadcast %140 : vector<1x16x1xf32> to vector<1x16x16xf32>
    %142 = arith.mulf %137, %141 : vector<1x16x16xf32>
    %143 = arith.truncf %142 : vector<1x16x16xf32> to vector<1x16x16xbf16>
    %144 = vector.shape_cast %143 : vector<1x16x16xbf16> to vector<16x16xbf16>
    %cst_54 = arith.constant dense<0.000000e+00> : vector<16x384xf32>
    %145 = tpu.matmul %144, %118, %cst_54 {dimension_numbers = #tpu.dot_dimension_numbers<[1], [0], [0], [1], [0, 0, 1, 1], [], []>} : vector<16x16xbf16>, vector<16x384xbf16>, vector<16x384xf32> -> vector<16x384xf32>
    %146 = vector.broadcast %115 : vector<1x384xf32> to vector<16x384xf32>
    %147 = arith.addf %145, %146 : vector<16x384xf32>
    %c0_55 = arith.constant 0 : index
    %c0_56 = arith.constant 0 : index
    %148 = vector.load %arg2[%c0_55, %c0_56] : memref<2x16xf32, #tpu.memory_space<vmem>>, vector<2x16xf32>
    %149 = arith.truncf %148 : vector<2x16xf32> to vector<2x16xbf16>
    %150 = arith.truncf %147 : vector<16x384xf32> to vector<16x384xbf16>
    %cst_57 = arith.constant dense<0.000000e+00> : vector<2x384xf32>
    %151 = tpu.matmul %149, %150, %cst_57 {dimension_numbers = #tpu.dot_dimension_numbers<[1], [0], [0], [1], [0, 0, 1, 1], [], []>} : vector<2x16xbf16>, vector<16x384xbf16>, vector<2x384xf32> -> vector<2x384xf32>
    %c1_i32_58 = arith.constant 1 : i32
    %152 = tpu.memref_slice %arg52[%c1_i32_58] : memref<8x!tpu.dma_semaphore, #tpu.memory_space<semaphore_mem>> -> memref<1x!tpu.dma_semaphore, #tpu.memory_space<semaphore_mem>>
    %153 = tpu.memref_squeeze %152 : memref<1x!tpu.dma_semaphore, #tpu.memory_space<semaphore_mem>> -> memref<!tpu.dma_semaphore, #tpu.memory_space<semaphore_mem>>
    tpu.wait_dma2 semaphore(%153 : memref<!tpu.dma_semaphore, #tpu.memory_space<semaphore_mem>>) src(%arg36 : memref<384x1024xbf16, #tpu.memory_space<any>>) dst(%arg45 : memref<384x1024xbf16, #tpu.memory_space<vmem>>)
    %c0_59 = arith.constant 0 : index
    %c0_60 = arith.constant 0 : index
    %154 = vector.load %arg45[%c0_59, %c0_60] : memref<384x1024xbf16, #tpu.memory_space<vmem>>, vector<384x1024xbf16>
    %c0_61 = arith.constant 0 : index
    %c0_62 = arith.constant 0 : index
    %155 = vector.load %arg18[%c0_61, %c0_62] : memref<1x1024xf32, #tpu.memory_space<vmem>>, vector<1x1024xf32>
    %156 = arith.truncf %151 : vector<2x384xf32> to vector<2x384xbf16>
    %cst_63 = arith.constant dense<0.000000e+00> : vector<2x1024xf32>
    %157 = tpu.matmul %156, %154, %cst_63 {dimension_numbers = #tpu.dot_dimension_numbers<[1], [0], [0], [1], [0, 0, 1, 1], [], []>} : vector<2x384xbf16>, vector<384x1024xbf16>, vector<2x1024xf32> -> vector<2x1024xf32>
    %158 = vector.broadcast %155 : vector<1x1024xf32> to vector<2x1024xf32>
    %159 = arith.addf %157, %158 : vector<2x1024xf32>
    %cst_64 = arith.constant 0.000000e+00 : f32
    %160 = vector.broadcast %cst_64 : f32 to vector<2x1024xf32>
    %161 = arith.maximumf %159, %160 : vector<2x1024xf32>
    %c2_i32_65 = arith.constant 2 : i32
    %162 = tpu.memref_slice %arg52[%c2_i32_65] : memref<8x!tpu.dma_semaphore, #tpu.memory_space<semaphore_mem>> -> memref<1x!tpu.dma_semaphore, #tpu.memory_space<semaphore_mem>>
    %163 = tpu.memref_squeeze %162 : memref<1x!tpu.dma_semaphore, #tpu.memory_space<semaphore_mem>> -> memref<!tpu.dma_semaphore, #tpu.memory_space<semaphore_mem>>
    tpu.wait_dma2 semaphore(%163 : memref<!tpu.dma_semaphore, #tpu.memory_space<semaphore_mem>>) src(%arg37 : memref<1024x128xbf16, #tpu.memory_space<any>>) dst(%arg46 : memref<1024x128xbf16, #tpu.memory_space<vmem>>)
    %c0_66 = arith.constant 0 : index
    %c0_67 = arith.constant 0 : index
    %164 = vector.load %arg46[%c0_66, %c0_67] : memref<1024x128xbf16, #tpu.memory_space<vmem>>, vector<1024x128xbf16>
    %c0_68 = arith.constant 0 : index
    %c0_69 = arith.constant 0 : index
    %165 = vector.load %arg19[%c0_68, %c0_69] : memref<1x128xf32, #tpu.memory_space<vmem>>, vector<1x128xf32>
    %166 = arith.truncf %161 : vector<2x1024xf32> to vector<2x1024xbf16>
    %cst_70 = arith.constant dense<0.000000e+00> : vector<2x128xf32>
    %167 = tpu.matmul %166, %164, %cst_70 {dimension_numbers = #tpu.dot_dimension_numbers<[1], [0], [0], [1], [0, 0, 1, 1], [], []>} : vector<2x1024xbf16>, vector<1024x128xbf16>, vector<2x128xf32> -> vector<2x128xf32>
    %168 = vector.broadcast %165 : vector<1x128xf32> to vector<2x128xf32>
    %169 = arith.addf %167, %168 : vector<2x128xf32>
    %c0_71 = arith.constant 0 : index
    %c0_72 = arith.constant 0 : index
    %170 = vector.load %arg5[%c0_71, %c0_72] : memref<16x16xf32, #tpu.memory_space<vmem>>, vector<16x16xf32>
    %c0_73 = arith.constant 0 : index
    %c0_74 = arith.constant 0 : index
    %171 = vector.load %arg3[%c0_73, %c0_74] : memref<16x128xf32, #tpu.memory_space<vmem>>, vector<16x128xf32>
    %c0_75 = arith.constant 0 : index
    %c0_76 = arith.constant 0 : index
    %172 = vector.load %arg4[%c0_75, %c0_76] : memref<16x16xf32, #tpu.memory_space<vmem>>, vector<16x16xf32>
    %c0_77 = arith.constant 0 : index
    %c0_78 = arith.constant 0 : index
    %173 = vector.load %arg20[%c0_77, %c0_78] : memref<128x128xbf16, #tpu.memory_space<vmem>>, vector<128x128xbf16>
    %c0_79 = arith.constant 0 : index
    %c0_80 = arith.constant 0 : index
    %174 = vector.load %arg21[%c0_79, %c0_80] : memref<1x128xf32, #tpu.memory_space<vmem>>, vector<1x128xf32>
    %175 = arith.truncf %171 : vector<16x128xf32> to vector<16x128xbf16>
    %cst_81 = arith.constant dense<0.000000e+00> : vector<16x128xf32>
    %176 = tpu.matmul %175, %173, %cst_81 {dimension_numbers = #tpu.dot_dimension_numbers<[1], [0], [0], [1], [0, 0, 1, 1], [], []>} : vector<16x128xbf16>, vector<128x128xbf16>, vector<16x128xf32> -> vector<16x128xf32>
    %177 = arith.truncf %172 : vector<16x16xf32> to vector<16x16xbf16>
    %178 = arith.truncf %176 : vector<16x128xf32> to vector<16x128xbf16>
    %cst_82 = arith.constant dense<0.000000e+00> : vector<16x128xf32>
    %179 = tpu.matmul %177, %178, %cst_82 {dimension_numbers = #tpu.dot_dimension_numbers<[1], [0], [0], [1], [0, 0, 1, 1], [], []>} : vector<16x16xbf16>, vector<16x128xbf16>, vector<16x128xf32> -> vector<16x128xf32>
    %180 = vector.broadcast %174 : vector<1x128xf32> to vector<16x128xf32>
    %181 = arith.addf %179, %180 : vector<16x128xf32>
    %cst_83 = arith.constant 0.000000e+00 : f32
    %182 = vector.broadcast %cst_83 : f32 to vector<16x128xf32>
    %183 = arith.maximumf %181, %182 : vector<16x128xf32>
    %c0_84 = arith.constant 0 : index
    %c0_85 = arith.constant 0 : index
    %184 = vector.load %arg22[%c0_84, %c0_85] : memref<128x256xbf16, #tpu.memory_space<vmem>>, vector<128x256xbf16>
    %c0_86 = arith.constant 0 : index
    %c0_87 = arith.constant 0 : index
    %185 = vector.load %arg23[%c0_86, %c0_87] : memref<2x256xbf16, #tpu.memory_space<vmem>>, vector<2x256xbf16>
    %c0_88 = arith.constant 0 : index
    %c0_89 = arith.constant 0 : index
    %186 = vector.load %arg24[%c0_88, %c0_89] : memref<2x256xbf16, #tpu.memory_space<vmem>>, vector<2x256xbf16>
    %c0_90 = arith.constant 0 : index
    %c0_91 = arith.constant 0 : index
    %187 = vector.load %arg25[%c0_90, %c0_91] : memref<1x256xf32, #tpu.memory_space<vmem>>, vector<1x256xf32>
    %188 = arith.truncf %183 : vector<16x128xf32> to vector<16x128xbf16>
    %cst_92 = arith.constant dense<0.000000e+00> : vector<16x256xf32>
    %189 = tpu.matmul %188, %184, %cst_92 {dimension_numbers = #tpu.dot_dimension_numbers<[1], [0], [0], [1], [0, 0, 1, 1], [], []>} : vector<16x128xbf16>, vector<128x256xbf16>, vector<16x256xf32> -> vector<16x256xf32>
    %190 = arith.truncf %189 : vector<16x256xf32> to vector<16x256xbf16>
    %cst_93 = arith.constant dense<0.000000e+00> : vector<2x16xf32>
    %191 = tpu.matmul %185, %190, %cst_93 {dimension_numbers = #tpu.dot_dimension_numbers<[1], [1], [0], [0], [0, 0, 1, 0], [], []>} : vector<2x256xbf16>, vector<16x256xbf16>, vector<2x16xf32> -> vector<2x16xf32>
    %cst_94 = arith.constant dense<0.000000e+00> : vector<2x16xf32>
    %192 = tpu.matmul %186, %190, %cst_94 {dimension_numbers = #tpu.dot_dimension_numbers<[1], [1], [0], [0], [0, 0, 1, 0], [], []>} : vector<2x256xbf16>, vector<16x256xbf16>, vector<2x16xf32> -> vector<2x16xf32>
    %193 = vector.shape_cast %192 : vector<2x16xf32> to vector<2x16x1xf32>
    %194 = vector.shape_cast %191 : vector<2x16xf32> to vector<2x1x16xf32>
    %195 = vector.broadcast %193 : vector<2x16x1xf32> to vector<2x16x16xf32>
    %196 = vector.broadcast %194 : vector<2x1x16xf32> to vector<2x16x16xf32>
    %197 = arith.addf %195, %196 : vector<2x16x16xf32>
    %cst_95 = arith.constant 0.000000e+00 : f32
    %198 = vector.broadcast %cst_95 : f32 to vector<2x16x16xf32>
    %199 = arith.cmpf oge, %197, %198 : vector<2x16x16xf32>
    %cst_96 = arith.constant 2.000000e-01 : f32
    %200 = vector.broadcast %cst_96 : f32 to vector<2x16x16xf32>
    %201 = arith.mulf %200, %197 : vector<2x16x16xf32>
    %202 = arith.select %199, %197, %201 : vector<2x16x16xi1>, vector<2x16x16xf32>
    %203 = vector.shape_cast %170 : vector<16x16xf32> to vector<1x16x16xf32>
    %204 = vector.broadcast %203 : vector<1x16x16xf32> to vector<2x16x16xf32>
    %205 = arith.addf %202, %204 : vector<2x16x16xf32>
    %cst_97 = arith.constant dense<0xFF800000> : vector<2x16xf32>
    %206 = vector.multi_reduction <maximumf>, %205, %cst_97 [2] : vector<2x16x16xf32> to vector<2x16xf32>
    %207 = vector.shape_cast %206 : vector<2x16xf32> to vector<2x16x1xf32>
    %208 = vector.broadcast %207 : vector<2x16x1xf32> to vector<2x16x16xf32>
    %209 = arith.subf %205, %208 : vector<2x16x16xf32>
    %210 = math.exp %209 : vector<2x16x16xf32>
    %cst_98 = arith.constant dense<0.000000e+00> : vector<2x16xf32>
    %211 = vector.multi_reduction <add>, %210, %cst_98 [2] : vector<2x16x16xf32> to vector<2x16xf32>
    %212 = vector.shape_cast %211 : vector<2x16xf32> to vector<2x16x1xf32>
    %213 = tpu.reciprocal %212 {approx = true} : vector<2x16x1xf32> -> vector<2x16x1xf32>
    %214 = vector.broadcast %213 : vector<2x16x1xf32> to vector<2x16x16xf32>
    %215 = arith.mulf %210, %214 : vector<2x16x16xf32>
    %216 = arith.truncf %215 : vector<2x16x16xf32> to vector<2x16x16xbf16>
    %217 = vector.extract_strided_slice %216 {offsets = [0, 0, 0], sizes = [1, 16, 16], strides = [1, 1, 1]} : vector<2x16x16xbf16> to vector<1x16x16xbf16>
    %218 = vector.shape_cast %217 : vector<1x16x16xbf16> to vector<16x16xbf16>
    %219 = vector.extract_strided_slice %190 {offsets = [0, 0], sizes = [16, 128], strides = [1, 1]} : vector<16x256xbf16> to vector<16x128xbf16>
    %cst_99 = arith.constant dense<0.000000e+00> : vector<16x128xf32>
    %220 = tpu.matmul %218, %219, %cst_99 {dimension_numbers = #tpu.dot_dimension_numbers<[1], [0], [0], [1], [0, 0, 1, 1], [], []>} : vector<16x16xbf16>, vector<16x128xbf16>, vector<16x128xf32> -> vector<16x128xf32>
    %221 = vector.extract_strided_slice %216 {offsets = [1, 0, 0], sizes = [1, 16, 16], strides = [1, 1, 1]} : vector<2x16x16xbf16> to vector<1x16x16xbf16>
    %222 = vector.shape_cast %221 : vector<1x16x16xbf16> to vector<16x16xbf16>
    %223 = vector.extract_strided_slice %190 {offsets = [0, 128], sizes = [16, 128], strides = [1, 1]} : vector<16x256xbf16> to vector<16x128xbf16>
    %cst_100 = arith.constant dense<0.000000e+00> : vector<16x128xf32>
    %224 = tpu.matmul %222, %223, %cst_100 {dimension_numbers = #tpu.dot_dimension_numbers<[1], [0], [0], [1], [0, 0, 1, 1], [], []>} : vector<16x16xbf16>, vector<16x128xbf16>, vector<16x128xf32> -> vector<16x128xf32>
    %225 = tpu.concatenate %220, %224 in 1 : vector<16x128xf32>, vector<16x128xf32> -> vector<16x256xf32>
    %226 = vector.broadcast %187 : vector<1x256xf32> to vector<16x256xf32>
    %227 = arith.addf %225, %226 : vector<16x256xf32>
    %cst_101 = arith.constant 0.000000e+00 : f32
    %228 = vector.broadcast %cst_101 : f32 to vector<16x256xf32>
    %229 = arith.maximumf %227, %228 : vector<16x256xf32>
    %c0_102 = arith.constant 0 : index
    %c0_103 = arith.constant 0 : index
    %230 = vector.load %arg26[%c0_102, %c0_103] : memref<256x256xbf16, #tpu.memory_space<vmem>>, vector<256x256xbf16>
    %c0_104 = arith.constant 0 : index
    %c0_105 = arith.constant 0 : index
    %231 = vector.load %arg27[%c0_104, %c0_105] : memref<1x256xbf16, #tpu.memory_space<vmem>>, vector<1x256xbf16>
    %c0_106 = arith.constant 0 : index
    %c0_107 = arith.constant 0 : index
    %232 = vector.load %arg28[%c0_106, %c0_107] : memref<1x256xbf16, #tpu.memory_space<vmem>>, vector<1x256xbf16>
    %c0_108 = arith.constant 0 : index
    %c0_109 = arith.constant 0 : index
    %233 = vector.load %arg29[%c0_108, %c0_109] : memref<1x256xf32, #tpu.memory_space<vmem>>, vector<1x256xf32>
    %234 = arith.truncf %229 : vector<16x256xf32> to vector<16x256xbf16>
    %cst_110 = arith.constant dense<0.000000e+00> : vector<16x256xf32>
    %235 = tpu.matmul %234, %230, %cst_110 {dimension_numbers = #tpu.dot_dimension_numbers<[1], [0], [0], [1], [0, 0, 1, 1], [], []>} : vector<16x256xbf16>, vector<256x256xbf16>, vector<16x256xf32> -> vector<16x256xf32>
    %236 = arith.truncf %235 : vector<16x256xf32> to vector<16x256xbf16>
    %cst_111 = arith.constant dense<0.000000e+00> : vector<1x16xf32>
    %237 = tpu.matmul %231, %236, %cst_111 {dimension_numbers = #tpu.dot_dimension_numbers<[1], [1], [0], [0], [0, 0, 1, 0], [], []>} : vector<1x256xbf16>, vector<16x256xbf16>, vector<1x16xf32> -> vector<1x16xf32>
    %cst_112 = arith.constant dense<0.000000e+00> : vector<1x16xf32>
    %238 = tpu.matmul %232, %236, %cst_112 {dimension_numbers = #tpu.dot_dimension_numbers<[1], [1], [0], [0], [0, 0, 1, 0], [], []>} : vector<1x256xbf16>, vector<16x256xbf16>, vector<1x16xf32> -> vector<1x16xf32>
    %239 = vector.shape_cast %238 : vector<1x16xf32> to vector<1x16x1xf32>
    %240 = vector.shape_cast %237 : vector<1x16xf32> to vector<1x1x16xf32>
    %241 = vector.broadcast %239 : vector<1x16x1xf32> to vector<1x16x16xf32>
    %242 = vector.broadcast %240 : vector<1x1x16xf32> to vector<1x16x16xf32>
    %243 = arith.addf %241, %242 : vector<1x16x16xf32>
    %cst_113 = arith.constant 0.000000e+00 : f32
    %244 = vector.broadcast %cst_113 : f32 to vector<1x16x16xf32>
    %245 = arith.cmpf oge, %243, %244 : vector<1x16x16xf32>
    %cst_114 = arith.constant 2.000000e-01 : f32
    %246 = vector.broadcast %cst_114 : f32 to vector<1x16x16xf32>
    %247 = arith.mulf %246, %243 : vector<1x16x16xf32>
    %248 = arith.select %245, %243, %247 : vector<1x16x16xi1>, vector<1x16x16xf32>
    %249 = vector.shape_cast %170 : vector<16x16xf32> to vector<1x16x16xf32>
    %250 = arith.addf %248, %249 : vector<1x16x16xf32>
    %cst_115 = arith.constant dense<0xFF800000> : vector<1x16xf32>
    %251 = vector.multi_reduction <maximumf>, %250, %cst_115 [2] : vector<1x16x16xf32> to vector<1x16xf32>
    %252 = vector.shape_cast %251 : vector<1x16xf32> to vector<1x16x1xf32>
    %253 = vector.broadcast %252 : vector<1x16x1xf32> to vector<1x16x16xf32>
    %254 = arith.subf %250, %253 : vector<1x16x16xf32>
    %255 = math.exp %254 : vector<1x16x16xf32>
    %cst_116 = arith.constant dense<0.000000e+00> : vector<1x16xf32>
    %256 = vector.multi_reduction <add>, %255, %cst_116 [2] : vector<1x16x16xf32> to vector<1x16xf32>
    %257 = vector.shape_cast %256 : vector<1x16xf32> to vector<1x16x1xf32>
    %258 = tpu.reciprocal %257 {approx = true} : vector<1x16x1xf32> -> vector<1x16x1xf32>
    %259 = vector.broadcast %258 : vector<1x16x1xf32> to vector<1x16x16xf32>
    %260 = arith.mulf %255, %259 : vector<1x16x16xf32>
    %261 = arith.truncf %260 : vector<1x16x16xf32> to vector<1x16x16xbf16>
    %262 = vector.shape_cast %261 : vector<1x16x16xbf16> to vector<16x16xbf16>
    %cst_117 = arith.constant dense<0.000000e+00> : vector<16x256xf32>
    %263 = tpu.matmul %262, %236, %cst_117 {dimension_numbers = #tpu.dot_dimension_numbers<[1], [0], [0], [1], [0, 0, 1, 1], [], []>} : vector<16x16xbf16>, vector<16x256xbf16>, vector<16x256xf32> -> vector<16x256xf32>
    %264 = vector.broadcast %233 : vector<1x256xf32> to vector<16x256xf32>
    %265 = arith.addf %263, %264 : vector<16x256xf32>
    %cst_118 = arith.constant 0.000000e+00 : f32
    %266 = vector.broadcast %cst_118 : f32 to vector<16x256xf32>
    %267 = arith.maximumf %265, %266 : vector<16x256xf32>
    %c0_119 = arith.constant 0 : index
    %c0_120 = arith.constant 0 : index
    %268 = vector.load %arg6[%c0_119, %c0_120] : memref<2x16xf32, #tpu.memory_space<vmem>>, vector<2x16xf32>
    %269 = arith.truncf %268 : vector<2x16xf32> to vector<2x16xbf16>
    %270 = arith.truncf %267 : vector<16x256xf32> to vector<16x256xbf16>
    %cst_121 = arith.constant dense<0.000000e+00> : vector<2x256xf32>
    %271 = tpu.matmul %269, %270, %cst_121 {dimension_numbers = #tpu.dot_dimension_numbers<[1], [0], [0], [1], [0, 0, 1, 1], [], []>} : vector<2x16xbf16>, vector<16x256xbf16>, vector<2x256xf32> -> vector<2x256xf32>
    %c3_i32_122 = arith.constant 3 : i32
    %272 = tpu.memref_slice %arg52[%c3_i32_122] : memref<8x!tpu.dma_semaphore, #tpu.memory_space<semaphore_mem>> -> memref<1x!tpu.dma_semaphore, #tpu.memory_space<semaphore_mem>>
    %273 = tpu.memref_squeeze %272 : memref<1x!tpu.dma_semaphore, #tpu.memory_space<semaphore_mem>> -> memref<!tpu.dma_semaphore, #tpu.memory_space<semaphore_mem>>
    tpu.wait_dma2 semaphore(%273 : memref<!tpu.dma_semaphore, #tpu.memory_space<semaphore_mem>>) src(%arg38 : memref<256x1024xbf16, #tpu.memory_space<any>>) dst(%arg47 : memref<256x1024xbf16, #tpu.memory_space<vmem>>)
    %c0_123 = arith.constant 0 : index
    %c0_124 = arith.constant 0 : index
    %274 = vector.load %arg47[%c0_123, %c0_124] : memref<256x1024xbf16, #tpu.memory_space<vmem>>, vector<256x1024xbf16>
    %c0_125 = arith.constant 0 : index
    %c0_126 = arith.constant 0 : index
    %275 = vector.load %arg30[%c0_125, %c0_126] : memref<1x1024xf32, #tpu.memory_space<vmem>>, vector<1x1024xf32>
    %276 = arith.truncf %271 : vector<2x256xf32> to vector<2x256xbf16>
    %cst_127 = arith.constant dense<0.000000e+00> : vector<2x1024xf32>
    %277 = tpu.matmul %276, %274, %cst_127 {dimension_numbers = #tpu.dot_dimension_numbers<[1], [0], [0], [1], [0, 0, 1, 1], [], []>} : vector<2x256xbf16>, vector<256x1024xbf16>, vector<2x1024xf32> -> vector<2x1024xf32>
    %278 = vector.broadcast %275 : vector<1x1024xf32> to vector<2x1024xf32>
    %279 = arith.addf %277, %278 : vector<2x1024xf32>
    %cst_128 = arith.constant 0.000000e+00 : f32
    %280 = vector.broadcast %cst_128 : f32 to vector<2x1024xf32>
    %281 = arith.maximumf %279, %280 : vector<2x1024xf32>
    %c4_i32_129 = arith.constant 4 : i32
    %282 = tpu.memref_slice %arg52[%c4_i32_129] : memref<8x!tpu.dma_semaphore, #tpu.memory_space<semaphore_mem>> -> memref<1x!tpu.dma_semaphore, #tpu.memory_space<semaphore_mem>>
    %283 = tpu.memref_squeeze %282 : memref<1x!tpu.dma_semaphore, #tpu.memory_space<semaphore_mem>> -> memref<!tpu.dma_semaphore, #tpu.memory_space<semaphore_mem>>
    tpu.wait_dma2 semaphore(%283 : memref<!tpu.dma_semaphore, #tpu.memory_space<semaphore_mem>>) src(%arg39 : memref<1024x128xbf16, #tpu.memory_space<any>>) dst(%arg48 : memref<1024x128xbf16, #tpu.memory_space<vmem>>)
    %c0_130 = arith.constant 0 : index
    %c0_131 = arith.constant 0 : index
    %284 = vector.load %arg48[%c0_130, %c0_131] : memref<1024x128xbf16, #tpu.memory_space<vmem>>, vector<1024x128xbf16>
    %c0_132 = arith.constant 0 : index
    %c0_133 = arith.constant 0 : index
    %285 = vector.load %arg31[%c0_132, %c0_133] : memref<1x128xf32, #tpu.memory_space<vmem>>, vector<1x128xf32>
    %286 = arith.truncf %281 : vector<2x1024xf32> to vector<2x1024xbf16>
    %cst_134 = arith.constant dense<0.000000e+00> : vector<2x128xf32>
    %287 = tpu.matmul %286, %284, %cst_134 {dimension_numbers = #tpu.dot_dimension_numbers<[1], [0], [0], [1], [0, 0, 1, 1], [], []>} : vector<2x1024xbf16>, vector<1024x128xbf16>, vector<2x128xf32> -> vector<2x128xf32>
    %288 = vector.broadcast %285 : vector<1x128xf32> to vector<2x128xf32>
    %289 = arith.addf %287, %288 : vector<2x128xf32>
    %290 = tpu.concatenate %169, %289 in 1 : vector<2x128xf32>, vector<2x128xf32> -> vector<2x256xf32>
    %c5_i32_135 = arith.constant 5 : i32
    %291 = tpu.memref_slice %arg52[%c5_i32_135] : memref<8x!tpu.dma_semaphore, #tpu.memory_space<semaphore_mem>> -> memref<1x!tpu.dma_semaphore, #tpu.memory_space<semaphore_mem>>
    %292 = tpu.memref_squeeze %291 : memref<1x!tpu.dma_semaphore, #tpu.memory_space<semaphore_mem>> -> memref<!tpu.dma_semaphore, #tpu.memory_space<semaphore_mem>>
    tpu.wait_dma2 semaphore(%292 : memref<!tpu.dma_semaphore, #tpu.memory_space<semaphore_mem>>) src(%arg40 : memref<256x1024xbf16, #tpu.memory_space<any>>) dst(%arg49 : memref<256x1024xbf16, #tpu.memory_space<vmem>>)
    %c0_136 = arith.constant 0 : index
    %c0_137 = arith.constant 0 : index
    %293 = vector.load %arg49[%c0_136, %c0_137] : memref<256x1024xbf16, #tpu.memory_space<vmem>>, vector<256x1024xbf16>
    %c0_138 = arith.constant 0 : index
    %c0_139 = arith.constant 0 : index
    %294 = vector.load %arg32[%c0_138, %c0_139] : memref<1x1024xf32, #tpu.memory_space<vmem>>, vector<1x1024xf32>
    %295 = arith.truncf %290 : vector<2x256xf32> to vector<2x256xbf16>
    %cst_140 = arith.constant dense<0.000000e+00> : vector<2x1024xf32>
    %296 = tpu.matmul %295, %293, %cst_140 {dimension_numbers = #tpu.dot_dimension_numbers<[1], [0], [0], [1], [0, 0, 1, 1], [], []>} : vector<2x256xbf16>, vector<256x1024xbf16>, vector<2x1024xf32> -> vector<2x1024xf32>
    %297 = vector.broadcast %294 : vector<1x1024xf32> to vector<2x1024xf32>
    %298 = arith.addf %296, %297 : vector<2x1024xf32>
    %cst_141 = arith.constant 0.000000e+00 : f32
    %299 = vector.broadcast %cst_141 : f32 to vector<2x1024xf32>
    %300 = arith.maximumf %298, %299 : vector<2x1024xf32>
    %c6_i32_142 = arith.constant 6 : i32
    %301 = tpu.memref_slice %arg52[%c6_i32_142] : memref<8x!tpu.dma_semaphore, #tpu.memory_space<semaphore_mem>> -> memref<1x!tpu.dma_semaphore, #tpu.memory_space<semaphore_mem>>
    %302 = tpu.memref_squeeze %301 : memref<1x!tpu.dma_semaphore, #tpu.memory_space<semaphore_mem>> -> memref<!tpu.dma_semaphore, #tpu.memory_space<semaphore_mem>>
    tpu.wait_dma2 semaphore(%302 : memref<!tpu.dma_semaphore, #tpu.memory_space<semaphore_mem>>) src(%arg41 : memref<1024x512xbf16, #tpu.memory_space<any>>) dst(%arg50 : memref<1024x512xbf16, #tpu.memory_space<vmem>>)
    %c0_143 = arith.constant 0 : index
    %c0_144 = arith.constant 0 : index
    %303 = vector.load %arg50[%c0_143, %c0_144] : memref<1024x512xbf16, #tpu.memory_space<vmem>>, vector<1024x512xbf16>
    %c0_145 = arith.constant 0 : index
    %c0_146 = arith.constant 0 : index
    %304 = vector.load %arg33[%c0_145, %c0_146] : memref<1x512xf32, #tpu.memory_space<vmem>>, vector<1x512xf32>
    %305 = arith.truncf %300 : vector<2x1024xf32> to vector<2x1024xbf16>
    %cst_147 = arith.constant dense<0.000000e+00> : vector<2x512xf32>
    %306 = tpu.matmul %305, %303, %cst_147 {dimension_numbers = #tpu.dot_dimension_numbers<[1], [0], [0], [1], [0, 0, 1, 1], [], []>} : vector<2x1024xbf16>, vector<1024x512xbf16>, vector<2x512xf32> -> vector<2x512xf32>
    %307 = vector.broadcast %304 : vector<1x512xf32> to vector<2x512xf32>
    %308 = arith.addf %306, %307 : vector<2x512xf32>
    %cst_148 = arith.constant 0.000000e+00 : f32
    %309 = vector.broadcast %cst_148 : f32 to vector<2x512xf32>
    %310 = arith.maximumf %308, %309 : vector<2x512xf32>
    %c7_i32_149 = arith.constant 7 : i32
    %311 = tpu.memref_slice %arg52[%c7_i32_149] : memref<8x!tpu.dma_semaphore, #tpu.memory_space<semaphore_mem>> -> memref<1x!tpu.dma_semaphore, #tpu.memory_space<semaphore_mem>>
    %312 = tpu.memref_squeeze %311 : memref<1x!tpu.dma_semaphore, #tpu.memory_space<semaphore_mem>> -> memref<!tpu.dma_semaphore, #tpu.memory_space<semaphore_mem>>
    tpu.wait_dma2 semaphore(%312 : memref<!tpu.dma_semaphore, #tpu.memory_space<semaphore_mem>>) src(%arg42 : memref<512x128xbf16, #tpu.memory_space<any>>) dst(%arg51 : memref<512x128xbf16, #tpu.memory_space<vmem>>)
    %c0_150 = arith.constant 0 : index
    %c0_151 = arith.constant 0 : index
    %313 = vector.load %arg51[%c0_150, %c0_151] : memref<512x128xbf16, #tpu.memory_space<vmem>>, vector<512x128xbf16>
    %c0_152 = arith.constant 0 : index
    %c0_153 = arith.constant 0 : index
    %314 = vector.load %arg34[%c0_152, %c0_153] : memref<1x128xf32, #tpu.memory_space<vmem>>, vector<1x128xf32>
    %315 = arith.truncf %310 : vector<2x512xf32> to vector<2x512xbf16>
    %cst_154 = arith.constant dense<0.000000e+00> : vector<2x128xf32>
    %316 = tpu.matmul %315, %313, %cst_154 {dimension_numbers = #tpu.dot_dimension_numbers<[1], [0], [0], [1], [0, 0, 1, 1], [], []>} : vector<2x512xbf16>, vector<512x128xbf16>, vector<2x128xf32> -> vector<2x128xf32>
    %317 = vector.broadcast %314 : vector<1x128xf32> to vector<2x128xf32>
    %318 = arith.addf %316, %317 : vector<2x128xf32>
    %c0_155 = arith.constant 0 : index
    %c0_156 = arith.constant 0 : index
    %319 = vector.load %arg43[%c0_155, %c0_156] : memref<2x128xf32, #tpu.memory_space<vmem>>, vector<2x128xf32>
    tpu.vector_store %arg43[%c0_155, %c0_156], %318 {strides = array<i32>} : memref<2x128xf32, #tpu.memory_space<vmem>>, vector<2x128xf32>,
    return
  }
}

</mosaic_0001>

<bundles_post_ra>
// kernel: dta_gat_forward.1
= control target key start
LH: loop header
LB: loop body
LE: loop exit
PB: predicated region body
PF: predicated region fallthrough
CT: control target
= control target key end

     0   :  { %s8354_s6 = smov 1   ;;  %s8355_s10 = smov 2   ;;  %s9364_s0 = inlined_call_operand.smem [shape: u32[44], index: -1, kind: input, shape index: {}] }
   0x1   :  { %s8465_s5 = sld [smem:[%s9364_s0]]   ;;  %s8356_s14 = smov 3  }
   0x2   :  { %s8470_s9 = sld [smem:[%s9364_s0 + %s8354_s6]]   ;;  %s8357_s18 = smov 4  }
   0x3   :  { %s8475_s13 = sld [smem:[%s9364_s0 + %s8355_s10]]   ;;  %s8358_s22 = smov 5  }
   0x4   :  { %s8480_s17 = sld [smem:[%s9364_s0 + %s8356_s14]]   ;;  %s8359_s26 = smov 6  }
   0x5   :  { %s8485_s21 = sld [smem:[%s9364_s0 + %s8357_s18]]   ;;  %s8360_s30 = smov 7  }
   0x6   :  { %s8490_s25 = sld [smem:[%s9364_s0 + %s8358_s22]]   ;;  %s8361_s4 = smov 8  }
   0x7   :  { %9385 = sst [smem:[#allocation91_spill]] %s8465_s5  ;;  %s8362_s10 = smov 9  }
   0x8   :  { %9386 = sst [smem:[#allocation92_spill]] %s8470_s9  ;;  %s8363_s15 = smov 10  }
   0x9   :  { %9387 = sst [smem:[#allocation93_spill]] %s8475_s13  ;;  %s8364_s20 = smov 11  }
   0xa   :  { %9388 = sst [smem:[#allocation94_spill]] %s8480_s17  ;;  %s8366_s1 = smov 13  }
   0xb   :  { %9389 = sst [smem:[#allocation95_spill]] %s8485_s21  ;;  %s8367_s7 = smov 14  }
   0xc   :  { %9390 = sst [smem:[#allocation96_spill]] %s8490_s25  ;;  %s8369_s22 = smov 16  }
   0xd   :  { %s8495_s29 = sld [smem:[%s9364_s0 + %s8359_s26]]   ;;  %s8365_s26 = smov 12  }
   0xe   :  { %s8500_s3 = sld [smem:[%s9364_s0 + %s8360_s30]]   ;;  %s8370_s28 = smov 17  }
   0xf   :  { %s8505_s8 = sld [smem:[%s9364_s0 + %s8361_s4]]  }
  0x10   :  { %s8510_s14 = sld [smem:[%s9364_s0 + %s8362_s10]]  }
  0x11   :  { %s8515_s19 = sld [smem:[%s9364_s0 + %s8363_s15]]   ;;  %s8368_s15 = smov 15  }
  0x12   :  { %s8520_s24 = sld [smem:[%s9364_s0 + %s8364_s20]]  }
  0x13   :  { %9391 = sst [smem:[#allocation97_spill]] %s8495_s29 }
  0x14   :  { %s8525_s30 = sld [smem:[%s9364_s0 + %s8365_s26]]  }
  0x15   :  { %s8530_s6 = sld [smem:[%s9364_s0 + %s8366_s1]]  }
  0x16   :  { %s8535_s12 = sld [smem:[%s9364_s0 + %s8367_s7]]   ;;  %s8371_s7 = smov 18  }
  0x17   :  { %s8540_s20 = sld [smem:[%s9364_s0 + %s8368_s15]]   ;;  %s8372_s15 = smov 19  }
  0x18   :  { %9392 = sst [smem:[#allocation98_spill]] %s8520_s24 }
  0x19   :  { %s8545_s27 = sld [smem:[%s9364_s0 + %s8369_s22]]   ;;  %s8373_s22 = smov 20  }
  0x1a   :  { %s8550_s4 = sld [smem:[%s9364_s0 + %s8370_s28]]   ;;  %s8374_s28 = smov 21  }
  0x1b   :  { %9393 = sst [smem:[#allocation99_spill]] %s8530_s6 }
  0x1c   :  { %s8555_s29 = sld [smem:[%s9364_s0 + %s8371_s7]]   ;;  %s8375_s7 = smov 22  }
  0x1d   :  { %9394 = sst [smem:[#allocation100_spill]] %s8540_s20 }
  0x1e   :  { %s8560_s25 = sld [smem:[%s9364_s0 + %s8372_s15]]   ;;  %s8376_s15 = smov 23  }
  0x1f   :  { %s8565_s21 = sld [smem:[%s9364_s0 + %s8373_s22]]   ;;  %s8377_s22 = smov 24  }
  0x20   :  { %9395 = sst [smem:[#allocation101_spill]] %s8550_s4 }
  0x21   :  { %s8570_s17 = sld [smem:[%s9364_s0 + %s8374_s28]]   ;;  %s8378_s28 = smov 25  }
  0x22   :  { %s8575_s13 = sld [smem:[%s9364_s0 + %s8375_s7]]   ;;  %s8379_s7 = smov 26  }
  0x23   :  { %s8580_s9 = sld [smem:[%s9364_s0 + %s8376_s15]]   ;;  %s8380_s15 = smov 27  }
  0x24   :  { %9396 = sst [smem:[#allocation102_spill]] %s8560_s25 }
  0x25   :  { %9397 = sst [smem:[#allocation103_spill]] %s8565_s21 }
  0x26   :  { %s8585_s21 = sld [smem:[%s9364_s0 + %s8377_s22]]   ;;  %s8381_s22 = smov 28  }
  0x27   :  { %s8590_s5 = sld [smem:[%s9364_s0 + %s8378_s28]]   ;;  %s8382_s28 = smov 29  }
  0x28   :  { %9398 = sst [smem:[#allocation104_spill]] %s8575_s13 }
  0x29   :  { %s8595_s13 = sld [smem:[%s9364_s0 + %s8379_s7]]   ;;  %s8383_s7 = smov 30  }
  0x2a   :  { %s8600_s25 = sld [smem:[%s9364_s0 + %s8380_s15]]   ;;  %s8384_s15 = smov 31  }
  0x2b   :  { %s8610_s4 = sld [smem:[%s9364_s0 + %s8382_s28]]   ;;  %s8386_s28 = smov 33  }
  0x2c   :  { %9399 = sst [smem:[#allocation105_spill]] %s8585_s21 }
  0x2d   :  { %s8605_s21 = sld [smem:[%s9364_s0 + %s8381_s22]]   ;;  %s8385_s22 = smov 32  }
  0x2e   :  { %s8620_s20 = sld [smem:[%s9364_s0 + %s8384_s15]]   ;;  %s8388_s15 = smov 35  }
  0x2f   :  { %9400 = sst [smem:[#allocation106_spill]] %s8595_s13 }
  0x30   :  { %s8615_s13 = sld [smem:[%s9364_s0 + %s8383_s7]]   ;;  %s8387_s7 = smov 34  }
  0x31   :  { %s8630_s6 = sld [smem:[%s9364_s0 + %s8386_s28]]   ;;  %s8390_s28 = smov 37  }
  0x33   :  { %9401 = sst [smem:[#allocation107_spill]] %s8605_s21 }
  0x34   :  { %9403 = sst [smem:[#allocation109_spill]] %s8620_s20 }
  0x35   :  { %s8625_s21 = sld [smem:[%s9364_s0 + %s8385_s22]]   ;;  %s8389_s22 = smov 36  }
  0x36   :  { %9402 = sst [smem:[#allocation108_spill]] %s8615_s13 }
  0x37   :  { %9404 = sst [smem:[#allocation110_spill]] %s8630_s6 }
  0x38   :  { %s8635_s13 = sld [smem:[%s9364_s0 + %s8387_s7]]   ;;  %s8391_s7 = smov 38  }
  0x39   :  { %s8640_s20 = sld [smem:[%s9364_s0 + %s8388_s15]]   ;;  %s8392_s15 = smov 39  }
  0x3a   :  { %s8645_s24 = sld [smem:[%s9364_s0 + %s8389_s22]]   ;;  %s8393_s22 = smov 40  }
  0x3b   :  { %s8650_s6 = sld [smem:[%s9364_s0 + %s8390_s28]]   ;;  %s8394_s28 = smov 41  }
  0x3e   :  { %9405 = sst [smem:[#allocation111_spill]] %s8635_s13 }
  0x3f   :  { %9406 = sst [smem:[#allocation112_spill]] %s8640_s20 }
  0x40   :  { %9407 = sst [smem:[#allocation113_spill]] %s8645_s24 }
  0x41   :  { %9408 = sst [smem:[#allocation114_spill]] %s8650_s6 }
  0x42   :  { %s8655_s13 = sld [smem:[%s9364_s0 + %s8391_s7]]   ;;  %s8395_s7 = smov 42  }
  0x43   :  { %s8660_s20 = sld [smem:[%s9364_s0 + %s8392_s15]]   ;;  %s8396_s15 = smov 43  }
  0x44   :  { %s8665_s24 = sld [smem:[%s9364_s0 + %s8393_s22]]  }
  0x45   :  { %s8670_s6 = sld [smem:[%s9364_s0 + %s8394_s28]]  }
  0x48   :  { %9409 = sst [smem:[#allocation115_spill]] %s8655_s13 }
  0x49   :  { %9410 = sst [smem:[#allocation116_spill]] %s8660_s20 }
  0x4a   :  { %s8675_s13 = sld [smem:[%s9364_s0 + %s8395_s7]]  }
  0x4b   :  { %s8680_s20 = sld [smem:[%s9364_s0 + %s8396_s15]]  }
  0x4c   :  { %92 = vsyncpa [#allocation12], 0 }
  0x4d   :  { %93 = vsyncpa [#allocation14], 0 }
  0x4e   :  { %94 = vsyncpa [#allocation17], 0 }
  0x4f   :  { %95 = vsyncpa [#allocation20], 0 }
  0x50   :  { %96 = vsyncpa [#allocation23], 0 }
  0x51   :  { %97 = vsyncpa [#allocation26], 0 }
  0x52   :  { %98 = vsyncpa [#allocation29], 0 }
  0x53   :  { %99 = vsyncpa [#allocation32], 0 }
  0x54   :  { %100 = vsyncpa [#allocation35], 0 }
  0x55   :  { %101 = vsyncpa [#allocation38], 0 }
  0x56   :  { %102 = vsyncpa [#allocation41], 0 }
  0x57   :  { %103 = vsyncpa [#allocation44], 0 }
  0x58   :  { %104 = vsyncpa [#allocation47], 0 }
  0x59   :  { %105 = vsyncpa [#allocation50], 0  ;;  %s8397_s22 = smov [#allocation13]   ;;  %s8398_s23 = smov [#allocation16]  }
  0x5a   :  { %s138_s0 = sshll.u32 %s8397_s22, 4  ;;  %s158_s26 = sshll.u32 %s8398_s23, 4  ;;  %s139_s0 = int_to_ptr.vmem [resolvable:$true] %s138_s0  ;;  %s159_s26 = int_to_ptr.vmem [resolvable:$true] %s158_s26 }
  0x5b   :  { %s7672_s28 = scalar_lea.hbm %s8505_s8, 32 }
  0x5c   :  { %p7673_p0 = scmp.ne.s32.totalorder %s8505_s8, %s7672_s28  ;;  %p7676_p1 = scmp.lt.u32.totalorder %s7672_s28, %s8505_s8 }
  0x5e   :  { %p7678_p2 = pnand %p7676_p1, %p7673_p0 }
  0x60   :  { %7681 = shalt.err (!%p7678_p2)
}
  0x61   :  { %s7682_s1 = scalar_lea.vmem %s139_s0, 32  ;;  %p7687_p4 = scmp.lt.s32.totalorder %s139_s0, %s139_s0 }
  0x62   :  { %p7683_p3 = scmp.ne.s32.totalorder %s139_s0, %s7682_s1  ;;  %p7688_p5 = scmp.lt.s32.totalorder %s7682_s1, %s7682_s1 }
  0x64   :  { %p7689_p6 = por %p7688_p5, %p7687_p4 }
  0x66   :  { %p7690_p7 = pnand %p7689_p6, %p7683_p3 }
  0x68   :  { %7693 = shalt.err (!%p7690_p7)
}
  0x69   :  { %141 = dma.hbm_to_vmem [thread:$0]  %s8505_s8, 32, %s139_s0, [#allocation14]  }
  0x6a   :  { %s7694_s2 = scalar_lea.hbm %s8515_s19, 32 }
  0x6b   :  { %p7695_p8 = scmp.ne.s32.totalorder %s8515_s19, %s7694_s2  ;;  %p7698_p9 = scmp.lt.u32.totalorder %s7694_s2, %s8515_s19 }
  0x6d   :  { %p7700_p10 = pnand %p7698_p9, %p7695_p8 }
  0x6f   :  { %7703 = shalt.err (!%p7700_p10)
}
  0x70   :  { %s7704_s7 = scalar_lea.vmem %s159_s26, 32  ;;  %p7709_p12 = scmp.lt.s32.totalorder %s159_s26, %s159_s26 }
  0x71   :  { %p7705_p11 = scmp.ne.s32.totalorder %s159_s26, %s7704_s7  ;;  %p7710_p13 = scmp.lt.s32.totalorder %s7704_s7, %s7704_s7 }
  0x73   :  { %p7711_p0 = por %p7710_p13, %p7709_p12 }
  0x75   :  { %p7712_p1 = pnand %p7711_p0, %p7705_p11 }
  0x77   :  { %7715 = shalt.err (!%p7712_p1)
}
  0x78   :  { %161 = dma.hbm_to_vmem [thread:$0]  %s8515_s19, 32, %s159_s26, [#allocation17]  }
  0x79   :  { %s8399_s10 = smov [#allocation19]   ;;  %s8400_s8 = smov [#allocation22]  }
  0x7a   :  { %s180_s11 = sshll.u32 %s8399_s10, 4  ;;  %s200_s15 = sshll.u32 %s8400_s8, 4  ;;  %s181_s11 = int_to_ptr.vmem [resolvable:$true] %s180_s11  ;;  %s201_s15 = int_to_ptr.vmem [resolvable:$true] %s200_s15 }
  0x7b   :  { %s7716_s16 = scalar_lea.hbm %s8525_s30, 64 }
  0x7c   :  { %p7717_p2 = scmp.ne.s32.totalorder %s8525_s30, %s7716_s16  ;;  %p7720_p3 = scmp.lt.u32.totalorder %s7716_s16, %s8525_s30 }
  0x7e   :  { %p7722_p4 = pnand %p7720_p3, %p7717_p2 }
  0x80   :  { %7725 = shalt.err (!%p7722_p4)
}
  0x81   :  { %s7726_s18 = scalar_lea.vmem %s181_s11, 64  ;;  %p7731_p6 = scmp.lt.s32.totalorder %s181_s11, %s181_s11 }
  0x82   :  { %p7727_p5 = scmp.ne.s32.totalorder %s181_s11, %s7726_s18  ;;  %p7732_p7 = scmp.lt.s32.totalorder %s7726_s18, %s7726_s18 }
  0x84   :  { %p7733_p8 = por %p7732_p7, %p7731_p6 }
  0x86   :  { %p7734_p9 = pnand %p7733_p8, %p7727_p5 }
  0x88   :  { %7737 = shalt.err (!%p7734_p9)
}
  0x89   :  { %183 = dma.hbm_to_vmem [thread:$0]  %s8525_s30, 64, %s181_s11, [#allocation20]  }
  0x8a   :  { %s7738_s19 = scalar_lea.hbm %s8535_s12, 64 }
  0x8b   :  { %p7739_p10 = scmp.ne.s32.totalorder %s8535_s12, %s7738_s19  ;;  %p7742_p11 = scmp.lt.u32.totalorder %s7738_s19, %s8535_s12 }
  0x8d   :  { %p7744_p12 = pnand %p7742_p11, %p7739_p10 }
  0x8f   :  { %7747 = shalt.err (!%p7744_p12)
}
  0x90   :  { %s7748_s22 = scalar_lea.vmem %s201_s15, 64  ;;  %p7753_p0 = scmp.lt.s32.totalorder %s201_s15, %s201_s15 }
  0x91   :  { %p7749_p13 = scmp.ne.s32.totalorder %s201_s15, %s7748_s22  ;;  %p7754_p1 = scmp.lt.s32.totalorder %s7748_s22, %s7748_s22 }
  0x93   :  { %p7755_p2 = por %p7754_p1, %p7753_p0 }
  0x95   :  { %p7756_p3 = pnand %p7755_p2, %p7749_p13 }
  0x97   :  { %7759 = shalt.err (!%p7756_p3)
}
  0x98   :  { %203 = dma.hbm_to_vmem [thread:$0]  %s8535_s12, 64, %s201_s15, [#allocation23]  }
  0x99   :  { %s8401_s0 = smov [#allocation25]   ;;  %s8402_s30 = smov [#allocation28]  }
  0x9a   :  { %s220_s23 = sshll.u32 %s8401_s0, 4  ;;  %s240_s26 = sshll.u32 %s8402_s30, 4  ;;  %s221_s23 = int_to_ptr.vmem [resolvable:$true] %s220_s23  ;;  %s241_s26 = int_to_ptr.vmem [resolvable:$true] %s240_s26 }
  0x9b   :  { %s7760_s28 = scalar_lea.hbm %s8545_s27, 48 }
  0x9c   :  { %p7761_p4 = scmp.ne.s32.totalorder %s8545_s27, %s7760_s28  ;;  %p7764_p5 = scmp.lt.u32.totalorder %s7760_s28, %s8545_s27 }
  0x9e   :  { %p7766_p6 = pnand %p7764_p5, %p7761_p4 }
  0xa0   :  { %7769 = shalt.err (!%p7766_p6)
}
  0xa1   :  { %s7770_s1 = scalar_lea.vmem %s221_s23, 48  ;;  %s7774_s2 = scalar_lea.vmem %s221_s23, 64 }
  0xa2   :  { %p7771_p7 = scmp.ne.s32.totalorder %s221_s23, %s7770_s1  ;;  %p7775_p8 = scmp.lt.s32.totalorder %s221_s23, %s221_s23 }
  0xa3   :  { %p7776_p9 = scmp.lt.s32.totalorder %s7774_s2, %s7770_s1 }
  0xa5   :  { %p7777_p10 = por %p7776_p9, %p7775_p8 }
  0xa7   :  { %p7778_p11 = pnand %p7777_p10, %p7771_p7 }
  0xa9   :  { %7781 = shalt.err (!%p7778_p11)
}
  0xaa   :  { %223 = dma.hbm_to_vmem [thread:$0]  %s8545_s27, 48, %s221_s23, [#allocation26]  }
  0xab   :  { %s7782_s12 = scalar_lea.hbm %s8555_s29, 128 }
  0xac   :  { %p7783_p12 = scmp.ne.s32.totalorder %s8555_s29, %s7782_s12  ;;  %p7786_p13 = scmp.lt.u32.totalorder %s7782_s12, %s8555_s29 }
  0xae   :  { %p7788_p0 = pnand %p7786_p13, %p7783_p12 }
  0xb0   :  { %7791 = shalt.err (!%p7788_p0)
}
  0xb1   :  { %s7792_s7 = scalar_lea.vmem %s241_s26, 128  ;;  %p7797_p2 = scmp.lt.s32.totalorder %s241_s26, %s241_s26 }
  0xb2   :  { %p7793_p1 = scmp.ne.s32.totalorder %s241_s26, %s7792_s7  ;;  %p7798_p3 = scmp.lt.s32.totalorder %s7792_s7, %s7792_s7 }
  0xb4   :  { %p7799_p4 = por %p7798_p3, %p7797_p2 }
  0xb6   :  { %p7800_p5 = pnand %p7799_p4, %p7793_p1 }
  0xb8   :  { %7803 = shalt.err (!%p7800_p5)
}
  0xb9   :  { %243 = dma.hbm_to_vmem [thread:$0]  %s8555_s29, 128, %s241_s26, [#allocation29]  }
  0xba   :  { %s8403_s10 = smov [#allocation31]   ;;  %s8404_s27 = smov [#allocation34]  }
  0xbb   :  { %s262_s11 = sshll.u32 %s8403_s10, 4  ;;  %s284_s8 = sshll.u32 %s8404_s27, 4  ;;  %s263_s11 = int_to_ptr.vmem [resolvable:$true] %s262_s11  ;;  %s285_s8 = int_to_ptr.vmem [resolvable:$true] %s284_s8 }
  0xbc   :  { %s7804_s15 = scalar_lea.hbm %s8570_s17, 16 }
  0xbd   :  { %p7805_p6 = scmp.ne.s32.totalorder %s8570_s17, %s7804_s15  ;;  %p7808_p7 = scmp.lt.u32.totalorder %s7804_s15, %s8570_s17 }
  0xbf   :  { %p7810_p8 = pnand %p7808_p7, %p7805_p6 }
  0xc1   :  { %7813 = shalt.err (!%p7810_p8)
}
  0xc2   :  { %s7814_s16 = scalar_lea.vmem %s263_s11, 16  ;;  %s7818_s18 = scalar_lea.vmem %s263_s11, 32 }
  0xc3   :  { %p7815_p9 = scmp.ne.s32.totalorder %s263_s11, %s7814_s16  ;;  %p7819_p10 = scmp.lt.s32.totalorder %s263_s11, %s263_s11 }
  0xc4   :  { %p7820_p11 = scmp.lt.s32.totalorder %s7818_s18, %s7814_s16 }
  0xc6   :  { %p7821_p12 = por %p7820_p11, %p7819_p10 }
  0xc8   :  { %p7822_p13 = pnand %p7821_p12, %p7815_p9 }
  0xca   :  { %7825 = shalt.err (!%p7822_p13)
}
  0xcb   :  { %265 = dma.hbm_to_vmem [thread:$0]  %s8570_s17, 16, %s263_s11, [#allocation32]  }
  0xcc   :  { %s7826_s29 = scalar_lea.hbm %s8580_s9, 32 }
  0xcd   :  { %p7827_p0 = scmp.ne.s32.totalorder %s8580_s9, %s7826_s29  ;;  %p7830_p1 = scmp.lt.u32.totalorder %s7826_s29, %s8580_s9 }
  0xcf   :  { %p7832_p2 = pnand %p7830_p1, %p7827_p0 }
  0xd1   :  { %7835 = shalt.err (!%p7832_p2)
}
  0xd2   :  { %s7836_s19 = scalar_lea.vmem %s285_s8, 32  ;;  %p7841_p4 = scmp.lt.s32.totalorder %s285_s8, %s285_s8 }
  0xd3   :  { %p7837_p3 = scmp.ne.s32.totalorder %s285_s8, %s7836_s19  ;;  %p7842_p5 = scmp.lt.s32.totalorder %s7836_s19, %s7836_s19 }
  0xd5   :  { %p7843_p6 = por %p7842_p5, %p7841_p4 }
  0xd7   :  { %p7844_p7 = pnand %p7843_p6, %p7837_p3 }
  0xd9   :  { %7847 = shalt.err (!%p7844_p7)
}
  0xda   :  { %287 = dma.hbm_to_vmem [thread:$0]  %s8580_s9, 32, %s285_s8, [#allocation35]  }
  0xdb   :  { %s8405_s22 = smov [#allocation37]   ;;  %s8406_s17 = smov [#allocation40]  }
  0xdc   :  { %s304_s0 = sshll.u32 %s8405_s22, 4  ;;  %s326_s23 = sshll.u32 %s8406_s17, 4  ;;  %s305_s0 = int_to_ptr.vmem [resolvable:$true] %s304_s0  ;;  %s327_s23 = int_to_ptr.vmem [resolvable:$true] %s326_s23 }
  0xdd   :  { %s7848_s30 = scalar_lea.hbm %s8590_s5, 32 }
  0xde   :  { %p7849_p8 = scmp.ne.s32.totalorder %s8590_s5, %s7848_s30  ;;  %p7852_p9 = scmp.lt.u32.totalorder %s7848_s30, %s8590_s5 }
  0xe0   :  { %p7854_p10 = pnand %p7852_p9, %p7849_p8 }
  0xe2   :  { %7857 = shalt.err (!%p7854_p10)
}
  0xe3   :  { %s7858_s26 = scalar_lea.vmem %s305_s0, 32  ;;  %p7863_p12 = scmp.lt.s32.totalorder %s305_s0, %s305_s0 }
  0xe4   :  { %p7859_p11 = scmp.ne.s32.totalorder %s305_s0, %s7858_s26  ;;  %p7864_p13 = scmp.lt.s32.totalorder %s7858_s26, %s7858_s26 }
  0xe6   :  { %p7865_p0 = por %p7864_p13, %p7863_p12 }
  0xe8   :  { %p7866_p1 = pnand %p7865_p0, %p7859_p11 }
  0xea   :  { %7869 = shalt.err (!%p7866_p1)
}
  0xeb   :  { %307 = dma.hbm_to_vmem [thread:$0]  %s8590_s5, 32, %s305_s0, [#allocation38]  }
  0xec   :  { %s7870_s9 = scalar_lea.hbm %s8600_s25, 32 }
  0xed   :  { %p7871_p2 = scmp.ne.s32.totalorder %s8600_s25, %s7870_s9  ;;  %p7874_p3 = scmp.lt.u32.totalorder %s7870_s9, %s8600_s25 }
  0xef   :  { %p7876_p4 = pnand %p7874_p3, %p7871_p2 }
  0xf1   :  { %7879 = shalt.err (!%p7876_p4)
}
  0xf2   :  { %s7880_s28 = scalar_lea.vmem %s327_s23, 32  ;;  %p7885_p6 = scmp.lt.s32.totalorder %s327_s23, %s327_s23 }
  0xf3   :  { %p7881_p5 = scmp.ne.s32.totalorder %s327_s23, %s7880_s28  ;;  %p7886_p7 = scmp.lt.s32.totalorder %s7880_s28, %s7880_s28 }
  0xf5   :  { %p7887_p8 = por %p7886_p7, %p7885_p6 }
  0xf7   :  { %p7888_p9 = pnand %p7887_p8, %p7881_p5 }
  0xf9   :  { %7891 = shalt.err (!%p7888_p9)
}
  0xfa   :  { %329 = dma.hbm_to_vmem [thread:$0]  %s8600_s25, 32, %s327_s23, [#allocation41]  }
  0xfb   :  { %s8407_s1 = smov [#allocation43]   ;;  %s8408_s5 = smov [#allocation46]  }
  0xfc   :  { %s346_s2 = sshll.u32 %s8407_s1, 4  ;;  %s368_s12 = sshll.u32 %s8408_s5, 4  ;;  %s347_s2 = int_to_ptr.vmem [resolvable:$true] %s346_s2  ;;  %s369_s12 = int_to_ptr.vmem [resolvable:$true] %s368_s12 }
  0xfd   :  { %s7892_s7 = scalar_lea.hbm %s8610_s4, 32 }
  0xfe   :  { %p7893_p10 = scmp.ne.s32.totalorder %s8610_s4, %s7892_s7  ;;  %p7896_p11 = scmp.lt.u32.totalorder %s7892_s7, %s8610_s4 }
 0x100   :  { %p7898_p12 = pnand %p7896_p11, %p7893_p10 }
 0x102   :  { %7901 = shalt.err (!%p7898_p12)
}
 0x103   :  { %s7902_s10 = scalar_lea.vmem %s347_s2, 32  ;;  %p7907_p0 = scmp.lt.s32.totalorder %s347_s2, %s347_s2 }
 0x104   :  { %p7903_p13 = scmp.ne.s32.totalorder %s347_s2, %s7902_s10  ;;  %p7908_p1 = scmp.lt.s32.totalorder %s7902_s10, %s7902_s10 }
 0x106   :  { %p7909_p2 = por %p7908_p1, %p7907_p0 }
 0x108   :  { %p7910_p3 = pnand %p7909_p2, %p7903_p13 }
 0x10a   :  { %7913 = shalt.err (!%p7910_p3)
}
 0x10b   :  { %349 = dma.hbm_to_vmem [thread:$0]  %s8610_s4, 32, %s347_s2, [#allocation44]  }
 0x10c   :  { %s7914_s25 = scalar_lea.hbm %s8625_s21, 128 }
 0x10d   :  { %p7915_p4 = scmp.ne.s32.totalorder %s8625_s21, %s7914_s25  ;;  %p7918_p5 = scmp.lt.u32.totalorder %s7914_s25, %s8625_s21 }
 0x10f   :  { %p7920_p6 = pnand %p7918_p5, %p7915_p4 }
 0x111   :  { %7923 = shalt.err (!%p7920_p6)
}
 0x112   :  { %s7924_s11 = scalar_lea.vmem %s369_s12, 128  ;;  %p7929_p8 = scmp.lt.s32.totalorder %s369_s12, %s369_s12 }
 0x113   :  { %p7925_p7 = scmp.ne.s32.totalorder %s369_s12, %s7924_s11  ;;  %p7930_p9 = scmp.lt.s32.totalorder %s7924_s11, %s7924_s11 }
 0x115   :  { %p7931_p10 = por %p7930_p9, %p7929_p8 }
 0x117   :  { %p7932_p11 = pnand %p7931_p10, %p7925_p7 }
 0x119   :  { %7935 = shalt.err (!%p7932_p11)
}
 0x11a   :  { %371 = dma.hbm_to_vmem [thread:$0]  %s8625_s21, 128, %s369_s12, [#allocation47]  }
 0x11b   :  { %s8409_s27 = smov [#allocation11]   ;;  %s7936_s4 = scalar_lea.hbm %s8500_s3, 2048 }
 0x11c   :  { %s125_s8 = sshll.u32 %s8409_s27, 4  ;;  %p7937_p12 = scmp.ne.s32.totalorder %s8500_s3, %s7936_s4  ;;  %s126_s8 = int_to_ptr.vmem [resolvable:$true] %s125_s8 }
 0x11d   :  { %p7940_p13 = scmp.lt.u32.totalorder %s7936_s4, %s8500_s3 }
 0x11f   :  { %p7942_p0 = pnand %p7940_p13, %p7937_p12 }
 0x121   :  { %7945 = shalt.err (!%p7942_p0)
}
 0x122   :  { %s7946_s15 = scalar_lea.vmem %s126_s8, 2048  ;;  %p7951_p2 = scmp.lt.s32.totalorder %s126_s8, %s126_s8 }
 0x123   :  { %p7947_p1 = scmp.ne.s32.totalorder %s126_s8, %s7946_s15  ;;  %p7952_p3 = scmp.lt.s32.totalorder %s7946_s15, %s7946_s15 }
 0x125   :  { %p7953_p4 = por %p7952_p3, %p7951_p2 }
 0x127   :  { %p7954_p5 = pnand %p7953_p4, %p7947_p1 }
 0x129   :  { %7957 = shalt.err (!%p7954_p5)
}
 0x12a   :  { %s8410_s16 = smov 128   ;;  %s8411_s21 = smov 8  }
 0x12b   :  { %131 = dma.hbm_to_vmem [thread:$0]  %s8500_s3, 2048, %s126_s8, [#allocation12], %s8410_s16, %s8410_s16, %s8411_s21  }
 0x12c   :  { %s8412_s18 = smov [#allocation15]   ;;  %s8413_s19 = smov [#allocation18]  }
 0x12d   :  { %s148_s29 = sshll.u32 %s8412_s18, 4  ;;  %s167_s22 = sshll.u32 %s8413_s19, 4  ;;  %s149_s29 = int_to_ptr.vmem [resolvable:$true] %s148_s29  ;;  %s168_s22 = int_to_ptr.vmem [resolvable:$true] %s167_s22 }
 0x12e   :  { %s7958_s0 = scalar_lea.hbm %s8510_s14, 32 }
 0x12f   :  { %p7959_p6 = scmp.ne.s32.totalorder %s8510_s14, %s7958_s0  ;;  %p7962_p7 = scmp.lt.u32.totalorder %s7958_s0, %s8510_s14 }
 0x131   :  { %p7964_p8 = pnand %p7962_p7, %p7959_p6 }
 0x133   :  { %7967 = shalt.err (!%p7964_p8)
}
 0x134   :  { %s7968_s17 = scalar_lea.vmem %s149_s29, 32  ;;  %p7973_p10 = scmp.lt.s32.totalorder %s149_s29, %s149_s29 }
 0x135   :  { %p7969_p9 = scmp.ne.s32.totalorder %s149_s29, %s7968_s17  ;;  %p7974_p11 = scmp.lt.s32.totalorder %s7968_s17, %s7968_s17 }
 0x137   :  { %p7975_p12 = por %p7974_p11, %p7973_p10 }
 0x139   :  { %p7976_p13 = pnand %p7975_p12, %p7969_p9 }
 0x13b   :  { %7979 = shalt.err (!%p7976_p13)
}
 0x13c   :  { %s9411_s23 = sld [smem:[#allocation98_spill]] }
 0x13d   :  { %151 = dma.hbm_to_vmem [thread:$0]  %s8510_s14, 32, %s149_s29, [#allocation14]  }
 0x142   :  { %s7980_s3 = scalar_lea.hbm %s9411_s23, 8192 }
 0x143   :  { %p7981_p0 = scmp.ne.s32.totalorder %s9411_s23, %s7980_s3  ;;  %p7984_p1 = scmp.lt.u32.totalorder %s7980_s3, %s9411_s23 }
 0x145   :  { %p7986_p2 = pnand %p7984_p1, %p7981_p0 }
 0x147   :  { %7989 = shalt.err (!%p7986_p2)
}
 0x148   :  { %s7990_s30 = scalar_lea.vmem %s168_s22, 8192  ;;  %p7995_p4 = scmp.lt.s32.totalorder %s168_s22, %s168_s22 }
 0x149   :  { %p7991_p3 = scmp.ne.s32.totalorder %s168_s22, %s7990_s30  ;;  %p7996_p5 = scmp.lt.s32.totalorder %s7990_s30, %s7990_s30 }
 0x14b   :  { %p7997_p6 = por %p7996_p5, %p7995_p4 }
 0x14d   :  { %p7998_p7 = pnand %p7997_p6, %p7991_p3 }
 0x14f   :  { %8001 = shalt.err (!%p7998_p7)
}
 0x150   :  { %s8414_s26 = smov 256   ;;  %s9412_s9 = sld [smem:[#allocation99_spill]] }
 0x151   :  { %s8415_s28 = smov 16   ;;  %s8416_s14 = smov [#allocation21]  }
 0x152   :  { %173 = dma.hbm_to_vmem [thread:$0]  %s9411_s23, 8192, %s168_s22, [#allocation17], %s8414_s26, %s8414_s26, %s8415_s28  }
 0x153   :  { %s190_s1 = sshll.u32 %s8416_s14, 4  ;;  %s8417_s2 = smov [#allocation24]   ;;  %s191_s1 = int_to_ptr.vmem [resolvable:$true] %s190_s1 }
 0x154   :  { %s210_s5 = sshll.u32 %s8417_s2, 4  ;;  %s211_s5 = int_to_ptr.vmem [resolvable:$true] %s210_s5 }
 0x156   :  { %s8002_s12 = scalar_lea.hbm %s9412_s9, 64 }
 0x157   :  { %p8003_p8 = scmp.ne.s32.totalorder %s9412_s9, %s8002_s12  ;;  %p8006_p9 = scmp.lt.u32.totalorder %s8002_s12, %s9412_s9 }
 0x159   :  { %p8008_p10 = pnand %p8006_p9, %p8003_p8 }
 0x15b   :  { %8011 = shalt.err (!%p8008_p10)
}
 0x15c   :  { %s8012_s7 = scalar_lea.vmem %s191_s1, 64  ;;  %p8017_p12 = scmp.lt.s32.totalorder %s191_s1, %s191_s1 }
 0x15d   :  { %p8013_p11 = scmp.ne.s32.totalorder %s191_s1, %s8012_s7  ;;  %p8018_p13 = scmp.lt.s32.totalorder %s8012_s7, %s8012_s7 }
 0x15f   :  { %p8019_p0 = por %p8018_p13, %p8017_p12 }
 0x161   :  { %p8020_p1 = pnand %p8019_p0, %p8013_p11 }
 0x163   :  { %8023 = shalt.err (!%p8020_p1)
}
 0x164   :  { %s9413_s10 = sld [smem:[#allocation100_spill]] }
 0x165   :  { %193 = dma.hbm_to_vmem [thread:$0]  %s9412_s9, 64, %s191_s1, [#allocation20]  }
 0x16a   :  { %s8024_s25 = scalar_lea.hbm %s9413_s10, 48 }
 0x16b   :  { %p8025_p2 = scmp.ne.s32.totalorder %s9413_s10, %s8024_s25  ;;  %p8028_p3 = scmp.lt.u32.totalorder %s8024_s25, %s9413_s10 }
 0x16d   :  { %p8030_p4 = pnand %p8028_p3, %p8025_p2 }
 0x16f   :  { %8033 = shalt.err (!%p8030_p4)
}
 0x170   :  { %s8034_s11 = scalar_lea.vmem %s211_s5, 48  ;;  %s8038_s27 = scalar_lea.vmem %s211_s5, 64 }
 0x171   :  { %p8035_p5 = scmp.ne.s32.totalorder %s211_s5, %s8034_s11  ;;  %p8039_p6 = scmp.lt.s32.totalorder %s211_s5, %s211_s5 }
 0x172   :  { %p8040_p7 = scmp.lt.s32.totalorder %s8038_s27, %s8034_s11 }
 0x174   :  { %p8041_p8 = por %p8040_p7, %p8039_p6 }
 0x176   :  { %p8042_p9 = pnand %p8041_p8, %p8035_p5 }
 0x178   :  { %8045 = shalt.err (!%p8042_p9)
}
 0x179   :  { %s9414_s8 = sld [smem:[#allocation101_spill]]  ;;  %s8418_s4 = smov [#allocation27]  }
 0x17a   :  { %213 = dma.hbm_to_vmem [thread:$0]  %s9413_s10, 48, %s211_s5, [#allocation23]  }
 0x17b   :  { %s230_s15 = sshll.u32 %s8418_s4, 4  ;;  %s8419_s18 = smov [#allocation30]   ;;  %s231_s15 = int_to_ptr.vmem [resolvable:$true] %s230_s15 }
 0x17c   :  { %s250_s29 = sshll.u32 %s8419_s18, 4  ;;  %s251_s29 = int_to_ptr.vmem [resolvable:$true] %s250_s29 }
 0x17f   :  { %s8046_s19 = scalar_lea.hbm %s9414_s8, 48 }
 0x180   :  { %p8047_p10 = scmp.ne.s32.totalorder %s9414_s8, %s8046_s19  ;;  %p8050_p11 = scmp.lt.u32.totalorder %s8046_s19, %s9414_s8 }
 0x182   :  { %p8052_p12 = pnand %p8050_p11, %p8047_p10 }
 0x184   :  { %8055 = shalt.err (!%p8052_p12)
}
 0x185   :  { %s8056_s22 = scalar_lea.vmem %s231_s15, 48  ;;  %s8060_s0 = scalar_lea.vmem %s231_s15, 64 }
 0x186   :  { %p8057_p13 = scmp.ne.s32.totalorder %s231_s15, %s8056_s22  ;;  %p8061_p0 = scmp.lt.s32.totalorder %s231_s15, %s231_s15 }
 0x187   :  { %p8062_p1 = scmp.lt.s32.totalorder %s8060_s0, %s8056_s22 }
 0x189   :  { %p8063_p2 = por %p8062_p1, %p8061_p0 }
 0x18b   :  { %p8064_p3 = pnand %p8063_p2, %p8057_p13 }
 0x18d   :  { %8067 = shalt.err (!%p8064_p3)
}
 0x18e   :  { %s9415_s17 = sld [smem:[#allocation102_spill]] }
 0x18f   :  { %233 = dma.hbm_to_vmem [thread:$0]  %s9414_s8, 48, %s231_s15, [#allocation26]  }
 0x194   :  { %s8068_s23 = scalar_lea.hbm %s9415_s17, 16 }
 0x195   :  { %p8069_p4 = scmp.ne.s32.totalorder %s9415_s17, %s8068_s23  ;;  %p8072_p5 = scmp.lt.u32.totalorder %s8068_s23, %s9415_s17 }
 0x197   :  { %p8074_p6 = pnand %p8072_p5, %p8069_p4 }
 0x199   :  { %8077 = shalt.err (!%p8074_p6)
}
 0x19a   :  { %s8078_s3 = scalar_lea.vmem %s251_s29, 16  ;;  %s8082_s30 = scalar_lea.vmem %s251_s29, 32 }
 0x19b   :  { %p8079_p7 = scmp.ne.s32.totalorder %s251_s29, %s8078_s3  ;;  %p8083_p8 = scmp.lt.s32.totalorder %s251_s29, %s251_s29 }
 0x19c   :  { %p8084_p9 = scmp.lt.s32.totalorder %s8082_s30, %s8078_s3 }
 0x19e   :  { %p8085_p10 = por %p8084_p9, %p8083_p8 }
 0x1a0   :  { %p8086_p11 = pnand %p8085_p10, %p8079_p7 }
 0x1a2   :  { %8089 = shalt.err (!%p8086_p11)
}
 0x1a3   :  { %s9416_s9 = sld [smem:[#allocation104_spill]]  ;;  %s8420_s28 = smov [#allocation33]  }
 0x1a4   :  { %253 = dma.hbm_to_vmem [thread:$0]  %s9415_s17, 16, %s251_s29, [#allocation29]  }
 0x1a5   :  { %s271_s14 = sshll.u32 %s8420_s28, 4  ;;  %s8421_s1 = smov [#allocation36]   ;;  %s272_s14 = int_to_ptr.vmem [resolvable:$true] %s271_s14 }
 0x1a6   :  { %s294_s2 = sshll.u32 %s8421_s1, 4  ;;  %s295_s2 = int_to_ptr.vmem [resolvable:$true] %s294_s2 }
 0x1a9   :  { %s8090_s5 = scalar_lea.hbm %s9416_s9, 2048 }
 0x1aa   :  { %p8091_p12 = scmp.ne.s32.totalorder %s9416_s9, %s8090_s5  ;;  %p8094_p13 = scmp.lt.u32.totalorder %s8090_s5, %s9416_s9 }
 0x1ac   :  { %p8096_p0 = pnand %p8094_p13, %p8091_p12 }
 0x1ae   :  { %8099 = shalt.err (!%p8096_p0)
}
 0x1af   :  { %s8100_s12 = scalar_lea.vmem %s272_s14, 2048  ;;  %p8105_p2 = scmp.lt.s32.totalorder %s272_s14, %s272_s14 }
 0x1b0   :  { %p8101_p1 = scmp.ne.s32.totalorder %s272_s14, %s8100_s12  ;;  %p8106_p3 = scmp.lt.s32.totalorder %s8100_s12, %s8100_s12 }
 0x1b2   :  { %p8107_p4 = por %p8106_p3, %p8105_p2 }
 0x1b4   :  { %p8108_p5 = pnand %p8107_p4, %p8101_p1 }
 0x1b6   :  { %8111 = shalt.err (!%p8108_p5)
}
 0x1b7   :  { %s9417_s7 = sld [smem:[#allocation105_spill]] }
 0x1b8   :  { %277 = dma.hbm_to_vmem [thread:$0]  %s9416_s9, 2048, %s272_s14, [#allocation32], %s8410_s16, %s8410_s16, %s8411_s21  }
 0x1bd   :  { %s8112_s10 = scalar_lea.hbm %s9417_s7, 32 }
 0x1be   :  { %p8113_p6 = scmp.ne.s32.totalorder %s9417_s7, %s8112_s10  ;;  %p8116_p7 = scmp.lt.u32.totalorder %s8112_s10, %s9417_s7 }
 0x1c0   :  { %p8118_p8 = pnand %p8116_p7, %p8113_p6 }
 0x1c2   :  { %8121 = shalt.err (!%p8118_p8)
}
 0x1c3   :  { %s8122_s25 = scalar_lea.vmem %s295_s2, 32  ;;  %p8127_p10 = scmp.lt.s32.totalorder %s295_s2, %s295_s2 }
 0x1c4   :  { %p8123_p9 = scmp.ne.s32.totalorder %s295_s2, %s8122_s25  ;;  %p8128_p11 = scmp.lt.s32.totalorder %s8122_s25, %s8122_s25 }
 0x1c6   :  { %p8129_p12 = por %p8128_p11, %p8127_p10 }
 0x1c8   :  { %p8130_p13 = pnand %p8129_p12, %p8123_p9 }
 0x1ca   :  { %8133 = shalt.err (!%p8130_p13)
}
 0x1cb   :  { %s9418_s11 = sld [smem:[#allocation106_spill]]  ;;  %s8422_s27 = smov [#allocation39]  }
 0x1cc   :  { %297 = dma.hbm_to_vmem [thread:$0]  %s9417_s7, 32, %s295_s2, [#allocation35]  }
 0x1cd   :  { %s313_s8 = sshll.u32 %s8422_s27, 4  ;;  %s8423_s4 = smov [#allocation42]   ;;  %s314_s8 = int_to_ptr.vmem [resolvable:$true] %s313_s8 }
 0x1ce   :  { %s336_s15 = sshll.u32 %s8423_s4, 4  ;;  %s337_s15 = int_to_ptr.vmem [resolvable:$true] %s336_s15 }
 0x1d1   :  { %s8134_s18 = scalar_lea.hbm %s9418_s11, 4096 }
 0x1d2   :  { %p8135_p0 = scmp.ne.s32.totalorder %s9418_s11, %s8134_s18  ;;  %p8138_p1 = scmp.lt.u32.totalorder %s8134_s18, %s9418_s11 }
 0x1d4   :  { %p8140_p2 = pnand %p8138_p1, %p8135_p0 }
 0x1d6   :  { %8143 = shalt.err (!%p8140_p2)
}
 0x1d7   :  { %s8144_s29 = scalar_lea.vmem %s314_s8, 4096  ;;  %p8149_p4 = scmp.lt.s32.totalorder %s314_s8, %s314_s8 }
 0x1d8   :  { %p8145_p3 = scmp.ne.s32.totalorder %s314_s8, %s8144_s29  ;;  %p8150_p5 = scmp.lt.s32.totalorder %s8144_s29, %s8144_s29 }
 0x1da   :  { %p8151_p6 = por %p8150_p5, %p8149_p4 }
 0x1dc   :  { %p8152_p7 = pnand %p8151_p6, %p8145_p3 }
 0x1de   :  { %8155 = shalt.err (!%p8152_p7)
}
 0x1df   :  { %s9419_s19 = sld [smem:[#allocation107_spill]] }
 0x1e0   :  { %319 = dma.hbm_to_vmem [thread:$0]  %s9418_s11, 4096, %s314_s8, [#allocation38], %s8410_s16, %s8410_s16, %s8411_s21  }
 0x1e5   :  { %s8156_s22 = scalar_lea.hbm %s9419_s19, 32 }
 0x1e6   :  { %p8157_p8 = scmp.ne.s32.totalorder %s9419_s19, %s8156_s22  ;;  %p8160_p9 = scmp.lt.u32.totalorder %s8156_s22, %s9419_s19 }
 0x1e8   :  { %p8162_p10 = pnand %p8160_p9, %p8157_p8 }
 0x1ea   :  { %8165 = shalt.err (!%p8162_p10)
}
 0x1eb   :  { %s8166_s0 = scalar_lea.vmem %s337_s15, 32  ;;  %p8171_p12 = scmp.lt.s32.totalorder %s337_s15, %s337_s15 }
 0x1ec   :  { %p8167_p11 = scmp.ne.s32.totalorder %s337_s15, %s8166_s0  ;;  %p8172_p13 = scmp.lt.s32.totalorder %s8166_s0, %s8166_s0 }
 0x1ee   :  { %p8173_p0 = por %p8172_p13, %p8171_p12 }
 0x1f0   :  { %p8174_p1 = pnand %p8173_p0, %p8167_p11 }
 0x1f2   :  { %8177 = shalt.err (!%p8174_p1)
}
 0x1f3   :  { %s9420_s17 = sld [smem:[#allocation108_spill]]  ;;  %s8424_s23 = smov [#allocation45]  }
 0x1f4   :  { %339 = dma.hbm_to_vmem [thread:$0]  %s9419_s19, 32, %s337_s15, [#allocation41]  }
 0x1f5   :  { %s356_s3 = sshll.u32 %s8424_s23, 4  ;;  %s8425_s30 = smov [#allocation48]   ;;  %s357_s3 = int_to_ptr.vmem [resolvable:$true] %s356_s3 }
 0x1f6   :  { %s378_s9 = sshll.u32 %s8425_s30, 4  ;;  %s379_s9 = int_to_ptr.vmem [resolvable:$true] %s378_s9 }
 0x1f9   :  { %s8178_s28 = scalar_lea.hbm %s9420_s17, 128 }
 0x1fa   :  { %p8179_p2 = scmp.ne.s32.totalorder %s9420_s17, %s8178_s28  ;;  %p8182_p3 = scmp.lt.u32.totalorder %s8178_s28, %s9420_s17 }
 0x1fc   :  { %p8184_p4 = pnand %p8182_p3, %p8179_p2 }
 0x1fe   :  { %8187 = shalt.err (!%p8184_p4)
}
 0x1ff   :  { %s8188_s14 = scalar_lea.vmem %s357_s3, 128  ;;  %p8193_p6 = scmp.lt.s32.totalorder %s357_s3, %s357_s3 }
 0x200   :  { %p8189_p5 = scmp.ne.s32.totalorder %s357_s3, %s8188_s14  ;;  %p8194_p7 = scmp.lt.s32.totalorder %s8188_s14, %s8188_s14 }
 0x202   :  { %p8195_p8 = por %p8194_p7, %p8193_p6 }
 0x204   :  { %p8196_p9 = pnand %p8195_p8, %p8189_p5 }
 0x206   :  { %8199 = shalt.err (!%p8196_p9)
}
 0x207   :  { %s9421_s1 = sld [smem:[#allocation110_spill]] }
 0x208   :  { %359 = dma.hbm_to_vmem [thread:$0]  %s9420_s17, 128, %s357_s3, [#allocation44]  }
 0x20d   :  { %s8200_s2 = scalar_lea.hbm %s9421_s1, 64 }
 0x20e   :  { %p8201_p10 = scmp.ne.s32.totalorder %s9421_s1, %s8200_s2  ;;  %p8204_p11 = scmp.lt.u32.totalorder %s8200_s2, %s9421_s1 }
 0x210   :  { %p8206_p12 = pnand %p8204_p11, %p8201_p10 }
 0x212   :  { %8209 = shalt.err (!%p8206_p12)
}
 0x213   :  { %s8210_s5 = scalar_lea.vmem %s379_s9, 64  ;;  %p8215_p0 = scmp.lt.s32.totalorder %s379_s9, %s379_s9 }
 0x214   :  { %p8211_p13 = scmp.ne.s32.totalorder %s379_s9, %s8210_s5  ;;  %p8216_p1 = scmp.lt.s32.totalorder %s8210_s5, %s8210_s5 }
 0x216   :  { %p8217_p2 = por %p8216_p1, %p8215_p0 }
 0x218   :  { %p8218_p3 = pnand %p8217_p2, %p8211_p13 }
 0x21a   :  { %8221 = shalt.err (!%p8218_p3)
}
 0x21b   :  { %s9422_s12 = sld [smem:[#allocation111_spill]]  ;;  %s8426_s7 = smov [#allocation49]  }
 0x21c   :  { %381 = dma.hbm_to_vmem [thread:$0]  %s9421_s1, 64, %s379_s9, [#allocation47]  }
 0x21d   :  { %s388_s10 = sshll.u32 %s8426_s7, 4  ;;  %s389_s10 = int_to_ptr.vmem [resolvable:$true] %s388_s10 }
 0x221   :  { %s8222_s25 = scalar_lea.hbm %s9422_s12, 16 }
 0x222   :  { %p8223_p4 = scmp.ne.s32.totalorder %s9422_s12, %s8222_s25  ;;  %p8226_p5 = scmp.lt.u32.totalorder %s8222_s25, %s9422_s12 }
 0x224   :  { %p8228_p6 = pnand %p8226_p5, %p8223_p4 }
 0x226   :  { %8231 = shalt.err (!%p8228_p6)
}
 0x227   :  { %s8232_s11 = scalar_lea.vmem %s389_s10, 16  ;;  %s8236_s27 = scalar_lea.vmem %s389_s10, 32 }
 0x228   :  { %p8233_p7 = scmp.ne.s32.totalorder %s389_s10, %s8232_s11  ;;  %p8237_p8 = scmp.lt.s32.totalorder %s389_s10, %s389_s10 }
 0x229   :  { %p8238_p9 = scmp.lt.s32.totalorder %s8236_s27, %s8232_s11 }
 0x22b   :  { %p8239_p10 = por %p8238_p9, %p8237_p8 }
 0x22d   :  { %p8240_p11 = pnand %p8239_p10, %p8233_p7 }
 0x22f   :  { %8243 = shalt.err (!%p8240_p11)
}
 0x230   :  { %391 = dma.hbm_to_vmem [thread:$0]  %s9422_s12, 16, %s389_s10, [#allocation50]  }
 0x231   :  { %8310 = dma.done.wait [#allocation12], 2048  }
 0x232   :  { %8311 = vsyncadd [#allocation12], 4294965248 }
 0x233   :  { %8312 = dma.done.wait [#allocation14], 64  }
 0x234   :  { %8313 = vsyncadd [#allocation14], 4294967232 }
 0x235   :  { %8314 = dma.done.wait [#allocation17], 8224  }
 0x236   :  { %8315 = vsyncadd [#allocation17], 4294959072 }
 0x237   :  { %8316 = dma.done.wait [#allocation20], 128  }
 0x238   :  { %8317 = vsyncadd [#allocation20], 4294967168 }
 0x239   :  { %8318 = dma.done.wait [#allocation23], 112  }
 0x23a   :  { %8319 = vsyncadd [#allocation23], 4294967184 }
 0x23b   :  { %8320 = dma.done.wait [#allocation26], 96  }
 0x23c   :  { %8321 = vsyncadd [#allocation26], 4294967200 }
 0x23d   :  { %8322 = dma.done.wait [#allocation29], 144  }
 0x23e   :  { %8323 = vsyncadd [#allocation29], 4294967152 }
 0x23f   :  { %8324 = dma.done.wait [#allocation32], 2064  }
 0x240   :  { %8325 = vsyncadd [#allocation32], 4294965232 }
 0x241   :  { %8326 = dma.done.wait [#allocation35], 64  }
 0x242   :  { %8327 = vsyncadd [#allocation35], 4294967232 }
 0x243   :  { %8328 = dma.done.wait [#allocation38], 4128  }
 0x244   :  { %8329 = vsyncadd [#allocation38], 4294963168 }
 0x245   :  { %8330 = dma.done.wait [#allocation41], 64  }
 0x246   :  { %8331 = vsyncadd [#allocation41], 4294967232 }
 0x247   :  { %8332 = dma.done.wait [#allocation44], 160  }
 0x248   :  { %8333 = vsyncadd [#allocation44], 4294967136 }
 0x249   :  { %8334 = dma.done.wait [#allocation47], 192  }
 0x24a   :  { %8335 = vsyncadd [#allocation47], 4294967104 }
 0x24b   :  { %8336 = dma.done.wait [#allocation50], 16  }
 0x24c   :  { %8337 = vsyncadd [#allocation50], 4294967280  ;;  %s475_s8 = sld [smem:[#allocation0]]   ;;  %s8427_s4 = smov 384   ;;  %v8428_v0 = vmov 0  }
 0x24d   :  { %487 = sst [smem:[#allocation52]] %s8427_s4  ;;  %818 = vmatprep.mubr.bf16.mxu0 %v8428_v0  ;;  %s8429_s15 = smov 3  }
 0x24e   :  { %489 = sst [smem:[#allocation52 + $0x1]] %s8427_s4  ;;  %s8430_s18 = smov 64  }
 0x24f   :  { %491 = sst [smem:[#allocation52 + $0x2]] %s8429_s15  ;;  %s9423_s29 = sld [smem:[#allocation112_spill]] }
 0x250   :  { %493 = sst [smem:[#allocation52 + $0x3]] %s8430_s18  ;;  %s8431_s19 = smov 2  }
 0x251   :  { %495 = sst [smem:[#allocation52 + $0x4]] %s8410_s16  ;;  %s8432_s0 = smov 192  }
 0x252   :  { %497 = sst [smem:[#allocation52 + $0x5]] %s8431_s19  ;;  %s6687_s22 = sshll.u32 %s475_s8, 26 }
 0x253   :  { %499 = sst [smem:[#allocation52 + $0x6]] %s8432_s0  ;;  %s8801_s17 = sadd.s32 134217728, %s6687_s22 }
 0x254   :  { %501 = sst [smem:[#allocation52 + $0x7]] %s8430_s18  ;;  %s8433_s23 = smov 4  }
 0x255   :  { %503 = sst [smem:[#allocation52 + $0x8]] %s8433_s23  ;;  %s8434_s3 = smov [#allocation2]  }
 0x256   :  { %s483_s30 = sshll.u32 %s8434_s3, 4  ;;  %s8435_s9 = smov [#allocation10]   ;;  %s484_s30 = int_to_ptr.vmem [resolvable:$true] %s483_s30 }
 0x257   :  { %s8436_s28 = smov [#allocation51]   ;;  %s8437_s14 = smov 1024  }
 0x258   :  { %505 = dma.general %s9423_s29, 12288, %s484_s30, %s8435_s9, %s8436_s28, [#allocation52], %s8801_s17, 0  }
 0x259   :  { %522 = sst [smem:[#allocation54]] %s8437_s14  ;;  %s9424_s1 = sld [smem:[#allocation113_spill]] }
 0x25a   :  { %524 = sst [smem:[#allocation54 + $0x1]] %s8437_s14  ;;  %s8438_s2 = smov [#allocation3]  }
 0x25b   :  { %526 = sst [smem:[#allocation54 + $0x2]] %s8411_s21  ;;  %s518_s5 = sshll.u32 %s8438_s2, 4  ;;  %s519_s5 = int_to_ptr.vmem [resolvable:$true] %s518_s5 }
 0x25c   :  { %528 = sst [smem:[#allocation54 + $0x3]] %s8430_s18  ;;  %s8439_s12 = smov 512  }
 0x25d   :  { %530 = sst [smem:[#allocation54 + $0x4]] %s8410_s16  ;;  %s8440_s7 = smov [#allocation4]  }
 0x25e   :  { %532 = sst [smem:[#allocation54 + $0x5]] %s8431_s19  ;;  %s549_s10 = sshll.u32 %s8440_s7, 4  ;;  %s550_s10 = int_to_ptr.vmem [resolvable:$true] %s549_s10 }
 0x25f   :  { %534 = sst [smem:[#allocation54 + $0x6]] %s8439_s12  ;;  %s8441_s25 = smov [#allocation10 + $0x1]  }
 0x260   :  { %536 = sst [smem:[#allocation54 + $0x7]] %s8430_s18  ;;  %s8442_s27 = smov [#allocation53]  }
 0x261   :  { %538 = sst [smem:[#allocation54 + $0x8]] %s8433_s23  ;;  %s9425_s11 = sld [smem:[#allocation114_spill]] }
 0x262   :  { %540 = dma.general %s9424_s1, 24576, %s519_s5, %s8441_s25, %s8442_s27, [#allocation54], %s8801_s17, 0  }
 0x263   :  { %569 = sst [smem:[#allocation60]] %s8437_s14  ;;  %s8443_s8 = smov [#allocation5]  }
 0x264   :  { %571 = sst [smem:[#allocation60 + $0x1]] %s8437_s14  ;;  %s8820_s4 = sshll.u32 %s8443_s8, 4  ;;  %s566_s4 = int_to_ptr.vmem [resolvable:$true] %s8820_s4 }
 0x265   :  { %573 = sst [smem:[#allocation60 + $0x2]] %s8411_s21 }
 0x266   :  { %575 = sst [smem:[#allocation60 + $0x3]] %s8430_s18 }
 0x267   :  { %577 = sst [smem:[#allocation60 + $0x4]] %s8410_s16  ;;  %s8244_s15 = scalar_lea.hbm %s9425_s11, 8192 }
 0x268   :  { %579 = sst [smem:[#allocation60 + $0x5]] %s8431_s19  ;;  %p8245_p12 = scmp.ne.s32.totalorder %s9425_s11, %s8244_s15 }
 0x269   :  { %581 = sst [smem:[#allocation60 + $0x6]] %s8439_s12  ;;  %p8248_p13 = scmp.lt.u32.totalorder %s8244_s15, %s9425_s11 }
 0x26a   :  { %583 = sst [smem:[#allocation60 + $0x7]] %s8430_s18 }
 0x26b   :  { %585 = sst [smem:[#allocation60 + $0x8]] %s8433_s23  ;;  %p8250_p0 = pnand %p8248_p13, %p8245_p12 }
 0x26d   :  { %8253 = shalt.err (!%p8250_p0)  }
 0x26e   :  { %s8254_s29 = scalar_lea.vmem %s550_s10, 8192  ;;  %p8259_p2 = scmp.lt.s32.totalorder %s550_s10, %s550_s10 }
 0x26f   :  { %p8255_p1 = scmp.ne.s32.totalorder %s550_s10, %s8254_s29  ;;  %p8260_p3 = scmp.lt.s32.totalorder %s8254_s29, %s8254_s29 }
 0x271   :  { %p8261_p4 = por %p8260_p3, %p8259_p2 }
 0x273   :  { %p8262_p5 = pnand %p8261_p4, %p8255_p1 }
 0x275   :  { %8265 = shalt.err (!%p8262_p5)  }
 0x276   :  { %s9426_s22 = sld [smem:[#allocation115_spill]]  ;;  %s8444_s0 = smov [#allocation10 + $0x3]  }
 0x277   :  { %552 = dma.hbm_to_vmem [thread:$0]  %s9425_s11, 8192, %s550_s10, [#allocation10 + $0x2] }
 0x278   :  { %s8445_s3 = smov [#allocation59]   ;;  %s8446_s9 = smov [#allocation6]  }
 0x279   :  { %s596_s28 = sshll.u32 %s8446_s9, 4  ;;  %s8447_s1 = smov [#allocation7]   ;;  %s597_s28 = int_to_ptr.vmem [resolvable:$true] %s596_s28 }
 0x27a   :  { %s612_s2 = sshll.u32 %s8447_s1, 4  ;;  %s613_s2 = int_to_ptr.vmem [resolvable:$true] %s612_s2 }
 0x27c   :  { %587 = dma.general %s9426_s22, 16384, %s566_s4, %s8444_s0, %s8445_s3, [#allocation60], %s8801_s17, 0  }
 0x27d   :  { %s9427_s30 = sld [smem:[#allocation116_spill]]  ;;  %616 = sst [smem:[#allocation64]] %s8437_s14 }
 0x27e   :  { %618 = sst [smem:[#allocation64 + $0x1]] %s8437_s14 }
 0x27f   :  { %620 = sst [smem:[#allocation64 + $0x2]] %s8411_s21 }
 0x280   :  { %622 = sst [smem:[#allocation64 + $0x3]] %s8430_s18 }
 0x281   :  { %624 = sst [smem:[#allocation64 + $0x4]] %s8410_s16 }
 0x282   :  { %626 = sst [smem:[#allocation64 + $0x5]] %s8431_s19 }
 0x283   :  { %628 = sst [smem:[#allocation64 + $0x6]] %s8439_s12  ;;  %s8266_s14 = scalar_lea.hbm %s9427_s30, 8192 }
 0x284   :  { %630 = sst [smem:[#allocation64 + $0x7]] %s8430_s18  ;;  %p8267_p6 = scmp.ne.s32.totalorder %s9427_s30, %s8266_s14 }
 0x285   :  { %632 = sst [smem:[#allocation64 + $0x8]] %s8433_s23  ;;  %p8270_p7 = scmp.lt.u32.totalorder %s8266_s14, %s9427_s30 }
 0x287   :  { %p8272_p8 = pnand %p8270_p7, %p8267_p6 }
 0x289   :  { %8275 = shalt.err (!%p8272_p8)  }
 0x28a   :  { %s8276_s21 = scalar_lea.vmem %s597_s28, 8192  ;;  %p8281_p10 = scmp.lt.s32.totalorder %s597_s28, %s597_s28 }
 0x28b   :  { %p8277_p9 = scmp.ne.s32.totalorder %s597_s28, %s8276_s21  ;;  %p8282_p11 = scmp.lt.s32.totalorder %s8276_s21, %s8276_s21 }
 0x28d   :  { %p8283_p12 = por %p8282_p11, %p8281_p10 }
 0x28f   :  { %p8284_p13 = pnand %p8283_p12, %p8277_p9 }
 0x291   :  { %8287 = shalt.err (!%p8284_p13)  }
 0x292   :  { %599 = dma.hbm_to_vmem [thread:$0]  %s9427_s30, 8192, %s597_s28, [#allocation10 + $0x4]  ;;  %v8453_v20 = vmov 1966171168   ;;  %v843_v22 = vlaneseq  ;;  %v8454_v38 = vmov 0.0   ;;  %vm1036_vm2 = vcmask 130048  }
 0x293   :  { %s8448_s5 = smov [#allocation10 + $0x5]   ;;  %s8449_s7 = smov [#allocation63]   ;;  %v841_v21 = vunpack.c.l.s4 %v8453_v20  ;;  %vm8455_vm5 = vmmov 0  }
 0x294   :  { %634 = dma.general %s8665_s24, 16384, %s613_s2, %s8448_s5, %s8449_s7, [#allocation64], %s8801_s17, 0   ;;  %v8864_v25 = vshrl.u32 %v843_v22, 7 }
 0x295   :  { %651 = sst [smem:[#allocation66]] %s8439_s12  ;;  %s8450_s10 = smov [#allocation8]   ;;  %v842_v24 = vunpack.c.0.s8 %v841_v21 }
 0x296   :  { %653 = sst [smem:[#allocation66 + $0x1]] %s8439_s12  ;;  %s647_s25 = sshll.u32 %s8450_s10, 4  ;;  %v8880_v41 = vsub.s32 1, %v8864_v25  ;;  %v8883_v42 = vsub.s32 0, %v8864_v25  ;;  %s648_s25 = int_to_ptr.vmem [resolvable:$true] %s647_s25 }
 0x297   :  { %655 = sst [smem:[#allocation66 + $0x2]] %s8433_s23  ;;  %s8451_s24 = smov [#allocation10 + $0x6]   ;;  %v8867_v27 = vsub.s32 %v842_v24, %v8864_v25 }
 0x298   :  { %657 = sst [smem:[#allocation66 + $0x3]] %s8430_s18  ;;  %s8452_s11 = smov [#allocation65]  }
 0x299   :  { %659 = sst [smem:[#allocation66 + $0x4]] %s8410_s16 }
 0x29a   :  { %661 = sst [smem:[#allocation66 + $0x5]] %s8431_s19  ;;  %s8288_s19 = scalar_lea.hbm %s8675_s13, 4096 }
 0x29b   :  { %663 = sst [smem:[#allocation66 + $0x6]] %s8414_s26  ;;  %s8456_s26 = smov [#allocation9]  }
 0x29c   :  { %665 = sst [smem:[#allocation66 + $0x7]] %s8430_s18  ;;  %s678_s18 = sshll.u32 %s8456_s26, 4  ;;  %s679_s18 = int_to_ptr.vmem [resolvable:$true] %s678_s18 }
 0x29d   :  { %667 = sst [smem:[#allocation66 + $0x8]] %s8433_s23  ;;  %p8289_p0 = scmp.ne.s32.totalorder %s8675_s13, %s8288_s19 }
 0x29e   :  { %669 = dma.general %s8670_s6, 32768, %s648_s25, %s8451_s24, %s8452_s11, [#allocation66], %s8801_s17, 0  }
 0x29f   :  { %v7408_v1 = vld [vmem:[#allocation11 + $0x4] ss:$8 sps:$4 sm:$0xff]   ;;  %v7410_v2 = vld [vmem:[#allocation11] ss:$8 sps:$4 sm:$0xff]   ;;  %v7411_v3 = vld [vmem:[#allocation11 + $0x14] ss:$8 sps:$4 sm:$0xff]   ;;  %p8292_p1 = scmp.lt.u32.totalorder %s8288_s19, %s8675_s13 }
 0x2a0   :  { %786 = vmatprep.subr.bf16.mxu0 %v7408_v1  ;;  %v7413_v4 = vld [vmem:[#allocation11 + $0x10] ss:$8 sps:$4 sm:$0xff]   ;;  %v7414_v5 = vld [vmem:[#allocation11 + $0x24] ss:$8 sps:$4 sm:$0xff]   ;;  %v7416_v6 = vld [vmem:[#allocation11 + $0x20] ss:$8 sps:$4 sm:$0xff]  }
 0x2a1   :  { %787 = vmatpush1.bf16.msra.mxu0 %v7410_v2  ;;  %v7417_v7 = vld [vmem:[#allocation11 + $0x34] ss:$8 sps:$4 sm:$0xff]   ;;  %v7419_v8 = vld [vmem:[#allocation11 + $0x30] ss:$8 sps:$4 sm:$0xff]   ;;  %s9428_s16 = sld [smem:[#allocation91_spill]]  ;;  %s9429_s6 = sld [smem:[#allocation92_spill]] }
 0x2a2   :  { %788 = vmatprep.subr.bf16.mxu0 %v7411_v3  ;;  %v7420_v9 = vld [vmem:[#allocation11 + $0x44] ss:$8 sps:$4 sm:$0xff]   ;;  %v7422_v10 = vld [vmem:[#allocation11 + $0x40] ss:$8 sps:$4 sm:$0xff]   ;;  %v7423_v11 = vld [vmem:[#allocation11 + $0x54] ss:$8 sps:$4 sm:$0xff]   ;;  %p8294_p2 = pnand %p8292_p1, %p8289_p0 }
 0x2a3   :  { %v7425_v12 = vld [vmem:[#allocation11 + $0x50] ss:$8 sps:$4 sm:$0xff]   ;;  %v7426_v13 = vld [vmem:[#allocation11 + $0x64] ss:$8 sps:$4 sm:$0xff]   ;;  %v7428_v14 = vld [vmem:[#allocation11 + $0x60] ss:$8 sps:$4 sm:$0xff]  }
 0x2a4   :  { %v7429_v15 = vld [vmem:[#allocation11 + $0x74] ss:$8 sps:$4 sm:$0xff]   ;;  %v7431_v16 = vld [vmem:[#allocation11 + $0x70] ss:$8 sps:$4 sm:$0xff]  }
 0x2a5   :  { %789 = vmatpush1.bf16.msra.mxu0 %v7413_v4  ;;  %v6714_v23 = vld.sshfl [vmem:[#allocation15] sm:$0x11 pattern:$0x75316420] }
 0x2a6   :  { %790 = vmatprep.subr.bf16.mxu0 %v7414_v5  ;;  %v904_v26 = vcombine.high %v6714_v23, %v6714_v23  ;;  %v6713_v29 = vld.sshfl [vmem:[#allocation13] sm:$0x11 pattern:$0x75316420]  ;;  %v911_v39 = vrot.slane %v6714_v23, %v8867_v27 }
 0x2a7   :  { %v684_v17 = vld [vmem:[%s9428_s16] sm:$0xff]  ;;  %v685_v18 = vld [vmem:[%s9428_s16 + $0x8] sm:$0xff]  ;;  %v839_v30 = vcombine.high %v6713_v29, %v6713_v29  ;;  %v846_v40 = vrot.slane %v6713_v29, %v8867_v27 }
 0x2a8   :  { %v705_v19 = vpack.c.bf16 %v685_v18, %v684_v17  ;;  %v918_v28 = vrot.slane %v904_v26, %v8867_v27  ;;  %v8893_v63 = vld [vmem:[%s9429_s6] sm:$0xff] }
 0x2a9   :  { %791 = vmatpush1.bf16.msra.mxu0 %v7416_v6  ;;  %v853_v31 = vrot.slane %v839_v30, %v8867_v27 }
 0x2aa   :  { %792 = vmatprep.subr.bf16.mxu0 %v7417_v7  ;;  %953 = vmatprep.mubr.bf16.mxu1 %v918_v28 }
 0x2ad   :  { %793 = vmatpush1.bf16.msra.mxu0 %v7419_v8 }
 0x2ae   :  { %794 = vmatprep.subr.bf16.mxu0 %v7420_v9 }
 0x2b1   :  { %795 = vmatpush1.bf16.msra.mxu0 %v7422_v10  ;;  %v8897_v10 = vld [vmem:[%s9429_s6 + $0x8] sm:$0xff] }
 0x2b2   :  { %796 = vmatprep.subr.bf16.mxu0 %v7423_v11 }
 0x2b5   :  { %797 = vmatpush1.bf16.msra.mxu0 %v7425_v12 }
 0x2b6   :  { %798 = vmatprep.subr.bf16.mxu0 %v7426_v13 }
 0x2b9   :  { %799 = vmatpush1.bf16.msra.mxu0 %v7428_v14 }
 0x2ba   :  { %800 = vmatprep.subr.bf16.mxu0 %v7429_v15 }
 0x2bd   :  { %801 = vmatpush1.bf16.msra.mxu0 %v7431_v16 }
 0x2c0   :  { %819 = vmatmul.mubr.bf16.vlgmr.msra.gmra.mrb[0].mxu0 %v705_v19 }
 0x2c1   :  { %888 = vmatprep.mubr.bf16.mxu0 %v853_v31 }
 0x393   :  { %v820_v32 = vpop.f32.mrb[0].mxu0 }
 0x394   :  { %v822_v33 = vpop.f32.mrb[1].mxu0 }
 0x395   :  { %v824_v34 = vpop.f32.mrb[2].mxu0 }
 0x396   :  { %v829_v35 = vpack.c.bf16 %v824_v34, %v820_v32  ;;  %v826_v36 = vpop.f32.mrb[3].mxu0 }
 0x397   :  { %v8871_v37 = vpack.c.bf16 %v826_v36, %v822_v33 }
 0x399   :  { %856 = vmatprep.subr.bf16.mxu0 %v8871_v37  ;;  %921 = vmatprep.subr.bf16.mxu1 %v8871_v37 }
 0x39a   :  { %857 = vmatpush1.bf16.xpose.msra.mxu0 %v829_v35  ;;  %922 = vmatpush1.bf16.xpose.msra.mxu1 %v829_v35 }
 0x39b   :  { %7159 = vmatprep.subr.bf16.mxu1 %v8454_v38 }
 0x3a1   :  { %954 = vmatmul.mubr.bf16.vlgmr.msra.gmra.mrb[0].mxu1 %v911_v39  ;;  %889 = vmatmul.mubr.bf16.vlgmr.msra.gmra.mrb[4].mxu0 %v846_v40 }
 0x3a2   :  { %7160 = vmatpush3.bf16.msra.mxu1 %v829_v35  ;;  %7161 = vmatprep.mubr.msk.bf16.mxu1 %vm8455_vm5, %v8454_v38 }
 0x3a3   :  { %7165 = vmatprep.subr.bf16.mxu1 %v8454_v38 }
 0x474   :  { %v955_v43 = vpop.f32.mrb[0].mxu1  ;;  %v890_v44 = vpop.f32.mrb[4].mxu0 }
 0x475   :  { %v957_v45 = vpop.f32.mrb[1].mxu1  ;;  %v975_v46 = vrot.slane %v955_v43, %v8880_v41  ;;  %v964_v47 = vrot.slane %v955_v43, %v8883_v42  ;;  %v892_v48 = vpop.f32.mrb[5].mxu0  ;;  %v990_v53 = vrot.slane %v890_v44, %v8867_v27 }
 0x476   :  { %v958_v49 = vpop.f32.mrb[2].mxu1  ;;  %v893_v50 = vpop.f32.mrb[6].mxu0  ;;  %v7432_v48 = vld [vmem:[#allocation18] ss:$16 sps:$4 sm:$0xff]  }
 0x477   :  { %977 = vbcast.lane.b32.xlu1 %v975_v46, 256  ;;  %966 = vbcast.lane.b32.xlu0 %v964_v47, 256  ;;  %v959_v51 = vpop.f32.mrb[3].mxu1  ;;  %v894_v52 = vpop.f32.mrb[7].mxu0  ;;  %v991_v54 = vcombine.high %v990_v53, %v990_v53  ;;  %v998_v55 = vrot.slane %v990_v53, %v8867_v27  ;;  %v7434_v49 = vld [vmem:[#allocation18 + $0x4] ss:$16 sps:$4 sm:$0xff]  }
 0x478   :  { %v7440_v50 = vld [vmem:[#allocation18 + $0x24] ss:$16 sps:$4 sm:$0xff]   ;;  %1579 = vmatprep.subr.bf16.mxu0 %v7434_v49  ;;  %v7438_v51 = vld [vmem:[#allocation18 + $0x20] ss:$16 sps:$4 sm:$0xff]   ;;  %v7489_v49 = vld [vmem:[#allocation18 + $0x128] ss:$16 sps:$4 sm:$0xff]  }
 0x479   :  { %v1005_v56 = vrot.slane %v991_v54, %v8867_v27  ;;  %v1009_v58 = vrot.slane %v998_v55, %v8883_v42  ;;  %1580 = vmatpush1.bf16.msra.mxu0 %v7432_v48  ;;  %v7446_v52 = vld [vmem:[#allocation18 + $0x44] ss:$16 sps:$4 sm:$0xff]   ;;  %v7444_v53 = vld [vmem:[#allocation18 + $0x40] ss:$16 sps:$4 sm:$0xff]   ;;  %v7491_v48 = vld [vmem:[#allocation18 + $0x12c] ss:$16 sps:$4 sm:$0xff]  }
 0x47a   :  { %1581 = vmatprep.subr.bf16.mxu0 %v7440_v50  ;;  %v7452_v54 = vld [vmem:[#allocation18 + $0x64] ss:$16 sps:$4 sm:$0xff]   ;;  %v7450_v55 = vld [vmem:[#allocation18 + $0x60] ss:$16 sps:$4 sm:$0xff]   ;;  %v7497_v50 = vld [vmem:[#allocation18 + $0x14c] ss:$16 sps:$4 sm:$0xff]  }
 0x47b   :  { %981 = vbcast.lane.b32.xlu1 %v975_v46, 264  ;;  %970 = vbcast.lane.b32.xlu0 %v964_v47, 264  ;;  %v1013_v57 = vrot.slane %v1005_v56, %v8883_v42  ;;  %v7458_v56 = vld [vmem:[#allocation18 + $0x84] ss:$16 sps:$4 sm:$0xff]  }
 0x47d   :  { %1582 = vmatpush1.bf16.msra.mxu0 %v7438_v51  ;;  %v7495_v51 = vld [vmem:[#allocation18 + $0x148] ss:$16 sps:$4 sm:$0xff]  }
 0x47e   :  { %1583 = vmatprep.subr.bf16.mxu0 %v7446_v52  ;;  %v7503_v52 = vld [vmem:[#allocation18 + $0x16c] ss:$16 sps:$4 sm:$0xff]  }
 0x481   :  { %1584 = vmatpush1.bf16.msra.mxu0 %v7444_v53  ;;  %v7501_v53 = vld [vmem:[#allocation18 + $0x168] ss:$16 sps:$4 sm:$0xff]  }
 0x482   :  { %1585 = vmatprep.subr.bf16.mxu0 %v7452_v54  ;;  %v7506_v54 = vld [vmem:[#allocation18 + $0x184] ss:$16 sps:$4 sm:$0xff]  }
 0x485   :  { %1586 = vmatpush1.bf16.msra.mxu0 %v7450_v55  ;;  %v7509_v55 = vld [vmem:[#allocation18 + $0x18c] ss:$16 sps:$4 sm:$0xff]  }
 0x486   :  { %1587 = vmatprep.subr.bf16.mxu0 %v7458_v56  ;;  %v7504_v56 = vld [vmem:[#allocation18 + $0x180] ss:$16 sps:$4 sm:$0xff]  }
 0x4e9   :  { %v978_v59 = vpop.permute.xlu1 %977  ;;  %v967_v60 = vpop.permute.xlu0 %966 }
 0x4ea   :  { %v1018_v61 = vadd.f32 %v1013_v57, %v978_v59  ;;  %v1016_v62 = vadd.f32 %v1009_v58, %v967_v60  ;;  %v7462_v59 = vld [vmem:[#allocation18 + $0xa0] ss:$16 sps:$4 sm:$0xff]   ;;  %v7470_v60 = vld [vmem:[#allocation18 + $0xc4] ss:$16 sps:$4 sm:$0xff]  }
 0x4ec   :  { %vm1022_vm0 = vcmp.ge.f32.partialorder %v1018_v61, 0.0  ;;  %v1026_v1 = vmul.f32 0.2, %v1018_v61  ;;  %vm1020_vm1 = vcmp.ge.f32.partialorder %v1016_v62, 0.0  ;;  %v1024_v2 = vmul.f32 0.2, %v1016_v62 }
 0x4ed   :  { %v982_v3 = vpop.permute.xlu1 %981  ;;  %v971_v4 = vpop.permute.xlu0 %970 }
 0x4ee   :  { %v1019_v5 = vadd.f32 %v1013_v57, %v982_v3  ;;  %v1017_v6 = vadd.f32 %v1009_v58, %v971_v4  ;;  %v1028_v7 = vsel %vm1020_vm1, %v1016_v62, %v1024_v2  ;;  %v1030_v8 = vsel %vm1022_vm0, %v1018_v61, %v1026_v1  ;;  %v7456_v57 = vld [vmem:[#allocation18 + $0x80] ss:$16 sps:$4 sm:$0xff]   ;;  %v7464_v58 = vld [vmem:[#allocation18 + $0xa4] ss:$16 sps:$4 sm:$0xff]  }
 0x4ef   :  { %v1032_v9 = vadd.f32 %v1028_v7, %v8893_v63  ;;  %v1034_v14 = vadd.f32 %v1030_v8, %v8893_v63  ;;  %1588 = vmatpush1.bf16.msra.mxu0 %v7456_v57  ;;  %v7468_v61 = vld [vmem:[#allocation18 + $0xc0] ss:$16 sps:$4 sm:$0xff]   ;;  %v7476_v62 = vld [vmem:[#allocation18 + $0xe4] ss:$16 sps:$4 sm:$0xff]   ;;  %v7507_v57 = vld [vmem:[#allocation18 + $0x188] ss:$16 sps:$4 sm:$0xff]  }
 0x4f0   :  { %vm1023_vm3 = vcmp.ge.f32.partialorder %v1019_v5, 0.0  ;;  %v1027_v11 = vmul.f32 0.2, %v1019_v5  ;;  %vm1021_vm4 = vcmp.ge.f32.partialorder %v1017_v6, 0.0  ;;  %v1025_v12 = vmul.f32 0.2, %v1017_v6  ;;  %1589 = vmatprep.subr.bf16.mxu0 %v7464_v58 }
 0x4f1   :  { %v1037_v13 = vsel %vm1036_vm2, %v1032_v9, -inf  ;;  %v1043_v19 = vsel %vm1036_vm2, %v1034_v14, -inf  ;;  %v7474_v1 = vld [vmem:[#allocation18 + $0xe0] ss:$16 sps:$4 sm:$0xff]   ;;  %v7482_v2 = vld [vmem:[#allocation18 + $0x104] ss:$16 sps:$4 sm:$0xff]  }
 0x4f2   :  { %1038 = vmax.xlane.f32.xlu0 %v1037_v13  ;;  %v1029_v15 = vsel %vm1021_vm4, %v1017_v6, %v1025_v12  ;;  %v1031_v16 = vsel %vm1023_vm3, %v1019_v5, %v1027_v11  ;;  %v7480_v3 = vld [vmem:[#allocation18 + $0x100] ss:$16 sps:$4 sm:$0xff]   ;;  %v7488_v4 = vld [vmem:[#allocation18 + $0x124] ss:$16 sps:$4 sm:$0xff]  }
 0x4f3   :  { %v1033_v17 = vadd.f32 %v1029_v15, %v8897_v10  ;;  %v1035_v20 = vadd.f32 %v1031_v16, %v8897_v10  ;;  %1590 = vmatpush1.bf16.msra.mxu0 %v7462_v59  ;;  %v7486_v5 = vld [vmem:[#allocation18 + $0x120] ss:$16 sps:$4 sm:$0xff]   ;;  %v7494_v6 = vld [vmem:[#allocation18 + $0x144] ss:$16 sps:$4 sm:$0xff]   ;;  %v7515_v59 = vld [vmem:[#allocation18 + $0x1ac] ss:$16 sps:$4 sm:$0xff]  }
 0x4f4   :  { %1591 = vmatprep.subr.bf16.mxu0 %v7470_v60  ;;  %v7492_v7 = vld [vmem:[#allocation18 + $0x140] ss:$16 sps:$4 sm:$0xff]   ;;  %v7500_v8 = vld [vmem:[#allocation18 + $0x164] ss:$16 sps:$4 sm:$0xff]  }
 0x4f5   :  { %v1040_v18 = vsel %vm1036_vm2, %v1033_v17, -inf  ;;  %v1046_v21 = vsel %vm1036_vm2, %v1035_v20, -inf  ;;  %v7512_v58 = vld [vmem:[#allocation18 + $0x1a4] ss:$16 sps:$4 sm:$0xff]   ;;  %v7510_v60 = vld [vmem:[#allocation18 + $0x1a0] ss:$16 sps:$4 sm:$0xff]  }
 0x4f6   :  { %1041 = vmax.xlane.f32.xlu1 %v1040_v18  ;;  %1044 = vmax.xlane.f32.xlu0 %v1043_v19 }
 0x4f7   :  { %1592 = vmatpush1.bf16.msra.mxu0 %v7468_v61  ;;  %v7513_v61 = vld [vmem:[#allocation18 + $0x1a8] ss:$16 sps:$4 sm:$0xff]  }
 0x4f8   :  { %1593 = vmatprep.subr.bf16.mxu0 %v7476_v62  ;;  %v7518_v62 = vld [vmem:[#allocation18 + $0x1c4] ss:$16 sps:$4 sm:$0xff]  }
 0x4fa   :  { %1047 = vmax.xlane.f32.xlu0 %v1046_v21 }
 0x4fb   :  { %1594 = vmatpush1.bf16.msra.mxu0 %v7474_v1  ;;  %v7521_v1 = vld [vmem:[#allocation18 + $0x1cc] ss:$16 sps:$4 sm:$0xff]  }
 0x4fc   :  { %1595 = vmatprep.subr.bf16.mxu0 %v7482_v2  ;;  %v7516_v2 = vld [vmem:[#allocation18 + $0x1c0] ss:$16 sps:$4 sm:$0xff]  }
 0x4ff   :  { %1596 = vmatpush1.bf16.msra.mxu0 %v7480_v3  ;;  %v7519_v3 = vld [vmem:[#allocation18 + $0x1c8] ss:$16 sps:$4 sm:$0xff]  }
 0x500   :  { %1597 = vmatprep.subr.bf16.mxu0 %v7488_v4  ;;  %v7524_v4 = vld [vmem:[#allocation18 + $0x1e4] ss:$16 sps:$4 sm:$0xff]  }
 0x503   :  { %1598 = vmatpush1.bf16.msra.mxu0 %v7486_v5  ;;  %v7527_v5 = vld [vmem:[#allocation18 + $0x1ec] ss:$16 sps:$4 sm:$0xff]  }
 0x504   :  { %1599 = vmatprep.subr.bf16.mxu0 %v7494_v6  ;;  %v7522_v6 = vld [vmem:[#allocation18 + $0x1e0] ss:$16 sps:$4 sm:$0xff]  }
 0x507   :  { %1600 = vmatpush1.bf16.msra.mxu0 %v7492_v7  ;;  %v7525_v7 = vld [vmem:[#allocation18 + $0x1e8] ss:$16 sps:$4 sm:$0xff]  }
 0x508   :  { %1601 = vmatprep.subr.bf16.mxu0 %v7500_v8  ;;  %v704_v8 = vld [vmem:[#allocation16] sm:$0x3] }
 0x57f   :  { %v1039_v22 = vpop.xlane.xlu0 %1038 }
 0x580   :  { %v1049_v23 = vsub.f32 %v1032_v9, %v1039_v22  ;;  %v7498_v9 = vld [vmem:[#allocation18 + $0x160] ss:$16 sps:$4 sm:$0xff]  }
 0x581   :  { %1602 = vmatpush1.bf16.msra.mxu0 %v7498_v9  ;;  %v1175_v9 = vrot.slane %v704_v8, %v8883_v42 }
 0x582   :  { %v1053_v24 = vmul.f32 1.442695, %v1049_v23  ;;  %1603 = vmatprep.subr.bf16.mxu0 %v7506_v54 }
 0x583   :  { %v1042_v26 = vpop.xlane.xlu1 %1041  ;;  %v1045_v28 = vpop.xlane.xlu0 %1044 }
 0x584   :  { %7528 = vpow2.f32 %v1053_v24  ;;  %v1050_v29 = vsub.f32 %v1033_v17, %v1042_v26  ;;  %v1051_v30 = vsub.f32 %v1034_v14, %v1045_v28  ;;  %v7435_v26 = vld [vmem:[#allocation18 + $0x8] ss:$16 sps:$4 sm:$0xff]  }
 0x585   :  { %1604 = vmatpush1.bf16.msra.mxu0 %v7504_v56 }
 0x586   :  { %v1055_v31 = vmul.f32 1.442695, %v1050_v29  ;;  %v1057_v32 = vmul.f32 1.442695, %v1051_v30  ;;  %v7443_v29 = vld [vmem:[#allocation18 + $0x2c] ss:$16 sps:$4 sm:$0xff]   ;;  %1605 = vmatprep.subr.bf16.mxu0 %v7512_v58 }
 0x587   :  { %v1048_v33 = vpop.xlane.xlu0 %1047  ;;  %v7441_v30 = vld [vmem:[#allocation18 + $0x28] ss:$16 sps:$4 sm:$0xff]  }
 0x588   :  { %7530 = vpow2.f32 %v1055_v31  ;;  %v1052_v34 = vsub.f32 %v1035_v20, %v1048_v33  ;;  %v7437_v20 = vld [vmem:[#allocation18 + $0xc] ss:$16 sps:$4 sm:$0xff]   ;;  %v7453_v33 = vld [vmem:[#allocation18 + $0x68] ss:$16 sps:$4 sm:$0xff]  }
 0x589   :  { %7532 = vpow2.f32 %v1057_v32  ;;  %v7449_v31 = vld [vmem:[#allocation18 + $0x4c] ss:$16 sps:$4 sm:$0xff]   ;;  %v7447_v32 = vld [vmem:[#allocation18 + $0x48] ss:$16 sps:$4 sm:$0xff]   ;;  %1606 = vmatpush1.bf16.msra.mxu0 %v7510_v60 }
 0x58a   :  { %v1059_v35 = vmul.f32 1.442695, %v1052_v34  ;;  %v7461_v34 = vld [vmem:[#allocation18 + $0x8c] ss:$16 sps:$4 sm:$0xff]   ;;  %1607 = vmatprep.subr.bf16.mxu0 %v7518_v62 }
 0x58c   :  { %7534 = vpow2.f32 %v1059_v35  ;;  %v7459_v35 = vld [vmem:[#allocation18 + $0x88] ss:$16 sps:$4 sm:$0xff]  }
 0x58d   :  { %1608 = vmatpush1.bf16.msra.mxu0 %v7516_v2 }
 0x58e   :  { %v8906_v36 = vpop.eup %7528  ;;  %1609 = vmatprep.subr.bf16.mxu0 %v7524_v4 }
 0x58f   :  { %v1061_v39 = vsel %vm1036_vm2, %v8906_v36, 0.0 }
 0x590   :  { %1062 = vadd.xlane.f32.xlu1 %v1061_v39  ;;  %v7465_v39 = vld [vmem:[#allocation18 + $0xa8] ss:$16 sps:$4 sm:$0xff]  }
 0x591   :  { %1610 = vmatpush1.bf16.msra.mxu0 %v7522_v6 }
 0x592   :  { %v8910_v40 = vpop.eup %7530 }
 0x593   :  { %v8912_v43 = vpop.eup %7532  ;;  %v1064_v44 = vsel %vm1036_vm2, %v8910_v40, 0.0 }
 0x594   :  { %1065 = vadd.xlane.f32.xlu0 %v1064_v44  ;;  %v1067_v45 = vsel %vm1036_vm2, %v8912_v43, 0.0  ;;  %v7479_v44 = vld [vmem:[#allocation18 + $0xec] ss:$16 sps:$4 sm:$0xff]  }
 0x595   :  { %1068 = vadd.xlane.f32.xlu1 %v1067_v45  ;;  %v7477_v45 = vld [vmem:[#allocation18 + $0xe8] ss:$16 sps:$4 sm:$0xff]  }
 0x596   :  { %v8918_v46 = vpop.eup %7534 }
 0x597   :  { %v1070_v47 = vsel %vm1036_vm2, %v8918_v46, 0.0 }
 0x598   :  { %1071 = vadd.xlane.f32.xlu0 %v1070_v47  ;;  %v7483_v47 = vld [vmem:[#allocation18 + $0x108] ss:$16 sps:$4 sm:$0xff]  }
 0x61d   :  { %v1063_v11 = vpop.xlane.xlu1 %1062 }
 0x61e   :  { %7536 = vrcp.f32 %v1063_v11 }
 0x621   :  { %v1066_v12 = vpop.xlane.xlu0 %1065 }
 0x622   :  { %7538 = vrcp.f32 %v1066_v12  ;;  %v1069_v13 = vpop.xlane.xlu1 %1068 }
 0x625   :  { %v1072_v14 = vpop.xlane.xlu0 %1071 }
 0x626   :  { %7540 = vrcp.f32 %v1072_v14 }
 0x627   :  { %7542 = vrcp.f32 %v1069_v13 }
 0x628   :  { %v7537_v15 = vpop.eup %7536 }
 0x629   :  { %v1077_v17 = vmul.f32 %v7537_v15, %v8906_v36  ;;  %v7467_v36 = vld [vmem:[#allocation18 + $0xac] ss:$16 sps:$4 sm:$0xff]  }
 0x62c   :  { %v7539_v16 = vpop.eup %7538 }
 0x62d   :  { %v1078_v18 = vmul.f32 %v7539_v16, %v8910_v40  ;;  %v7473_v40 = vld [vmem:[#allocation18 + $0xcc] ss:$16 sps:$4 sm:$0xff]  }
 0x62f   :  { %v1081_v19 = vpack.c.bf16 %v1078_v18, %v1077_v17 }
 0x630   :  { %v7541_v21 = vpop.eup %7540 }
 0x631   :  { %7162 = vmatmul.mubr.msk.bf16.vlgmr.msra.gmra.mrb[4].mxu1 %vm1036_vm2, %v1081_v19  ;;  %v7543_v22 = vpop.eup %7542  ;;  %v1080_v23 = vmul.f32 %v7541_v21, %v8918_v46  ;;  %v7485_v46 = vld [vmem:[#allocation18 + $0x10c] ss:$16 sps:$4 sm:$0xff]   ;;  %v1179_v19 = vrot.slane %v704_v8, %v8880_v41 }
 0x632   :  { %7166 = vmatpush3.bf16.msra.mxu1 %v8871_v37  ;;  %7167 = vmatprep.mubr.msk.bf16.mxu1 %vm8455_vm5, %v8454_v38  ;;  %v1079_v24 = vmul.f32 %v7543_v22, %v8912_v43  ;;  %v7455_v37 = vld [vmem:[#allocation18 + $0x6c] ss:$16 sps:$4 sm:$0xff]   ;;  %v7471_v43 = vld [vmem:[#allocation18 + $0xc8] ss:$16 sps:$4 sm:$0xff]  }
 0x633   :  { %1622 = vmatprep.subr.bf16.mxu1 %v7437_v20 }
 0x634   :  { %v1082_v28 = vpack.c.bf16 %v1080_v23, %v1079_v24 }
 0x639   :  { %7168 = vmatmul.mubr.msk.bf16.vlgmr.msra.gmra.mrb[8].mxu1 %vm1036_vm2, %v1082_v28 }
 0x63a   :  { %1623 = vmatpush1.bf16.msra.mxu1 %v7435_v26 }
 0x63b   :  { %1624 = vmatprep.subr.bf16.mxu1 %v7443_v29 }
 0x63e   :  { %1625 = vmatpush1.bf16.msra.mxu1 %v7441_v30 }
 0x63f   :  { %1626 = vmatprep.subr.bf16.mxu1 %v7449_v31 }
 0x642   :  { %1627 = vmatpush1.bf16.msra.mxu1 %v7447_v32  ;;  %v6781_v32 = vld.sshfl [vmem:[#allocation19] sm:$0x33 pattern:$0x75316420] }
 0x643   :  { %1628 = vmatprep.subr.bf16.mxu1 %v7455_v37  ;;  %v1677_v37 = vcombine.high %v6781_v32, %v6781_v32 }
 0x646   :  { %1629 = vmatpush1.bf16.msra.mxu1 %v7453_v33  ;;  %v6782_v33 = vld.sshfl [vmem:[#allocation21] sm:$0x33 pattern:$0x75316420] }
 0x647   :  { %1630 = vmatprep.subr.bf16.mxu1 %v7461_v34  ;;  %v1786_v34 = vcombine.high %v6782_v33, %v6782_v33  ;;  %v1793_v54 = vrot.slane %v6782_v33, %v8867_v27 }
 0x649   :  { %v1801_v58 = vcombine.high %v1793_v54, %v1793_v54 }
 0x64a   :  { %1631 = vmatpush1.bf16.msra.mxu1 %v7459_v35  ;;  %v1691_v35 = vrot.slane %v1677_v37, %v8867_v27 }
 0x64b   :  { %1632 = vmatprep.subr.bf16.mxu1 %v7467_v36  ;;  %v1800_v36 = vrot.slane %v1786_v34, %v8867_v27 }
 0x64d   :  { %v1802_v56 = vcombine.high %v1800_v36, %v1800_v36 }
 0x64e   :  { %1633 = vmatpush1.bf16.msra.mxu1 %v7465_v39 }
 0x64f   :  { %1634 = vmatprep.subr.bf16.mxu1 %v7473_v40 }
 0x652   :  { %1635 = vmatpush1.bf16.msra.mxu1 %v7471_v43 }
 0x653   :  { %1636 = vmatprep.subr.bf16.mxu1 %v7479_v44 }
 0x656   :  { %1637 = vmatpush1.bf16.msra.mxu1 %v7477_v45 }
 0x657   :  { %1638 = vmatprep.subr.bf16.mxu1 %v7485_v46 }
 0x65a   :  { %1639 = vmatpush1.bf16.msra.mxu1 %v7483_v47 }
 0x65b   :  { %1640 = vmatprep.subr.bf16.mxu1 %v7491_v48 }
 0x65e   :  { %1641 = vmatpush1.bf16.msra.mxu1 %v7489_v49 }
 0x65f   :  { %1642 = vmatprep.subr.bf16.mxu1 %v7497_v50 }
 0x662   :  { %1643 = vmatpush1.bf16.msra.mxu1 %v7495_v51 }
 0x663   :  { %1644 = vmatprep.subr.bf16.mxu1 %v7503_v52 }
 0x666   :  { %1645 = vmatpush1.bf16.msra.mxu1 %v7501_v53  ;;  %v1684_v53 = vrot.slane %v6781_v32, %v8867_v27 }
 0x667   :  { %1646 = vmatprep.subr.bf16.mxu1 %v7509_v55  ;;  %v1693_v55 = vcombine.high %v1691_v35, %v1691_v35 }
 0x66a   :  { %1647 = vmatpush1.bf16.msra.mxu1 %v7507_v57  ;;  %v1692_v57 = vcombine.high %v1684_v53, %v1684_v53 }
 0x66b   :  { %1648 = vmatprep.subr.bf16.mxu1 %v7515_v59 }
 0x66e   :  { %1649 = vmatpush1.bf16.msra.mxu1 %v7513_v61 }
 0x66f   :  { %1650 = vmatprep.subr.bf16.mxu1 %v7521_v1 }
 0x672   :  { %1651 = vmatpush1.bf16.msra.mxu1 %v7519_v3 }
 0x673   :  { %1652 = vmatprep.subr.bf16.mxu1 %v7527_v5 }
 0x676   :  { %1653 = vmatpush1.bf16.msra.mxu1 %v7525_v7 }
 0x704   :  { %v1120_v11 = vpop.f32.mrb[4].mxu1 }
 0x705   :  { %v1182_v12 = vadd.f32 %v1175_v9, %v1120_v11  ;;  %v7163_v13 = vpop.f32.mrb[5].mxu1 }
 0x706   :  { %v1123_v14 = vpop.f32.mrb[6].mxu1 }
 0x707   :  { %v1184_v15 = vadd.f32 %v1175_v9, %v1123_v14  ;;  %v7164_v16 = vpop.f32.mrb[7].mxu1  ;;  %v1186_v17 = vmax.f32 %v1182_v12, 0.0 }
 0x709   :  { %v1188_v18 = vmax.f32 %v1184_v15, 0.0 }
 0x70b   :  { %v1257_v20 = vpack.c.bf16 %v1188_v18, %v1186_v17 }
 0x70c   :  { %v1164_v21 = vpop.f32.mrb[8].mxu1 }
 0x70d   :  { %v1183_v22 = vadd.f32 %v1179_v19, %v1164_v21  ;;  %v7169_v23 = vpop.f32.mrb[9].mxu1 }
 0x70e   :  { %v1167_v24 = vpop.f32.mrb[10].mxu1 }
 0x70f   :  { %v1185_v26 = vadd.f32 %v1179_v19, %v1167_v24  ;;  %v7170_v28 = vpop.f32.mrb[11].mxu1  ;;  %v1187_v29 = vmax.f32 %v1183_v22, 0.0 }
 0x711   :  { %v1189_v30 = vmax.f32 %v1185_v26, 0.0 }
 0x713   :  { %v1258_v31 = vpack.c.bf16 %v1189_v30, %v1187_v29 }
 0x715   :  { %1611 = vmatprep.mubr.bf16.mxu0 %v1258_v31  ;;  %1654 = vmatprep.mubr.bf16.mxu1 %v1258_v31 }
 0x716   :  { %1612 = vmatmul.mubr.bf16.vlgmr.msra.gmra.mrb[8].mxu0 %v1257_v20  ;;  %1655 = vmatmul.mubr.bf16.vlgmr.msra.gmra.mrb[12].mxu1 %v1257_v20 }
 0x717   :  { %1730 = vmatprep.mubr.bf16.mxu0 %v1691_v35  ;;  %1839 = vmatprep.mubr.bf16.mxu1 %v1800_v36 }
 0x7e9   :  { %v1613_v39 = vpop.f32.mrb[8].mxu0  ;;  %v1656_v40 = vpop.f32.mrb[12].mxu1 }
 0x7ea   :  { %v1615_v43 = vpop.f32.mrb[9].mxu0  ;;  %v1658_v44 = vpop.f32.mrb[13].mxu1 }
 0x7eb   :  { %v1617_v45 = vpop.f32.mrb[10].mxu0  ;;  %v1660_v46 = vpop.f32.mrb[14].mxu1 }
 0x7ec   :  { %v1665_v47 = vpack.c.bf16 %v1617_v45, %v1613_v39  ;;  %v1667_v48 = vpack.c.bf16 %v1660_v46, %v1656_v40  ;;  %v1619_v49 = vpop.f32.mrb[11].mxu0  ;;  %v1662_v50 = vpop.f32.mrb[15].mxu1 }
 0x7ed   :  { %v1666_v51 = vpack.c.bf16 %v1619_v49, %v1615_v43  ;;  %v1668_v52 = vpack.c.bf16 %v1662_v50, %v1658_v44 }
 0x7ef   :  { %1698 = vmatprep.subr.bf16.mxu0 %v1666_v51  ;;  %1807 = vmatprep.subr.bf16.mxu1 %v1666_v51 }
 0x7f0   :  { %1699 = vmatpush1.bf16.xpose.msra.mxu0 %v1665_v47  ;;  %1808 = vmatpush1.bf16.xpose.msra.mxu1 %v1665_v47 }
 0x7f1   :  { %1738 = vmatprep.subr.bf16.mxu0 %v1668_v52  ;;  %1847 = vmatprep.subr.bf16.mxu1 %v1668_v52 }
 0x7f7   :  { %1731 = vmatmul.mubr.bf16.vlgmr.msra.gmra.mrb[12].mxu0 %v1684_v53  ;;  %1840 = vmatmul.mubr.bf16.vlgmr.msra.gmra.mrb[16].mxu1 %v1793_v54 }
 0x7f8   :  { %1739 = vmatpush1.bf16.xpose.msra.mxu0 %v1667_v48  ;;  %1848 = vmatpush1.bf16.xpose.msra.mxu1 %v1667_v48 }
 0x7f9   :  { %2011 = vmatprep.subr.bf16.mxu0 %v1666_v51  ;;  %2057 = vmatprep.subr.bf16.mxu1 %v1668_v52 }
 0x7fa   :  { %1770 = vmatprep.mubr.bf16.mxu0 %v1693_v55  ;;  %1879 = vmatprep.mubr.bf16.mxu1 %v1802_v56 }
 0x803   :  { %1771 = vmatmul.mubr.bf16.vlgmr.msra.gmra.mrb[12].mxu0 %v1692_v57  ;;  %1880 = vmatmul.mubr.bf16.vlgmr.msra.gmra.mrb[16].mxu1 %v1801_v58 }
 0x804   :  { %2012 = vmatpush1.bf16.msra.mxu0 %v1665_v47  ;;  %2058 = vmatpush1.bf16.msra.mxu1 %v1667_v48 }
 0x805   :  { %2043 = vmatprep.mubr.bf16.mxu0 %v8428_v0  ;;  %2089 = vmatprep.mubr.bf16.mxu1 %v8428_v0 }
 0x8d6   :  { %v1881_v59 = vpop.f32.mrb[16].mxu1  ;;  %v1772_v60 = vpop.f32.mrb[12].mxu0 }
 0x8d7   :  { %v1883_v61 = vpop.f32.mrb[17].mxu1  ;;  %v1890_v62 = vrot.slane %v1881_v59, %v8883_v42  ;;  %v1774_v1 = vpop.f32.mrb[13].mxu0  ;;  %v1901_v6 = vrot.slane %v1881_v59, %v8880_v41  ;;  %v1916_v7 = vrot.slane %v1772_v60, %v8867_v27 }
 0x8d8   :  { %v1884_v2 = vpop.f32.mrb[18].mxu1  ;;  %v1775_v3 = vpop.f32.mrb[14].mxu0 }
 0x8d9   :  { %1896 = vbcast.lane.b32.xlu0 %v1890_v62, 264  ;;  %1892 = vbcast.lane.b32.xlu1 %v1890_v62, 256  ;;  %v1885_v4 = vpop.f32.mrb[19].mxu1  ;;  %v1776_v5 = vpop.f32.mrb[15].mxu0  ;;  %v1917_v8 = vcombine.high %v1916_v7, %v1916_v7  ;;  %v1924_v9 = vrot.slane %v1916_v7, %v8867_v27 }
 0x8db   :  { %v1931_v11 = vrot.slane %v1917_v8, %v8867_v27  ;;  %v1935_v12 = vrot.slane %v1924_v9, %v8883_v42 }
 0x8dd   :  { %1903 = vbcast.lane.b32.xlu1 %v1901_v6, 256  ;;  %v1939_v17 = vrot.slane %v1931_v11, %v8883_v42 }
 0x8e1   :  { %1907 = vbcast.lane.b32.xlu1 %v1901_v6, 264 }
 0x94b   :  { %v1897_v13 = vpop.permute.xlu0 %1896  ;;  %v1893_v14 = vpop.permute.xlu1 %1892 }
 0x94c   :  { %v1943_v15 = vadd.f32 %v1935_v12, %v1897_v13  ;;  %v1942_v16 = vadd.f32 %v1935_v12, %v1893_v14 }
 0x94e   :  { %vm1947_vm6 = vcmp.ge.f32.partialorder %v1943_v15, 0.0  ;;  %v1951_v18 = vmul.f32 0.2, %v1943_v15  ;;  %vm1946_vm7 = vcmp.ge.f32.partialorder %v1942_v16, 0.0  ;;  %v1950_v19 = vmul.f32 0.2, %v1942_v16 }
 0x94f   :  { %v1904_v20 = vpop.permute.xlu1 %1903 }
 0x950   :  { %v1944_v21 = vadd.f32 %v1939_v17, %v1904_v20  ;;  %v1955_v22 = vsel %vm1947_vm6, %v1943_v15, %v1951_v18  ;;  %v1954_v23 = vsel %vm1946_vm7, %v1942_v16, %v1950_v19 }
 0x951   :  { %v1959_v24 = vadd.f32 %v1955_v22, %v8897_v10  ;;  %v1958_v26 = vadd.f32 %v1954_v23, %v8893_v63 }
 0x952   :  { %vm1948_vm8 = vcmp.ge.f32.partialorder %v1944_v21, 0.0  ;;  %v1952_v28 = vmul.f32 0.2, %v1944_v21 }
 0x953   :  { %v1908_v29 = vpop.permute.xlu1 %1907  ;;  %v1965_v30 = vsel %vm1036_vm2, %v1959_v24, -inf  ;;  %v1962_v31 = vsel %vm1036_vm2, %v1958_v26, -inf }
 0x954   :  { %v1945_v32 = vadd.f32 %v1939_v17, %v1908_v29  ;;  %1966 = vmax.xlane.f32.xlu1 %v1965_v30  ;;  %1963 = vmax.xlane.f32.xlu0 %v1962_v31  ;;  %v1956_v37 = vsel %vm1948_vm8, %v1944_v21, %v1952_v28 }
 0x955   :  { %v1960_v33 = vadd.f32 %v1956_v37, %v8893_v63 }
 0x956   :  { %vm1949_vm9 = vcmp.ge.f32.partialorder %v1945_v32, 0.0  ;;  %v1953_v34 = vmul.f32 0.2, %v1945_v32 }
 0x957   :  { %v1968_v35 = vsel %vm1036_vm2, %v1960_v33, -inf }
 0x958   :  { %1969 = vmax.xlane.f32.xlu0 %v1968_v35  ;;  %v1957_v36 = vsel %vm1949_vm9, %v1945_v32, %v1953_v34 }
 0x959   :  { %v1961_v39 = vadd.f32 %v1957_v36, %v8897_v10 }
 0x95b   :  { %v1971_v40 = vsel %vm1036_vm2, %v1961_v39, -inf }
 0x95c   :  { %1972 = vmax.xlane.f32.xlu0 %v1971_v40 }
 0x9e1   :  { %v1967_v43 = vpop.xlane.xlu1 %1966  ;;  %v1964_v44 = vpop.xlane.xlu0 %1963 }
 0x9e2   :  { %v1975_v45 = vsub.f32 %v1959_v24, %v1967_v43  ;;  %v1974_v46 = vsub.f32 %v1958_v26, %v1964_v44 }
 0x9e4   :  { %v1980_v47 = vmul.f32 1.442695, %v1975_v45  ;;  %v1978_v48 = vmul.f32 1.442695, %v1974_v46 }
 0x9e5   :  { %v1970_v49 = vpop.xlane.xlu0 %1969 }
 0x9e6   :  { %7544 = vpow2.f32 %v1980_v47  ;;  %v1976_v50 = vsub.f32 %v1960_v33, %v1970_v49 }
 0x9e7   :  { %7546 = vpow2.f32 %v1978_v48 }
 0x9e8   :  { %v1982_v51 = vmul.f32 1.442695, %v1976_v50 }
 0x9e9   :  { %v1973_v52 = vpop.xlane.xlu0 %1972 }
 0x9ea   :  { %7548 = vpow2.f32 %v1982_v51  ;;  %v1977_v53 = vsub.f32 %v1961_v39, %v1973_v52 }
 0x9ec   :  { %v1984_v54 = vmul.f32 1.442695, %v1977_v53 }
 0x9ee   :  { %7550 = vpow2.f32 %v1984_v54 }
 0x9f0   :  { %v7545_v55 = vpop.eup %7544 }
 0x9f1   :  { %v7547_v56 = vpop.eup %7546  ;;  %v1989_v57 = vsel %vm1036_vm2, %v7545_v55, 0.0 }
 0x9f2   :  { %v1986_v58 = vsel %vm1036_vm2, %v7547_v56, 0.0  ;;  %1990 = vadd.xlane.f32.xlu0 %v1989_v57 }
 0x9f3   :  { %1987 = vadd.xlane.f32.xlu1 %v1986_v58 }
 0x9f4   :  { %v7549_v59 = vpop.eup %7548 }
 0x9f5   :  { %v1992_v60 = vsel %vm1036_vm2, %v7549_v59, 0.0 }
 0x9f7   :  { %1993 = vadd.xlane.f32.xlu1 %v1992_v60 }
 0x9f8   :  { %v7551_v61 = vpop.eup %7550 }
 0x9f9   :  { %v1995_v62 = vsel %vm1036_vm2, %v7551_v61, 0.0 }
 0x9fa   :  { %1996 = vadd.xlane.f32.xlu0 %v1995_v62 }
 0xa7f   :  { %v1991_v1 = vpop.xlane.xlu0 %1990 }
 0xa80   :  { %v1988_v2 = vpop.xlane.xlu1 %1987  ;;  %7552 = vrcp.f32 %v1991_v1 }
 0xa81   :  { %7554 = vrcp.f32 %v1988_v2 }
 0xa84   :  { %v1994_v3 = vpop.xlane.xlu1 %1993 }
 0xa85   :  { %7556 = vrcp.f32 %v1994_v3 }
 0xa87   :  { %v1997_v4 = vpop.xlane.xlu0 %1996 }
 0xa88   :  { %7558 = vrcp.f32 %v1997_v4 }
 0xa8a   :  { %v7553_v5 = vpop.eup %7552 }
 0xa8b   :  { %v7555_v6 = vpop.eup %7554  ;;  %v2003_v7 = vmul.f32 %v7553_v5, %v7545_v55 }
 0xa8c   :  { %v2002_v8 = vmul.f32 %v7555_v6, %v7547_v56 }
 0xa8e   :  { %v2006_v9 = vpack.c.bf16 %v2003_v7, %v2002_v8 }
 0xa8f   :  { %v7557_v11 = vpop.eup %7556 }
 0xa90   :  { %6783 = vmatmul.mubr.msk.bf16.vlgmr.msra.gmra.mrb[16].mxu0 %vm1036_vm2, %v2006_v9  ;;  %v2004_v13 = vmul.f32 %v7557_v11, %v7549_v59 }
 0xa92   :  { %v7559_v12 = vpop.eup %7558 }
 0xa93   :  { %v2005_v14 = vmul.f32 %v7559_v12, %v7551_v61 }
 0xa95   :  { %v2007_v15 = vpack.c.bf16 %v2005_v14, %v2004_v13 }
 0xa97   :  { %6784 = vmatmul.mubr.msk.bf16.vlgmr.msra.gmra.mrb[20].mxu1 %vm1036_vm2, %v2007_v15 }
 0xa98   :  { %8297 = shalt.err (!%p8294_p2)  }
 0xa99   :  { %s8298_s17 = scalar_lea.vmem %s679_s18, 4096  ;;  %p8303_p4 = scmp.lt.s32.totalorder %s679_s18, %s679_s18 }
 0xa9a   :  { %p8299_p3 = scmp.ne.s32.totalorder %s679_s18, %s8298_s17  ;;  %p8304_p5 = scmp.lt.s32.totalorder %s8298_s17, %s8298_s17 }
 0xa9c   :  { %p8305_p6 = por %p8304_p5, %p8303_p4 }
 0xa9e   :  { %p8306_p7 = pnand %p8305_p6, %p8299_p3 }
 0xaa0   :  { %8309 = shalt.err (!%p8306_p7)  }
 0xaa1   :  { %681 = dma.hbm_to_vmem [thread:$0]  %s8675_s13, 4096, %s679_s18, [#allocation10 + $0x7]  ;;  %v1256_v16 = vld [vmem:[#allocation22] sm:$0xf]  ;;  %v8969_v20 = vsub.s32 2, %v8864_v25  ;;  %v8974_v23 = vsub.s32 3, %v8864_v25 }
 0xaa2   :  { %v2104_v17 = vrot.slane %v1256_v16, %v8883_v42  ;;  %v2108_v18 = vrot.slane %v1256_v16, %v8880_v41 }
 0xaa3   :  { %v2112_v37 = vrot.slane %v1256_v16, %v8969_v20  ;;  %v2116_v34 = vrot.slane %v1256_v16, %v8974_v23 }
 0xb63   :  { %v2045_v19 = vpop.f32.mrb[16].mxu0 }
 0xb64   :  { %v8971_v21 = vadd.f32 %v2104_v17, %v2045_v19  ;;  %v2047_v22 = vpop.f32.mrb[17].mxu0 }
 0xb65   :  { %v2122_v24 = vadd.f32 %v2108_v18, %v2047_v22  ;;  %v2049_v26 = vpop.f32.mrb[18].mxu0 }
 0xb66   :  { %v2129_v28 = vmax.f32 %v8971_v21, 0.0  ;;  %v8977_v29 = vadd.f32 %v2104_v17, %v2049_v26  ;;  %v2051_v30 = vpop.f32.mrb[19].mxu0 }
 0xb67   :  { %v2130_v31 = vmax.f32 %v2122_v24, 0.0  ;;  %v2126_v32 = vadd.f32 %v2108_v18, %v2051_v30 }
 0xb68   :  { %v2133_v33 = vmax.f32 %v8977_v29, 0.0 }
 0xb69   :  { %v2134_v35 = vmax.f32 %v2126_v32, 0.0 }
 0xb6a   :  { %v2091_v36 = vpop.f32.mrb[20].mxu1 }
 0xb6b   :  { %v8982_v39 = vadd.f32 %v2112_v37, %v2091_v36  ;;  %v2093_v40 = vpop.f32.mrb[21].mxu1 }
 0xb6c   :  { %v8984_v43 = vadd.f32 %v2116_v34, %v2093_v40  ;;  %v2095_v44 = vpop.f32.mrb[22].mxu1 }
 0xb6d   :  { %v2131_v45 = vmax.f32 %v8982_v39, 0.0  ;;  %v8987_v46 = vadd.f32 %v2112_v37, %v2095_v44  ;;  %v2097_v47 = vpop.f32.mrb[23].mxu1 }
 0xb6e   :  { %v2132_v48 = vmax.f32 %v8984_v43, 0.0  ;;  %v8990_v49 = vadd.f32 %v2116_v34, %v2097_v47 }
 0xb6f   :  { %v2135_v50 = vmax.f32 %v8987_v46, 0.0 }
 0xb70   :  { %v2136_v51 = vmax.f32 %v8990_v49, 0.0 }
 0xb71   :  { %8338 = dma.done.wait [#allocation10], 12288 }
 0xb72   :  { %8339 = vsyncadd [#allocation10], 4294955008  ;;  %v2241_v52 = vpack.c.bf16 %v2134_v35, %v2130_v31  ;;  %v2142_v53 = vld [vmem:[#allocation2 + $0x8] sm:$0xff]  ;;  %v2141_v54 = vld [vmem:[#allocation2] sm:$0xff]  ;;  %v8998_v40 = vpack.c.bf16 %v2136_v51, %v2132_v48  ;;  %v2240_v44 = vpack.c.bf16 %v2133_v33, %v2129_v28  ;;  %s9430_s13 = sld [smem:[#allocation93_spill]] }
 0xb73   :  { %v2145_v55 = vld [vmem:[#allocation2 + $0x20] sm:$0xff]  ;;  %2244 = vmatprep.subr.bf16.mxu0 %v2142_v53  ;;  %v2144_v56 = vld [vmem:[#allocation2 + $0x18] sm:$0xff]  ;;  %v2167_v58 = vld [vmem:[#allocation2 + $0xd0] sm:$0xff] }
 0xb74   :  { %2276 = vmatprep.mubr.bf16.mxu0 %v2241_v52  ;;  %2362 = vmatprep.mubr.bf16.mxu1 %v2241_v52  ;;  %v2148_v57 = vld [vmem:[#allocation2 + $0x38] sm:$0xff]  ;;  %v2147_v59 = vld [vmem:[#allocation2 + $0x30] sm:$0xff]  ;;  %v2170_v62 = vld [vmem:[#allocation2 + $0xe8] sm:$0xff] }
 0xb75   :  { %2245 = vmatpush1.bf16.msra.mxu0 %v2141_v54  ;;  %6872 = vmatprep.subr.bf16.mxu1 %v2167_v58  ;;  %v2143_v60 = vld [vmem:[#allocation2 + $0x10] sm:$0xff]  ;;  %v2146_v1 = vld [vmem:[#allocation2 + $0x28] sm:$0xff]  ;;  %v2173_v2 = vld [vmem:[#allocation2 + $0x100] sm:$0xff] }
 0xb76   :  { %2246 = vmatprep.subr.bf16.mxu0 %v2145_v55  ;;  %v2151_v61 = vld [vmem:[#allocation2 + $0x50] sm:$0xff]  ;;  %6873 = vmatpush3.bf16.msra.mxu1 %v2143_v60  ;;  %v2150_v3 = vld [vmem:[#allocation2 + $0x48] sm:$0xff]  ;;  %v2149_v5 = vld [vmem:[#allocation2 + $0x40] sm:$0xff] }
 0xb77   :  { %6874 = vmatprep.subr.bf16.mxu1 %v2170_v62  ;;  %v2154_v4 = vld [vmem:[#allocation2 + $0x68] sm:$0xff]  ;;  %v2176_v6 = vld [vmem:[#allocation2 + $0x118] sm:$0xff]  ;;  %v2153_v7 = vld [vmem:[#allocation2 + $0x60] sm:$0xff] }
 0xb78   :  { %v2157_v8 = vld [vmem:[#allocation2 + $0x80] sm:$0xff]  ;;  %v2152_v9 = vld [vmem:[#allocation2 + $0x58] sm:$0xff]  ;;  %v2179_v11 = vld [vmem:[#allocation2 + $0x130] sm:$0xff] }
 0xb79   :  { %2247 = vmatpush1.bf16.msra.mxu0 %v2144_v56  ;;  %v2156_v12 = vld [vmem:[#allocation2 + $0x78] sm:$0xff]  ;;  %v2155_v14 = vld [vmem:[#allocation2 + $0x70] sm:$0xff]  ;;  %v2182_v15 = vld [vmem:[#allocation2 + $0x148] sm:$0xff] }
 0xb7a   :  { %2248 = vmatprep.subr.bf16.mxu0 %v2148_v57  ;;  %6875 = vmatpush3.bf16.msra.mxu1 %v2146_v1  ;;  %v2160_v13 = vld [vmem:[#allocation2 + $0x98] sm:$0xff]  ;;  %v2159_v16 = vld [vmem:[#allocation2 + $0x90] sm:$0xff]  ;;  %v2158_v18 = vld [vmem:[#allocation2 + $0x88] sm:$0xff] }
 0xb7b   :  { %6876 = vmatprep.subr.bf16.mxu1 %v2173_v2  ;;  %v2163_v17 = vld [vmem:[#allocation2 + $0xb0] sm:$0xff]  ;;  %v2185_v19 = vld [vmem:[#allocation2 + $0x160] sm:$0xff]  ;;  %v2162_v22 = vld [vmem:[#allocation2 + $0xa8] sm:$0xff] }
 0xb7c   :  { %v2166_v24 = vld [vmem:[#allocation2 + $0xc8] sm:$0xff]  ;;  %v2161_v26 = vld [vmem:[#allocation2 + $0xa0] sm:$0xff]  ;;  %v2188_v30 = vld [vmem:[#allocation2 + $0x178] sm:$0xff] }
 0xb7d   :  { %2249 = vmatpush1.bf16.msra.mxu0 %v2147_v59  ;;  %v2165_v31 = vld [vmem:[#allocation2 + $0xc0] sm:$0xff]  ;;  %v2164_v37 = vld [vmem:[#allocation2 + $0xb8] sm:$0xff]  ;;  %v2215_v34 = vld [vmem:[#allocation2 + $0x250] sm:$0xff] }
 0xb7e   :  { %2250 = vmatprep.subr.bf16.mxu0 %v2151_v61  ;;  %6877 = vmatpush3.bf16.msra.mxu1 %v2149_v5  ;;  %v2169_v32 = vld [vmem:[#allocation2 + $0xe0] sm:$0xff]  ;;  %v2168_v35 = vld [vmem:[#allocation2 + $0xd8] sm:$0xff]  ;;  %v2191_v47 = vld [vmem:[#allocation2 + $0x190] sm:$0xff] }
 0xb7f   :  { %6878 = vmatprep.subr.bf16.mxu1 %v2176_v6  ;;  %v2172_v36 = vld [vmem:[#allocation2 + $0xf8] sm:$0xff]  ;;  %v2218_v52 = vld [vmem:[#allocation2 + $0x268] sm:$0xff]  ;;  %v2171_v53 = vld [vmem:[#allocation2 + $0xf0] sm:$0xff] }
 0xb80   :  { %v2175_v54 = vld [vmem:[#allocation2 + $0x110] sm:$0xff]  ;;  %v2194_v43 = vld [vmem:[#allocation2 + $0x1a8] sm:$0xff]  ;;  %v2221_v48 = vld [vmem:[#allocation2 + $0x280] sm:$0xff] }
 0xb81   :  { %2251 = vmatpush1.bf16.msra.mxu0 %v2150_v3  ;;  %v2174_v21 = vld [vmem:[#allocation2 + $0x108] sm:$0xff]  ;;  %v2197_v28 = vld [vmem:[#allocation2 + $0x1c0] sm:$0xff]  ;;  %v2224_v29 = vld [vmem:[#allocation2 + $0x298] sm:$0xff] }
 0xb82   :  { %2252 = vmatprep.subr.bf16.mxu0 %v2154_v4  ;;  %6879 = vmatpush3.bf16.msra.mxu1 %v2152_v9  ;;  %v2178_v49 = vld [vmem:[#allocation2 + $0x128] sm:$0xff]  ;;  %v2177_v33 = vld [vmem:[#allocation2 + $0x120] sm:$0xff]  ;;  %v2200_v55 = vld [vmem:[#allocation2 + $0x1d8] sm:$0xff] }
 0xb83   :  { %6880 = vmatprep.subr.bf16.mxu1 %v2179_v11  ;;  %v2181_v51 = vld [vmem:[#allocation2 + $0x140] sm:$0xff]  ;;  %v2227_v56 = vld [vmem:[#allocation2 + $0x2b0] sm:$0xff]  ;;  %v2180_v57 = vld [vmem:[#allocation2 + $0x138] sm:$0xff] }
 0xb84   :  { %v2184_v58 = vld [vmem:[#allocation2 + $0x158] sm:$0xff]  ;;  %v2203_v59 = vld [vmem:[#allocation2 + $0x1f0] sm:$0xff]  ;;  %v2230_v60 = vld [vmem:[#allocation2 + $0x2c8] sm:$0xff] }
 0xb85   :  { %2253 = vmatpush1.bf16.msra.mxu0 %v2153_v7  ;;  %v2183_v61 = vld [vmem:[#allocation2 + $0x150] sm:$0xff]  ;;  %v2206_v1 = vld [vmem:[#allocation2 + $0x208] sm:$0xff]  ;;  %v2233_v2 = vld [vmem:[#allocation2 + $0x2e0] sm:$0xff] }
 0xb86   :  { %2254 = vmatprep.subr.bf16.mxu0 %v2157_v8  ;;  %6881 = vmatpush3.bf16.msra.mxu1 %v2155_v14  ;;  %v2187_v62 = vld [vmem:[#allocation2 + $0x170] sm:$0xff]  ;;  %v2186_v3 = vld [vmem:[#allocation2 + $0x168] sm:$0xff]  ;;  %v2209_v5 = vld [vmem:[#allocation2 + $0x220] sm:$0xff] }
 0xb87   :  { %6882 = vmatprep.subr.bf16.mxu1 %v2182_v15  ;;  %v2190_v4 = vld [vmem:[#allocation2 + $0x188] sm:$0xff]  ;;  %v2236_v6 = vld [vmem:[#allocation2 + $0x2f8] sm:$0xff]  ;;  %v2189_v7 = vld [vmem:[#allocation2 + $0x180] sm:$0xff] }
 0xb88   :  { %v2193_v8 = vld [vmem:[#allocation2 + $0x1a0] sm:$0xff]  ;;  %v2212_v9 = vld [vmem:[#allocation2 + $0x238] sm:$0xff]  ;;  %v2195_v14 = vld [vmem:[#allocation2 + $0x1b0] sm:$0xff] }
 0xb89   :  { %2255 = vmatpush1.bf16.msra.mxu0 %v2156_v12  ;;  %v2192_v11 = vld [vmem:[#allocation2 + $0x198] sm:$0xff]  ;;  %v2242_v12 = vpack.c.bf16 %v2135_v50, %v2131_v45  ;;  %v2199_v15 = vld [vmem:[#allocation2 + $0x1d0] sm:$0xff] }
 0xb8a   :  { %2256 = vmatprep.subr.bf16.mxu0 %v2160_v13  ;;  %6883 = vmatpush3.bf16.msra.mxu1 %v2158_v18  ;;  %v2196_v13 = vld [vmem:[#allocation2 + $0x1b8] sm:$0xff]  ;;  %v2201_v18 = vld [vmem:[#allocation2 + $0x1e0] sm:$0xff]  ;;  %v2207_v45 = vld [vmem:[#allocation2 + $0x210] sm:$0xff] }
 0xb8b   :  { %6884 = vmatprep.subr.bf16.mxu1 %v2185_v19  ;;  %v2205_v19 = vld [vmem:[#allocation2 + $0x200] sm:$0xff]  ;;  %v2204_v39 = vld [vmem:[#allocation2 + $0x1f8] sm:$0xff]  ;;  %v2211_v50 = vld [vmem:[#allocation2 + $0x230] sm:$0xff] }
 0xb8c   :  { %v2208_v46 = vld [vmem:[#allocation2 + $0x218] sm:$0xff] }
 0xb8d   :  { %2257 = vmatpush1.bf16.msra.mxu0 %v2159_v16  ;;  %v2198_v16 = vld [vmem:[#allocation2 + $0x1c8] sm:$0xff] }
 0xb8e   :  { %2258 = vmatprep.subr.bf16.mxu0 %v2163_v17  ;;  %6885 = vmatpush3.bf16.msra.mxu1 %v2161_v26  ;;  %v2202_v17 = vld [vmem:[#allocation2 + $0x1e8] sm:$0xff]  ;;  %v2213_v26 = vld [vmem:[#allocation2 + $0x240] sm:$0xff] }
 0xb8f   :  { %6886 = vmatprep.subr.bf16.mxu1 %v2188_v30  ;;  %v2217_v30 = vld [vmem:[#allocation2 + $0x260] sm:$0xff] }
 0xb91   :  { %2259 = vmatpush1.bf16.msra.mxu0 %v2162_v22  ;;  %v2210_v22 = vld [vmem:[#allocation2 + $0x228] sm:$0xff] }
 0xb92   :  { %2260 = vmatprep.subr.bf16.mxu0 %v2166_v24  ;;  %6887 = vmatpush3.bf16.msra.mxu1 %v2164_v37  ;;  %v2214_v24 = vld [vmem:[#allocation2 + $0x248] sm:$0xff]  ;;  %v2219_v37 = vld [vmem:[#allocation2 + $0x270] sm:$0xff] }
 0xb93   :  { %6894 = vmatprep.subr.bf16.mxu1 %v2215_v34  ;;  %v2223_v34 = vld [vmem:[#allocation2 + $0x290] sm:$0xff] }
 0xb95   :  { %2261 = vmatpush1.bf16.msra.mxu0 %v2165_v31  ;;  %2363 = vmatmul.mubr.bf16.vlgmr.msra.gmra.mrb[24].mxu1 %v2240_v44  ;;  %v2216_v31 = vld [vmem:[#allocation2 + $0x258] sm:$0xff] }
 0xb96   :  { %2262 = vmatprep.subr.bf16.mxu0 %v2169_v32  ;;  %6895 = vmatpush3.bf16.msra.mxu1 %v2191_v47  ;;  %v2220_v32 = vld [vmem:[#allocation2 + $0x278] sm:$0xff] }
 0xb97   :  { %2403 = vmatprep.mubr.bf16.mxu1 %v8998_v40  ;;  %6896 = vmatprep.subr.bf16.mxu1 %v2218_v52  ;;  %v2228_v47 = vld [vmem:[#allocation2 + $0x2b8] sm:$0xff] }
 0xb98   :  { %v2232_v52 = vld [vmem:[#allocation2 + $0x2d8] sm:$0xff] }
 0xb99   :  { %2263 = vmatpush1.bf16.msra.mxu0 %v2168_v35  ;;  %v2222_v35 = vld [vmem:[#allocation2 + $0x288] sm:$0xff] }
 0xb9a   :  { %2264 = vmatprep.subr.bf16.mxu0 %v2172_v36  ;;  %6897 = vmatpush3.bf16.msra.mxu1 %v2194_v43  ;;  %v2226_v36 = vld [vmem:[#allocation2 + $0x2a8] sm:$0xff] }
 0xb9b   :  { %6898 = vmatprep.subr.bf16.mxu1 %v2221_v48  ;;  %v2234_v43 = vld [vmem:[#allocation2 + $0x2e8] sm:$0xff]  ;;  %v6785_v48 = vld.sshfl [vmem:[#allocation24] sm:$0x13 pattern:$0x75316420] }
 0xb9d   :  { %2265 = vmatpush1.bf16.msra.mxu0 %v2171_v53  ;;  %v2231_v53 = vld [vmem:[#allocation2 + $0x2d0] sm:$0xff] }
 0xb9e   :  { %2266 = vmatprep.subr.bf16.mxu0 %v2175_v54  ;;  %6899 = vmatpush3.bf16.msra.mxu1 %v2197_v28  ;;  %v2235_v54 = vld [vmem:[#allocation2 + $0x2f0] sm:$0xff] }
 0xb9f   :  { %6900 = vmatprep.subr.bf16.mxu1 %v2224_v29 }
 0xba1   :  { %2267 = vmatpush1.bf16.msra.mxu0 %v2174_v21  ;;  %v2423_v21 = vcombine.high %v6785_v48, %v6785_v48 }
 0xba2   :  { %2268 = vmatprep.subr.bf16.mxu0 %v2178_v49  ;;  %6901 = vmatpush3.bf16.msra.mxu1 %v2200_v55 }
 0xba3   :  { %6902 = vmatprep.subr.bf16.mxu1 %v2227_v56  ;;  %v2437_v49 = vrot.slane %v2423_v21, %v8867_v27 }
 0xba5   :  { %2269 = vmatpush1.bf16.msra.mxu0 %v2177_v33 }
 0xba6   :  { %2270 = vmatprep.subr.bf16.mxu0 %v2181_v51  ;;  %6903 = vmatpush3.bf16.msra.mxu1 %v2203_v59 }
 0xba7   :  { %6904 = vmatprep.subr.bf16.mxu1 %v2230_v60 }
 0xba9   :  { %2271 = vmatpush1.bf16.msra.mxu0 %v2180_v57 }
 0xbaa   :  { %2272 = vmatprep.subr.bf16.mxu0 %v2184_v58  ;;  %6905 = vmatpush3.bf16.msra.mxu1 %v2206_v1 }
 0xbab   :  { %6906 = vmatprep.subr.bf16.mxu1 %v2233_v2 }
 0xbad   :  { %2273 = vmatpush1.bf16.msra.mxu0 %v2183_v61 }
 0xbae   :  { %2274 = vmatprep.subr.bf16.mxu0 %v2187_v62  ;;  %6907 = vmatpush3.bf16.msra.mxu1 %v2209_v5 }
 0xbaf   :  { %6908 = vmatprep.subr.bf16.mxu1 %v2236_v6 }
 0xbb1   :  { %2275 = vmatpush1.bf16.msra.mxu0 %v2186_v3 }
 0xbb2   :  { %2287 = vmatprep.subr.bf16.mxu0 %v2190_v4  ;;  %6909 = vmatpush3.bf16.msra.mxu1 %v2212_v9 }
 0xbb4   :  { %2277 = vmatmul.mubr.bf16.vlgmr.msra.gmra.mrb[20].mxu0 %v2240_v44  ;;  %v2229_v44 = vld [vmem:[#allocation2 + $0x2c0] sm:$0xff] }
 0xbb5   :  { %2288 = vmatpush1.bf16.msra.mxu0 %v2189_v7  ;;  %2319 = vmatprep.mubr.bf16.mxu0 %v8998_v40  ;;  %v2225_v40 = vld [vmem:[#allocation2 + $0x2a0] sm:$0xff] }
 0xbb6   :  { %2289 = vmatprep.subr.bf16.mxu0 %v2193_v8  ;;  %2404 = vmatmul.mubr.bf16.vlgmr.msra.gmra.mrb[28].mxu1 %v2242_v12 }
 0xbb7   :  { %2474 = vmatprep.mubr.bf16.mxu1 %v2437_v49 }
 0xbb9   :  { %2290 = vmatpush1.bf16.msra.mxu0 %v2192_v11  ;;  %v2430_v11 = vrot.slane %v6785_v48, %v8867_v27 }
 0xbba   :  { %2291 = vmatprep.subr.bf16.mxu0 %v2196_v13 }
 0xbbd   :  { %2292 = vmatpush1.bf16.msra.mxu0 %v2195_v14  ;;  %v2438_v14 = vcombine.high %v2430_v11, %v2430_v11 }
 0xbbe   :  { %2293 = vmatprep.subr.bf16.mxu0 %v2199_v15 }
 0xbc1   :  { %2294 = vmatpush1.bf16.msra.mxu0 %v2198_v16 }
 0xbc2   :  { %2295 = vmatprep.subr.bf16.mxu0 %v2202_v17 }
 0xbc5   :  { %2296 = vmatpush1.bf16.msra.mxu0 %v2201_v18 }
 0xbc6   :  { %2297 = vmatprep.subr.bf16.mxu0 %v2205_v19 }
 0xbc9   :  { %2298 = vmatpush1.bf16.msra.mxu0 %v2204_v39 }
 0xbca   :  { %2299 = vmatprep.subr.bf16.mxu0 %v2208_v46 }
 0xbcd   :  { %2300 = vmatpush1.bf16.msra.mxu0 %v2207_v45 }
 0xbce   :  { %2301 = vmatprep.subr.bf16.mxu0 %v2211_v50 }
 0xbd1   :  { %2302 = vmatpush1.bf16.msra.mxu0 %v2210_v22 }
 0xbd2   :  { %2303 = vmatprep.subr.bf16.mxu0 %v2214_v24 }
 0xbd5   :  { %2304 = vmatpush1.bf16.msra.mxu0 %v2213_v26 }
 0xbd6   :  { %2305 = vmatprep.subr.bf16.mxu0 %v2217_v30 }
 0xbd9   :  { %2306 = vmatpush1.bf16.msra.mxu0 %v2216_v31 }
 0xbda   :  { %2307 = vmatprep.subr.bf16.mxu0 %v2220_v32 }
 0xbdd   :  { %2308 = vmatpush1.bf16.msra.mxu0 %v2219_v37 }
 0xbde   :  { %2309 = vmatprep.subr.bf16.mxu0 %v2223_v34 }
 0xbe1   :  { %2310 = vmatpush1.bf16.msra.mxu0 %v2222_v35 }
 0xbe2   :  { %2311 = vmatprep.subr.bf16.mxu0 %v2226_v36 }
 0xbe5   :  { %2312 = vmatpush1.bf16.msra.mxu0 %v2225_v40 }
 0xbe6   :  { %2313 = vmatprep.subr.bf16.mxu0 %v2229_v44 }
 0xbe9   :  { %2314 = vmatpush1.bf16.msra.mxu0 %v2228_v47 }
 0xbea   :  { %2315 = vmatprep.subr.bf16.mxu0 %v2232_v52 }
 0xbed   :  { %2316 = vmatpush1.bf16.msra.mxu0 %v2231_v53 }
 0xbee   :  { %2317 = vmatprep.subr.bf16.mxu0 %v2235_v54 }
 0xbf1   :  { %2318 = vmatpush1.bf16.msra.mxu0 %v2234_v43 }
 0xbf4   :  { %2320 = vmatmul.mubr.bf16.vlgmr.msra.gmra.mrb[20].mxu0 %v2242_v12  ;;  %v6786_v12 = vld.sshfl [vmem:[#allocation25] sm:$0x13 pattern:$0x75316420] }
 0xbf5   :  { %v2530_v13 = vcombine.high %v6786_v12, %v6786_v12  ;;  %v2537_v16 = vrot.slane %v6786_v12, %v8867_v27 }
 0xbf7   :  { %v2544_v15 = vrot.slane %v2530_v13, %v8867_v27  ;;  %v2545_v17 = vcombine.high %v2537_v16, %v2537_v16  ;;  %v2780_v13 = vld [vmem:[%s9430_s13] sm:$0x3] }
 0xc68   :  { %v6888_v28 = vpop.f32.mrb[24].mxu1 }
 0xc69   :  { %v6889_v29 = vpop.f32.mrb[25].mxu1 }
 0xc6a   :  { %v6890_v33 = vadd.f32 %v6889_v29, %v6888_v28  ;;  %v6891_v51 = vpop.f32.mrb[26].mxu1 }
 0xc6b   :  { %v6892_v55 = vpop.f32.mrb[27].mxu1 }
 0xc6c   :  { %v6893_v56 = vadd.f32 %v6892_v55, %v6891_v51 }
 0xc89   :  { %v6910_v57 = vpop.f32.mrb[28].mxu1 }
 0xc8a   :  { %v6911_v58 = vpop.f32.mrb[29].mxu1 }
 0xc8b   :  { %v6912_v59 = vadd.f32 %v6911_v58, %v6910_v57  ;;  %v6913_v60 = vpop.f32.mrb[30].mxu1 }
 0xc8c   :  { %v6914_v61 = vpop.f32.mrb[31].mxu1 }
 0xc8d   :  { %v2406_v62 = vadd.f32 %v6912_v59, %v6890_v33  ;;  %v6915_v1 = vadd.f32 %v6914_v61, %v6913_v60 }
 0xc8f   :  { %v2409_v2 = vadd.f32 %v6915_v1, %v6893_v56 }
 0xc91   :  { %v9011_v3 = vpack.c.bf16 %v2409_v2, %v2406_v62  ;;  %v2239_v62 = vld [vmem:[#allocation27] sm:$0x7] }
 0xc92   :  { %v2681_v1 = vrot.slane %v2239_v62, %v8883_v42 }
 0xcc7   :  { %v2321_v4 = vpop.f32.mrb[20].mxu0 }
 0xcc8   :  { %v2323_v5 = vpop.f32.mrb[21].mxu0 }
 0xcc9   :  { %v2325_v6 = vpop.f32.mrb[22].mxu0 }
 0xcca   :  { %v2412_v7 = vpack.c.bf16 %v2325_v6, %v2321_v4  ;;  %v2327_v8 = vpop.f32.mrb[23].mxu0  ;;  %v2685_v4 = vrot.slane %v2239_v62, %v8880_v41 }
 0xccb   :  { %v2413_v9 = vpack.c.bf16 %v2327_v8, %v2323_v5 }
 0xccd   :  { %2442 = vmatprep.subr.bf16.mxu1 %v2413_v9 }
 0xcce   :  { %2443 = vmatpush1.bf16.xpose.msra.mxu1 %v2412_v7 }
 0xccf   :  { %7171 = vmatprep.subr.bf16.mxu1 %v8454_v38 }
 0xcd5   :  { %2475 = vmatmul.mubr.bf16.vlgmr.msra.gmra.mrb[32].mxu1 %v2430_v11 }
 0xcd6   :  { %7172 = vmatpush3.bf16.xpose.msra.mxu1 %v9011_v3  ;;  %7173 = vmatprep.mubr.msk.bf16.mxu1 %vm8455_vm5, %v8454_v38 }
 0xcd7   :  { %2549 = vmatprep.subr.bf16.mxu1 %v2413_v9 }
 0xce1   :  { %7174 = vmatmul.mubr.bf16.vlgmr.msra.gmra.mrb[32].mxu1 %v2438_v14 }
 0xce2   :  { %2550 = vmatpush1.bf16.xpose.msra.mxu1 %v2412_v7  ;;  %2581 = vmatprep.mubr.bf16.mxu1 %v2544_v15  ;;  %v2689_v15 = vrot.slane %v2239_v62, %v8969_v20 }
 0xce3   :  { %7177 = vmatprep.subr.bf16.mxu1 %v8454_v38 }
 0xce9   :  { %2582 = vmatmul.mubr.bf16.vlgmr.msra.gmra.mrb[36].mxu1 %v2537_v16 }
 0xcea   :  { %7178 = vmatpush3.bf16.xpose.msra.mxu1 %v9011_v3  ;;  %7179 = vmatprep.mubr.msk.bf16.mxu1 %vm8455_vm5, %v8454_v38 }
 0xceb   :  { %2696 = vmatprep.subr.bf16.mxu1 %v2413_v9 }
 0xcf5   :  { %7180 = vmatmul.mubr.bf16.vlgmr.msra.gmra.mrb[36].mxu1 %v2545_v17  ;;  %v2781_v17 = vpack.c.bf16 %v2780_v13, %v2780_v13 }
 0xcf6   :  { %2697 = vmatpush1.bf16.msra.mxu1 %v2412_v7  ;;  %2728 = vmatprep.mubr.bf16.mxu1 %v8428_v0 }
 0xcf7   :  { %7183 = vmatprep.subr.bf16.mxu1 %v8454_v38 }
 0xdb4   :  { %v2516_v18 = vpop.f32.mrb[32].mxu1 }
 0xdb5   :  { %v7175_v19 = vpop.f32.mrb[33].mxu1  ;;  %v2643_v30 = vrot.slane %v2516_v18, %v8883_v42 }
 0xdb6   :  { %v2519_v39 = vpop.f32.mrb[34].mxu1 }
 0xdb7   :  { %v7176_v46 = vpop.f32.mrb[35].mxu1 }
 0xdc8   :  { %v2623_v45 = vpop.f32.mrb[36].mxu1 }
 0xdc9   :  { %v2632_v50 = vrot.slane %v2623_v45, %v8883_v42  ;;  %v7181_v22 = vpop.f32.mrb[37].mxu1 }
 0xdca   :  { %v2626_v24 = vpop.f32.mrb[38].mxu1 }
 0xdcb   :  { %2634 = vbcast.lane.b32.xlu0 %v2632_v50, 256  ;;  %v7182_v26 = vpop.f32.mrb[39].mxu1 }
 0xdcf   :  { %2638 = vbcast.lane.b32.xlu0 %v2632_v50, 264 }
 0xe3d   :  { %v2635_v31 = vpop.permute.xlu0 %2634 }
 0xe3e   :  { %v2644_v32 = vadd.f32 %v2643_v30, %v2635_v31 }
 0xe40   :  { %v2648_v37 = vmul.f32 0.2, %v2644_v32  ;;  %vm2646_vm10 = vcmp.ge.f32.partialorder %v2644_v32, 0.0 }
 0xe41   :  { %v2639_v34 = vpop.permute.xlu0 %2638 }
 0xe42   :  { %v2645_v35 = vadd.f32 %v2643_v30, %v2639_v34  ;;  %v2650_v36 = vsel %vm2646_vm10, %v2644_v32, %v2648_v37 }
 0xe43   :  { %v2652_v40 = vadd.f32 %v2650_v36, %v8893_v63 }
 0xe44   :  { %v2649_v44 = vmul.f32 0.2, %v2645_v35  ;;  %vm2647_vm11 = vcmp.ge.f32.partialorder %v2645_v35, 0.0 }
 0xe45   :  { %v2654_v47 = vsel %vm1036_vm2, %v2652_v40, -inf }
 0xe46   :  { %2655 = vmax.xlane.f32.xlu1 %v2654_v47  ;;  %v2651_v52 = vsel %vm2647_vm11, %v2645_v35, %v2649_v44 }
 0xe47   :  { %v2653_v53 = vadd.f32 %v2651_v52, %v8897_v10 }
 0xe49   :  { %v2657_v54 = vsel %vm1036_vm2, %v2653_v53, -inf }
 0xe4a   :  { %2658 = vmax.xlane.f32.xlu1 %v2657_v54 }
 0xed3   :  { %v2656_v43 = vpop.xlane.xlu1 %2655 }
 0xed4   :  { %v2660_v48 = vsub.f32 %v2652_v40, %v2656_v43 }
 0xed6   :  { %v2662_v21 = vmul.f32 1.442695, %v2660_v48 }
 0xed7   :  { %v2659_v49 = vpop.xlane.xlu1 %2658 }
 0xed8   :  { %7560 = vpow2.f32 %v2662_v21  ;;  %v2661_v28 = vsub.f32 %v2653_v53, %v2659_v49 }
 0xeda   :  { %v2664_v29 = vmul.f32 1.442695, %v2661_v28 }
 0xedc   :  { %7562 = vpow2.f32 %v2664_v29 }
 0xee2   :  { %v7561_v63 = vpop.eup %7560 }
 0xee3   :  { %v2666_v33 = vsel %vm1036_vm2, %v7561_v63, 0.0 }
 0xee4   :  { %2667 = vadd.xlane.f32.xlu0 %v2666_v33 }
 0xee6   :  { %v7563_v51 = vpop.eup %7562 }
 0xee7   :  { %v2669_v55 = vsel %vm1036_vm2, %v7563_v51, 0.0 }
 0xee8   :  { %2670 = vadd.xlane.f32.xlu1 %v2669_v55 }
 0xf71   :  { %v2668_v10 = vpop.xlane.xlu0 %2667 }
 0xf72   :  { %7564 = vrcp.f32 %v2668_v10 }
 0xf75   :  { %v2671_v56 = vpop.xlane.xlu1 %2670 }
 0xf76   :  { %7566 = vrcp.f32 %v2671_v56 }
 0xf7c   :  { %v7565_v57 = vpop.eup %7564 }
 0xf7d   :  { %v2674_v59 = vmul.f32 %v7565_v57, %v7561_v63 }
 0xf80   :  { %v7567_v58 = vpop.eup %7566 }
 0xf81   :  { %v2675_v60 = vmul.f32 %v7567_v58, %v7563_v51 }
 0xf83   :  { %v2676_v61 = vpack.c.bf16 %v2675_v60, %v2674_v59 }
 0xf85   :  { %6787 = vmatmul.mubr.msk.bf16.vlgmr.msra.gmra.mrb[40].mxu1 %vm1036_vm2, %v2676_v61 }
 0xf86   :  { %7184 = vmatpush3.bf16.msra.mxu1 %v9011_v3  ;;  %7185 = vmatprep.mubr.msk.bf16.mxu1 %vm8455_vm5, %v8454_v38 }
 0xf8d   :  { %7186 = vmatmul.mubr.msk.bf16.vlgmr.msra.gmra.mrb[44].mxu1 %vm1036_vm2, %v2676_v61 }
 0xf8e   :  { %2820 = vmatprep.mubr.bf16.mxu1 %v8428_v0 }
0x1058   :  { %v2730_v2 = vpop.f32.mrb[40].mxu1 }
0x1059   :  { %v2732_v5 = vpop.f32.mrb[41].mxu1  ;;  %v2731_v7 = vadd.f32 %v2730_v2, %v2681_v1 }
0x105a   :  { %v2734_v6 = vpop.f32.mrb[42].mxu1  ;;  %v2733_v3 = vadd.f32 %v2732_v5, %v2685_v4 }
0x105b   :  { %v2735_v8 = vadd.f32 %v2734_v6, %v2681_v1  ;;  %v2736_v9 = vpop.f32.mrb[43].mxu1 }
0x105c   :  { %v2737_v11 = vadd.f32 %v2736_v9, %v2685_v4 }
0x105d   :  { %v2782_v12 = vpack.c.bf16 %v2735_v8, %v2731_v7 }
0x105e   :  { %v2783_v14 = vpack.c.bf16 %v2737_v11, %v2733_v3 }
0x1060   :  { %v2773_v16 = vpop.f32.mrb[44].mxu1  ;;  %2788 = vmatprep.subr.bf16.mxu1 %v2783_v14 }
0x1061   :  { %v7187_v18 = vpop.f32.mrb[45].mxu1  ;;  %2789 = vmatpush1.bf16.msra.mxu1 %v2782_v12  ;;  %v2774_v39 = vadd.f32 %v2773_v16, %v2689_v15 }
0x1062   :  { %v2776_v19 = vpop.f32.mrb[46].mxu1  ;;  %7189 = vmatprep.subr.bf16.mxu1 %v8454_v38 }
0x1063   :  { %v2777_v46 = vadd.f32 %v2776_v19, %v2689_v15  ;;  %v7188_v45 = vpop.f32.mrb[47].mxu1 }
0x1064   :  { %6789 = vmatmul.mubr.msk.bf16.vlgmr.msra.gmra.mrb[48].mxu1 %vm1036_vm2, %v2781_v17 }
0x1065   :  { %v2784_v50 = vpack.c.bf16 %v2777_v46, %v2774_v39  ;;  %7191 = vmatprep.mubr.msk.bf16.mxu1 %vm8455_vm5, %v8454_v38 }
0x1067   :  { %7190 = vmatpush3.bf16.msra.mxu1 %v2784_v50 }
0x106c   :  { %7192 = vmatmul.mubr.msk.bf16.vlgmr.msra.gmra.mrb[52].mxu1 %vm1036_vm2, %v2781_v17 }
0x1137   :  { %v9049_v22 = vpop.f32.mrb[48].mxu1 }
0x1138   :  { %v2824_v24 = vpop.f32.mrb[49].mxu1 }
0x1139   :  { %v2826_v26 = vpop.f32.mrb[50].mxu1 }
0x113a   :  { %v2827_v30 = vpop.f32.mrb[51].mxu1 }
0x113f   :  { %v9051_v31 = vpop.f32.mrb[52].mxu1 }
0x1140   :  { %v7193_v32 = vpop.f32.mrb[53].mxu1 }
0x1141   :  { %v2866_v37 = vpop.f32.mrb[54].mxu1 }
0x1142   :  { %v7194_v34 = vpop.f32.mrb[55].mxu1 }
0x1143   :  { %8340 = dma.done.wait [#allocation10 + $0x1], 24576 }
0x1144   :  { %8341 = vsyncadd [#allocation10 + $0x1], 4294942720  ;;  %v9053_v35 = vpack.c.bf16 %v2824_v24, %v2824_v24  ;;  %v2874_v36 = vld [vmem:[#allocation3 + $0x8] sm:$0xff]  ;;  %v2876_v40 = vld [vmem:[#allocation3 + $0x18] sm:$0xff] }
0x1145   :  { %v2873_v44 = vld [vmem:[#allocation3] sm:$0xff]  ;;  %3110 = vmatprep.subr.bf16.mxu0 %v2874_v36  ;;  %3192 = vmatprep.subr.bf16.mxu1 %v2876_v40  ;;  %v2875_v47 = vld [vmem:[#allocation3 + $0x10] sm:$0xff]  ;;  %v2882_v52 = vld [vmem:[#allocation3 + $0x48] sm:$0xff] }
0x1146   :  { %3142 = vmatprep.mubr.bf16.mxu0 %v9053_v35  ;;  %3224 = vmatprep.mubr.bf16.mxu1 %v9053_v35  ;;  %v2884_v53 = vld [vmem:[#allocation3 + $0x58] sm:$0xff]  ;;  %v2881_v54 = vld [vmem:[#allocation3 + $0x40] sm:$0xff]  ;;  %v2883_v43 = vld [vmem:[#allocation3 + $0x50] sm:$0xff] }
0x1147   :  { %3111 = vmatpush1.bf16.msra.mxu0 %v2873_v44  ;;  %3193 = vmatpush1.bf16.msra.mxu1 %v2875_v47  ;;  %v2890_v48 = vld [vmem:[#allocation3 + $0x88] sm:$0xff]  ;;  %v2892_v21 = vld [vmem:[#allocation3 + $0x98] sm:$0xff]  ;;  %v2889_v49 = vld [vmem:[#allocation3 + $0x80] sm:$0xff] }
0x1148   :  { %3112 = vmatprep.subr.bf16.mxu0 %v2882_v52  ;;  %3194 = vmatprep.subr.bf16.mxu1 %v2884_v53  ;;  %v2891_v28 = vld [vmem:[#allocation3 + $0x90] sm:$0xff]  ;;  %v2898_v29 = vld [vmem:[#allocation3 + $0xc8] sm:$0xff]  ;;  %v2900_v63 = vld [vmem:[#allocation3 + $0xd8] sm:$0xff] }
0x1149   :  { %v2897_v33 = vld [vmem:[#allocation3 + $0xc0] sm:$0xff]  ;;  %v2899_v51 = vld [vmem:[#allocation3 + $0xd0] sm:$0xff]  ;;  %v2906_v55 = vld [vmem:[#allocation3 + $0x108] sm:$0xff] }
0x114a   :  { %v2908_v10 = vld [vmem:[#allocation3 + $0x118] sm:$0xff]  ;;  %v2905_v56 = vld [vmem:[#allocation3 + $0x100] sm:$0xff]  ;;  %v2907_v57 = vld [vmem:[#allocation3 + $0x110] sm:$0xff] }
0x114b   :  { %3113 = vmatpush1.bf16.msra.mxu0 %v2881_v54  ;;  %3195 = vmatpush1.bf16.msra.mxu1 %v2883_v43  ;;  %v2914_v58 = vld [vmem:[#allocation3 + $0x148] sm:$0xff]  ;;  %v2916_v59 = vld [vmem:[#allocation3 + $0x158] sm:$0xff]  ;;  %v2913_v60 = vld [vmem:[#allocation3 + $0x140] sm:$0xff] }
0x114c   :  { %3114 = vmatprep.subr.bf16.mxu0 %v2890_v48  ;;  %3196 = vmatprep.subr.bf16.mxu1 %v2892_v21  ;;  %v2915_v61 = vld [vmem:[#allocation3 + $0x150] sm:$0xff]  ;;  %v2922_v62 = vld [vmem:[#allocation3 + $0x188] sm:$0xff]  ;;  %v2924_v1 = vld [vmem:[#allocation3 + $0x198] sm:$0xff] }
0x114d   :  { %v2921_v2 = vld [vmem:[#allocation3 + $0x180] sm:$0xff]  ;;  %v2923_v4 = vld [vmem:[#allocation3 + $0x190] sm:$0xff]  ;;  %v2930_v5 = vld [vmem:[#allocation3 + $0x1c8] sm:$0xff] }
0x114e   :  { %v2932_v6 = vld [vmem:[#allocation3 + $0x1d8] sm:$0xff]  ;;  %v2929_v7 = vld [vmem:[#allocation3 + $0x1c0] sm:$0xff]  ;;  %v2931_v8 = vld [vmem:[#allocation3 + $0x1d0] sm:$0xff] }
0x114f   :  { %3115 = vmatpush1.bf16.msra.mxu0 %v2889_v49  ;;  %3197 = vmatpush1.bf16.msra.mxu1 %v2891_v28  ;;  %v2938_v9 = vld [vmem:[#allocation3 + $0x208] sm:$0xff]  ;;  %v2940_v3 = vld [vmem:[#allocation3 + $0x218] sm:$0xff]  ;;  %v2937_v11 = vld [vmem:[#allocation3 + $0x200] sm:$0xff] }
0x1150   :  { %3116 = vmatprep.subr.bf16.mxu0 %v2898_v29  ;;  %3198 = vmatprep.subr.bf16.mxu1 %v2900_v63  ;;  %v2939_v12 = vld [vmem:[#allocation3 + $0x210] sm:$0xff]  ;;  %v2946_v13 = vld [vmem:[#allocation3 + $0x248] sm:$0xff]  ;;  %v2948_v14 = vld [vmem:[#allocation3 + $0x258] sm:$0xff]  ;;  %v9059_v63 = vpack.c.bf16 %v9049_v22, %v9049_v22 }
0x1151   :  { %v2945_v15 = vld [vmem:[#allocation3 + $0x240] sm:$0xff]  ;;  %v2947_v16 = vld [vmem:[#allocation3 + $0x250] sm:$0xff]  ;;  %v2954_v17 = vld [vmem:[#allocation3 + $0x288] sm:$0xff] }
0x1152   :  { %v2956_v18 = vld [vmem:[#allocation3 + $0x298] sm:$0xff]  ;;  %v2953_v19 = vld [vmem:[#allocation3 + $0x280] sm:$0xff]  ;;  %v2955_v39 = vld [vmem:[#allocation3 + $0x290] sm:$0xff] }
0x1153   :  { %3117 = vmatpush1.bf16.msra.mxu0 %v2897_v33  ;;  %3199 = vmatpush1.bf16.msra.mxu1 %v2899_v51  ;;  %v2962_v46 = vld [vmem:[#allocation3 + $0x2c8] sm:$0xff]  ;;  %v2964_v45 = vld [vmem:[#allocation3 + $0x2d8] sm:$0xff]  ;;  %v2961_v50 = vld [vmem:[#allocation3 + $0x2c0] sm:$0xff] }
0x1154   :  { %3118 = vmatprep.subr.bf16.mxu0 %v2906_v55  ;;  %3200 = vmatprep.subr.bf16.mxu1 %v2908_v10  ;;  %v2963_v24 = vld [vmem:[#allocation3 + $0x2d0] sm:$0xff]  ;;  %v2970_v26 = vld [vmem:[#allocation3 + $0x308] sm:$0xff]  ;;  %v2972_v30 = vld [vmem:[#allocation3 + $0x318] sm:$0xff] }
0x1155   :  { %v2969_v32 = vld [vmem:[#allocation3 + $0x300] sm:$0xff]  ;;  %v2971_v37 = vld [vmem:[#allocation3 + $0x310] sm:$0xff]  ;;  %v2978_v34 = vld [vmem:[#allocation3 + $0x348] sm:$0xff] }
0x1156   :  { %v2980_v36 = vld [vmem:[#allocation3 + $0x358] sm:$0xff]  ;;  %v2977_v40 = vld [vmem:[#allocation3 + $0x340] sm:$0xff]  ;;  %v2979_v44 = vld [vmem:[#allocation3 + $0x350] sm:$0xff] }
0x1157   :  { %3119 = vmatpush1.bf16.msra.mxu0 %v2905_v56  ;;  %3201 = vmatpush1.bf16.msra.mxu1 %v2907_v57  ;;  %v2986_v47 = vld [vmem:[#allocation3 + $0x388] sm:$0xff]  ;;  %v2988_v52 = vld [vmem:[#allocation3 + $0x398] sm:$0xff]  ;;  %v2985_v53 = vld [vmem:[#allocation3 + $0x380] sm:$0xff] }
0x1158   :  { %3120 = vmatprep.subr.bf16.mxu0 %v2914_v58  ;;  %3202 = vmatprep.subr.bf16.mxu1 %v2916_v59  ;;  %v2987_v54 = vld [vmem:[#allocation3 + $0x390] sm:$0xff]  ;;  %v2994_v43 = vld [vmem:[#allocation3 + $0x3c8] sm:$0xff]  ;;  %v2996_v48 = vld [vmem:[#allocation3 + $0x3d8] sm:$0xff] }
0x1159   :  { %v2993_v21 = vld [vmem:[#allocation3 + $0x3c0] sm:$0xff]  ;;  %v2995_v49 = vld [vmem:[#allocation3 + $0x3d0] sm:$0xff]  ;;  %v3002_v28 = vld [vmem:[#allocation3 + $0x408] sm:$0xff] }
0x115a   :  { %v3004_v29 = vld [vmem:[#allocation3 + $0x418] sm:$0xff]  ;;  %v3001_v33 = vld [vmem:[#allocation3 + $0x400] sm:$0xff]  ;;  %v3003_v51 = vld [vmem:[#allocation3 + $0x410] sm:$0xff] }
0x115b   :  { %3121 = vmatpush1.bf16.msra.mxu0 %v2913_v60  ;;  %3203 = vmatpush1.bf16.msra.mxu1 %v2915_v61  ;;  %v3010_v55 = vld [vmem:[#allocation3 + $0x448] sm:$0xff]  ;;  %v3012_v10 = vld [vmem:[#allocation3 + $0x458] sm:$0xff]  ;;  %v3009_v56 = vld [vmem:[#allocation3 + $0x440] sm:$0xff] }
0x115c   :  { %3122 = vmatprep.subr.bf16.mxu0 %v2922_v62  ;;  %3204 = vmatprep.subr.bf16.mxu1 %v2924_v1  ;;  %v3011_v57 = vld [vmem:[#allocation3 + $0x450] sm:$0xff]  ;;  %v3018_v22 = vld [vmem:[#allocation3 + $0x488] sm:$0xff]  ;;  %v3020_v58 = vld [vmem:[#allocation3 + $0x498] sm:$0xff] }
0x115d   :  { %v3017_v59 = vld [vmem:[#allocation3 + $0x480] sm:$0xff]  ;;  %v3019_v60 = vld [vmem:[#allocation3 + $0x490] sm:$0xff]  ;;  %v3026_v61 = vld [vmem:[#allocation3 + $0x4c8] sm:$0xff] }
0x115e   :  { %v3028_v62 = vld [vmem:[#allocation3 + $0x4d8] sm:$0xff]  ;;  %v3025_v1 = vld [vmem:[#allocation3 + $0x4c0] sm:$0xff] }
0x115f   :  { %3123 = vmatpush1.bf16.msra.mxu0 %v2921_v2  ;;  %3205 = vmatpush1.bf16.msra.mxu1 %v2923_v4  ;;  %v3027_v2 = vld [vmem:[#allocation3 + $0x4d0] sm:$0xff]  ;;  %v3034_v4 = vld [vmem:[#allocation3 + $0x508] sm:$0xff] }
0x1160   :  { %3124 = vmatprep.subr.bf16.mxu0 %v2930_v5  ;;  %3206 = vmatprep.subr.bf16.mxu1 %v2932_v6  ;;  %v3036_v5 = vld [vmem:[#allocation3 + $0x518] sm:$0xff]  ;;  %v3033_v6 = vld [vmem:[#allocation3 + $0x500] sm:$0xff] }
0x1163   :  { %3125 = vmatpush1.bf16.msra.mxu0 %v2929_v7  ;;  %3207 = vmatpush1.bf16.msra.mxu1 %v2931_v8  ;;  %v3035_v7 = vld [vmem:[#allocation3 + $0x510] sm:$0xff]  ;;  %v3042_v8 = vld [vmem:[#allocation3 + $0x548] sm:$0xff] }
0x1164   :  { %3126 = vmatprep.subr.bf16.mxu0 %v2938_v9  ;;  %3208 = vmatprep.subr.bf16.mxu1 %v2940_v3  ;;  %v3044_v9 = vld [vmem:[#allocation3 + $0x558] sm:$0xff]  ;;  %v3041_v3 = vld [vmem:[#allocation3 + $0x540] sm:$0xff] }
0x1167   :  { %3127 = vmatpush1.bf16.msra.mxu0 %v2937_v11  ;;  %3209 = vmatpush1.bf16.msra.mxu1 %v2939_v12  ;;  %v3043_v11 = vld [vmem:[#allocation3 + $0x550] sm:$0xff]  ;;  %v3050_v12 = vld [vmem:[#allocation3 + $0x588] sm:$0xff] }
0x1168   :  { %3128 = vmatprep.subr.bf16.mxu0 %v2946_v13  ;;  %3210 = vmatprep.subr.bf16.mxu1 %v2948_v14  ;;  %v3052_v13 = vld [vmem:[#allocation3 + $0x598] sm:$0xff]  ;;  %v3049_v14 = vld [vmem:[#allocation3 + $0x580] sm:$0xff] }
0x116b   :  { %3129 = vmatpush1.bf16.msra.mxu0 %v2945_v15  ;;  %3211 = vmatpush1.bf16.msra.mxu1 %v2947_v16  ;;  %v3051_v15 = vld [vmem:[#allocation3 + $0x590] sm:$0xff]  ;;  %v3058_v16 = vld [vmem:[#allocation3 + $0x5c8] sm:$0xff] }
0x116c   :  { %3130 = vmatprep.subr.bf16.mxu0 %v2954_v17  ;;  %3212 = vmatprep.subr.bf16.mxu1 %v2956_v18  ;;  %v3060_v17 = vld [vmem:[#allocation3 + $0x5d8] sm:$0xff]  ;;  %v3057_v18 = vld [vmem:[#allocation3 + $0x5c0] sm:$0xff] }
0x116f   :  { %3131 = vmatpush1.bf16.msra.mxu0 %v2953_v19  ;;  %3213 = vmatpush1.bf16.msra.mxu1 %v2955_v39  ;;  %v3059_v19 = vld [vmem:[#allocation3 + $0x5d0] sm:$0xff]  ;;  %v2878_v39 = vld [vmem:[#allocation3 + $0x28] sm:$0xff] }
0x1170   :  { %3132 = vmatprep.subr.bf16.mxu0 %v2962_v46  ;;  %3214 = vmatprep.subr.bf16.mxu1 %v2964_v45  ;;  %v2880_v46 = vld [vmem:[#allocation3 + $0x38] sm:$0xff]  ;;  %v9067_v45 = vpack.c.bf16 %v9051_v31, %v9051_v31  ;;  %v2894_v31 = vld [vmem:[#allocation3 + $0xa8] sm:$0xff] }
0x1173   :  { %3133 = vmatpush1.bf16.msra.mxu0 %v2961_v50  ;;  %3215 = vmatpush1.bf16.msra.mxu1 %v2963_v24  ;;  %v2877_v50 = vld [vmem:[#allocation3 + $0x20] sm:$0xff]  ;;  %v2879_v24 = vld [vmem:[#allocation3 + $0x30] sm:$0xff] }
0x1174   :  { %3134 = vmatprep.subr.bf16.mxu0 %v2970_v26  ;;  %3216 = vmatprep.subr.bf16.mxu1 %v2972_v30  ;;  %v2886_v26 = vld [vmem:[#allocation3 + $0x68] sm:$0xff]  ;;  %v2888_v30 = vld [vmem:[#allocation3 + $0x78] sm:$0xff] }
0x1177   :  { %3135 = vmatpush1.bf16.msra.mxu0 %v2969_v32  ;;  %3217 = vmatpush1.bf16.msra.mxu1 %v2971_v37  ;;  %v2885_v32 = vld [vmem:[#allocation3 + $0x60] sm:$0xff]  ;;  %v2887_v37 = vld [vmem:[#allocation3 + $0x70] sm:$0xff] }
0x1178   :  { %3136 = vmatprep.subr.bf16.mxu0 %v2978_v34  ;;  %3218 = vmatprep.subr.bf16.mxu1 %v2980_v36  ;;  %v2896_v34 = vld [vmem:[#allocation3 + $0xb8] sm:$0xff]  ;;  %v2893_v36 = vld [vmem:[#allocation3 + $0xa0] sm:$0xff] }
0x117b   :  { %3137 = vmatpush1.bf16.msra.mxu0 %v2977_v40  ;;  %3219 = vmatpush1.bf16.msra.mxu1 %v2979_v44  ;;  %v2895_v40 = vld [vmem:[#allocation3 + $0xb0] sm:$0xff]  ;;  %v2902_v44 = vld [vmem:[#allocation3 + $0xe8] sm:$0xff] }
0x117c   :  { %3138 = vmatprep.subr.bf16.mxu0 %v2986_v47  ;;  %3220 = vmatprep.subr.bf16.mxu1 %v2988_v52  ;;  %v2904_v47 = vld [vmem:[#allocation3 + $0xf8] sm:$0xff]  ;;  %v2901_v52 = vld [vmem:[#allocation3 + $0xe0] sm:$0xff] }
0x117f   :  { %3139 = vmatpush1.bf16.msra.mxu0 %v2985_v53  ;;  %3221 = vmatpush1.bf16.msra.mxu1 %v2987_v54  ;;  %v2903_v53 = vld [vmem:[#allocation3 + $0xf0] sm:$0xff]  ;;  %v2910_v54 = vld [vmem:[#allocation3 + $0x128] sm:$0xff] }
0x1180   :  { %3140 = vmatprep.subr.bf16.mxu0 %v2994_v43  ;;  %3222 = vmatprep.subr.bf16.mxu1 %v2996_v48  ;;  %v2912_v43 = vld [vmem:[#allocation3 + $0x138] sm:$0xff]  ;;  %v2911_v48 = vld [vmem:[#allocation3 + $0x130] sm:$0xff] }
0x1183   :  { %3141 = vmatpush1.bf16.msra.mxu0 %v2993_v21  ;;  %3223 = vmatpush1.bf16.msra.mxu1 %v2995_v49  ;;  %v2918_v21 = vld [vmem:[#allocation3 + $0x168] sm:$0xff]  ;;  %v2920_v49 = vld [vmem:[#allocation3 + $0x178] sm:$0xff] }
0x1184   :  { %3151 = vmatprep.subr.bf16.mxu0 %v3002_v28  ;;  %3233 = vmatprep.subr.bf16.mxu1 %v3004_v29  ;;  %v2917_v28 = vld [vmem:[#allocation3 + $0x160] sm:$0xff]  ;;  %v2919_v29 = vld [vmem:[#allocation3 + $0x170] sm:$0xff] }
0x1186   :  { %3143 = vmatmul.mubr.bf16.vlgmr.msra.gmra.mrb[24].mxu0 %v9059_v63  ;;  %3225 = vmatmul.mubr.bf16.vlgmr.msra.gmra.mrb[56].mxu1 %v9059_v63 }
0x1187   :  { %3152 = vmatpush1.bf16.msra.mxu0 %v3001_v33  ;;  %3234 = vmatpush1.bf16.msra.mxu1 %v3003_v51  ;;  %v2926_v33 = vld [vmem:[#allocation3 + $0x1a8] sm:$0xff]  ;;  %v2928_v51 = vld [vmem:[#allocation3 + $0x1b8] sm:$0xff] }
0x1188   :  { %3153 = vmatprep.subr.bf16.mxu0 %v3010_v55  ;;  %3235 = vmatprep.subr.bf16.mxu1 %v3012_v10  ;;  %v2925_v55 = vld [vmem:[#allocation3 + $0x1a0] sm:$0xff]  ;;  %v2927_v10 = vld [vmem:[#allocation3 + $0x1b0] sm:$0xff] }
0x1189   :  { %3183 = vmatprep.mubr.bf16.mxu0 %v8428_v0  ;;  %3265 = vmatprep.mubr.bf16.mxu1 %v8428_v0 }
0x118b   :  { %3154 = vmatpush1.bf16.msra.mxu0 %v3009_v56  ;;  %3236 = vmatpush1.bf16.msra.mxu1 %v3011_v57  ;;  %v2934_v56 = vld [vmem:[#allocation3 + $0x1e8] sm:$0xff]  ;;  %v2936_v57 = vld [vmem:[#allocation3 + $0x1f8] sm:$0xff] }
0x118c   :  { %3155 = vmatprep.subr.bf16.mxu0 %v3018_v22  ;;  %3237 = vmatprep.subr.bf16.mxu1 %v3020_v58  ;;  %v2933_v22 = vld [vmem:[#allocation3 + $0x1e0] sm:$0xff]  ;;  %v2935_v58 = vld [vmem:[#allocation3 + $0x1f0] sm:$0xff] }
0x118f   :  { %3156 = vmatpush1.bf16.msra.mxu0 %v3017_v59  ;;  %3238 = vmatpush1.bf16.msra.mxu1 %v3019_v60  ;;  %v2942_v59 = vld [vmem:[#allocation3 + $0x228] sm:$0xff]  ;;  %v2944_v60 = vld [vmem:[#allocation3 + $0x238] sm:$0xff] }
0x1190   :  { %3157 = vmatprep.subr.bf16.mxu0 %v3026_v61  ;;  %3239 = vmatprep.subr.bf16.mxu1 %v3028_v62  ;;  %v2941_v61 = vld [vmem:[#allocation3 + $0x220] sm:$0xff]  ;;  %v2943_v62 = vld [vmem:[#allocation3 + $0x230] sm:$0xff] }
0x1193   :  { %3158 = vmatpush1.bf16.msra.mxu0 %v3025_v1  ;;  %3240 = vmatpush1.bf16.msra.mxu1 %v3027_v2  ;;  %v2950_v1 = vld [vmem:[#allocation3 + $0x268] sm:$0xff]  ;;  %v2952_v2 = vld [vmem:[#allocation3 + $0x278] sm:$0xff] }
0x1194   :  { %3159 = vmatprep.subr.bf16.mxu0 %v3034_v4  ;;  %3241 = vmatprep.subr.bf16.mxu1 %v3036_v5  ;;  %v2949_v4 = vld [vmem:[#allocation3 + $0x260] sm:$0xff]  ;;  %v2951_v5 = vld [vmem:[#allocation3 + $0x270] sm:$0xff] }
0x1197   :  { %3160 = vmatpush1.bf16.msra.mxu0 %v3033_v6  ;;  %3242 = vmatpush1.bf16.msra.mxu1 %v3035_v7  ;;  %v2958_v6 = vld [vmem:[#allocation3 + $0x2a8] sm:$0xff]  ;;  %v2960_v7 = vld [vmem:[#allocation3 + $0x2b8] sm:$0xff] }
0x1198   :  { %3161 = vmatprep.subr.bf16.mxu0 %v3042_v8  ;;  %3243 = vmatprep.subr.bf16.mxu1 %v3044_v9  ;;  %v2957_v8 = vld [vmem:[#allocation3 + $0x2a0] sm:$0xff]  ;;  %v2959_v9 = vld [vmem:[#allocation3 + $0x2b0] sm:$0xff] }
0x119b   :  { %3162 = vmatpush1.bf16.msra.mxu0 %v3041_v3  ;;  %3244 = vmatpush1.bf16.msra.mxu1 %v3043_v11  ;;  %v2966_v3 = vld [vmem:[#allocation3 + $0x2e8] sm:$0xff]  ;;  %v2968_v11 = vld [vmem:[#allocation3 + $0x2f8] sm:$0xff] }
0x119c   :  { %3163 = vmatprep.subr.bf16.mxu0 %v3050_v12  ;;  %3245 = vmatprep.subr.bf16.mxu1 %v3052_v13  ;;  %v2965_v12 = vld [vmem:[#allocation3 + $0x2e0] sm:$0xff]  ;;  %v2967_v13 = vld [vmem:[#allocation3 + $0x2f0] sm:$0xff] }
0x119f   :  { %3164 = vmatpush1.bf16.msra.mxu0 %v3049_v14  ;;  %3246 = vmatpush1.bf16.msra.mxu1 %v3051_v15  ;;  %v2974_v14 = vld [vmem:[#allocation3 + $0x328] sm:$0xff]  ;;  %v2976_v15 = vld [vmem:[#allocation3 + $0x338] sm:$0xff] }
0x11a0   :  { %3165 = vmatprep.subr.bf16.mxu0 %v3058_v16  ;;  %3247 = vmatprep.subr.bf16.mxu1 %v3060_v17  ;;  %v2973_v16 = vld [vmem:[#allocation3 + $0x320] sm:$0xff]  ;;  %v2975_v17 = vld [vmem:[#allocation3 + $0x330] sm:$0xff] }
0x11a3   :  { %3166 = vmatpush1.bf16.msra.mxu0 %v3057_v18  ;;  %3248 = vmatpush1.bf16.msra.mxu1 %v3059_v19  ;;  %v2982_v18 = vld [vmem:[#allocation3 + $0x368] sm:$0xff]  ;;  %v2984_v19 = vld [vmem:[#allocation3 + $0x378] sm:$0xff] }
0x11a4   :  { %3274 = vmatprep.subr.bf16.mxu0 %v2878_v39  ;;  %3356 = vmatprep.subr.bf16.mxu1 %v2880_v46  ;;  %v2981_v39 = vld [vmem:[#allocation3 + $0x360] sm:$0xff]  ;;  %v2983_v46 = vld [vmem:[#allocation3 + $0x370] sm:$0xff] }
0x11a6   :  { %3184 = vmatmul.mubr.bf16.vlgmr.msra.gmra.mrb[24].mxu0 %v9067_v45  ;;  %3266 = vmatmul.mubr.bf16.vlgmr.msra.gmra.mrb[56].mxu1 %v9067_v45 }
0x11a7   :  { %3275 = vmatpush1.bf16.msra.mxu0 %v2877_v50  ;;  %3357 = vmatpush1.bf16.msra.mxu1 %v2879_v24  ;;  %v2990_v50 = vld [vmem:[#allocation3 + $0x3a8] sm:$0xff]  ;;  %v2992_v24 = vld [vmem:[#allocation3 + $0x3b8] sm:$0xff] }
0x11a8   :  { %3276 = vmatprep.subr.bf16.mxu0 %v2886_v26  ;;  %3358 = vmatprep.subr.bf16.mxu1 %v2888_v30  ;;  %v2989_v26 = vld [vmem:[#allocation3 + $0x3a0] sm:$0xff]  ;;  %v2991_v30 = vld [vmem:[#allocation3 + $0x3b0] sm:$0xff] }
0x11a9   :  { %3306 = vmatprep.mubr.bf16.mxu0 %v9053_v35  ;;  %3388 = vmatprep.mubr.bf16.mxu1 %v9053_v35  ;;  %v2909_v35 = vld [vmem:[#allocation3 + $0x120] sm:$0xff] }
0x11ab   :  { %3277 = vmatpush1.bf16.msra.mxu0 %v2885_v32  ;;  %3359 = vmatpush1.bf16.msra.mxu1 %v2887_v37  ;;  %v2998_v32 = vld [vmem:[#allocation3 + $0x3e8] sm:$0xff]  ;;  %v3000_v37 = vld [vmem:[#allocation3 + $0x3f8] sm:$0xff] }
0x11ac   :  { %3278 = vmatprep.subr.bf16.mxu0 %v2894_v31  ;;  %3360 = vmatprep.subr.bf16.mxu1 %v2896_v34  ;;  %v2997_v31 = vld [vmem:[#allocation3 + $0x3e0] sm:$0xff]  ;;  %v2999_v34 = vld [vmem:[#allocation3 + $0x3f0] sm:$0xff] }
0x11af   :  { %3279 = vmatpush1.bf16.msra.mxu0 %v2893_v36  ;;  %3361 = vmatpush1.bf16.msra.mxu1 %v2895_v40  ;;  %v3006_v36 = vld [vmem:[#allocation3 + $0x428] sm:$0xff]  ;;  %v3008_v40 = vld [vmem:[#allocation3 + $0x438] sm:$0xff] }
0x11b0   :  { %3280 = vmatprep.subr.bf16.mxu0 %v2902_v44  ;;  %3362 = vmatprep.subr.bf16.mxu1 %v2904_v47  ;;  %v3005_v44 = vld [vmem:[#allocation3 + $0x420] sm:$0xff]  ;;  %v3007_v47 = vld [vmem:[#allocation3 + $0x430] sm:$0xff] }
0x11b3   :  { %3281 = vmatpush1.bf16.msra.mxu0 %v2901_v52  ;;  %3363 = vmatpush1.bf16.msra.mxu1 %v2903_v53  ;;  %v3014_v52 = vld [vmem:[#allocation3 + $0x468] sm:$0xff]  ;;  %v3016_v53 = vld [vmem:[#allocation3 + $0x478] sm:$0xff] }
0x11b4   :  { %3282 = vmatprep.subr.bf16.mxu0 %v2910_v54  ;;  %3364 = vmatprep.subr.bf16.mxu1 %v2912_v43  ;;  %v3013_v54 = vld [vmem:[#allocation3 + $0x460] sm:$0xff]  ;;  %v3015_v43 = vld [vmem:[#allocation3 + $0x470] sm:$0xff] }
0x11b7   :  { %3283 = vmatpush1.bf16.msra.mxu0 %v2909_v35  ;;  %3365 = vmatpush1.bf16.msra.mxu1 %v2911_v48  ;;  %v3022_v35 = vld [vmem:[#allocation3 + $0x4a8] sm:$0xff]  ;;  %v3024_v48 = vld [vmem:[#allocation3 + $0x4b8] sm:$0xff] }
0x11b8   :  { %3284 = vmatprep.subr.bf16.mxu0 %v2918_v21  ;;  %3366 = vmatprep.subr.bf16.mxu1 %v2920_v49  ;;  %v3021_v21 = vld [vmem:[#allocation3 + $0x4a0] sm:$0xff]  ;;  %v3023_v49 = vld [vmem:[#allocation3 + $0x4b0] sm:$0xff] }
0x11bb   :  { %3285 = vmatpush1.bf16.msra.mxu0 %v2917_v28  ;;  %3367 = vmatpush1.bf16.msra.mxu1 %v2919_v29  ;;  %v3030_v28 = vld [vmem:[#allocation3 + $0x4e8] sm:$0xff]  ;;  %v3029_v29 = vld [vmem:[#allocation3 + $0x4e0] sm:$0xff] }
0x11bc   :  { %3286 = vmatprep.subr.bf16.mxu0 %v2926_v33  ;;  %3368 = vmatprep.subr.bf16.mxu1 %v2928_v51  ;;  %v3031_v33 = vld [vmem:[#allocation3 + $0x4f0] sm:$0xff]  ;;  %v3038_v51 = vld [vmem:[#allocation3 + $0x528] sm:$0xff] }
0x11bf   :  { %3287 = vmatpush1.bf16.msra.mxu0 %v2925_v55  ;;  %3369 = vmatpush1.bf16.msra.mxu1 %v2927_v10  ;;  %v3040_v55 = vld [vmem:[#allocation3 + $0x538] sm:$0xff]  ;;  %v3037_v10 = vld [vmem:[#allocation3 + $0x520] sm:$0xff] }
0x11c0   :  { %3288 = vmatprep.subr.bf16.mxu0 %v2934_v56  ;;  %3370 = vmatprep.subr.bf16.mxu1 %v2936_v57  ;;  %v3039_v56 = vld [vmem:[#allocation3 + $0x530] sm:$0xff]  ;;  %v3046_v57 = vld [vmem:[#allocation3 + $0x568] sm:$0xff] }
0x11c3   :  { %3289 = vmatpush1.bf16.msra.mxu0 %v2933_v22  ;;  %3371 = vmatpush1.bf16.msra.mxu1 %v2935_v58  ;;  %v3048_v22 = vld [vmem:[#allocation3 + $0x578] sm:$0xff]  ;;  %v3045_v58 = vld [vmem:[#allocation3 + $0x560] sm:$0xff] }
0x11c4   :  { %3290 = vmatprep.subr.bf16.mxu0 %v2942_v59  ;;  %3372 = vmatprep.subr.bf16.mxu1 %v2944_v60  ;;  %v3047_v59 = vld [vmem:[#allocation3 + $0x570] sm:$0xff]  ;;  %v3054_v60 = vld [vmem:[#allocation3 + $0x5a8] sm:$0xff] }
0x11c7   :  { %3291 = vmatpush1.bf16.msra.mxu0 %v2941_v61  ;;  %3373 = vmatpush1.bf16.msra.mxu1 %v2943_v62  ;;  %v3056_v61 = vld [vmem:[#allocation3 + $0x5b8] sm:$0xff]  ;;  %v3053_v62 = vld [vmem:[#allocation3 + $0x5a0] sm:$0xff] }
0x11c8   :  { %3292 = vmatprep.subr.bf16.mxu0 %v2950_v1  ;;  %3374 = vmatprep.subr.bf16.mxu1 %v2952_v2  ;;  %v3055_v1 = vld [vmem:[#allocation3 + $0x5b0] sm:$0xff]  ;;  %v3062_v2 = vld [vmem:[#allocation3 + $0x5e8] sm:$0xff] }
0x11cb   :  { %3293 = vmatpush1.bf16.msra.mxu0 %v2949_v4  ;;  %3375 = vmatpush1.bf16.msra.mxu1 %v2951_v5  ;;  %v3064_v4 = vld [vmem:[#allocation3 + $0x5f8] sm:$0xff]  ;;  %v3061_v5 = vld [vmem:[#allocation3 + $0x5e0] sm:$0xff] }
0x11cc   :  { %3294 = vmatprep.subr.bf16.mxu0 %v2958_v6  ;;  %3376 = vmatprep.subr.bf16.mxu1 %v2960_v7  ;;  %v3063_v6 = vld [vmem:[#allocation3 + $0x5f0] sm:$0xff]  ;;  %v3065_v7 = vld [vmem:[#allocation28] sm:$0xff] }
0x11cf   :  { %3295 = vmatpush1.bf16.msra.mxu0 %v2957_v8  ;;  %3377 = vmatpush1.bf16.msra.mxu1 %v2959_v9  ;;  %v3073_v8 = vrot.slane %v3065_v7, %v8883_v42  ;;  %v3081_v9 = vrot.slane %v3065_v7, %v8969_v20 }
0x11d0   :  { %3296 = vmatprep.subr.bf16.mxu0 %v2966_v3  ;;  %3378 = vmatprep.subr.bf16.mxu1 %v2968_v11  ;;  %v3077_v3 = vrot.slane %v3065_v7, %v8880_v41  ;;  %v3085_v11 = vrot.slane %v3065_v7, %v8974_v23 }
0x11d3   :  { %3297 = vmatpush1.bf16.msra.mxu0 %v2965_v12  ;;  %3379 = vmatpush1.bf16.msra.mxu1 %v2967_v13 }
0x11d4   :  { %3298 = vmatprep.subr.bf16.mxu0 %v2974_v14  ;;  %3380 = vmatprep.subr.bf16.mxu1 %v2976_v15 }
0x11d7   :  { %3299 = vmatpush1.bf16.msra.mxu0 %v2973_v16  ;;  %3381 = vmatpush1.bf16.msra.mxu1 %v2975_v17 }
0x11d8   :  { %3300 = vmatprep.subr.bf16.mxu0 %v2982_v18  ;;  %3382 = vmatprep.subr.bf16.mxu1 %v2984_v19 }
0x11db   :  { %3301 = vmatpush1.bf16.msra.mxu0 %v2981_v39  ;;  %3383 = vmatpush1.bf16.msra.mxu1 %v2983_v46 }
0x11dc   :  { %3302 = vmatprep.subr.bf16.mxu0 %v2990_v50  ;;  %3384 = vmatprep.subr.bf16.mxu1 %v2992_v24 }
0x11df   :  { %3303 = vmatpush1.bf16.msra.mxu0 %v2989_v26  ;;  %3385 = vmatpush1.bf16.msra.mxu1 %v2991_v30 }
0x11e0   :  { %3304 = vmatprep.subr.bf16.mxu0 %v2998_v32  ;;  %3386 = vmatprep.subr.bf16.mxu1 %v3000_v37  ;;  %v9090_v37 = vsub.s32 4, %v8864_v25 }
0x11e3   :  { %3305 = vmatpush1.bf16.msra.mxu0 %v2997_v31  ;;  %3387 = vmatpush1.bf16.msra.mxu1 %v2999_v34  ;;  %v9093_v31 = vsub.s32 6, %v8864_v25  ;;  %v9096_v34 = vsub.s32 5, %v8864_v25 }
0x11e4   :  { %3315 = vmatprep.subr.bf16.mxu0 %v3006_v36  ;;  %3397 = vmatprep.subr.bf16.mxu1 %v3008_v40  ;;  %v9099_v36 = vsub.s32 7, %v8864_v25  ;;  %v3089_v40 = vrot.slane %v3065_v7, %v9090_v37 }
0x11e6   :  { %3307 = vmatmul.mubr.bf16.vlgmr.msra.gmra.mrb[28].mxu0 %v9059_v63  ;;  %3389 = vmatmul.mubr.bf16.vlgmr.msra.gmra.mrb[60].mxu1 %v9059_v63  ;;  %v3032_v63 = vld [vmem:[#allocation3 + $0x4f8] sm:$0xff] }
0x11e7   :  { %3316 = vmatpush1.bf16.msra.mxu0 %v3005_v44  ;;  %3398 = vmatpush1.bf16.msra.mxu1 %v3007_v47  ;;  %v3097_v44 = vrot.slane %v3065_v7, %v9093_v31  ;;  %v3093_v47 = vrot.slane %v3065_v7, %v9096_v34 }
0x11e8   :  { %3317 = vmatprep.subr.bf16.mxu0 %v3014_v52  ;;  %3399 = vmatprep.subr.bf16.mxu1 %v3016_v53  ;;  %v3101_v52 = vrot.slane %v3065_v7, %v9099_v36 }
0x11e9   :  { %3347 = vmatprep.mubr.bf16.mxu0 %v8428_v0  ;;  %3429 = vmatprep.mubr.bf16.mxu1 %v8428_v0 }
0x11eb   :  { %3318 = vmatpush1.bf16.msra.mxu0 %v3013_v54  ;;  %3400 = vmatpush1.bf16.msra.mxu1 %v3015_v43 }
0x11ec   :  { %3319 = vmatprep.subr.bf16.mxu0 %v3022_v35  ;;  %3401 = vmatprep.subr.bf16.mxu1 %v3024_v48 }
0x11ef   :  { %3320 = vmatpush1.bf16.msra.mxu0 %v3021_v21  ;;  %3402 = vmatpush1.bf16.msra.mxu1 %v3023_v49 }
0x11f0   :  { %3321 = vmatprep.subr.bf16.mxu0 %v3030_v28  ;;  %3403 = vmatprep.subr.bf16.mxu1 %v3032_v63 }
0x11f3   :  { %3322 = vmatpush1.bf16.msra.mxu0 %v3029_v29  ;;  %3404 = vmatpush1.bf16.msra.mxu1 %v3031_v33 }
0x11f4   :  { %3323 = vmatprep.subr.bf16.mxu0 %v3038_v51  ;;  %3405 = vmatprep.subr.bf16.mxu1 %v3040_v55 }
0x11f7   :  { %3324 = vmatpush1.bf16.msra.mxu0 %v3037_v10  ;;  %3406 = vmatpush1.bf16.msra.mxu1 %v3039_v56 }
0x11f8   :  { %3325 = vmatprep.subr.bf16.mxu0 %v3046_v57  ;;  %3407 = vmatprep.subr.bf16.mxu1 %v3048_v22 }
0x11fb   :  { %3326 = vmatpush1.bf16.msra.mxu0 %v3045_v58  ;;  %3408 = vmatpush1.bf16.msra.mxu1 %v3047_v59 }
0x11fc   :  { %3327 = vmatprep.subr.bf16.mxu0 %v3054_v60  ;;  %3409 = vmatprep.subr.bf16.mxu1 %v3056_v61 }
0x11ff   :  { %3328 = vmatpush1.bf16.msra.mxu0 %v3053_v62  ;;  %3410 = vmatpush1.bf16.msra.mxu1 %v3055_v1 }
0x1200   :  { %3329 = vmatprep.subr.bf16.mxu0 %v3062_v2  ;;  %3411 = vmatprep.subr.bf16.mxu1 %v3064_v4 }
0x1203   :  { %3330 = vmatpush1.bf16.msra.mxu0 %v3061_v5  ;;  %3412 = vmatpush1.bf16.msra.mxu1 %v3063_v6 }
0x1206   :  { %3348 = vmatmul.mubr.bf16.vlgmr.msra.gmra.mrb[28].mxu0 %v9067_v45  ;;  %3430 = vmatmul.mubr.bf16.vlgmr.msra.gmra.mrb[60].mxu1 %v9067_v45 }
0x1279   :  { %v3185_v12 = vpop.f32.mrb[24].mxu0  ;;  %v3267_v13 = vpop.f32.mrb[56].mxu1 }
0x127a   :  { %v9083_v14 = vadd.f32 %v3185_v12, %v3073_v8  ;;  %v9085_v15 = vadd.f32 %v3267_v13, %v3081_v9  ;;  %v3187_v16 = vpop.f32.mrb[25].mxu0  ;;  %v3269_v17 = vpop.f32.mrb[57].mxu1 }
0x127b   :  { %v7234_v18 = vadd.f32 %v3187_v16, %v3077_v3  ;;  %v7236_v19 = vadd.f32 %v3269_v17, %v3085_v11  ;;  %v3189_v45 = vpop.f32.mrb[26].mxu0  ;;  %v3271_v39 = vpop.f32.mrb[58].mxu1 }
0x127c   :  { %v3438_v46 = vmax.f32 %v9083_v14, 0.0  ;;  %v3440_v50 = vmax.f32 %v9085_v15, 0.0  ;;  %v3190_v24 = vpop.f32.mrb[27].mxu0  ;;  %v3272_v26 = vpop.f32.mrb[59].mxu1 }
0x127d   :  { %v3439_v30 = vmax.f32 %v7234_v18, 0.0  ;;  %v3441_v32 = vmax.f32 %v7236_v19, 0.0 }
0x12d9   :  { %v3349_v53 = vpop.f32.mrb[28].mxu0  ;;  %v3431_v54 = vpop.f32.mrb[60].mxu1 }
0x12da   :  { %v9105_v43 = vadd.f32 %v3349_v53, %v3089_v40  ;;  %v9107_v35 = vadd.f32 %v3431_v54, %v3097_v44  ;;  %v3351_v48 = vpop.f32.mrb[29].mxu0  ;;  %v3433_v21 = vpop.f32.mrb[61].mxu1 }
0x12db   :  { %v9109_v49 = vadd.f32 %v3351_v48, %v3093_v47  ;;  %v9111_v25 = vadd.f32 %v3433_v21, %v3101_v52  ;;  %v3353_v28 = vpop.f32.mrb[30].mxu0  ;;  %v3435_v63 = vpop.f32.mrb[62].mxu1 }
0x12dc   :  { %v3442_v29 = vmax.f32 %v9105_v43, 0.0  ;;  %v3444_v33 = vmax.f32 %v9107_v35, 0.0  ;;  %v3354_v51 = vpop.f32.mrb[31].mxu0  ;;  %v3436_v55 = vpop.f32.mrb[63].mxu1 }
0x12dd   :  { %v3443_v10 = vmax.f32 %v9109_v49, 0.0  ;;  %v3445_v56 = vmax.f32 %v9111_v25, 0.0 }
0x12de   :  { %8342 = dma.done.wait [#allocation10 + $0x2], 8192 }
0x12df   :  { %8343 = vsyncadd [#allocation10 + $0x2], 4294959104  ;;  %v3516_v57 = vpack.c.bf16 %v3439_v30, %v3439_v30  ;;  %v3518_v22 = vpack.c.bf16 %v3441_v32, %v3441_v32  ;;  %v3458_v58 = vld [vmem:[#allocation4 + $0x40] sm:$0xff]  ;;  %v3459_v62 = vld [vmem:[#allocation4 + $0x48] sm:$0xff]  ;;  %v3515_v21 = vpack.c.bf16 %v3438_v46, %v3438_v46  ;;  %v3517_v63 = vpack.c.bf16 %v3440_v50, %v3440_v50  ;;  %s9431_s23 = sld [smem:[#allocation103_spill]]  ;;  %s9432_s12 = sld [smem:[#allocation94_spill]] }
0x12e0   :  { %v3450_v59 = vld [vmem:[#allocation4] sm:$0xff]  ;;  %6924 = vmatprep.subr.bf16.mxu0 %v3458_v58  ;;  %v3475_v1 = vld [vmem:[#allocation4 + $0xc8] sm:$0xff]  ;;  %v3460_v5 = vld [vmem:[#allocation4 + $0x50] sm:$0xff]  ;;  %v3522_v14 = vpack.c.bf16 %v3445_v56, %v3445_v56  ;;  %s9433_s27 = sld [smem:[#allocation95_spill]]  ;;  %s9434_s8 = sld [smem:[#allocation96_spill]] }
0x12e1   :  { %3561 = vmatprep.mubr.bf16.mxu0 %v3516_v57  ;;  %3601 = vmatprep.mubr.bf16.mxu1 %v3518_v22  ;;  %v3474_v60 = vld [vmem:[#allocation4 + $0xc0] sm:$0xff]  ;;  %v3451_v2 = vld [vmem:[#allocation4 + $0x8] sm:$0xff]  ;;  %v3476_v6 = vld [vmem:[#allocation4 + $0xd0] sm:$0xff]  ;;  %v3520_v22 = vpack.c.bf16 %v3443_v10, %v3443_v10  ;;  %s9435_s4 = sld [smem:[#allocation97_spill]] }
0x12e2   :  { %6946 = vmatprep.subr.bf16.mxu1 %v3474_v60  ;;  %v3466_v61 = vld [vmem:[#allocation4 + $0x80] sm:$0xff]  ;;  %6925 = vmatpush3.bf16.msra.mxu0 %v3450_v59  ;;  %v3467_v4 = vld [vmem:[#allocation4 + $0x88] sm:$0xff]  ;;  %v3452_v7 = vld [vmem:[#allocation4 + $0x10] sm:$0xff] }
0x12e3   :  { %6947 = vmatpush3.bf16.msra.mxu1 %v3466_v61  ;;  %6926 = vmatprep.subr.bf16.mxu0 %v3459_v62  ;;  %v3468_v8 = vld [vmem:[#allocation4 + $0x90] sm:$0xff]  ;;  %v3461_v9 = vld [vmem:[#allocation4 + $0x58] sm:$0xff]  ;;  %v3462_v13 = vld [vmem:[#allocation4 + $0x60] sm:$0xff] }
0x12e4   :  { %6948 = vmatprep.subr.bf16.mxu1 %v3475_v1  ;;  %v3477_v3 = vld [vmem:[#allocation4 + $0xd8] sm:$0xff]  ;;  %v3478_v16 = vld [vmem:[#allocation4 + $0xe0] sm:$0xff]  ;;  %v3463_v19 = vld [vmem:[#allocation4 + $0x68] sm:$0xff] }
0x12e5   :  { %v3453_v11 = vld [vmem:[#allocation4 + $0x18] sm:$0xff]  ;;  %v3454_v17 = vld [vmem:[#allocation4 + $0x20] sm:$0xff]  ;;  %v3479_v45 = vld [vmem:[#allocation4 + $0xe8] sm:$0xff] }
0x12e6   :  { %6927 = vmatpush3.bf16.msra.mxu0 %v3451_v2  ;;  %v3469_v12 = vld [vmem:[#allocation4 + $0x98] sm:$0xff]  ;;  %v3470_v18 = vld [vmem:[#allocation4 + $0xa0] sm:$0xff]  ;;  %v3455_v39 = vld [vmem:[#allocation4 + $0x28] sm:$0xff] }
0x12e7   :  { %6949 = vmatpush3.bf16.msra.mxu1 %v3467_v4  ;;  %6928 = vmatprep.subr.bf16.mxu0 %v3460_v5  ;;  %v3471_v24 = vld [vmem:[#allocation4 + $0xa8] sm:$0xff]  ;;  %v3464_v26 = vld [vmem:[#allocation4 + $0x70] sm:$0xff]  ;;  %v3465_v44 = vld [vmem:[#allocation4 + $0x78] sm:$0xff] }
0x12e8   :  { %6950 = vmatprep.subr.bf16.mxu1 %v3476_v6  ;;  %v3480_v30 = vld [vmem:[#allocation4 + $0xf0] sm:$0xff]  ;;  %v3481_v47 = vld [vmem:[#allocation4 + $0xf8] sm:$0xff]  ;;  %v3490_v54 = vld [vmem:[#allocation4 + $0x140] sm:$0xff] }
0x12e9   :  { %v3456_v32 = vld [vmem:[#allocation4 + $0x30] sm:$0xff]  ;;  %v3457_v52 = vld [vmem:[#allocation4 + $0x38] sm:$0xff]  ;;  %v3506_v48 = vld [vmem:[#allocation4 + $0x1c0] sm:$0xff] }
0x12ea   :  { %6929 = vmatpush3.bf16.msra.mxu0 %v3452_v7  ;;  %v3472_v40 = vld [vmem:[#allocation4 + $0xb0] sm:$0xff]  ;;  %v3473_v53 = vld [vmem:[#allocation4 + $0xb8] sm:$0xff]  ;;  %v3482_v28 = vld [vmem:[#allocation4 + $0x100] sm:$0xff] }
0x12eb   :  { %6951 = vmatpush3.bf16.msra.mxu1 %v3468_v8  ;;  %6930 = vmatprep.subr.bf16.mxu0 %v3461_v9  ;;  %v3498_v51 = vld [vmem:[#allocation4 + $0x180] sm:$0xff]  ;;  %v3491_v55 = vld [vmem:[#allocation4 + $0x148] sm:$0xff]  ;;  %v3492_v50 = vld [vmem:[#allocation4 + $0x150] sm:$0xff] }
0x12ec   :  { %6952 = vmatprep.subr.bf16.mxu1 %v3477_v3  ;;  %v3507_v57 = vld [vmem:[#allocation4 + $0x1c8] sm:$0xff]  ;;  %v3508_v58 = vld [vmem:[#allocation4 + $0x1d0] sm:$0xff]  ;;  %v3493_v10 = vld [vmem:[#allocation4 + $0x158] sm:$0xff] }
0x12ed   :  { %v3483_v15 = vld [vmem:[#allocation4 + $0x108] sm:$0xff]  ;;  %v3484_v59 = vld [vmem:[#allocation4 + $0x110] sm:$0xff]  ;;  %v3509_v25 = vld [vmem:[#allocation4 + $0x1d8] sm:$0xff] }
0x12ee   :  { %6931 = vmatpush3.bf16.msra.mxu0 %v3453_v11  ;;  %v3499_v46 = vld [vmem:[#allocation4 + $0x188] sm:$0xff]  ;;  %v3500_v49 = vld [vmem:[#allocation4 + $0x190] sm:$0xff]  ;;  %v3485_v56 = vld [vmem:[#allocation4 + $0x118] sm:$0xff] }
0x12ef   :  { %6953 = vmatpush3.bf16.msra.mxu1 %v3469_v12  ;;  %6932 = vmatprep.subr.bf16.mxu0 %v3462_v13  ;;  %v3501_v60 = vld [vmem:[#allocation4 + $0x198] sm:$0xff]  ;;  %v3494_v61 = vld [vmem:[#allocation4 + $0x160] sm:$0xff]  ;;  %v3495_v4 = vld [vmem:[#allocation4 + $0x168] sm:$0xff] }
0x12f0   :  { %6954 = vmatprep.subr.bf16.mxu1 %v3478_v16  ;;  %v3510_v62 = vld [vmem:[#allocation4 + $0x1e0] sm:$0xff]  ;;  %v3511_v5 = vld [vmem:[#allocation4 + $0x1e8] sm:$0xff]  ;;  %v3496_v8 = vld [vmem:[#allocation4 + $0x170] sm:$0xff] }
0x12f1   :  { %v3486_v1 = vld [vmem:[#allocation4 + $0x120] sm:$0xff]  ;;  %v3487_v6 = vld [vmem:[#allocation4 + $0x128] sm:$0xff]  ;;  %v3512_v9 = vld [vmem:[#allocation4 + $0x1f0] sm:$0xff] }
0x12f2   :  { %6933 = vmatpush3.bf16.msra.mxu0 %v3454_v17  ;;  %v3502_v2 = vld [vmem:[#allocation4 + $0x1a0] sm:$0xff]  ;;  %v3503_v7 = vld [vmem:[#allocation4 + $0x1a8] sm:$0xff]  ;;  %v3488_v3 = vld [vmem:[#allocation4 + $0x130] sm:$0xff] }
0x12f3   :  { %6955 = vmatpush3.bf16.msra.mxu1 %v3470_v18  ;;  %6934 = vmatprep.subr.bf16.mxu0 %v3463_v19  ;;  %v3504_v11 = vld [vmem:[#allocation4 + $0x1b0] sm:$0xff]  ;;  %v3497_v12 = vld [vmem:[#allocation4 + $0x178] sm:$0xff]  ;;  %v3519_v18 = vpack.c.bf16 %v3442_v29, %v3442_v29  ;;  %v3521_v19 = vpack.c.bf16 %v3444_v33, %v3444_v33  ;;  %v7569_v43 = vld [vmem:[%s9431_s23 + $0x8] sm:$0xff]  }
0x12f4   :  { %6956 = vmatprep.subr.bf16.mxu1 %v3479_v45  ;;  %v3513_v13 = vld [vmem:[#allocation4 + $0x1f8] sm:$0xff]  ;;  %v7568_v45 = vld [vmem:[%s9431_s23] sm:$0xff]   ;;  %v7570_v35 = vld [vmem:[%s9431_s23 + $0x10] sm:$0xff]  }
0x12f5   :  { %v3489_v16 = vld [vmem:[#allocation4 + $0x138] sm:$0xff]  ;;  %v7572_v33 = vld [vmem:[%s9431_s23 + $0x20] sm:$0xff]  }
0x12f6   :  { %6935 = vmatpush3.bf16.msra.mxu0 %v3455_v39  ;;  %v3505_v17 = vld [vmem:[#allocation4 + $0x1b8] sm:$0xff]  ;;  %v7573_v39 = vld [vmem:[%s9431_s23 + $0x28] sm:$0xff]  }
0x12f7   :  { %6957 = vmatpush3.bf16.msra.mxu1 %v3471_v24  ;;  %6936 = vmatprep.subr.bf16.mxu0 %v3464_v26  ;;  %v7571_v29 = vld [vmem:[%s9431_s23 + $0x18] sm:$0xff]   ;;  %v7574_v24 = vld [vmem:[%s9431_s23 + $0x30] sm:$0xff]  }
0x12f8   :  { %6958 = vmatprep.subr.bf16.mxu1 %v3480_v30  ;;  %v7575_v26 = vld [vmem:[%s9431_s23 + $0x38] sm:$0xff]   ;;  %v3691_v30 = vld [vmem:[%s9432_s12] sm:$0xff] }
0x12fa   :  { %6937 = vmatpush3.bf16.msra.mxu0 %v3456_v32  ;;  %v3692_v32 = vld [vmem:[%s9432_s12 + $0x8] sm:$0xff] }
0x12fb   :  { %6959 = vmatpush3.bf16.msra.mxu1 %v3472_v40  ;;  %6938 = vmatprep.subr.bf16.mxu0 %v3465_v44  ;;  %v3712_v40 = vpack.c.bf16 %v3692_v32, %v3691_v30 }
0x12fc   :  { %6960 = vmatprep.subr.bf16.mxu1 %v3481_v47 }
0x12fe   :  { %6939 = vmatpush3.bf16.msra.mxu0 %v3457_v52  ;;  %v6791_v52 = vld [vmem:[#allocation30] ss:$0 sm:$0xff] }
0x12ff   :  { %6961 = vmatpush3.bf16.msra.mxu1 %v3473_v53  ;;  %6968 = vmatprep.subr.bf16.mxu0 %v3490_v54 }
0x1300   :  { %6990 = vmatprep.subr.bf16.mxu1 %v3506_v48 }
0x1301   :  { %3562 = vmatmul.mubr.bf16.vlgmr.msra.gmra.mrb[32].mxu0 %v3515_v21 }
0x1302   :  { %3602 = vmatmul.mubr.bf16.vlgmr.msra.gmra.mrb[64].mxu1 %v3517_v63  ;;  %6969 = vmatpush3.bf16.msra.mxu0 %v3482_v28 }
0x1303   :  { %6991 = vmatpush3.bf16.msra.mxu1 %v3498_v51  ;;  %6970 = vmatprep.subr.bf16.mxu0 %v3491_v55 }
0x1304   :  { %6992 = vmatprep.subr.bf16.mxu1 %v3507_v57  ;;  %3641 = vmatprep.mubr.bf16.mxu0 %v3520_v22 }
0x1305   :  { %3681 = vmatprep.mubr.bf16.mxu1 %v3522_v14 }
0x1306   :  { %6971 = vmatpush3.bf16.msra.mxu0 %v3483_v15 }
0x1307   :  { %6993 = vmatpush3.bf16.msra.mxu1 %v3499_v46  ;;  %6972 = vmatprep.subr.bf16.mxu0 %v3492_v50 }
0x1308   :  { %6994 = vmatprep.subr.bf16.mxu1 %v3508_v58 }
0x130a   :  { %6973 = vmatpush3.bf16.msra.mxu0 %v3484_v59 }
0x130b   :  { %6995 = vmatpush3.bf16.msra.mxu1 %v3500_v49  ;;  %6974 = vmatprep.subr.bf16.mxu0 %v3493_v10 }
0x130c   :  { %6996 = vmatprep.subr.bf16.mxu1 %v3509_v25 }
0x130e   :  { %6975 = vmatpush3.bf16.msra.mxu0 %v3485_v56 }
0x130f   :  { %6997 = vmatpush3.bf16.msra.mxu1 %v3501_v60  ;;  %6976 = vmatprep.subr.bf16.mxu0 %v3494_v61 }
0x1310   :  { %6998 = vmatprep.subr.bf16.mxu1 %v3510_v62 }
0x1312   :  { %6977 = vmatpush3.bf16.msra.mxu0 %v3486_v1 }
0x1313   :  { %6999 = vmatpush3.bf16.msra.mxu1 %v3502_v2  ;;  %6978 = vmatprep.subr.bf16.mxu0 %v3495_v4  ;;  %v3693_v2 = vld [vmem:[%s9433_s27] sm:$0xff]  ;;  %v3694_v4 = vld [vmem:[%s9433_s27 + $0x8] sm:$0xff] }
0x1314   :  { %7000 = vmatprep.subr.bf16.mxu1 %v3511_v5 }
0x1316   :  { %6979 = vmatpush3.bf16.msra.mxu0 %v3487_v6  ;;  %v7578_v6 = vld [vmem:[#allocation33 + $0x4] ss:$8 sps:$4 sm:$0xff]  }
0x1317   :  { %7001 = vmatpush3.bf16.msra.mxu1 %v3503_v7  ;;  %6980 = vmatprep.subr.bf16.mxu0 %v3496_v8 }
0x1318   :  { %7002 = vmatprep.subr.bf16.mxu1 %v3512_v9  ;;  %v3802_v9 = vpack.c.bf16 %v3694_v4, %v3693_v2 }
0x131a   :  { %6981 = vmatpush3.bf16.msra.mxu0 %v3488_v3  ;;  %v7576_v3 = vld [vmem:[#allocation33] ss:$8 sps:$4 sm:$0xff]  }
0x131b   :  { %7003 = vmatpush3.bf16.msra.mxu1 %v3504_v11  ;;  %6982 = vmatprep.subr.bf16.mxu0 %v3497_v12  ;;  %v7581_v11 = vld [vmem:[#allocation33 + $0x14] ss:$8 sps:$4 sm:$0xff]   ;;  %v7579_v12 = vld [vmem:[#allocation33 + $0x10] ss:$8 sps:$4 sm:$0xff]  }
0x131c   :  { %7004 = vmatprep.subr.bf16.mxu1 %v3513_v13  ;;  %v7584_v13 = vld [vmem:[#allocation33 + $0x24] ss:$8 sps:$4 sm:$0xff]  }
0x131e   :  { %6983 = vmatpush3.bf16.msra.mxu0 %v3489_v16  ;;  %v7582_v16 = vld [vmem:[#allocation33 + $0x20] ss:$8 sps:$4 sm:$0xff]  }
0x131f   :  { %7005 = vmatpush3.bf16.msra.mxu1 %v3505_v17  ;;  %7195 = vmatprep.subr.bf16.mxu0 %v8454_v38  ;;  %v7587_v17 = vld [vmem:[#allocation33 + $0x34] ss:$8 sps:$4 sm:$0xff]  }
0x1320   :  { %7215 = vmatprep.subr.bf16.mxu1 %v8454_v38 }
0x1321   :  { %3642 = vmatmul.mubr.bf16.vlgmr.msra.gmra.mrb[36].mxu0 %v3519_v18  ;;  %v7585_v18 = vld [vmem:[#allocation33 + $0x30] ss:$8 sps:$4 sm:$0xff]  }
0x1322   :  { %3682 = vmatmul.mubr.bf16.vlgmr.msra.gmra.mrb[68].mxu1 %v3521_v19  ;;  %7196 = vmatpush3.bf16.msra.mxu0 %v7568_v45  ;;  %v7590_v19 = vld [vmem:[#allocation33 + $0x44] ss:$8 sps:$4 sm:$0xff]   ;;  %v7588_v45 = vld [vmem:[#allocation33 + $0x40] ss:$8 sps:$4 sm:$0xff]  }
0x1323   :  { %7211 = vmatprep.mubr.msk.bf16.mxu0 %vm8455_vm5, %v8454_v38  ;;  %7197 = vmatprep.subr.bf16.mxu0 %v8454_v38 }
0x1324   :  { %7217 = vmatprep.mubr.msk.bf16.mxu1 %vm8455_vm5, %v8454_v38 }
0x1326   :  { %7198 = vmatpush3.bf16.msra.mxu0 %v7569_v43  ;;  %v7593_v43 = vld [vmem:[#allocation33 + $0x54] ss:$8 sps:$4 sm:$0xff]  }
0x1327   :  { %7199 = vmatprep.subr.bf16.mxu0 %v8454_v38 }
0x132a   :  { %7200 = vmatpush3.bf16.msra.mxu0 %v7570_v35  ;;  %v7591_v35 = vld [vmem:[#allocation33 + $0x50] ss:$8 sps:$4 sm:$0xff]  }
0x132b   :  { %7201 = vmatprep.subr.bf16.mxu0 %v8454_v38 }
0x132e   :  { %7202 = vmatpush3.bf16.msra.mxu0 %v7571_v29  ;;  %v7596_v29 = vld [vmem:[#allocation33 + $0x64] ss:$8 sps:$4 sm:$0xff]  }
0x132f   :  { %7203 = vmatprep.subr.bf16.mxu0 %v8454_v38 }
0x1332   :  { %7204 = vmatpush3.bf16.msra.mxu0 %v7572_v33  ;;  %v7594_v33 = vld [vmem:[#allocation33 + $0x60] ss:$8 sps:$4 sm:$0xff]  }
0x1333   :  { %7205 = vmatprep.subr.bf16.mxu0 %v8454_v38 }
0x1336   :  { %7206 = vmatpush3.bf16.msra.mxu0 %v7573_v39  ;;  %v7599_v39 = vld [vmem:[#allocation33 + $0x74] ss:$8 sps:$4 sm:$0xff]  }
0x1337   :  { %7207 = vmatprep.subr.bf16.mxu0 %v8454_v38 }
0x133a   :  { %7208 = vmatpush3.bf16.msra.mxu0 %v7574_v24  ;;  %v7597_v24 = vld [vmem:[#allocation33 + $0x70] ss:$8 sps:$4 sm:$0xff]  }
0x133b   :  { %7209 = vmatprep.subr.bf16.mxu0 %v8454_v38 }
0x133e   :  { %7210 = vmatpush3.bf16.msra.mxu0 %v7575_v26  ;;  %v6800_v26 = vld [vmem:[#allocation31] ss:$0 sm:$0xff] }
0x1341   :  { %7212 = vmatmul.mubr.bf16.vlgmr.msra.gmra.mrb[40].mxu0 %v3712_v40 }
0x13d4   :  { %v6940_v44 = vpop.f32.mrb[32].mxu0 }
0x13d5   :  { %v6962_v47 = vpop.f32.mrb[64].mxu1  ;;  %v6941_v53 = vpop.f32.mrb[33].mxu0 }
0x13d6   :  { %v6963_v54 = vpop.f32.mrb[65].mxu1  ;;  %v6942_v48 = vadd.f32 %v6941_v53, %v6940_v44  ;;  %v6943_v21 = vpop.f32.mrb[34].mxu0 }
0x13d7   :  { %v6964_v28 = vadd.f32 %v6963_v54, %v6962_v47  ;;  %v6965_v63 = vpop.f32.mrb[66].mxu1  ;;  %v6944_v51 = vpop.f32.mrb[35].mxu0  ;;  %v6818_v21 = vld.sshfl [vmem:[#allocation34] sm:$0x11 pattern:$0x75316420] }
0x13d8   :  { %v6966_v55 = vpop.f32.mrb[67].mxu1  ;;  %v3564_v57 = vadd.f32 %v6942_v48, %v6791_v52 }
0x13da   :  { %v3604_v22 = vadd.f32 %v6964_v28, %v3564_v57  ;;  %v4009_v28 = vcombine.high %v6818_v21, %v6818_v21 }
0x13dc   :  { %v4023_v63 = vrot.slane %v4009_v28, %v8867_v27 }
0x13de   :  { %4058 = vmatprep.mubr.bf16.mxu0 %v4023_v63 }
0x13f4   :  { %v6984_v14 = vpop.f32.mrb[36].mxu0 }
0x13f5   :  { %v7006_v15 = vpop.f32.mrb[68].mxu1  ;;  %v6985_v46 = vpop.f32.mrb[37].mxu0 }
0x13f6   :  { %v7007_v50 = vpop.f32.mrb[69].mxu1  ;;  %v6986_v58 = vadd.f32 %v6985_v46, %v6984_v14  ;;  %v6987_v59 = vpop.f32.mrb[38].mxu0  ;;  %v6819_v46 = vld.sshfl [vmem:[#allocation36] sm:$0x11 pattern:$0x75316420] }
0x13f7   :  { %v7008_v49 = vadd.f32 %v7007_v50, %v7006_v15  ;;  %v7009_v10 = vpop.f32.mrb[70].mxu1  ;;  %v6988_v25 = vpop.f32.mrb[39].mxu0  ;;  %v4074_v50 = vcombine.high %v6819_v46, %v6819_v46 }
0x13f8   :  { %v7010_v56 = vpop.f32.mrb[71].mxu1  ;;  %v3644_v60 = vadd.f32 %v6986_v58, %v3604_v22  ;;  %v4016_v58 = vrot.slane %v6818_v21, %v8867_v27 }
0x13f9   :  { %v4088_v59 = vrot.slane %v4074_v50, %v8867_v27 }
0x13fa   :  { %v9158_v61 = vadd.f32 %v7008_v49, %v3644_v60  ;;  %v4081_v49 = vrot.slane %v6819_v46, %v8867_v27 }
0x1414   :  { %v3795_v62 = vpop.f32.mrb[40].mxu0 }
0x1415   :  { %v7213_v1 = vpop.f32.mrb[41].mxu0 }
0x1416   :  { %v3798_v5 = vpop.f32.mrb[42].mxu0 }
0x1417   :  { %v3803_v7 = vpack.c.bf16 %v3798_v5, %v3795_v62  ;;  %v7214_v8 = vpop.f32.mrb[43].mxu0 }
0x1419   :  { %7216 = vmatpush3.bf16.msra.mxu1 %v3803_v7 }
0x141a   :  { %3956 = vmatprep.subr.bf16.mxu1 %v7578_v6 }
0x141c   :  { %7218 = vmatmul.mubr.msk.bf16.vlgmr.msra.gmra.mrb[72].mxu1 %vm1036_vm2, %v3802_v9 }
0x141d   :  { %3957 = vmatpush1.bf16.msra.mxu1 %v7576_v3  ;;  %3988 = vmatprep.mubr.bf16.mxu1 %v8428_v0 }
0x141e   :  { %3958 = vmatprep.subr.bf16.mxu1 %v7581_v11 }
0x1421   :  { %3959 = vmatpush1.bf16.msra.mxu1 %v7579_v12 }
0x1422   :  { %3960 = vmatprep.subr.bf16.mxu1 %v7584_v13 }
0x1425   :  { %3961 = vmatpush1.bf16.msra.mxu1 %v7582_v16 }
0x1426   :  { %3962 = vmatprep.subr.bf16.mxu1 %v7587_v17 }
0x1429   :  { %3963 = vmatpush1.bf16.msra.mxu1 %v7585_v18  ;;  %v9182_v18 = vld [vmem:[%s9434_s8] sm:$0xff] }
0x142a   :  { %3964 = vmatprep.subr.bf16.mxu1 %v7590_v19 }
0x142d   :  { %3965 = vmatpush1.bf16.msra.mxu1 %v7588_v45 }
0x142e   :  { %3966 = vmatprep.subr.bf16.mxu1 %v7593_v43 }
0x1431   :  { %3967 = vmatpush1.bf16.msra.mxu1 %v7591_v35 }
0x1432   :  { %3968 = vmatprep.subr.bf16.mxu1 %v7596_v29 }
0x1435   :  { %3969 = vmatpush1.bf16.msra.mxu1 %v7594_v33 }
0x1436   :  { %3970 = vmatprep.subr.bf16.mxu1 %v7599_v39 }
0x1439   :  { %3971 = vmatpush1.bf16.msra.mxu1 %v7597_v24 }
0x143a   :  { %7221 = vmatprep.subr.bf16.mxu1 %v8454_v38 }
0x14ef   :  { %v3847_v30 = vpop.f32.mrb[72].mxu1 }
0x14f0   :  { %v3848_v32 = vadd.f32 %v6800_v26, %v3847_v30  ;;  %v7219_v40 = vpop.f32.mrb[73].mxu1  ;;  %v9186_v30 = vld [vmem:[%s9434_s8 + $0x8] sm:$0xff] }
0x14f1   :  { %v3850_v44 = vpop.f32.mrb[74].mxu1 }
0x14f2   :  { %v3851_v47 = vadd.f32 %v6800_v26, %v3850_v44  ;;  %v7220_v52 = vpop.f32.mrb[75].mxu1  ;;  %v3854_v53 = vmax.f32 %v3848_v32, 0.0 }
0x14f4   :  { %v3855_v54 = vmax.f32 %v3851_v47, 0.0 }
0x14f6   :  { %v3875_v48 = vpack.c.bf16 %v3855_v54, %v3854_v53 }
0x14f8   :  { %3989 = vmatmul.mubr.bf16.vlgmr.msra.gmra.mrb[76].mxu1 %v3875_v48 }
0x14f9   :  { %7223 = vmatprep.mubr.msk.bf16.mxu1 %vm8455_vm5, %v8454_v38 }
0x15cb   :  { %v3990_v51 = vpop.f32.mrb[76].mxu1 }
0x15cc   :  { %v3992_v55 = vpop.f32.mrb[77].mxu1 }
0x15cd   :  { %v3994_v57 = vpop.f32.mrb[78].mxu1 }
0x15ce   :  { %v3999_v22 = vpack.c.bf16 %v3994_v57, %v3990_v51  ;;  %v3996_v14 = vpop.f32.mrb[79].mxu1 }
0x15cf   :  { %v4000_v15 = vpack.c.bf16 %v3996_v14, %v3992_v55 }
0x15d0   :  { %7222 = vmatpush3.bf16.msra.mxu1 %v3999_v22 }
0x15d1   :  { %4026 = vmatprep.subr.bf16.mxu0 %v4000_v15 }
0x15d2   :  { %4027 = vmatpush1.bf16.xpose.msra.mxu0 %v3999_v22 }
0x15d3   :  { %4091 = vmatprep.subr.bf16.mxu0 %v4000_v15 }
0x15d9   :  { %4059 = vmatmul.mubr.bf16.vlgmr.msra.gmra.mrb[44].mxu0 %v4016_v58 }
0x15da   :  { %4092 = vmatpush1.bf16.xpose.msra.mxu0 %v3999_v22  ;;  %4123 = vmatprep.mubr.bf16.mxu0 %v4088_v59 }
0x15db   :  { %7227 = vmatprep.subr.bf16.mxu0 %v8454_v38 }
0x15e1   :  { %4124 = vmatmul.mubr.bf16.vlgmr.msra.gmra.mrb[48].mxu0 %v4081_v49 }
0x15e2   :  { %7228 = vmatpush3.bf16.msra.mxu0 %v4000_v15  ;;  %7229 = vmatprep.mubr.msk.bf16.mxu0 %vm8455_vm5, %v8454_v38 }
0x16ac   :  { %v4060_v10 = vpop.f32.mrb[44].mxu0 }
0x16ad   :  { %v4062_v25 = vpop.f32.mrb[45].mxu0  ;;  %v4160_v7 = vrot.slane %v4060_v10, %v8867_v27 }
0x16ae   :  { %v4063_v56 = vpop.f32.mrb[46].mxu0 }
0x16af   :  { %v4064_v60 = vpop.f32.mrb[47].mxu0  ;;  %v4161_v38 = vcombine.high %v4160_v7, %v4160_v7  ;;  %v4168_v8 = vrot.slane %v4160_v7, %v8867_v27 }
0x16b1   :  { %v4175_v9 = vrot.slane %v4161_v38, %v8867_v27  ;;  %v4179_v11 = vrot.slane %v4168_v8, %v8883_v42 }
0x16b3   :  { %v4183_v3 = vrot.slane %v4175_v9, %v8883_v42 }
0x16b4   :  { %v4125_v62 = vpop.f32.mrb[48].mxu0 }
0x16b5   :  { %v4127_v1 = vpop.f32.mrb[49].mxu0  ;;  %v4145_v2 = vrot.slane %v4125_v62, %v8880_v41  ;;  %v4134_v4 = vrot.slane %v4125_v62, %v8883_v42 }
0x16b6   :  { %v4128_v5 = vpop.f32.mrb[50].mxu0 }
0x16b7   :  { %4147 = vbcast.lane.b32.xlu0 %v4145_v2, 256  ;;  %4136 = vbcast.lane.b32.xlu1 %v4134_v4, 256  ;;  %v4129_v6 = vpop.f32.mrb[51].mxu0 }
0x16b8   :  { %v7602_v6 = vld [vmem:[#allocation39 + $0x4] ss:$8 sps:$4 sm:$0xff]  }
0x16b9   :  { %4556 = vmatprep.subr.bf16.mxu1 %v7602_v6 }
0x16bb   :  { %4151 = vbcast.lane.b32.xlu0 %v4145_v2, 264  ;;  %4140 = vbcast.lane.b32.xlu1 %v4134_v4, 264 }
0x1729   :  { %v4148_v12 = vpop.permute.xlu0 %4147  ;;  %v4137_v13 = vpop.permute.xlu1 %4136 }
0x172a   :  { %v4188_v16 = vadd.f32 %v4183_v3, %v4148_v12  ;;  %v4186_v17 = vadd.f32 %v4179_v11, %v4137_v13 }
0x172c   :  { %vm4192_vm12 = vcmp.ge.f32.partialorder %v4188_v16, 0.0  ;;  %v4196_v19 = vmul.f32 0.2, %v4188_v16  ;;  %vm4190_vm13 = vcmp.ge.f32.partialorder %v4186_v17, 0.0  ;;  %v4194_v45 = vmul.f32 0.2, %v4186_v17 }
0x172d   :  { %v4152_v43 = vpop.permute.xlu0 %4151  ;;  %v4141_v35 = vpop.permute.xlu1 %4140 }
0x172e   :  { %v4189_v29 = vadd.f32 %v4183_v3, %v4152_v43  ;;  %v4187_v33 = vadd.f32 %v4179_v11, %v4141_v35  ;;  %v4200_v39 = vsel %vm4192_vm12, %v4188_v16, %v4196_v19  ;;  %v4198_v24 = vsel %vm4190_vm13, %v4186_v17, %v4194_v45  ;;  %v7600_v35 = vld [vmem:[#allocation39] ss:$8 sps:$4 sm:$0xff]  }
0x172f   :  { %v4204_v26 = vadd.f32 %v4200_v39, %v9182_v18  ;;  %v4202_v47 = vadd.f32 %v4198_v24, %v9182_v18  ;;  %v7603_v39 = vld [vmem:[#allocation39 + $0x10] ss:$8 sps:$4 sm:$0xff]   ;;  %v7608_v24 = vld [vmem:[#allocation39 + $0x24] ss:$8 sps:$4 sm:$0xff]  }
0x1730   :  { %vm4193_vm14 = vcmp.ge.f32.partialorder %v4189_v29, 0.0  ;;  %v4197_v32 = vmul.f32 0.2, %v4189_v29  ;;  %vm4191_vm15 = vcmp.ge.f32.partialorder %v4187_v33, 0.0  ;;  %v4195_v40 = vmul.f32 0.2, %v4187_v33 }
0x1731   :  { %v4212_v44 = vsel %vm1036_vm2, %v4204_v26, -inf  ;;  %v4206_v21 = vsel %vm1036_vm2, %v4202_v47, -inf }
0x1732   :  { %4213 = vmax.xlane.f32.xlu0 %v4212_v44  ;;  %v4201_v52 = vsel %vm4193_vm14, %v4189_v29, %v4197_v32  ;;  %v4199_v53 = vsel %vm4191_vm15, %v4187_v33, %v4195_v40  ;;  %v7605_v33 = vld [vmem:[#allocation39 + $0x14] ss:$8 sps:$4 sm:$0xff]   ;;  %v7609_v40 = vld [vmem:[#allocation39 + $0x30] ss:$8 sps:$4 sm:$0xff]   ;;  %v7614_v44 = vld [vmem:[#allocation39 + $0x44] ss:$8 sps:$4 sm:$0xff]  }
0x1733   :  { %v4205_v54 = vadd.f32 %v4201_v52, %v9186_v30  ;;  %v4203_v28 = vadd.f32 %v4199_v53, %v9186_v30  ;;  %v7611_v32 = vld [vmem:[#allocation39 + $0x34] ss:$8 sps:$4 sm:$0xff]   ;;  %v7615_v53 = vld [vmem:[#allocation39 + $0x50] ss:$8 sps:$4 sm:$0xff]  }
0x1734   :  { %v7617_v52 = vld [vmem:[#allocation39 + $0x54] ss:$8 sps:$4 sm:$0xff]  }
0x1735   :  { %v4215_v48 = vsel %vm1036_vm2, %v4205_v54, -inf  ;;  %v4209_v63 = vsel %vm1036_vm2, %v4203_v28, -inf }
0x1736   :  { %4216 = vmax.xlane.f32.xlu1 %v4215_v48  ;;  %4207 = vmax.xlane.f32.xlu0 %v4206_v21  ;;  %v7618_v48 = vld [vmem:[#allocation39 + $0x60] ss:$8 sps:$4 sm:$0xff]   ;;  %v7623_v21 = vld [vmem:[#allocation39 + $0x74] ss:$8 sps:$4 sm:$0xff]  }
0x173a   :  { %4210 = vmax.xlane.f32.xlu0 %v4209_v63  ;;  %v7626_v63 = vld [vmem:[#allocation39 + $0x84] ss:$8 sps:$4 sm:$0xff]  }
0x17bf   :  { %v4214_v51 = vpop.xlane.xlu0 %4213 }
0x17c0   :  { %v4220_v55 = vsub.f32 %v4204_v26, %v4214_v51  ;;  %v7606_v26 = vld [vmem:[#allocation39 + $0x20] ss:$8 sps:$4 sm:$0xff]  }
0x17c1   :  { %v7624_v51 = vld [vmem:[#allocation39 + $0x80] ss:$8 sps:$4 sm:$0xff]  }
0x17c2   :  { %v4226_v57 = vmul.f32 1.442695, %v4220_v55  ;;  %v7629_v55 = vld [vmem:[#allocation39 + $0x94] ss:$8 sps:$4 sm:$0xff]  }
0x17c3   :  { %v4208_v22 = vpop.xlane.xlu0 %4207  ;;  %v4217_v14 = vpop.xlane.xlu1 %4216 }
0x17c4   :  { %7648 = vpow2.f32 %v4226_v57  ;;  %v4218_v15 = vsub.f32 %v4202_v47, %v4208_v22  ;;  %v4221_v46 = vsub.f32 %v4205_v54, %v4217_v14  ;;  %v7612_v47 = vld [vmem:[#allocation39 + $0x40] ss:$8 sps:$4 sm:$0xff]   ;;  %v7620_v54 = vld [vmem:[#allocation39 + $0x64] ss:$8 sps:$4 sm:$0xff]   ;;  %v7627_v57 = vld [vmem:[#allocation39 + $0x90] ss:$8 sps:$4 sm:$0xff]  }
0x17c5   :  { %v7632_v22 = vld [vmem:[#allocation39 + $0xa4] ss:$8 sps:$4 sm:$0xff]   ;;  %v7630_v14 = vld [vmem:[#allocation39 + $0xa0] ss:$8 sps:$4 sm:$0xff]  }
0x17c6   :  { %v4222_v50 = vmul.f32 1.442695, %v4218_v15  ;;  %v4228_v58 = vmul.f32 1.442695, %v4221_v46  ;;  %v7635_v15 = vld [vmem:[#allocation39 + $0xb4] ss:$8 sps:$4 sm:$0xff]  }
0x17c7   :  { %v4211_v59 = vpop.xlane.xlu0 %4210  ;;  %v7633_v46 = vld [vmem:[#allocation39 + $0xb0] ss:$8 sps:$4 sm:$0xff]  }
0x17c8   :  { %7650 = vpow2.f32 %v4222_v50  ;;  %v4219_v49 = vsub.f32 %v4203_v28, %v4211_v59  ;;  %v7621_v28 = vld [vmem:[#allocation39 + $0x70] ss:$8 sps:$4 sm:$0xff]   ;;  %v7638_v50 = vld [vmem:[#allocation39 + $0xc4] ss:$8 sps:$4 sm:$0xff]   ;;  %v7641_v59 = vld [vmem:[#allocation39 + $0xd4] ss:$8 sps:$4 sm:$0xff]  }
0x17c9   :  { %7652 = vpow2.f32 %v4228_v58  ;;  %v7636_v58 = vld [vmem:[#allocation39 + $0xc0] ss:$8 sps:$4 sm:$0xff]  }
0x17ca   :  { %v4224_v10 = vmul.f32 1.442695, %v4219_v49  ;;  %v7639_v49 = vld [vmem:[#allocation39 + $0xd0] ss:$8 sps:$4 sm:$0xff]  }
0x17cc   :  { %7654 = vpow2.f32 %v4224_v10  ;;  %v7644_v10 = vld [vmem:[#allocation39 + $0xe4] ss:$8 sps:$4 sm:$0xff]  }
0x17ce   :  { %v7649_v25 = vpop.eup %7648 }
0x17cf   :  { %v4236_v56 = vsel %vm1036_vm2, %v7649_v25, 0.0 }
0x17d0   :  { %4237 = vadd.xlane.f32.xlu1 %v4236_v56  ;;  %v7647_v56 = vld [vmem:[#allocation39 + $0xf4] ss:$8 sps:$4 sm:$0xff]  }
0x17d2   :  { %v7651_v60 = vpop.eup %7650 }
0x17d3   :  { %v7653_v62 = vpop.eup %7652  ;;  %v4230_v1 = vsel %vm1036_vm2, %v7651_v60, 0.0 }
0x17d4   :  { %4231 = vadd.xlane.f32.xlu1 %v4230_v1  ;;  %v4239_v2 = vsel %vm1036_vm2, %v7653_v62, 0.0 }
0x17d5   :  { %4240 = vadd.xlane.f32.xlu0 %v4239_v2 }
0x17d6   :  { %v7655_v4 = vpop.eup %7654 }
0x17d7   :  { %v4233_v5 = vsel %vm1036_vm2, %v7655_v4, 0.0 }
0x17d9   :  { %4234 = vadd.xlane.f32.xlu0 %v4233_v5 }
0x185d   :  { %v4238_v7 = vpop.xlane.xlu1 %4237 }
0x185e   :  { %7656 = vrcp.f32 %v4238_v7 }
0x1861   :  { %v4232_v8 = vpop.xlane.xlu1 %4231 }
0x1862   :  { %v4241_v38 = vpop.xlane.xlu0 %4240 }
0x1863   :  { %7658 = vrcp.f32 %v4241_v38 }
0x1864   :  { %7660 = vrcp.f32 %v4232_v8 }
0x1866   :  { %v4235_v9 = vpop.xlane.xlu0 %4234 }
0x1867   :  { %7662 = vrcp.f32 %v4235_v9 }
0x1868   :  { %v7657_v3 = vpop.eup %7656 }
0x1869   :  { %v4248_v12 = vmul.f32 %v7657_v3, %v7649_v25  ;;  %v7642_v25 = vld [vmem:[#allocation39 + $0xe0] ss:$8 sps:$4 sm:$0xff]  }
0x186d   :  { %v7659_v11 = vpop.eup %7658 }
0x186e   :  { %v4249_v13 = vmul.f32 %v7659_v11, %v7653_v62  ;;  %v7661_v16 = vpop.eup %7660  ;;  %v3874_v62 = vld [vmem:[#allocation37] sm:$0x3] }
0x186f   :  { %v4246_v45 = vmul.f32 %v7661_v16, %v7651_v60  ;;  %v7645_v60 = vld [vmem:[#allocation39 + $0xf0] ss:$8 sps:$4 sm:$0xff]   ;;  %v4348_v1 = vrot.slane %v3874_v62, %v8880_v41  ;;  %v4344_v6 = vrot.slane %v3874_v62, %v8883_v42 }
0x1870   :  { %v4251_v17 = vpack.c.bf16 %v4249_v13, %v4248_v12 }
0x1871   :  { %v7663_v19 = vpop.eup %7662 }
0x1872   :  { %7230 = vmatmul.mubr.msk.bf16.vlgmr.msra.gmra.mrb[52].mxu0 %vm1036_vm2, %v4251_v17  ;;  %v4247_v43 = vmul.f32 %v7663_v19, %v7655_v4 }
0x1874   :  { %v4250_v29 = vpack.c.bf16 %v4247_v43, %v4246_v45 }
0x1876   :  { %7224 = vmatmul.mubr.msk.bf16.vlgmr.msra.gmra.mrb[80].mxu1 %vm1036_vm2, %v4250_v29 }
0x1877   :  { %4557 = vmatpush1.bf16.msra.mxu1 %v7600_v35 }
0x1878   :  { %4558 = vmatprep.subr.bf16.mxu1 %v7605_v33  ;;  %v6854_v33 = vld.sshfl [vmem:[#allocation40] sm:$0x11 pattern:$0x75316420] }
0x187b   :  { %4559 = vmatpush1.bf16.msra.mxu1 %v7603_v39  ;;  %v4609_v39 = vcombine.high %v6854_v33, %v6854_v33 }
0x187c   :  { %4560 = vmatprep.subr.bf16.mxu1 %v7608_v24 }
0x187d   :  { %v4623_v24 = vrot.slane %v4609_v39, %v8867_v27 }
0x187f   :  { %4561 = vmatpush1.bf16.msra.mxu1 %v7606_v26  ;;  %4658 = vmatprep.mubr.bf16.mxu0 %v4623_v24 }
0x1880   :  { %4562 = vmatprep.subr.bf16.mxu1 %v7611_v32 }
0x1883   :  { %4563 = vmatpush1.bf16.msra.mxu1 %v7609_v40 }
0x1884   :  { %4564 = vmatprep.subr.bf16.mxu1 %v7614_v44 }
0x1887   :  { %4565 = vmatpush1.bf16.msra.mxu1 %v7612_v47 }
0x1888   :  { %4566 = vmatprep.subr.bf16.mxu1 %v7617_v52 }
0x188b   :  { %4567 = vmatpush1.bf16.msra.mxu1 %v7615_v53  ;;  %v6855_v53 = vld.sshfl [vmem:[#allocation42] sm:$0x11 pattern:$0x75316420] }
0x188c   :  { %4568 = vmatprep.subr.bf16.mxu1 %v7620_v54  ;;  %v4674_v54 = vcombine.high %v6855_v53, %v6855_v53 }
0x188f   :  { %4569 = vmatpush1.bf16.msra.mxu1 %v7618_v48  ;;  %v4616_v48 = vrot.slane %v6854_v33, %v8867_v27 }
0x1890   :  { %4570 = vmatprep.subr.bf16.mxu1 %v7623_v21  ;;  %v4688_v21 = vrot.slane %v4674_v54, %v8867_v27 }
0x1893   :  { %4571 = vmatpush1.bf16.msra.mxu1 %v7621_v28  ;;  %v4681_v28 = vrot.slane %v6855_v53, %v8867_v27 }
0x1894   :  { %4572 = vmatprep.subr.bf16.mxu1 %v7626_v63 }
0x1897   :  { %4573 = vmatpush1.bf16.msra.mxu1 %v7624_v51 }
0x1898   :  { %4574 = vmatprep.subr.bf16.mxu1 %v7629_v55 }
0x189b   :  { %4575 = vmatpush1.bf16.msra.mxu1 %v7627_v57 }
0x189c   :  { %4576 = vmatprep.subr.bf16.mxu1 %v7632_v22 }
0x189f   :  { %4577 = vmatpush1.bf16.msra.mxu1 %v7630_v14 }
0x18a0   :  { %4578 = vmatprep.subr.bf16.mxu1 %v7635_v15 }
0x18a3   :  { %4579 = vmatpush1.bf16.msra.mxu1 %v7633_v46 }
0x18a4   :  { %4580 = vmatprep.subr.bf16.mxu1 %v7638_v50 }
0x18a7   :  { %4581 = vmatpush1.bf16.msra.mxu1 %v7636_v58 }
0x18a8   :  { %4582 = vmatprep.subr.bf16.mxu1 %v7641_v59 }
0x18ab   :  { %4583 = vmatpush1.bf16.msra.mxu1 %v7639_v49 }
0x18ac   :  { %4584 = vmatprep.subr.bf16.mxu1 %v7644_v10 }
0x18af   :  { %4585 = vmatpush1.bf16.msra.mxu1 %v7642_v25 }
0x18b0   :  { %4586 = vmatprep.subr.bf16.mxu1 %v7647_v56 }
0x18b3   :  { %4587 = vmatpush1.bf16.msra.mxu1 %v7645_v60 }
0x1945   :  { %v4333_v2 = vpop.f32.mrb[52].mxu0 }
0x1946   :  { %v4352_v4 = vadd.f32 %v4348_v1, %v4333_v2  ;;  %v7231_v5 = vpop.f32.mrb[53].mxu0 }
0x1947   :  { %v4336_v7 = vpop.f32.mrb[54].mxu0 }
0x1948   :  { %v4354_v38 = vadd.f32 %v4348_v1, %v4336_v7  ;;  %v7232_v8 = vpop.f32.mrb[55].mxu0  ;;  %v4356_v3 = vmax.f32 %v4352_v4, 0.0 }
0x1949   :  { %v4289_v9 = vpop.f32.mrb[80].mxu1 }
0x194a   :  { %v4358_v11 = vmax.f32 %v4354_v38, 0.0  ;;  %v4351_v12 = vadd.f32 %v4344_v6, %v4289_v9  ;;  %v7225_v13 = vpop.f32.mrb[81].mxu1 }
0x194b   :  { %v4292_v16 = vpop.f32.mrb[82].mxu1 }
0x194c   :  { %v4395_v17 = vpack.c.bf16 %v4358_v11, %v4356_v3  ;;  %v4353_v19 = vadd.f32 %v4344_v6, %v4292_v16  ;;  %v7226_v45 = vpop.f32.mrb[83].mxu1  ;;  %v4355_v43 = vmax.f32 %v4351_v12, 0.0 }
0x194e   :  { %v4357_v35 = vmax.f32 %v4353_v19, 0.0  ;;  %4588 = vmatprep.mubr.bf16.mxu1 %v4395_v17 }
0x1950   :  { %v4394_v29 = vpack.c.bf16 %v4357_v35, %v4355_v43 }
0x1952   :  { %4589 = vmatmul.mubr.bf16.vlgmr.msra.gmra.mrb[84].mxu1 %v4394_v29  ;;  %v4393_v29 = vld [vmem:[#allocation43] sm:$0x3] }
0x1953   :  { %v4783_v33 = vrot.slane %v4393_v29, %v8883_v42  ;;  %v4787_v39 = vrot.slane %v4393_v29, %v8880_v41 }
0x1a25   :  { %v4590_v26 = vpop.f32.mrb[84].mxu1 }
0x1a26   :  { %v4592_v32 = vpop.f32.mrb[85].mxu1 }
0x1a27   :  { %v4594_v40 = vpop.f32.mrb[86].mxu1 }
0x1a28   :  { %v4599_v44 = vpack.c.bf16 %v4594_v40, %v4590_v26  ;;  %v4596_v47 = vpop.f32.mrb[87].mxu1 }
0x1a29   :  { %v4600_v52 = vpack.c.bf16 %v4596_v47, %v4592_v32 }
0x1a2b   :  { %4626 = vmatprep.subr.bf16.mxu0 %v4600_v52 }
0x1a2c   :  { %4627 = vmatpush1.bf16.xpose.msra.mxu0 %v4599_v44 }
0x1a2d   :  { %4691 = vmatprep.subr.bf16.mxu0 %v4600_v52 }
0x1a33   :  { %4659 = vmatmul.mubr.bf16.vlgmr.msra.gmra.mrb[56].mxu0 %v4616_v48 }
0x1a34   :  { %4692 = vmatpush1.bf16.xpose.msra.mxu0 %v4599_v44  ;;  %4723 = vmatprep.mubr.bf16.mxu0 %v4688_v21 }
0x1a35   :  { %4793 = vmatprep.subr.bf16.mxu0 %v4600_v52 }
0x1a3b   :  { %4724 = vmatmul.mubr.bf16.vlgmr.msra.gmra.mrb[60].mxu0 %v4681_v28 }
0x1a3c   :  { %4794 = vmatpush1.bf16.msra.mxu0 %v4599_v44  ;;  %4825 = vmatprep.mubr.bf16.mxu0 %v8428_v0 }
0x1b06   :  { %v4660_v63 = vpop.f32.mrb[56].mxu0 }
0x1b07   :  { %v4662_v51 = vpop.f32.mrb[57].mxu0  ;;  %v4745_v58 = vrot.slane %v4660_v63, %v8883_v42 }
0x1b08   :  { %v4663_v55 = vpop.f32.mrb[58].mxu0 }
0x1b09   :  { %v4664_v57 = vpop.f32.mrb[59].mxu0 }
0x1b0e   :  { %v4725_v22 = vpop.f32.mrb[60].mxu0 }
0x1b0f   :  { %v4734_v14 = vrot.slane %v4725_v22, %v8883_v42  ;;  %v4727_v15 = vpop.f32.mrb[61].mxu0 }
0x1b10   :  { %v4728_v46 = vpop.f32.mrb[62].mxu0 }
0x1b11   :  { %4740 = vbcast.lane.b32.xlu0 %v4734_v14, 264  ;;  %4736 = vbcast.lane.b32.xlu1 %v4734_v14, 256  ;;  %v4729_v50 = vpop.f32.mrb[63].mxu0 }
0x1b83   :  { %v4741_v59 = vpop.permute.xlu0 %4740  ;;  %v4737_v27 = vpop.permute.xlu1 %4736 }
0x1b84   :  { %v4747_v49 = vadd.f32 %v4745_v58, %v4741_v59  ;;  %v4746_v10 = vadd.f32 %v4745_v58, %v4737_v27 }
0x1b86   :  { %vm4749_vm0 = vcmp.ge.f32.partialorder %v4747_v49, 0.0  ;;  %v4751_v25 = vmul.f32 0.2, %v4747_v49  ;;  %vm4748_vm1 = vcmp.ge.f32.partialorder %v4746_v10, 0.0  ;;  %v4750_v56 = vmul.f32 0.2, %v4746_v10 }
0x1b88   :  { %v4753_v60 = vsel %vm4749_vm0, %v4747_v49, %v4751_v25  ;;  %v4752_v62 = vsel %vm4748_vm1, %v4746_v10, %v4750_v56 }
0x1b89   :  { %v4755_v1 = vadd.f32 %v4753_v60, %v9186_v30  ;;  %v4754_v2 = vadd.f32 %v4752_v62, %v9182_v18 }
0x1b8b   :  { %v4759_v4 = vsel %vm1036_vm2, %v4755_v1, -inf  ;;  %v4756_v5 = vsel %vm1036_vm2, %v4754_v2, -inf }
0x1b8c   :  { %4760 = vmax.xlane.f32.xlu0 %v4759_v4  ;;  %4757 = vmax.xlane.f32.xlu1 %v4756_v5 }
0x1c19   :  { %v4761_v6 = vpop.xlane.xlu0 %4760  ;;  %v4758_v7 = vpop.xlane.xlu1 %4757 }
0x1c1a   :  { %v4763_v38 = vsub.f32 %v4755_v1, %v4761_v6  ;;  %v4762_v8 = vsub.f32 %v4754_v2, %v4758_v7 }
0x1c1c   :  { %v4766_v9 = vmul.f32 1.442695, %v4763_v38  ;;  %v4764_v3 = vmul.f32 1.442695, %v4762_v8 }
0x1c1e   :  { %7664 = vpow2.f32 %v4766_v9 }
0x1c1f   :  { %7666 = vpow2.f32 %v4764_v3 }
0x1c28   :  { %v7665_v11 = vpop.eup %7664 }
0x1c29   :  { %v7667_v12 = vpop.eup %7666  ;;  %v4771_v30 = vsel %vm1036_vm2, %v7665_v11, 0.0 }
0x1c2a   :  { %4772 = vadd.xlane.f32.xlu0 %v4771_v30  ;;  %v4768_v18 = vsel %vm1036_vm2, %v7667_v12, 0.0 }
0x1c2b   :  { %4769 = vadd.xlane.f32.xlu1 %v4768_v18 }
0x1cb7   :  { %v4773_v13 = vpop.xlane.xlu0 %4772 }
0x1cb8   :  { %7668 = vrcp.f32 %v4773_v13  ;;  %v4770_v16 = vpop.xlane.xlu1 %4769 }
0x1cb9   :  { %7670 = vrcp.f32 %v4770_v16 }
0x1cc2   :  { %v7669_v17 = vpop.eup %7668 }
0x1cc3   :  { %v7671_v19 = vpop.eup %7670  ;;  %v4777_v45 = vmul.f32 %v7669_v17, %v7665_v11 }
0x1cc4   :  { %v4776_v43 = vmul.f32 %v7671_v19, %v7667_v12 }
0x1cc6   :  { %v4778_v35 = vpack.c.bf16 %v4777_v45, %v4776_v43 }
0x1cc8   :  { %6856 = vmatmul.mubr.msk.bf16.vlgmr.msra.gmra.mrb[64].mxu0 %vm1036_vm2, %v4778_v35 }
0x1cc9   :  { %4879 = vmatprep.mubr.bf16.mxu0 %v8428_v0  ;;  %v4840_v0 = vld [vmem:[%s9435_s4] sm:$0x3] }
0x1cca   :  { %v4841_v55 = vpack.c.bf16 %v4840_v0, %v4840_v0 }
0x1d9b   :  { %v4827_v24 = vpop.f32.mrb[64].mxu0 }
0x1d9c   :  { %v4828_v26 = vadd.f32 %v4827_v24, %v4783_v33  ;;  %v4829_v32 = vpop.f32.mrb[65].mxu0 }
0x1d9d   :  { %v4830_v40 = vadd.f32 %v4829_v32, %v4787_v39  ;;  %v4831_v44 = vpop.f32.mrb[66].mxu0 }
0x1d9e   :  { %v4832_v47 = vadd.f32 %v4831_v44, %v4783_v33  ;;  %v4833_v52 = vpop.f32.mrb[67].mxu0  ;;  %v4836_v54 = vmax.f32 %v4828_v26, 0.0 }
0x1d9f   :  { %v4834_v53 = vadd.f32 %v4833_v52, %v4787_v39  ;;  %v4837_v21 = vmax.f32 %v4830_v40, 0.0 }
0x1da0   :  { %v4838_v48 = vmax.f32 %v4832_v47, 0.0 }
0x1da1   :  { %v4839_v28 = vmax.f32 %v4834_v53, 0.0 }
0x1da2   :  { %v4842_v63 = vpack.c.bf16 %v4838_v48, %v4836_v54 }
0x1da3   :  { %v4843_v51 = vpack.c.bf16 %v4839_v28, %v4837_v21 }
0x1da5   :  { %4847 = vmatprep.subr.bf16.mxu0 %v4843_v51 }
0x1da6   :  { %4848 = vmatpush1.bf16.msra.mxu0 %v4842_v63 }
0x1da9   :  { %6857 = vmatmul.mubr.msk.bf16.vlgmr.msra.gmra.mrb[68].mxu0 %vm1036_vm2, %v4841_v55 }
0x1e7c   :  { %v9222_v57 = vpop.f32.mrb[68].mxu0 }
0x1e7d   :  { %v4883_v22 = vpop.f32.mrb[69].mxu0 }
0x1e7e   :  { %v4885_v14 = vpop.f32.mrb[70].mxu0 }
0x1e7f   :  { %v4886_v15 = vpop.f32.mrb[71].mxu0 }
0x1e80   :  { %8344 = dma.done.wait [#allocation10 + $0x3], 16384 }
0x1e81   :  { %8345 = vsyncadd [#allocation10 + $0x3], 4294950912  ;;  %v9224_v46 = vpack.c.bf16 %v4883_v22, %v4883_v22  ;;  %v4893_v50 = vld [vmem:[#allocation5 + $0x8] sm:$0xff]  ;;  %v4895_v58 = vld [vmem:[#allocation5 + $0x18] sm:$0xff] }
0x1e82   :  { %v4892_v59 = vld [vmem:[#allocation5] sm:$0xff]  ;;  %5064 = vmatprep.subr.bf16.mxu0 %v4893_v50  ;;  %5105 = vmatprep.subr.bf16.mxu1 %v4895_v58  ;;  %v4894_v27 = vld [vmem:[#allocation5 + $0x10] sm:$0xff]  ;;  %v4901_v49 = vld [vmem:[#allocation5 + $0x48] sm:$0xff] }
0x1e83   :  { %5096 = vmatprep.mubr.bf16.mxu0 %v9224_v46  ;;  %5137 = vmatprep.mubr.bf16.mxu1 %v9224_v46  ;;  %v4903_v10 = vld [vmem:[#allocation5 + $0x58] sm:$0xff]  ;;  %v4900_v25 = vld [vmem:[#allocation5 + $0x40] sm:$0xff]  ;;  %v4902_v56 = vld [vmem:[#allocation5 + $0x50] sm:$0xff] }
0x1e84   :  { %5065 = vmatpush1.bf16.msra.mxu0 %v4892_v59  ;;  %5106 = vmatpush1.bf16.msra.mxu1 %v4894_v27  ;;  %v4909_v60 = vld [vmem:[#allocation5 + $0x88] sm:$0xff]  ;;  %v4911_v62 = vld [vmem:[#allocation5 + $0x98] sm:$0xff]  ;;  %v4908_v1 = vld [vmem:[#allocation5 + $0x80] sm:$0xff] }
0x1e85   :  { %5066 = vmatprep.subr.bf16.mxu0 %v4901_v49  ;;  %5107 = vmatprep.subr.bf16.mxu1 %v4903_v10  ;;  %v4910_v2 = vld [vmem:[#allocation5 + $0x90] sm:$0xff]  ;;  %v4917_v4 = vld [vmem:[#allocation5 + $0xc8] sm:$0xff]  ;;  %v4919_v5 = vld [vmem:[#allocation5 + $0xd8] sm:$0xff] }
0x1e86   :  { %v4916_v6 = vld [vmem:[#allocation5 + $0xc0] sm:$0xff]  ;;  %v4918_v7 = vld [vmem:[#allocation5 + $0xd0] sm:$0xff]  ;;  %v4925_v38 = vld [vmem:[#allocation5 + $0x108] sm:$0xff] }
0x1e87   :  { %v4927_v8 = vld [vmem:[#allocation5 + $0x118] sm:$0xff]  ;;  %v4924_v9 = vld [vmem:[#allocation5 + $0x100] sm:$0xff]  ;;  %v4926_v3 = vld [vmem:[#allocation5 + $0x110] sm:$0xff] }
0x1e88   :  { %5067 = vmatpush1.bf16.msra.mxu0 %v4900_v25  ;;  %5108 = vmatpush1.bf16.msra.mxu1 %v4902_v56  ;;  %v4933_v11 = vld [vmem:[#allocation5 + $0x148] sm:$0xff]  ;;  %v4935_v12 = vld [vmem:[#allocation5 + $0x158] sm:$0xff]  ;;  %v4932_v30 = vld [vmem:[#allocation5 + $0x140] sm:$0xff] }
0x1e89   :  { %5068 = vmatprep.subr.bf16.mxu0 %v4909_v60  ;;  %5109 = vmatprep.subr.bf16.mxu1 %v4911_v62  ;;  %v4934_v18 = vld [vmem:[#allocation5 + $0x150] sm:$0xff]  ;;  %v4941_v13 = vld [vmem:[#allocation5 + $0x188] sm:$0xff]  ;;  %v4943_v16 = vld [vmem:[#allocation5 + $0x198] sm:$0xff] }
0x1e8a   :  { %v4940_v17 = vld [vmem:[#allocation5 + $0x180] sm:$0xff]  ;;  %v4942_v19 = vld [vmem:[#allocation5 + $0x190] sm:$0xff]  ;;  %v4949_v45 = vld [vmem:[#allocation5 + $0x1c8] sm:$0xff] }
0x1e8b   :  { %v4951_v43 = vld [vmem:[#allocation5 + $0x1d8] sm:$0xff]  ;;  %v4948_v35 = vld [vmem:[#allocation5 + $0x1c0] sm:$0xff]  ;;  %v4950_v29 = vld [vmem:[#allocation5 + $0x1d0] sm:$0xff] }
0x1e8c   :  { %5069 = vmatpush1.bf16.msra.mxu0 %v4908_v1  ;;  %5110 = vmatpush1.bf16.msra.mxu1 %v4910_v2  ;;  %v4957_v33 = vld [vmem:[#allocation5 + $0x208] sm:$0xff]  ;;  %v4959_v39 = vld [vmem:[#allocation5 + $0x218] sm:$0xff]  ;;  %v4956_v24 = vld [vmem:[#allocation5 + $0x200] sm:$0xff] }
0x1e8d   :  { %5070 = vmatprep.subr.bf16.mxu0 %v4917_v4  ;;  %5111 = vmatprep.subr.bf16.mxu1 %v4919_v5  ;;  %v4958_v26 = vld [vmem:[#allocation5 + $0x210] sm:$0xff]  ;;  %v4965_v32 = vld [vmem:[#allocation5 + $0x248] sm:$0xff]  ;;  %v4967_v40 = vld [vmem:[#allocation5 + $0x258] sm:$0xff]  ;;  %v9230_v5 = vpack.c.bf16 %v9222_v57, %v9222_v57 }
0x1e8e   :  { %v4964_v44 = vld [vmem:[#allocation5 + $0x240] sm:$0xff]  ;;  %v4966_v47 = vld [vmem:[#allocation5 + $0x250] sm:$0xff]  ;;  %v4973_v52 = vld [vmem:[#allocation5 + $0x288] sm:$0xff] }
0x1e8f   :  { %v4975_v53 = vld [vmem:[#allocation5 + $0x298] sm:$0xff]  ;;  %v4972_v54 = vld [vmem:[#allocation5 + $0x280] sm:$0xff]  ;;  %v4974_v48 = vld [vmem:[#allocation5 + $0x290] sm:$0xff] }
0x1e90   :  { %5071 = vmatpush1.bf16.msra.mxu0 %v4916_v6  ;;  %5112 = vmatpush1.bf16.msra.mxu1 %v4918_v7  ;;  %v4981_v21 = vld [vmem:[#allocation5 + $0x2c8] sm:$0xff]  ;;  %v4983_v28 = vld [vmem:[#allocation5 + $0x2d8] sm:$0xff]  ;;  %v4980_v63 = vld [vmem:[#allocation5 + $0x2c0] sm:$0xff] }
0x1e91   :  { %5072 = vmatprep.subr.bf16.mxu0 %v4925_v38  ;;  %5113 = vmatprep.subr.bf16.mxu1 %v4927_v8  ;;  %v4982_v0 = vld [vmem:[#allocation5 + $0x2d0] sm:$0xff]  ;;  %v4989_v51 = vld [vmem:[#allocation5 + $0x308] sm:$0xff]  ;;  %v4991_v55 = vld [vmem:[#allocation5 + $0x318] sm:$0xff] }
0x1e92   :  { %v4988_v22 = vld [vmem:[#allocation5 + $0x300] sm:$0xff]  ;;  %v4990_v14 = vld [vmem:[#allocation5 + $0x310] sm:$0xff]  ;;  %v4997_v15 = vld [vmem:[#allocation5 + $0x348] sm:$0xff] }
0x1e93   :  { %v4999_v50 = vld [vmem:[#allocation5 + $0x358] sm:$0xff]  ;;  %v4996_v58 = vld [vmem:[#allocation5 + $0x340] sm:$0xff]  ;;  %v4998_v59 = vld [vmem:[#allocation5 + $0x350] sm:$0xff] }
0x1e94   :  { %5073 = vmatpush1.bf16.msra.mxu0 %v4924_v9  ;;  %5114 = vmatpush1.bf16.msra.mxu1 %v4926_v3  ;;  %v5005_v27 = vld [vmem:[#allocation5 + $0x388] sm:$0xff]  ;;  %v5007_v49 = vld [vmem:[#allocation5 + $0x398] sm:$0xff]  ;;  %v5004_v10 = vld [vmem:[#allocation5 + $0x380] sm:$0xff] }
0x1e95   :  { %5074 = vmatprep.subr.bf16.mxu0 %v4933_v11  ;;  %5115 = vmatprep.subr.bf16.mxu1 %v4935_v12  ;;  %v5006_v25 = vld [vmem:[#allocation5 + $0x390] sm:$0xff]  ;;  %v5013_v56 = vld [vmem:[#allocation5 + $0x3c8] sm:$0xff]  ;;  %v5015_v60 = vld [vmem:[#allocation5 + $0x3d8] sm:$0xff] }
0x1e96   :  { %v5012_v62 = vld [vmem:[#allocation5 + $0x3c0] sm:$0xff]  ;;  %v5014_v1 = vld [vmem:[#allocation5 + $0x3d0] sm:$0xff]  ;;  %v4897_v2 = vld [vmem:[#allocation5 + $0x28] sm:$0xff] }
0x1e97   :  { %v4899_v4 = vld [vmem:[#allocation5 + $0x38] sm:$0xff]  ;;  %v4896_v6 = vld [vmem:[#allocation5 + $0x20] sm:$0xff]  ;;  %v4898_v7 = vld [vmem:[#allocation5 + $0x30] sm:$0xff] }
0x1e98   :  { %5075 = vmatpush1.bf16.msra.mxu0 %v4932_v30  ;;  %5116 = vmatpush1.bf16.msra.mxu1 %v4934_v18  ;;  %v4905_v38 = vld [vmem:[#allocation5 + $0x68] sm:$0xff]  ;;  %v4907_v8 = vld [vmem:[#allocation5 + $0x78] sm:$0xff]  ;;  %v4904_v9 = vld [vmem:[#allocation5 + $0x60] sm:$0xff] }
0x1e99   :  { %5076 = vmatprep.subr.bf16.mxu0 %v4941_v13  ;;  %5117 = vmatprep.subr.bf16.mxu1 %v4943_v16  ;;  %v4906_v3 = vld [vmem:[#allocation5 + $0x70] sm:$0xff]  ;;  %v4913_v57 = vld [vmem:[#allocation5 + $0xa8] sm:$0xff]  ;;  %v4915_v11 = vld [vmem:[#allocation5 + $0xb8] sm:$0xff] }
0x1e9a   :  { %v4912_v12 = vld [vmem:[#allocation5 + $0xa0] sm:$0xff]  ;;  %v4914_v30 = vld [vmem:[#allocation5 + $0xb0] sm:$0xff]  ;;  %v4921_v18 = vld [vmem:[#allocation5 + $0xe8] sm:$0xff] }
0x1e9b   :  { %v4923_v13 = vld [vmem:[#allocation5 + $0xf8] sm:$0xff]  ;;  %v4920_v16 = vld [vmem:[#allocation5 + $0xe0] sm:$0xff] }
0x1e9c   :  { %5077 = vmatpush1.bf16.msra.mxu0 %v4940_v17  ;;  %5118 = vmatpush1.bf16.msra.mxu1 %v4942_v19  ;;  %v4922_v17 = vld [vmem:[#allocation5 + $0xf0] sm:$0xff]  ;;  %v4929_v19 = vld [vmem:[#allocation5 + $0x128] sm:$0xff] }
0x1e9d   :  { %5078 = vmatprep.subr.bf16.mxu0 %v4949_v45  ;;  %5119 = vmatprep.subr.bf16.mxu1 %v4951_v43  ;;  %v4931_v45 = vld [vmem:[#allocation5 + $0x138] sm:$0xff]  ;;  %v4930_v43 = vld [vmem:[#allocation5 + $0x130] sm:$0xff] }
0x1ea0   :  { %5079 = vmatpush1.bf16.msra.mxu0 %v4948_v35  ;;  %5120 = vmatpush1.bf16.msra.mxu1 %v4950_v29  ;;  %v4937_v35 = vld [vmem:[#allocation5 + $0x168] sm:$0xff]  ;;  %v4939_v29 = vld [vmem:[#allocation5 + $0x178] sm:$0xff] }
0x1ea1   :  { %5080 = vmatprep.subr.bf16.mxu0 %v4957_v33  ;;  %5121 = vmatprep.subr.bf16.mxu1 %v4959_v39  ;;  %v4936_v33 = vld [vmem:[#allocation5 + $0x160] sm:$0xff]  ;;  %v4938_v39 = vld [vmem:[#allocation5 + $0x170] sm:$0xff] }
0x1ea4   :  { %5081 = vmatpush1.bf16.msra.mxu0 %v4956_v24  ;;  %5122 = vmatpush1.bf16.msra.mxu1 %v4958_v26  ;;  %v4945_v24 = vld [vmem:[#allocation5 + $0x1a8] sm:$0xff]  ;;  %v4947_v26 = vld [vmem:[#allocation5 + $0x1b8] sm:$0xff] }
0x1ea5   :  { %5082 = vmatprep.subr.bf16.mxu0 %v4965_v32  ;;  %5123 = vmatprep.subr.bf16.mxu1 %v4967_v40  ;;  %v4944_v32 = vld [vmem:[#allocation5 + $0x1a0] sm:$0xff]  ;;  %v4946_v40 = vld [vmem:[#allocation5 + $0x1b0] sm:$0xff] }
0x1ea8   :  { %5083 = vmatpush1.bf16.msra.mxu0 %v4964_v44  ;;  %5124 = vmatpush1.bf16.msra.mxu1 %v4966_v47  ;;  %v4953_v44 = vld [vmem:[#allocation5 + $0x1e8] sm:$0xff]  ;;  %v4955_v47 = vld [vmem:[#allocation5 + $0x1f8] sm:$0xff] }
0x1ea9   :  { %5084 = vmatprep.subr.bf16.mxu0 %v4973_v52  ;;  %5125 = vmatprep.subr.bf16.mxu1 %v4975_v53  ;;  %v4952_v52 = vld [vmem:[#allocation5 + $0x1e0] sm:$0xff]  ;;  %v4954_v53 = vld [vmem:[#allocation5 + $0x1f0] sm:$0xff] }
0x1eac   :  { %5085 = vmatpush1.bf16.msra.mxu0 %v4972_v54  ;;  %5126 = vmatpush1.bf16.msra.mxu1 %v4974_v48  ;;  %v4961_v54 = vld [vmem:[#allocation5 + $0x228] sm:$0xff]  ;;  %v4963_v48 = vld [vmem:[#allocation5 + $0x238] sm:$0xff] }
0x1ead   :  { %5086 = vmatprep.subr.bf16.mxu0 %v4981_v21  ;;  %5127 = vmatprep.subr.bf16.mxu1 %v4983_v28  ;;  %v4960_v21 = vld [vmem:[#allocation5 + $0x220] sm:$0xff]  ;;  %v4962_v28 = vld [vmem:[#allocation5 + $0x230] sm:$0xff] }
0x1eb0   :  { %5087 = vmatpush1.bf16.msra.mxu0 %v4980_v63  ;;  %5128 = vmatpush1.bf16.msra.mxu1 %v4982_v0  ;;  %v4969_v63 = vld [vmem:[#allocation5 + $0x268] sm:$0xff]  ;;  %v4971_v0 = vld [vmem:[#allocation5 + $0x278] sm:$0xff] }
0x1eb1   :  { %5088 = vmatprep.subr.bf16.mxu0 %v4989_v51  ;;  %5129 = vmatprep.subr.bf16.mxu1 %v4991_v55  ;;  %v4968_v51 = vld [vmem:[#allocation5 + $0x260] sm:$0xff]  ;;  %v4970_v55 = vld [vmem:[#allocation5 + $0x270] sm:$0xff] }
0x1eb4   :  { %5089 = vmatpush1.bf16.msra.mxu0 %v4988_v22  ;;  %5130 = vmatpush1.bf16.msra.mxu1 %v4990_v14  ;;  %v4977_v22 = vld [vmem:[#allocation5 + $0x2a8] sm:$0xff]  ;;  %v4979_v14 = vld [vmem:[#allocation5 + $0x2b8] sm:$0xff] }
0x1eb5   :  { %5090 = vmatprep.subr.bf16.mxu0 %v4997_v15  ;;  %5131 = vmatprep.subr.bf16.mxu1 %v4999_v50  ;;  %v4976_v15 = vld [vmem:[#allocation5 + $0x2a0] sm:$0xff]  ;;  %v4978_v50 = vld [vmem:[#allocation5 + $0x2b0] sm:$0xff] }
0x1eb8   :  { %5091 = vmatpush1.bf16.msra.mxu0 %v4996_v58  ;;  %5132 = vmatpush1.bf16.msra.mxu1 %v4998_v59  ;;  %v4985_v58 = vld [vmem:[#allocation5 + $0x2e8] sm:$0xff]  ;;  %v4987_v59 = vld [vmem:[#allocation5 + $0x2f8] sm:$0xff] }
0x1eb9   :  { %5092 = vmatprep.subr.bf16.mxu0 %v5005_v27  ;;  %5133 = vmatprep.subr.bf16.mxu1 %v5007_v49  ;;  %v4984_v27 = vld [vmem:[#allocation5 + $0x2e0] sm:$0xff]  ;;  %v4986_v49 = vld [vmem:[#allocation5 + $0x2f0] sm:$0xff] }
0x1ebc   :  { %5093 = vmatpush1.bf16.msra.mxu0 %v5004_v10  ;;  %5134 = vmatpush1.bf16.msra.mxu1 %v5006_v25  ;;  %v4993_v10 = vld [vmem:[#allocation5 + $0x328] sm:$0xff]  ;;  %v4995_v25 = vld [vmem:[#allocation5 + $0x338] sm:$0xff] }
0x1ebd   :  { %5094 = vmatprep.subr.bf16.mxu0 %v5013_v56  ;;  %5135 = vmatprep.subr.bf16.mxu1 %v5015_v60  ;;  %v4992_v56 = vld [vmem:[#allocation5 + $0x320] sm:$0xff]  ;;  %v4994_v60 = vld [vmem:[#allocation5 + $0x330] sm:$0xff] }
0x1ec0   :  { %5095 = vmatpush1.bf16.msra.mxu0 %v5012_v62  ;;  %5136 = vmatpush1.bf16.msra.mxu1 %v5014_v1  ;;  %v5001_v62 = vld [vmem:[#allocation5 + $0x368] sm:$0xff]  ;;  %v5003_v1 = vld [vmem:[#allocation5 + $0x378] sm:$0xff] }
0x1ec1   :  { %5146 = vmatprep.subr.bf16.mxu0 %v4897_v2  ;;  %5187 = vmatprep.subr.bf16.mxu1 %v4899_v4  ;;  %v5000_v2 = vld [vmem:[#allocation5 + $0x360] sm:$0xff]  ;;  %v5002_v4 = vld [vmem:[#allocation5 + $0x370] sm:$0xff] }
0x1ec3   :  { %5097 = vmatmul.mubr.bf16.vlgmr.msra.gmra.mrb[72].mxu0 %v9230_v5  ;;  %5138 = vmatmul.mubr.bf16.vlgmr.msra.gmra.mrb[88].mxu1 %v9230_v5 }
0x1ec4   :  { %5147 = vmatpush1.bf16.msra.mxu0 %v4896_v6  ;;  %5188 = vmatpush1.bf16.msra.mxu1 %v4898_v7  ;;  %v5009_v6 = vld [vmem:[#allocation5 + $0x3a8] sm:$0xff]  ;;  %v5011_v7 = vld [vmem:[#allocation5 + $0x3b8] sm:$0xff] }
0x1ec5   :  { %5148 = vmatprep.subr.bf16.mxu0 %v4905_v38  ;;  %5189 = vmatprep.subr.bf16.mxu1 %v4907_v8  ;;  %v5008_v38 = vld [vmem:[#allocation5 + $0x3a0] sm:$0xff]  ;;  %v5010_v8 = vld [vmem:[#allocation5 + $0x3b0] sm:$0xff] }
0x1ec6   :  { %5178 = vmatprep.mubr.bf16.mxu0 %v9224_v46  ;;  %5219 = vmatprep.mubr.bf16.mxu1 %v9224_v46  ;;  %v4928_v46 = vld [vmem:[#allocation5 + $0x120] sm:$0xff] }
0x1ec8   :  { %5149 = vmatpush1.bf16.msra.mxu0 %v4904_v9  ;;  %5190 = vmatpush1.bf16.msra.mxu1 %v4906_v3  ;;  %v5017_v9 = vld [vmem:[#allocation5 + $0x3e8] sm:$0xff]  ;;  %v5019_v3 = vld [vmem:[#allocation5 + $0x3f8] sm:$0xff] }
0x1ec9   :  { %5150 = vmatprep.subr.bf16.mxu0 %v4913_v57  ;;  %5191 = vmatprep.subr.bf16.mxu1 %v4915_v11  ;;  %v5016_v57 = vld [vmem:[#allocation5 + $0x3e0] sm:$0xff]  ;;  %v5018_v11 = vld [vmem:[#allocation5 + $0x3f0] sm:$0xff] }
0x1ecc   :  { %5151 = vmatpush1.bf16.msra.mxu0 %v4912_v12  ;;  %5192 = vmatpush1.bf16.msra.mxu1 %v4914_v30  ;;  %v5020_v12 = vld [vmem:[#allocation45] sm:$0xff] }
0x1ecd   :  { %5152 = vmatprep.subr.bf16.mxu0 %v4921_v18  ;;  %5193 = vmatprep.subr.bf16.mxu1 %v4923_v13  ;;  %v5027_v30 = vrot.slane %v5020_v12, %v8883_v42  ;;  %v5035_v18 = vrot.slane %v5020_v12, %v8969_v20  ;;  %v5031_v13 = vrot.slane %v5020_v12, %v8880_v41 }
0x1ed0   :  { %5153 = vmatpush1.bf16.msra.mxu0 %v4920_v16  ;;  %5194 = vmatpush1.bf16.msra.mxu1 %v4922_v17  ;;  %v5039_v16 = vrot.slane %v5020_v12, %v8974_v23 }
0x1ed1   :  { %5154 = vmatprep.subr.bf16.mxu0 %v4929_v19  ;;  %5195 = vmatprep.subr.bf16.mxu1 %v4931_v45 }
0x1ed4   :  { %5155 = vmatpush1.bf16.msra.mxu0 %v4928_v46  ;;  %5196 = vmatpush1.bf16.msra.mxu1 %v4930_v43 }
0x1ed5   :  { %5156 = vmatprep.subr.bf16.mxu0 %v4937_v35  ;;  %5197 = vmatprep.subr.bf16.mxu1 %v4939_v29 }
0x1ed8   :  { %5157 = vmatpush1.bf16.msra.mxu0 %v4936_v33  ;;  %5198 = vmatpush1.bf16.msra.mxu1 %v4938_v39 }
0x1ed9   :  { %5158 = vmatprep.subr.bf16.mxu0 %v4945_v24  ;;  %5199 = vmatprep.subr.bf16.mxu1 %v4947_v26 }
0x1edc   :  { %5159 = vmatpush1.bf16.msra.mxu0 %v4944_v32  ;;  %5200 = vmatpush1.bf16.msra.mxu1 %v4946_v40 }
0x1edd   :  { %5160 = vmatprep.subr.bf16.mxu0 %v4953_v44  ;;  %5201 = vmatprep.subr.bf16.mxu1 %v4955_v47 }
0x1ee0   :  { %5161 = vmatpush1.bf16.msra.mxu0 %v4952_v52  ;;  %5202 = vmatpush1.bf16.msra.mxu1 %v4954_v53  ;;  %v5043_v52 = vrot.slane %v5020_v12, %v9090_v37  ;;  %v5051_v53 = vrot.slane %v5020_v12, %v9093_v31 }
0x1ee1   :  { %5162 = vmatprep.subr.bf16.mxu0 %v4961_v54  ;;  %5203 = vmatprep.subr.bf16.mxu1 %v4963_v48  ;;  %v5047_v54 = vrot.slane %v5020_v12, %v9096_v34  ;;  %v5055_v48 = vrot.slane %v5020_v12, %v9099_v36 }
0x1ee4   :  { %5163 = vmatpush1.bf16.msra.mxu0 %v4960_v21  ;;  %5204 = vmatpush1.bf16.msra.mxu1 %v4962_v28 }
0x1ee5   :  { %5164 = vmatprep.subr.bf16.mxu0 %v4969_v63  ;;  %5205 = vmatprep.subr.bf16.mxu1 %v4971_v0 }
0x1ee8   :  { %5165 = vmatpush1.bf16.msra.mxu0 %v4968_v51  ;;  %5206 = vmatpush1.bf16.msra.mxu1 %v4970_v55 }
0x1ee9   :  { %5166 = vmatprep.subr.bf16.mxu0 %v4977_v22  ;;  %5207 = vmatprep.subr.bf16.mxu1 %v4979_v14 }
0x1eec   :  { %5167 = vmatpush1.bf16.msra.mxu0 %v4976_v15  ;;  %5208 = vmatpush1.bf16.msra.mxu1 %v4978_v50 }
0x1eed   :  { %5168 = vmatprep.subr.bf16.mxu0 %v4985_v58  ;;  %5209 = vmatprep.subr.bf16.mxu1 %v4987_v59 }
0x1ef0   :  { %5169 = vmatpush1.bf16.msra.mxu0 %v4984_v27  ;;  %5210 = vmatpush1.bf16.msra.mxu1 %v4986_v49 }
0x1ef1   :  { %5170 = vmatprep.subr.bf16.mxu0 %v4993_v10  ;;  %5211 = vmatprep.subr.bf16.mxu1 %v4995_v25 }
0x1ef4   :  { %5171 = vmatpush1.bf16.msra.mxu0 %v4992_v56  ;;  %5212 = vmatpush1.bf16.msra.mxu1 %v4994_v60 }
0x1ef5   :  { %5172 = vmatprep.subr.bf16.mxu0 %v5001_v62  ;;  %5213 = vmatprep.subr.bf16.mxu1 %v5003_v1 }
0x1ef8   :  { %5173 = vmatpush1.bf16.msra.mxu0 %v5000_v2  ;;  %5214 = vmatpush1.bf16.msra.mxu1 %v5002_v4 }
0x1ef9   :  { %5174 = vmatprep.subr.bf16.mxu0 %v5009_v6  ;;  %5215 = vmatprep.subr.bf16.mxu1 %v5011_v7 }
0x1efc   :  { %5175 = vmatpush1.bf16.msra.mxu0 %v5008_v38  ;;  %5216 = vmatpush1.bf16.msra.mxu1 %v5010_v8 }
0x1efd   :  { %5176 = vmatprep.subr.bf16.mxu0 %v5017_v9  ;;  %5217 = vmatprep.subr.bf16.mxu1 %v5019_v3 }
0x1f00   :  { %5177 = vmatpush1.bf16.msra.mxu0 %v5016_v57  ;;  %5218 = vmatpush1.bf16.msra.mxu1 %v5018_v11 }
0x1f03   :  { %5179 = vmatmul.mubr.bf16.vlgmr.msra.gmra.mrb[76].mxu0 %v9230_v5  ;;  %5220 = vmatmul.mubr.bf16.vlgmr.msra.gmra.mrb[92].mxu1 %v9230_v5 }
0x1f96   :  { %v5098_v17 = vpop.f32.mrb[72].mxu0  ;;  %v5139_v19 = vpop.f32.mrb[88].mxu1 }
0x1f97   :  { %v9242_v45 = vadd.f32 %v5098_v17, %v5027_v30  ;;  %v9244_v46 = vadd.f32 %v5139_v19, %v5035_v18  ;;  %v5100_v43 = vpop.f32.mrb[73].mxu0  ;;  %v5141_v35 = vpop.f32.mrb[89].mxu1 }
0x1f98   :  { %v5101_v29 = vadd.f32 %v5100_v43, %v5031_v13  ;;  %v5142_v33 = vadd.f32 %v5141_v35, %v5039_v16  ;;  %v5102_v5 = vpop.f32.mrb[74].mxu0  ;;  %v5143_v39 = vpop.f32.mrb[90].mxu1 }
0x1f99   :  { %v5228_v24 = vmax.f32 %v9242_v45, 0.0  ;;  %v5230_v26 = vmax.f32 %v9244_v46, 0.0  ;;  %v5103_v32 = vpop.f32.mrb[75].mxu0  ;;  %v5144_v40 = vpop.f32.mrb[91].mxu1 }
0x1f9a   :  { %v5229_v44 = vmax.f32 %v5101_v29, 0.0  ;;  %v5231_v47 = vmax.f32 %v5142_v33, 0.0 }
0x1fd6   :  { %v5180_v21 = vpop.f32.mrb[76].mxu0  ;;  %v5221_v28 = vpop.f32.mrb[92].mxu1 }
0x1fd7   :  { %v9252_v63 = vadd.f32 %v5180_v21, %v5043_v52  ;;  %v9254_v0 = vadd.f32 %v5221_v28, %v5051_v53  ;;  %v5182_v51 = vpop.f32.mrb[77].mxu0  ;;  %v5223_v55 = vpop.f32.mrb[93].mxu1 }
0x1fd8   :  { %v9256_v22 = vadd.f32 %v5182_v51, %v5047_v54  ;;  %v9258_v14 = vadd.f32 %v5223_v55, %v5055_v48  ;;  %v5184_v15 = vpop.f32.mrb[78].mxu0  ;;  %v5225_v50 = vpop.f32.mrb[94].mxu1 }
0x1fd9   :  { %v5232_v58 = vmax.f32 %v9252_v63, 0.0  ;;  %v5234_v59 = vmax.f32 %v9254_v0, 0.0  ;;  %v5185_v27 = vpop.f32.mrb[79].mxu0  ;;  %v5226_v49 = vpop.f32.mrb[95].mxu1 }
0x1fda   :  { %v5233_v10 = vmax.f32 %v9256_v22, 0.0  ;;  %v5235_v25 = vmax.f32 %v9258_v14, 0.0 }
0x1fdb   :  { %8346 = dma.done.wait [#allocation10 + $0x4], 8192 }
0x1fdc   :  { %8347 = vsyncadd [#allocation10 + $0x4], 4294959104  ;;  %v5304_v56 = vpack.c.bf16 %v5229_v44, %v5229_v44  ;;  %v5306_v60 = vpack.c.bf16 %v5231_v47, %v5231_v47  ;;  %v5246_v62 = vld [vmem:[#allocation6 + $0x40] sm:$0xff]  ;;  %v5247_v6 = vld [vmem:[#allocation6 + $0x48] sm:$0xff]  ;;  %v5303_v28 = vpack.c.bf16 %v5228_v24, %v5228_v24  ;;  %v5305_v51 = vpack.c.bf16 %v5230_v26, %v5230_v26  ;;  %s9436_s15 = sld [smem:[#allocation109_spill]] }
0x1fdd   :  { %v5262_v1 = vld [vmem:[#allocation6 + $0xc0] sm:$0xff]  ;;  %7027 = vmatprep.subr.bf16.mxu0 %v5246_v62  ;;  %v5263_v7 = vld [vmem:[#allocation6 + $0xc8] sm:$0xff]  ;;  %v5248_v9 = vld [vmem:[#allocation6 + $0x50] sm:$0xff]  ;;  %v5308_v49 = vpack.c.bf16 %v5233_v10, %v5233_v10  ;;  %v5310_v45 = vpack.c.bf16 %v5235_v25, %v5235_v25 }
0x1fde   :  { %5349 = vmatprep.mubr.bf16.mxu0 %v5304_v56  ;;  %5389 = vmatprep.mubr.bf16.mxu1 %v5306_v60  ;;  %v5238_v2 = vld [vmem:[#allocation6] sm:$0xff]  ;;  %v5239_v38 = vld [vmem:[#allocation6 + $0x8] sm:$0xff]  ;;  %v5264_v3 = vld [vmem:[#allocation6 + $0xd0] sm:$0xff] }
0x1fdf   :  { %7049 = vmatprep.subr.bf16.mxu1 %v5262_v1  ;;  %v5254_v4 = vld [vmem:[#allocation6 + $0x80] sm:$0xff]  ;;  %7028 = vmatpush3.bf16.msra.mxu0 %v5238_v2  ;;  %v5255_v8 = vld [vmem:[#allocation6 + $0x88] sm:$0xff]  ;;  %v5240_v57 = vld [vmem:[#allocation6 + $0x10] sm:$0xff] }
0x1fe0   :  { %7050 = vmatpush3.bf16.msra.mxu1 %v5254_v4  ;;  %7029 = vmatprep.subr.bf16.mxu0 %v5247_v6  ;;  %v5256_v11 = vld [vmem:[#allocation6 + $0x90] sm:$0xff]  ;;  %v5249_v12 = vld [vmem:[#allocation6 + $0x58] sm:$0xff]  ;;  %v5250_v16 = vld [vmem:[#allocation6 + $0x60] sm:$0xff] }
0x1fe1   :  { %7051 = vmatprep.subr.bf16.mxu1 %v5263_v7  ;;  %v5265_v30 = vld [vmem:[#allocation6 + $0xd8] sm:$0xff]  ;;  %v5266_v17 = vld [vmem:[#allocation6 + $0xe0] sm:$0xff]  ;;  %v5251_v35 = vld [vmem:[#allocation6 + $0x68] sm:$0xff] }
0x1fe2   :  { %v5241_v18 = vld [vmem:[#allocation6 + $0x18] sm:$0xff]  ;;  %v5242_v19 = vld [vmem:[#allocation6 + $0x20] sm:$0xff]  ;;  %v5267_v29 = vld [vmem:[#allocation6 + $0xe8] sm:$0xff] }
0x1fe3   :  { %7030 = vmatpush3.bf16.msra.mxu0 %v5239_v38  ;;  %v5257_v13 = vld [vmem:[#allocation6 + $0x98] sm:$0xff]  ;;  %v5258_v43 = vld [vmem:[#allocation6 + $0xa0] sm:$0xff]  ;;  %v5243_v33 = vld [vmem:[#allocation6 + $0x28] sm:$0xff] }
0x1fe4   :  { %7052 = vmatpush3.bf16.msra.mxu1 %v5255_v8  ;;  %7031 = vmatprep.subr.bf16.mxu0 %v5248_v9  ;;  %v5259_v5 = vld [vmem:[#allocation6 + $0xa8] sm:$0xff]  ;;  %v5252_v39 = vld [vmem:[#allocation6 + $0x70] sm:$0xff]  ;;  %v5253_v47 = vld [vmem:[#allocation6 + $0x78] sm:$0xff] }
0x1fe5   :  { %7053 = vmatprep.subr.bf16.mxu1 %v5264_v3  ;;  %v5268_v32 = vld [vmem:[#allocation6 + $0xf0] sm:$0xff]  ;;  %v5269_v52 = vld [vmem:[#allocation6 + $0xf8] sm:$0xff]  ;;  %v5278_v48 = vld [vmem:[#allocation6 + $0x140] sm:$0xff] }
0x1fe6   :  { %v5244_v40 = vld [vmem:[#allocation6 + $0x30] sm:$0xff]  ;;  %v5245_v53 = vld [vmem:[#allocation6 + $0x38] sm:$0xff]  ;;  %v5294_v21 = vld [vmem:[#allocation6 + $0x1c0] sm:$0xff] }
0x1fe7   :  { %7032 = vmatpush3.bf16.msra.mxu0 %v5240_v57  ;;  %v5260_v44 = vld [vmem:[#allocation6 + $0xb0] sm:$0xff]  ;;  %v5261_v54 = vld [vmem:[#allocation6 + $0xb8] sm:$0xff]  ;;  %v5270_v55 = vld [vmem:[#allocation6 + $0x100] sm:$0xff] }
0x1fe8   :  { %7054 = vmatpush3.bf16.msra.mxu1 %v5256_v11  ;;  %7033 = vmatprep.subr.bf16.mxu0 %v5249_v12  ;;  %v5286_v15 = vld [vmem:[#allocation6 + $0x180] sm:$0xff]  ;;  %v5279_v50 = vld [vmem:[#allocation6 + $0x148] sm:$0xff]  ;;  %v5280_v26 = vld [vmem:[#allocation6 + $0x150] sm:$0xff] }
0x1fe9   :  { %7055 = vmatprep.subr.bf16.mxu1 %v5265_v30  ;;  %v5295_v27 = vld [vmem:[#allocation6 + $0x1c8] sm:$0xff]  ;;  %v5296_v56 = vld [vmem:[#allocation6 + $0x1d0] sm:$0xff]  ;;  %v5281_v10 = vld [vmem:[#allocation6 + $0x158] sm:$0xff] }
0x1fea   :  { %v5271_v46 = vld [vmem:[#allocation6 + $0x108] sm:$0xff]  ;;  %v5272_v22 = vld [vmem:[#allocation6 + $0x110] sm:$0xff]  ;;  %v5297_v25 = vld [vmem:[#allocation6 + $0x1d8] sm:$0xff] }
0x1feb   :  { %7034 = vmatpush3.bf16.msra.mxu0 %v5241_v18  ;;  %v5287_v24 = vld [vmem:[#allocation6 + $0x188] sm:$0xff]  ;;  %v5288_v14 = vld [vmem:[#allocation6 + $0x190] sm:$0xff]  ;;  %v5273_v60 = vld [vmem:[#allocation6 + $0x118] sm:$0xff] }
0x1fec   :  { %7056 = vmatpush3.bf16.msra.mxu1 %v5257_v13  ;;  %7035 = vmatprep.subr.bf16.mxu0 %v5250_v16  ;;  %v5289_v62 = vld [vmem:[#allocation6 + $0x198] sm:$0xff]  ;;  %v5282_v1 = vld [vmem:[#allocation6 + $0x160] sm:$0xff]  ;;  %v5283_v7 = vld [vmem:[#allocation6 + $0x168] sm:$0xff] }
0x1fed   :  { %7057 = vmatprep.subr.bf16.mxu1 %v5266_v17  ;;  %v5298_v2 = vld [vmem:[#allocation6 + $0x1e0] sm:$0xff]  ;;  %v5299_v38 = vld [vmem:[#allocation6 + $0x1e8] sm:$0xff]  ;;  %v5284_v3 = vld [vmem:[#allocation6 + $0x170] sm:$0xff]  ;;  %v5307_v17 = vpack.c.bf16 %v5232_v58, %v5232_v58 }
0x1fee   :  { %v5274_v4 = vld [vmem:[#allocation6 + $0x120] sm:$0xff]  ;;  %v5275_v8 = vld [vmem:[#allocation6 + $0x128] sm:$0xff]  ;;  %v5300_v57 = vld [vmem:[#allocation6 + $0x1f0] sm:$0xff] }
0x1fef   :  { %7036 = vmatpush3.bf16.msra.mxu0 %v5242_v19  ;;  %v5290_v6 = vld [vmem:[#allocation6 + $0x1a0] sm:$0xff]  ;;  %v5291_v9 = vld [vmem:[#allocation6 + $0x1a8] sm:$0xff]  ;;  %v5276_v11 = vld [vmem:[#allocation6 + $0x130] sm:$0xff]  ;;  %v5309_v19 = vpack.c.bf16 %v5234_v59, %v5234_v59 }
0x1ff0   :  { %7058 = vmatpush3.bf16.msra.mxu1 %v5258_v43  ;;  %7037 = vmatprep.subr.bf16.mxu0 %v5251_v35  ;;  %v5292_v12 = vld [vmem:[#allocation6 + $0x1b0] sm:$0xff]  ;;  %v5285_v30 = vld [vmem:[#allocation6 + $0x178] sm:$0xff] }
0x1ff1   :  { %7059 = vmatprep.subr.bf16.mxu1 %v5267_v29  ;;  %v5301_v18 = vld [vmem:[#allocation6 + $0x1f8] sm:$0xff]  ;;  %v6858_v29 = vld [vmem:[%s9436_s15] ss:$0 sm:$0xff] }
0x1ff2   :  { %v5277_v13 = vld [vmem:[#allocation6 + $0x138] sm:$0xff] }
0x1ff3   :  { %7038 = vmatpush3.bf16.msra.mxu0 %v5243_v33  ;;  %v5293_v16 = vld [vmem:[#allocation6 + $0x1b8] sm:$0xff] }
0x1ff4   :  { %7060 = vmatpush3.bf16.msra.mxu1 %v5259_v5  ;;  %7039 = vmatprep.subr.bf16.mxu0 %v5252_v39 }
0x1ff5   :  { %7061 = vmatprep.subr.bf16.mxu1 %v5268_v32 }
0x1ff7   :  { %7040 = vmatpush3.bf16.msra.mxu0 %v5244_v40 }
0x1ff8   :  { %7062 = vmatpush3.bf16.msra.mxu1 %v5260_v44  ;;  %7041 = vmatprep.subr.bf16.mxu0 %v5253_v47 }
0x1ff9   :  { %7063 = vmatprep.subr.bf16.mxu1 %v5269_v52 }
0x1ffb   :  { %7042 = vmatpush3.bf16.msra.mxu0 %v5245_v53 }
0x1ffc   :  { %7064 = vmatpush3.bf16.msra.mxu1 %v5261_v54  ;;  %7071 = vmatprep.subr.bf16.mxu0 %v5278_v48 }
0x1ffd   :  { %7093 = vmatprep.subr.bf16.mxu1 %v5294_v21 }
0x1ffe   :  { %5350 = vmatmul.mubr.bf16.vlgmr.msra.gmra.mrb[80].mxu0 %v5303_v28 }
0x1fff   :  { %5390 = vmatmul.mubr.bf16.vlgmr.msra.gmra.mrb[96].mxu1 %v5305_v51  ;;  %7072 = vmatpush3.bf16.msra.mxu0 %v5270_v55 }
0x2000   :  { %7094 = vmatpush3.bf16.msra.mxu1 %v5286_v15  ;;  %7073 = vmatprep.subr.bf16.mxu0 %v5279_v50 }
0x2001   :  { %7095 = vmatprep.subr.bf16.mxu1 %v5295_v27  ;;  %5429 = vmatprep.mubr.bf16.mxu0 %v5308_v49 }
0x2002   :  { %5469 = vmatprep.mubr.bf16.mxu1 %v5310_v45 }
0x2003   :  { %7074 = vmatpush3.bf16.msra.mxu0 %v5271_v46 }
0x2004   :  { %7096 = vmatpush3.bf16.msra.mxu1 %v5287_v24  ;;  %7075 = vmatprep.subr.bf16.mxu0 %v5280_v26 }
0x2005   :  { %7097 = vmatprep.subr.bf16.mxu1 %v5296_v56 }
0x2007   :  { %7076 = vmatpush3.bf16.msra.mxu0 %v5272_v22 }
0x2008   :  { %7098 = vmatpush3.bf16.msra.mxu1 %v5288_v14  ;;  %7077 = vmatprep.subr.bf16.mxu0 %v5281_v10 }
0x2009   :  { %7099 = vmatprep.subr.bf16.mxu1 %v5297_v25 }
0x200b   :  { %7078 = vmatpush3.bf16.msra.mxu0 %v5273_v60 }
0x200c   :  { %7100 = vmatpush3.bf16.msra.mxu1 %v5289_v62  ;;  %7079 = vmatprep.subr.bf16.mxu0 %v5282_v1 }
0x200d   :  { %7101 = vmatprep.subr.bf16.mxu1 %v5298_v2 }
0x200f   :  { %7080 = vmatpush3.bf16.msra.mxu0 %v5274_v4 }
0x2010   :  { %7102 = vmatpush3.bf16.msra.mxu1 %v5290_v6  ;;  %7081 = vmatprep.subr.bf16.mxu0 %v5283_v7 }
0x2011   :  { %7103 = vmatprep.subr.bf16.mxu1 %v5299_v38 }
0x2013   :  { %7082 = vmatpush3.bf16.msra.mxu0 %v5275_v8 }
0x2014   :  { %7104 = vmatpush3.bf16.msra.mxu1 %v5291_v9  ;;  %7083 = vmatprep.subr.bf16.mxu0 %v5284_v3 }
0x2015   :  { %7105 = vmatprep.subr.bf16.mxu1 %v5300_v57 }
0x2017   :  { %7084 = vmatpush3.bf16.msra.mxu0 %v5276_v11 }
0x2018   :  { %7106 = vmatpush3.bf16.msra.mxu1 %v5292_v12  ;;  %7085 = vmatprep.subr.bf16.mxu0 %v5285_v30 }
0x2019   :  { %7107 = vmatprep.subr.bf16.mxu1 %v5301_v18 }
0x201b   :  { %7086 = vmatpush3.bf16.msra.mxu0 %v5277_v13 }
0x201c   :  { %7108 = vmatpush3.bf16.msra.mxu1 %v5293_v16 }
0x201e   :  { %5430 = vmatmul.mubr.bf16.vlgmr.msra.gmra.mrb[84].mxu0 %v5307_v17 }
0x201f   :  { %5470 = vmatmul.mubr.bf16.vlgmr.msra.gmra.mrb[100].mxu1 %v5309_v19 }
0x20d1   :  { %v7043_v43 = vpop.f32.mrb[80].mxu0 }
0x20d2   :  { %v7065_v35 = vpop.f32.mrb[96].mxu1  ;;  %v7044_v33 = vpop.f32.mrb[81].mxu0 }
0x20d3   :  { %v7066_v5 = vpop.f32.mrb[97].mxu1  ;;  %v7045_v39 = vadd.f32 %v7044_v33, %v7043_v43  ;;  %v7046_v40 = vpop.f32.mrb[82].mxu0 }
0x20d4   :  { %v7067_v32 = vadd.f32 %v7066_v5, %v7065_v35  ;;  %v7068_v44 = vpop.f32.mrb[98].mxu1  ;;  %v7047_v63 = vpop.f32.mrb[83].mxu0 }
0x20d5   :  { %v7069_v47 = vpop.f32.mrb[99].mxu1  ;;  %v5352_v58 = vadd.f32 %v7045_v39, %v6858_v29 }
0x20d7   :  { %v5392_v52 = vadd.f32 %v7067_v32, %v5352_v58 }
0x20f1   :  { %v7087_v0 = vpop.f32.mrb[84].mxu0 }
0x20f2   :  { %v7109_v53 = vpop.f32.mrb[100].mxu1  ;;  %v7088_v59 = vpop.f32.mrb[85].mxu0 }
0x20f3   :  { %v7110_v54 = vpop.f32.mrb[101].mxu1  ;;  %v7089_v48 = vadd.f32 %v7088_v59, %v7087_v0  ;;  %v7090_v28 = vpop.f32.mrb[86].mxu0 }
0x20f4   :  { %v7111_v21 = vadd.f32 %v7110_v54, %v7109_v53  ;;  %v7112_v51 = vpop.f32.mrb[102].mxu1  ;;  %v7091_v55 = vpop.f32.mrb[87].mxu0 }
0x20f5   :  { %v7113_v15 = vpop.f32.mrb[103].mxu1  ;;  %v5432_v50 = vadd.f32 %v7089_v48, %v5392_v52 }
0x20f7   :  { %v5472_v27 = vadd.f32 %v7111_v21, %v5432_v50 }
0x20f8   :  { %8348 = dma.done.wait [#allocation10 + $0x5], 16384 }
0x20f9   :  { %8349 = vsyncadd [#allocation10 + $0x5], 4294950912  ;;  %v9283_v49 = vpack.c.bf16 %v5472_v27, %v5472_v27  ;;  %v5480_v45 = vld [vmem:[#allocation7 + $0x8] sm:$0xff]  ;;  %v5482_v46 = vld [vmem:[#allocation7 + $0x18] sm:$0xff] }
0x20fa   :  { %v5479_v24 = vld [vmem:[#allocation7] sm:$0xff]  ;;  %5651 = vmatprep.subr.bf16.mxu0 %v5480_v45  ;;  %5692 = vmatprep.subr.bf16.mxu1 %v5482_v46  ;;  %v5481_v26 = vld [vmem:[#allocation7 + $0x10] sm:$0xff]  ;;  %v5488_v56 = vld [vmem:[#allocation7 + $0x48] sm:$0xff] }
0x20fb   :  { %5683 = vmatprep.mubr.bf16.mxu0 %v9283_v49  ;;  %5724 = vmatprep.mubr.bf16.mxu1 %v9283_v49  ;;  %v5490_v22 = vld [vmem:[#allocation7 + $0x58] sm:$0xff]  ;;  %v5487_v14 = vld [vmem:[#allocation7 + $0x40] sm:$0xff]  ;;  %v5489_v10 = vld [vmem:[#allocation7 + $0x50] sm:$0xff] }
0x20fc   :  { %5652 = vmatpush1.bf16.msra.mxu0 %v5479_v24  ;;  %5693 = vmatpush1.bf16.msra.mxu1 %v5481_v26  ;;  %v5496_v25 = vld [vmem:[#allocation7 + $0x88] sm:$0xff]  ;;  %v5498_v60 = vld [vmem:[#allocation7 + $0x98] sm:$0xff]  ;;  %v5495_v62 = vld [vmem:[#allocation7 + $0x80] sm:$0xff] }
0x20fd   :  { %5653 = vmatprep.subr.bf16.mxu0 %v5488_v56  ;;  %5694 = vmatprep.subr.bf16.mxu1 %v5490_v22  ;;  %v5497_v1 = vld [vmem:[#allocation7 + $0x90] sm:$0xff]  ;;  %v5504_v2 = vld [vmem:[#allocation7 + $0xc8] sm:$0xff]  ;;  %v5506_v4 = vld [vmem:[#allocation7 + $0xd8] sm:$0xff] }
0x20fe   :  { %v5503_v6 = vld [vmem:[#allocation7 + $0xc0] sm:$0xff]  ;;  %v5505_v7 = vld [vmem:[#allocation7 + $0xd0] sm:$0xff]  ;;  %v5512_v38 = vld [vmem:[#allocation7 + $0x108] sm:$0xff] }
0x20ff   :  { %v5514_v8 = vld [vmem:[#allocation7 + $0x118] sm:$0xff]  ;;  %v5511_v9 = vld [vmem:[#allocation7 + $0x100] sm:$0xff]  ;;  %v5513_v3 = vld [vmem:[#allocation7 + $0x110] sm:$0xff] }
0x2100   :  { %5654 = vmatpush1.bf16.msra.mxu0 %v5487_v14  ;;  %5695 = vmatpush1.bf16.msra.mxu1 %v5489_v10  ;;  %v5520_v57 = vld [vmem:[#allocation7 + $0x148] sm:$0xff]  ;;  %v5522_v11 = vld [vmem:[#allocation7 + $0x158] sm:$0xff]  ;;  %v5519_v12 = vld [vmem:[#allocation7 + $0x140] sm:$0xff] }
0x2101   :  { %5655 = vmatprep.subr.bf16.mxu0 %v5496_v25  ;;  %5696 = vmatprep.subr.bf16.mxu1 %v5498_v60  ;;  %v5521_v30 = vld [vmem:[#allocation7 + $0x150] sm:$0xff]  ;;  %v5528_v18 = vld [vmem:[#allocation7 + $0x188] sm:$0xff]  ;;  %v5530_v13 = vld [vmem:[#allocation7 + $0x198] sm:$0xff] }
0x2102   :  { %v5527_v16 = vld [vmem:[#allocation7 + $0x180] sm:$0xff]  ;;  %v5529_v17 = vld [vmem:[#allocation7 + $0x190] sm:$0xff]  ;;  %v5536_v19 = vld [vmem:[#allocation7 + $0x1c8] sm:$0xff] }
0x2103   :  { %v5538_v43 = vld [vmem:[#allocation7 + $0x1d8] sm:$0xff]  ;;  %v5535_v35 = vld [vmem:[#allocation7 + $0x1c0] sm:$0xff]  ;;  %v5537_v29 = vld [vmem:[#allocation7 + $0x1d0] sm:$0xff] }
0x2104   :  { %5656 = vmatpush1.bf16.msra.mxu0 %v5495_v62  ;;  %5697 = vmatpush1.bf16.msra.mxu1 %v5497_v1  ;;  %v5544_v33 = vld [vmem:[#allocation7 + $0x208] sm:$0xff]  ;;  %v5546_v5 = vld [vmem:[#allocation7 + $0x218] sm:$0xff]  ;;  %v5543_v39 = vld [vmem:[#allocation7 + $0x200] sm:$0xff] }
0x2105   :  { %5657 = vmatprep.subr.bf16.mxu0 %v5504_v2  ;;  %5698 = vmatprep.subr.bf16.mxu1 %v5506_v4  ;;  %v5545_v32 = vld [vmem:[#allocation7 + $0x210] sm:$0xff]  ;;  %v5552_v40 = vld [vmem:[#allocation7 + $0x248] sm:$0xff]  ;;  %v5554_v44 = vld [vmem:[#allocation7 + $0x258] sm:$0xff]  ;;  %v9289_v2 = vpack.c.bf16 %v9158_v61, %v9158_v61 }
0x2106   :  { %v5551_v63 = vld [vmem:[#allocation7 + $0x240] sm:$0xff]  ;;  %v5553_v47 = vld [vmem:[#allocation7 + $0x250] sm:$0xff]  ;;  %v5560_v58 = vld [vmem:[#allocation7 + $0x288] sm:$0xff] }
0x2107   :  { %v5562_v52 = vld [vmem:[#allocation7 + $0x298] sm:$0xff]  ;;  %v5559_v0 = vld [vmem:[#allocation7 + $0x280] sm:$0xff]  ;;  %v5561_v53 = vld [vmem:[#allocation7 + $0x290] sm:$0xff] }
0x2108   :  { %5658 = vmatpush1.bf16.msra.mxu0 %v5503_v6  ;;  %5699 = vmatpush1.bf16.msra.mxu1 %v5505_v7  ;;  %v5568_v59 = vld [vmem:[#allocation7 + $0x2c8] sm:$0xff]  ;;  %v5570_v54 = vld [vmem:[#allocation7 + $0x2d8] sm:$0xff]  ;;  %v5567_v48 = vld [vmem:[#allocation7 + $0x2c0] sm:$0xff] }
0x2109   :  { %5659 = vmatprep.subr.bf16.mxu0 %v5512_v38  ;;  %5700 = vmatprep.subr.bf16.mxu1 %v5514_v8  ;;  %v5569_v21 = vld [vmem:[#allocation7 + $0x2d0] sm:$0xff]  ;;  %v5576_v28 = vld [vmem:[#allocation7 + $0x308] sm:$0xff]  ;;  %v5578_v51 = vld [vmem:[#allocation7 + $0x318] sm:$0xff] }
0x210a   :  { %v5575_v55 = vld [vmem:[#allocation7 + $0x300] sm:$0xff]  ;;  %v5577_v15 = vld [vmem:[#allocation7 + $0x310] sm:$0xff]  ;;  %v5584_v50 = vld [vmem:[#allocation7 + $0x348] sm:$0xff] }
0x210b   :  { %v5586_v27 = vld [vmem:[#allocation7 + $0x358] sm:$0xff]  ;;  %v5583_v45 = vld [vmem:[#allocation7 + $0x340] sm:$0xff]  ;;  %v5585_v46 = vld [vmem:[#allocation7 + $0x350] sm:$0xff] }
0x210c   :  { %5660 = vmatpush1.bf16.msra.mxu0 %v5511_v9  ;;  %5701 = vmatpush1.bf16.msra.mxu1 %v5513_v3  ;;  %v5592_v24 = vld [vmem:[#allocation7 + $0x388] sm:$0xff]  ;;  %v5594_v26 = vld [vmem:[#allocation7 + $0x398] sm:$0xff]  ;;  %v5591_v56 = vld [vmem:[#allocation7 + $0x380] sm:$0xff] }
0x210d   :  { %5661 = vmatprep.subr.bf16.mxu0 %v5520_v57  ;;  %5702 = vmatprep.subr.bf16.mxu1 %v5522_v11  ;;  %v5593_v22 = vld [vmem:[#allocation7 + $0x390] sm:$0xff]  ;;  %v5600_v14 = vld [vmem:[#allocation7 + $0x3c8] sm:$0xff]  ;;  %v5602_v10 = vld [vmem:[#allocation7 + $0x3d8] sm:$0xff] }
0x210e   :  { %v5599_v25 = vld [vmem:[#allocation7 + $0x3c0] sm:$0xff]  ;;  %v5601_v60 = vld [vmem:[#allocation7 + $0x3d0] sm:$0xff]  ;;  %v5484_v62 = vld [vmem:[#allocation7 + $0x28] sm:$0xff] }
0x210f   :  { %v5486_v1 = vld [vmem:[#allocation7 + $0x38] sm:$0xff]  ;;  %v5483_v4 = vld [vmem:[#allocation7 + $0x20] sm:$0xff]  ;;  %v5485_v6 = vld [vmem:[#allocation7 + $0x30] sm:$0xff] }
0x2110   :  { %5662 = vmatpush1.bf16.msra.mxu0 %v5519_v12  ;;  %5703 = vmatpush1.bf16.msra.mxu1 %v5521_v30  ;;  %v5492_v7 = vld [vmem:[#allocation7 + $0x68] sm:$0xff]  ;;  %v5494_v38 = vld [vmem:[#allocation7 + $0x78] sm:$0xff]  ;;  %v5491_v8 = vld [vmem:[#allocation7 + $0x60] sm:$0xff] }
0x2111   :  { %5663 = vmatprep.subr.bf16.mxu0 %v5528_v18  ;;  %5704 = vmatprep.subr.bf16.mxu1 %v5530_v13  ;;  %v5493_v9 = vld [vmem:[#allocation7 + $0x70] sm:$0xff]  ;;  %v5500_v61 = vld [vmem:[#allocation7 + $0xa8] sm:$0xff]  ;;  %v5502_v3 = vld [vmem:[#allocation7 + $0xb8] sm:$0xff] }
0x2112   :  { %v5499_v57 = vld [vmem:[#allocation7 + $0xa0] sm:$0xff]  ;;  %v5501_v11 = vld [vmem:[#allocation7 + $0xb0] sm:$0xff]  ;;  %v5508_v12 = vld [vmem:[#allocation7 + $0xe8] sm:$0xff] }
0x2113   :  { %v5510_v30 = vld [vmem:[#allocation7 + $0xf8] sm:$0xff]  ;;  %v5507_v18 = vld [vmem:[#allocation7 + $0xe0] sm:$0xff]  ;;  %v5509_v13 = vld [vmem:[#allocation7 + $0xf0] sm:$0xff] }
0x2114   :  { %5664 = vmatpush1.bf16.msra.mxu0 %v5527_v16  ;;  %5705 = vmatpush1.bf16.msra.mxu1 %v5529_v17  ;;  %v5516_v16 = vld [vmem:[#allocation7 + $0x128] sm:$0xff]  ;;  %v5518_v17 = vld [vmem:[#allocation7 + $0x138] sm:$0xff] }
0x2115   :  { %5665 = vmatprep.subr.bf16.mxu0 %v5536_v19  ;;  %5706 = vmatprep.subr.bf16.mxu1 %v5538_v43  ;;  %v5517_v19 = vld [vmem:[#allocation7 + $0x130] sm:$0xff]  ;;  %v5524_v43 = vld [vmem:[#allocation7 + $0x168] sm:$0xff] }
0x2118   :  { %5666 = vmatpush1.bf16.msra.mxu0 %v5535_v35  ;;  %5707 = vmatpush1.bf16.msra.mxu1 %v5537_v29  ;;  %v5526_v35 = vld [vmem:[#allocation7 + $0x178] sm:$0xff]  ;;  %v5523_v29 = vld [vmem:[#allocation7 + $0x160] sm:$0xff] }
0x2119   :  { %5667 = vmatprep.subr.bf16.mxu0 %v5544_v33  ;;  %5708 = vmatprep.subr.bf16.mxu1 %v5546_v5  ;;  %v5525_v33 = vld [vmem:[#allocation7 + $0x170] sm:$0xff]  ;;  %v5532_v5 = vld [vmem:[#allocation7 + $0x1a8] sm:$0xff] }
0x211c   :  { %5668 = vmatpush1.bf16.msra.mxu0 %v5543_v39  ;;  %5709 = vmatpush1.bf16.msra.mxu1 %v5545_v32  ;;  %v5534_v39 = vld [vmem:[#allocation7 + $0x1b8] sm:$0xff]  ;;  %v5531_v32 = vld [vmem:[#allocation7 + $0x1a0] sm:$0xff] }
0x211d   :  { %5669 = vmatprep.subr.bf16.mxu0 %v5552_v40  ;;  %5710 = vmatprep.subr.bf16.mxu1 %v5554_v44  ;;  %v5533_v40 = vld [vmem:[#allocation7 + $0x1b0] sm:$0xff]  ;;  %v5540_v44 = vld [vmem:[#allocation7 + $0x1e8] sm:$0xff] }
0x2120   :  { %5670 = vmatpush1.bf16.msra.mxu0 %v5551_v63  ;;  %5711 = vmatpush1.bf16.msra.mxu1 %v5553_v47  ;;  %v5542_v63 = vld [vmem:[#allocation7 + $0x1f8] sm:$0xff]  ;;  %v5539_v47 = vld [vmem:[#allocation7 + $0x1e0] sm:$0xff] }
0x2121   :  { %5671 = vmatprep.subr.bf16.mxu0 %v5560_v58  ;;  %5712 = vmatprep.subr.bf16.mxu1 %v5562_v52  ;;  %v5541_v58 = vld [vmem:[#allocation7 + $0x1f0] sm:$0xff]  ;;  %v5548_v52 = vld [vmem:[#allocation7 + $0x228] sm:$0xff] }
0x2124   :  { %5672 = vmatpush1.bf16.msra.mxu0 %v5559_v0  ;;  %5713 = vmatpush1.bf16.msra.mxu1 %v5561_v53  ;;  %v5550_v0 = vld [vmem:[#allocation7 + $0x238] sm:$0xff]  ;;  %v5547_v53 = vld [vmem:[#allocation7 + $0x220] sm:$0xff] }
0x2125   :  { %5673 = vmatprep.subr.bf16.mxu0 %v5568_v59  ;;  %5714 = vmatprep.subr.bf16.mxu1 %v5570_v54  ;;  %v5549_v59 = vld [vmem:[#allocation7 + $0x230] sm:$0xff]  ;;  %v5556_v54 = vld [vmem:[#allocation7 + $0x268] sm:$0xff] }
0x2128   :  { %5674 = vmatpush1.bf16.msra.mxu0 %v5567_v48  ;;  %5715 = vmatpush1.bf16.msra.mxu1 %v5569_v21  ;;  %v5558_v48 = vld [vmem:[#allocation7 + $0x278] sm:$0xff]  ;;  %v5555_v21 = vld [vmem:[#allocation7 + $0x260] sm:$0xff] }
0x2129   :  { %5675 = vmatprep.subr.bf16.mxu0 %v5576_v28  ;;  %5716 = vmatprep.subr.bf16.mxu1 %v5578_v51  ;;  %v5557_v28 = vld [vmem:[#allocation7 + $0x270] sm:$0xff]  ;;  %v5564_v51 = vld [vmem:[#allocation7 + $0x2a8] sm:$0xff] }
0x212c   :  { %5676 = vmatpush1.bf16.msra.mxu0 %v5575_v55  ;;  %5717 = vmatpush1.bf16.msra.mxu1 %v5577_v15  ;;  %v5566_v55 = vld [vmem:[#allocation7 + $0x2b8] sm:$0xff]  ;;  %v5563_v15 = vld [vmem:[#allocation7 + $0x2a0] sm:$0xff] }
0x212d   :  { %5677 = vmatprep.subr.bf16.mxu0 %v5584_v50  ;;  %5718 = vmatprep.subr.bf16.mxu1 %v5586_v27  ;;  %v5565_v50 = vld [vmem:[#allocation7 + $0x2b0] sm:$0xff]  ;;  %v5572_v27 = vld [vmem:[#allocation7 + $0x2e8] sm:$0xff] }
0x2130   :  { %5678 = vmatpush1.bf16.msra.mxu0 %v5583_v45  ;;  %5719 = vmatpush1.bf16.msra.mxu1 %v5585_v46  ;;  %v5574_v45 = vld [vmem:[#allocation7 + $0x2f8] sm:$0xff]  ;;  %v5571_v46 = vld [vmem:[#allocation7 + $0x2e0] sm:$0xff] }
0x2131   :  { %5679 = vmatprep.subr.bf16.mxu0 %v5592_v24  ;;  %5720 = vmatprep.subr.bf16.mxu1 %v5594_v26  ;;  %v5573_v24 = vld [vmem:[#allocation7 + $0x2f0] sm:$0xff]  ;;  %v5580_v26 = vld [vmem:[#allocation7 + $0x328] sm:$0xff] }
0x2134   :  { %5680 = vmatpush1.bf16.msra.mxu0 %v5591_v56  ;;  %5721 = vmatpush1.bf16.msra.mxu1 %v5593_v22  ;;  %v5582_v56 = vld [vmem:[#allocation7 + $0x338] sm:$0xff]  ;;  %v5579_v22 = vld [vmem:[#allocation7 + $0x320] sm:$0xff] }
0x2135   :  { %5681 = vmatprep.subr.bf16.mxu0 %v5600_v14  ;;  %5722 = vmatprep.subr.bf16.mxu1 %v5602_v10  ;;  %v5581_v14 = vld [vmem:[#allocation7 + $0x330] sm:$0xff]  ;;  %v5588_v10 = vld [vmem:[#allocation7 + $0x368] sm:$0xff] }
0x2138   :  { %5682 = vmatpush1.bf16.msra.mxu0 %v5599_v25  ;;  %5723 = vmatpush1.bf16.msra.mxu1 %v5601_v60  ;;  %v5590_v25 = vld [vmem:[#allocation7 + $0x378] sm:$0xff]  ;;  %v5587_v60 = vld [vmem:[#allocation7 + $0x360] sm:$0xff] }
0x2139   :  { %5733 = vmatprep.subr.bf16.mxu0 %v5484_v62  ;;  %5774 = vmatprep.subr.bf16.mxu1 %v5486_v1  ;;  %v5589_v62 = vld [vmem:[#allocation7 + $0x370] sm:$0xff]  ;;  %v5596_v1 = vld [vmem:[#allocation7 + $0x3a8] sm:$0xff] }
0x213b   :  { %5684 = vmatmul.mubr.bf16.vlgmr.msra.gmra.mrb[88].mxu0 %v9289_v2  ;;  %5725 = vmatmul.mubr.bf16.vlgmr.msra.gmra.mrb[104].mxu1 %v9289_v2 }
0x213c   :  { %5734 = vmatpush1.bf16.msra.mxu0 %v5483_v4  ;;  %5775 = vmatpush1.bf16.msra.mxu1 %v5485_v6  ;;  %v5598_v4 = vld [vmem:[#allocation7 + $0x3b8] sm:$0xff]  ;;  %v5595_v6 = vld [vmem:[#allocation7 + $0x3a0] sm:$0xff] }
0x213d   :  { %5735 = vmatprep.subr.bf16.mxu0 %v5492_v7  ;;  %5776 = vmatprep.subr.bf16.mxu1 %v5494_v38  ;;  %v5597_v7 = vld [vmem:[#allocation7 + $0x3b0] sm:$0xff]  ;;  %v5604_v38 = vld [vmem:[#allocation7 + $0x3e8] sm:$0xff] }
0x213e   :  { %5765 = vmatprep.mubr.bf16.mxu0 %v9283_v49  ;;  %5806 = vmatprep.mubr.bf16.mxu1 %v9283_v49  ;;  %v5515_v49 = vld [vmem:[#allocation7 + $0x120] sm:$0xff] }
0x2140   :  { %5736 = vmatpush1.bf16.msra.mxu0 %v5491_v8  ;;  %5777 = vmatpush1.bf16.msra.mxu1 %v5493_v9  ;;  %v5606_v8 = vld [vmem:[#allocation7 + $0x3f8] sm:$0xff]  ;;  %v5603_v9 = vld [vmem:[#allocation7 + $0x3e0] sm:$0xff] }
0x2141   :  { %5737 = vmatprep.subr.bf16.mxu0 %v5500_v61  ;;  %5778 = vmatprep.subr.bf16.mxu1 %v5502_v3  ;;  %v5605_v61 = vld [vmem:[#allocation7 + $0x3f0] sm:$0xff]  ;;  %v5607_v3 = vld [vmem:[#allocation46] sm:$0xff] }
0x2144   :  { %5738 = vmatpush1.bf16.msra.mxu0 %v5499_v57  ;;  %5779 = vmatpush1.bf16.msra.mxu1 %v5501_v11  ;;  %v5614_v57 = vrot.slane %v5607_v3, %v8883_v42  ;;  %v5622_v11 = vrot.slane %v5607_v3, %v8969_v20 }
0x2145   :  { %5739 = vmatprep.subr.bf16.mxu0 %v5508_v12  ;;  %5780 = vmatprep.subr.bf16.mxu1 %v5510_v30  ;;  %v5618_v12 = vrot.slane %v5607_v3, %v8880_v41  ;;  %v5626_v30 = vrot.slane %v5607_v3, %v8974_v23 }
0x2148   :  { %5740 = vmatpush1.bf16.msra.mxu0 %v5507_v18  ;;  %5781 = vmatpush1.bf16.msra.mxu1 %v5509_v13 }
0x2149   :  { %5741 = vmatprep.subr.bf16.mxu0 %v5516_v16  ;;  %5782 = vmatprep.subr.bf16.mxu1 %v5518_v17 }
0x214c   :  { %5742 = vmatpush1.bf16.msra.mxu0 %v5515_v49  ;;  %5783 = vmatpush1.bf16.msra.mxu1 %v5517_v19 }
0x214d   :  { %5743 = vmatprep.subr.bf16.mxu0 %v5524_v43  ;;  %5784 = vmatprep.subr.bf16.mxu1 %v5526_v35 }
0x2150   :  { %5744 = vmatpush1.bf16.msra.mxu0 %v5523_v29  ;;  %5785 = vmatpush1.bf16.msra.mxu1 %v5525_v33 }
0x2151   :  { %5745 = vmatprep.subr.bf16.mxu0 %v5532_v5  ;;  %5786 = vmatprep.subr.bf16.mxu1 %v5534_v39 }
0x2154   :  { %5746 = vmatpush1.bf16.msra.mxu0 %v5531_v32  ;;  %5787 = vmatpush1.bf16.msra.mxu1 %v5533_v40 }
0x2155   :  { %5747 = vmatprep.subr.bf16.mxu0 %v5540_v44  ;;  %5788 = vmatprep.subr.bf16.mxu1 %v5542_v63  ;;  %v5630_v63 = vrot.slane %v5607_v3, %v9090_v37 }
0x2158   :  { %5748 = vmatpush1.bf16.msra.mxu0 %v5539_v47  ;;  %5789 = vmatpush1.bf16.msra.mxu1 %v5541_v58  ;;  %v5638_v47 = vrot.slane %v5607_v3, %v9093_v31  ;;  %v5634_v58 = vrot.slane %v5607_v3, %v9096_v34 }
0x2159   :  { %5749 = vmatprep.subr.bf16.mxu0 %v5548_v52  ;;  %5790 = vmatprep.subr.bf16.mxu1 %v5550_v0  ;;  %v5642_v52 = vrot.slane %v5607_v3, %v9099_v36 }
0x215c   :  { %5750 = vmatpush1.bf16.msra.mxu0 %v5547_v53  ;;  %5791 = vmatpush1.bf16.msra.mxu1 %v5549_v59 }
0x215d   :  { %5751 = vmatprep.subr.bf16.mxu0 %v5556_v54  ;;  %5792 = vmatprep.subr.bf16.mxu1 %v5558_v48 }
0x2160   :  { %5752 = vmatpush1.bf16.msra.mxu0 %v5555_v21  ;;  %5793 = vmatpush1.bf16.msra.mxu1 %v5557_v28 }
0x2161   :  { %5753 = vmatprep.subr.bf16.mxu0 %v5564_v51  ;;  %5794 = vmatprep.subr.bf16.mxu1 %v5566_v55 }
0x2164   :  { %5754 = vmatpush1.bf16.msra.mxu0 %v5563_v15  ;;  %5795 = vmatpush1.bf16.msra.mxu1 %v5565_v50 }
0x2165   :  { %5755 = vmatprep.subr.bf16.mxu0 %v5572_v27  ;;  %5796 = vmatprep.subr.bf16.mxu1 %v5574_v45 }
0x2168   :  { %5756 = vmatpush1.bf16.msra.mxu0 %v5571_v46  ;;  %5797 = vmatpush1.bf16.msra.mxu1 %v5573_v24 }
0x2169   :  { %5757 = vmatprep.subr.bf16.mxu0 %v5580_v26  ;;  %5798 = vmatprep.subr.bf16.mxu1 %v5582_v56 }
0x216c   :  { %5758 = vmatpush1.bf16.msra.mxu0 %v5579_v22  ;;  %5799 = vmatpush1.bf16.msra.mxu1 %v5581_v14 }
0x216d   :  { %5759 = vmatprep.subr.bf16.mxu0 %v5588_v10  ;;  %5800 = vmatprep.subr.bf16.mxu1 %v5590_v25 }
0x2170   :  { %5760 = vmatpush1.bf16.msra.mxu0 %v5587_v60  ;;  %5801 = vmatpush1.bf16.msra.mxu1 %v5589_v62 }
0x2171   :  { %5761 = vmatprep.subr.bf16.mxu0 %v5596_v1  ;;  %5802 = vmatprep.subr.bf16.mxu1 %v5598_v4 }
0x2174   :  { %5762 = vmatpush1.bf16.msra.mxu0 %v5595_v6  ;;  %5803 = vmatpush1.bf16.msra.mxu1 %v5597_v7 }
0x2175   :  { %5763 = vmatprep.subr.bf16.mxu0 %v5604_v38  ;;  %5804 = vmatprep.subr.bf16.mxu1 %v5606_v8 }
0x2178   :  { %5764 = vmatpush1.bf16.msra.mxu0 %v5603_v9  ;;  %5805 = vmatpush1.bf16.msra.mxu1 %v5605_v61 }
0x217b   :  { %5766 = vmatmul.mubr.bf16.vlgmr.msra.gmra.mrb[92].mxu0 %v9289_v2  ;;  %5807 = vmatmul.mubr.bf16.vlgmr.msra.gmra.mrb[108].mxu1 %v9289_v2 }
0x220e   :  { %v5685_v18 = vpop.f32.mrb[88].mxu0  ;;  %v5726_v13 = vpop.f32.mrb[104].mxu1 }
0x220f   :  { %v9301_v16 = vadd.f32 %v5685_v18, %v5614_v57  ;;  %v9303_v17 = vadd.f32 %v5726_v13, %v5622_v11  ;;  %v5687_v49 = vpop.f32.mrb[89].mxu0  ;;  %v5728_v19 = vpop.f32.mrb[105].mxu1 }
0x2210   :  { %v5688_v43 = vadd.f32 %v5687_v49, %v5618_v12  ;;  %v9305_v35 = vadd.f32 %v5728_v19, %v5626_v30  ;;  %v5689_v2 = vpop.f32.mrb[90].mxu0  ;;  %v5730_v29 = vpop.f32.mrb[106].mxu1 }
0x2211   :  { %v5815_v33 = vmax.f32 %v9301_v16, 0.0  ;;  %v5817_v5 = vmax.f32 %v9303_v17, 0.0  ;;  %v5690_v39 = vpop.f32.mrb[91].mxu0  ;;  %v5731_v32 = vpop.f32.mrb[107].mxu1 }
0x2212   :  { %v5816_v40 = vmax.f32 %v5688_v43, 0.0  ;;  %v5818_v44 = vmax.f32 %v9305_v35, 0.0 }
0x224e   :  { %v5767_v0 = vpop.f32.mrb[92].mxu0  ;;  %v5808_v53 = vpop.f32.mrb[108].mxu1 }
0x224f   :  { %v9314_v59 = vadd.f32 %v5767_v0, %v5630_v63  ;;  %v9316_v54 = vadd.f32 %v5808_v53, %v5638_v47  ;;  %v5769_v48 = vpop.f32.mrb[93].mxu0  ;;  %v5810_v21 = vpop.f32.mrb[109].mxu1 }
0x2250   :  { %v9318_v28 = vadd.f32 %v5769_v48, %v5634_v58  ;;  %v9320_v51 = vadd.f32 %v5810_v21, %v5642_v52  ;;  %v5771_v55 = vpop.f32.mrb[94].mxu0  ;;  %v5812_v37 = vpop.f32.mrb[110].mxu1 }
0x2251   :  { %v5819_v31 = vmax.f32 %v9314_v59, 0.0  ;;  %v5821_v34 = vmax.f32 %v9316_v54, 0.0  ;;  %v5772_v15 = vpop.f32.mrb[95].mxu0  ;;  %v5813_v36 = vpop.f32.mrb[111].mxu1 }
0x2252   :  { %v5820_v50 = vmax.f32 %v9318_v28, 0.0  ;;  %v5822_v27 = vmax.f32 %v9320_v51, 0.0 }
0x2253   :  { %8350 = dma.done.wait [#allocation10 + $0x6], 32768 }
0x2254   :  { %8351 = vsyncadd [#allocation10 + $0x6], 4294934528  ;;  %v6084_v45 = vpack.c.bf16 %v5816_v40, %v5816_v40  ;;  %v5827_v46 = vld [vmem:[#allocation8 + $0x8] sm:$0xff]  ;;  %v5829_v24 = vld [vmem:[#allocation8 + $0x18] sm:$0xff] }
0x2255   :  { %v5826_v26 = vld [vmem:[#allocation8] sm:$0xff]  ;;  %6112 = vmatprep.subr.bf16.mxu0 %v5827_v46  ;;  %6276 = vmatprep.subr.bf16.mxu1 %v5829_v24  ;;  %v5828_v56 = vld [vmem:[#allocation8 + $0x10] sm:$0xff]  ;;  %v5831_v22 = vld [vmem:[#allocation8 + $0x28] sm:$0xff] }
0x2256   :  { %6144 = vmatprep.mubr.bf16.mxu0 %v6084_v45  ;;  %6308 = vmatprep.mubr.bf16.mxu1 %v6084_v45  ;;  %v5833_v14 = vld [vmem:[#allocation8 + $0x38] sm:$0xff]  ;;  %v5830_v10 = vld [vmem:[#allocation8 + $0x20] sm:$0xff]  ;;  %v5832_v25 = vld [vmem:[#allocation8 + $0x30] sm:$0xff] }
0x2257   :  { %6113 = vmatpush1.bf16.msra.mxu0 %v5826_v26  ;;  %6277 = vmatpush1.bf16.msra.mxu1 %v5828_v56  ;;  %v5835_v60 = vld [vmem:[#allocation8 + $0x48] sm:$0xff]  ;;  %v5837_v62 = vld [vmem:[#allocation8 + $0x58] sm:$0xff]  ;;  %v5834_v1 = vld [vmem:[#allocation8 + $0x40] sm:$0xff] }
0x2258   :  { %6114 = vmatprep.subr.bf16.mxu0 %v5831_v22  ;;  %6278 = vmatprep.subr.bf16.mxu1 %v5833_v14  ;;  %v5836_v4 = vld [vmem:[#allocation8 + $0x50] sm:$0xff]  ;;  %v5839_v6 = vld [vmem:[#allocation8 + $0x68] sm:$0xff]  ;;  %v5841_v7 = vld [vmem:[#allocation8 + $0x78] sm:$0xff] }
0x2259   :  { %v5838_v38 = vld [vmem:[#allocation8 + $0x60] sm:$0xff]  ;;  %v5840_v8 = vld [vmem:[#allocation8 + $0x70] sm:$0xff]  ;;  %v5843_v9 = vld [vmem:[#allocation8 + $0x88] sm:$0xff] }
0x225a   :  { %v5845_v61 = vld [vmem:[#allocation8 + $0x98] sm:$0xff]  ;;  %v5842_v3 = vld [vmem:[#allocation8 + $0x80] sm:$0xff]  ;;  %v5844_v57 = vld [vmem:[#allocation8 + $0x90] sm:$0xff] }
0x225b   :  { %6115 = vmatpush1.bf16.msra.mxu0 %v5830_v10  ;;  %6279 = vmatpush1.bf16.msra.mxu1 %v5832_v25  ;;  %v5847_v11 = vld [vmem:[#allocation8 + $0xa8] sm:$0xff]  ;;  %v5849_v12 = vld [vmem:[#allocation8 + $0xb8] sm:$0xff]  ;;  %v5846_v30 = vld [vmem:[#allocation8 + $0xa0] sm:$0xff] }
0x225c   :  { %6116 = vmatprep.subr.bf16.mxu0 %v5835_v60  ;;  %6280 = vmatprep.subr.bf16.mxu1 %v5837_v62  ;;  %v5848_v18 = vld [vmem:[#allocation8 + $0xb0] sm:$0xff]  ;;  %v5851_v13 = vld [vmem:[#allocation8 + $0xc8] sm:$0xff]  ;;  %v5853_v49 = vld [vmem:[#allocation8 + $0xd8] sm:$0xff] }
0x225d   :  { %v5850_v19 = vld [vmem:[#allocation8 + $0xc0] sm:$0xff]  ;;  %v5852_v43 = vld [vmem:[#allocation8 + $0xd0] sm:$0xff]  ;;  %v5855_v2 = vld [vmem:[#allocation8 + $0xe8] sm:$0xff] }
0x225e   :  { %v5857_v29 = vld [vmem:[#allocation8 + $0xf8] sm:$0xff]  ;;  %v5854_v39 = vld [vmem:[#allocation8 + $0xe0] sm:$0xff]  ;;  %v5856_v32 = vld [vmem:[#allocation8 + $0xf0] sm:$0xff] }
0x225f   :  { %6117 = vmatpush1.bf16.msra.mxu0 %v5834_v1  ;;  %6281 = vmatpush1.bf16.msra.mxu1 %v5836_v4  ;;  %v5859_v40 = vld [vmem:[#allocation8 + $0x108] sm:$0xff]  ;;  %v5861_v63 = vld [vmem:[#allocation8 + $0x118] sm:$0xff]  ;;  %v5858_v47 = vld [vmem:[#allocation8 + $0x100] sm:$0xff] }
0x2260   :  { %6118 = vmatprep.subr.bf16.mxu0 %v5839_v6  ;;  %6282 = vmatprep.subr.bf16.mxu1 %v5841_v7  ;;  %v5860_v58 = vld [vmem:[#allocation8 + $0x110] sm:$0xff]  ;;  %v5863_v52 = vld [vmem:[#allocation8 + $0x128] sm:$0xff]  ;;  %v5865_v0 = vld [vmem:[#allocation8 + $0x138] sm:$0xff] }
0x2261   :  { %v5862_v53 = vld [vmem:[#allocation8 + $0x120] sm:$0xff]  ;;  %v5864_v48 = vld [vmem:[#allocation8 + $0x130] sm:$0xff]  ;;  %v5867_v21 = vld [vmem:[#allocation8 + $0x148] sm:$0xff] }
0x2262   :  { %v5869_v55 = vld [vmem:[#allocation8 + $0x158] sm:$0xff]  ;;  %v5866_v37 = vld [vmem:[#allocation8 + $0x140] sm:$0xff]  ;;  %v5868_v15 = vld [vmem:[#allocation8 + $0x150] sm:$0xff] }
0x2263   :  { %6119 = vmatpush1.bf16.msra.mxu0 %v5838_v38  ;;  %6283 = vmatpush1.bf16.msra.mxu1 %v5840_v8  ;;  %v5871_v36 = vld [vmem:[#allocation8 + $0x168] sm:$0xff]  ;;  %v5873_v45 = vld [vmem:[#allocation8 + $0x178] sm:$0xff]  ;;  %v5870_v46 = vld [vmem:[#allocation8 + $0x160] sm:$0xff] }
0x2264   :  { %6120 = vmatprep.subr.bf16.mxu0 %v5843_v9  ;;  %6284 = vmatprep.subr.bf16.mxu1 %v5845_v61  ;;  %v5872_v24 = vld [vmem:[#allocation8 + $0x170] sm:$0xff]  ;;  %v5875_v26 = vld [vmem:[#allocation8 + $0x188] sm:$0xff]  ;;  %v5877_v56 = vld [vmem:[#allocation8 + $0x198] sm:$0xff] }
0x2265   :  { %v5874_v22 = vld [vmem:[#allocation8 + $0x180] sm:$0xff]  ;;  %v5876_v14 = vld [vmem:[#allocation8 + $0x190] sm:$0xff]  ;;  %v5879_v10 = vld [vmem:[#allocation8 + $0x1a8] sm:$0xff] }
0x2266   :  { %v5881_v25 = vld [vmem:[#allocation8 + $0x1b8] sm:$0xff]  ;;  %v5878_v60 = vld [vmem:[#allocation8 + $0x1a0] sm:$0xff]  ;;  %v5880_v62 = vld [vmem:[#allocation8 + $0x1b0] sm:$0xff] }
0x2267   :  { %6121 = vmatpush1.bf16.msra.mxu0 %v5842_v3  ;;  %6285 = vmatpush1.bf16.msra.mxu1 %v5844_v57  ;;  %v5883_v1 = vld [vmem:[#allocation8 + $0x1c8] sm:$0xff]  ;;  %v5885_v4 = vld [vmem:[#allocation8 + $0x1d8] sm:$0xff]  ;;  %v5882_v6 = vld [vmem:[#allocation8 + $0x1c0] sm:$0xff] }
0x2268   :  { %6122 = vmatprep.subr.bf16.mxu0 %v5847_v11  ;;  %6286 = vmatprep.subr.bf16.mxu1 %v5849_v12  ;;  %v5884_v7 = vld [vmem:[#allocation8 + $0x1d0] sm:$0xff]  ;;  %v5887_v38 = vld [vmem:[#allocation8 + $0x1e8] sm:$0xff]  ;;  %v5889_v8 = vld [vmem:[#allocation8 + $0x1f8] sm:$0xff]  ;;  %v6083_v11 = vpack.c.bf16 %v5815_v33, %v5815_v33 }
0x2269   :  { %v5886_v9 = vld [vmem:[#allocation8 + $0x1e0] sm:$0xff]  ;;  %v5888_v61 = vld [vmem:[#allocation8 + $0x1f0] sm:$0xff]  ;;  %v5891_v3 = vld [vmem:[#allocation8 + $0x208] sm:$0xff] }
0x226a   :  { %v5893_v57 = vld [vmem:[#allocation8 + $0x218] sm:$0xff]  ;;  %v5890_v12 = vld [vmem:[#allocation8 + $0x200] sm:$0xff]  ;;  %v5896_v33 = vld [vmem:[#allocation8 + $0x230] sm:$0xff] }
0x226b   :  { %6123 = vmatpush1.bf16.msra.mxu0 %v5846_v30  ;;  %6287 = vmatpush1.bf16.msra.mxu1 %v5848_v18  ;;  %v5892_v30 = vld [vmem:[#allocation8 + $0x210] sm:$0xff]  ;;  %v5895_v18 = vld [vmem:[#allocation8 + $0x228] sm:$0xff]  ;;  %v5894_v16 = vld [vmem:[#allocation8 + $0x220] sm:$0xff] }
0x226c   :  { %6124 = vmatprep.subr.bf16.mxu0 %v5851_v13  ;;  %6288 = vmatprep.subr.bf16.mxu1 %v5853_v49  ;;  %v5897_v13 = vld [vmem:[#allocation8 + $0x238] sm:$0xff]  ;;  %v6086_v49 = vpack.c.bf16 %v5818_v44, %v5818_v44  ;;  %v5900_v35 = vld [vmem:[#allocation8 + $0x250] sm:$0xff]  ;;  %v5958_v17 = vld [vmem:[#allocation8 + $0x420] sm:$0xff] }
0x226d   :  { %v5905_v44 = vld [vmem:[#allocation8 + $0x278] sm:$0xff]  ;;  %v5964_v28 = vld [vmem:[#allocation8 + $0x450] sm:$0xff]  ;;  %v6022_v59 = vld [vmem:[#allocation8 + $0x620] sm:$0xff] }
0x226e   :  { %v6028_v51 = vld [vmem:[#allocation8 + $0x650] sm:$0xff] }
0x226f   :  { %6125 = vmatpush1.bf16.msra.mxu0 %v5850_v19  ;;  %6289 = vmatpush1.bf16.msra.mxu1 %v5852_v43  ;;  %v5899_v19 = vld [vmem:[#allocation8 + $0x248] sm:$0xff]  ;;  %v5901_v43 = vld [vmem:[#allocation8 + $0x258] sm:$0xff] }
0x2270   :  { %6126 = vmatprep.subr.bf16.mxu0 %v5855_v2  ;;  %6290 = vmatprep.subr.bf16.mxu1 %v5857_v29  ;;  %v5898_v2 = vld [vmem:[#allocation8 + $0x240] sm:$0xff]  ;;  %v5903_v29 = vld [vmem:[#allocation8 + $0x268] sm:$0xff] }
0x2273   :  { %6127 = vmatpush1.bf16.msra.mxu0 %v5854_v39  ;;  %6291 = vmatpush1.bf16.msra.mxu1 %v5856_v32  ;;  %v5902_v39 = vld [vmem:[#allocation8 + $0x260] sm:$0xff]  ;;  %v5904_v32 = vld [vmem:[#allocation8 + $0x270] sm:$0xff] }
0x2274   :  { %6128 = vmatprep.subr.bf16.mxu0 %v5859_v40  ;;  %6292 = vmatprep.subr.bf16.mxu1 %v5861_v63  ;;  %v5907_v40 = vld [vmem:[#allocation8 + $0x288] sm:$0xff]  ;;  %v5909_v63 = vld [vmem:[#allocation8 + $0x298] sm:$0xff] }
0x2277   :  { %6129 = vmatpush1.bf16.msra.mxu0 %v5858_v47  ;;  %6293 = vmatpush1.bf16.msra.mxu1 %v5860_v58  ;;  %v5906_v47 = vld [vmem:[#allocation8 + $0x280] sm:$0xff]  ;;  %v5908_v58 = vld [vmem:[#allocation8 + $0x290] sm:$0xff] }
0x2278   :  { %6130 = vmatprep.subr.bf16.mxu0 %v5863_v52  ;;  %6294 = vmatprep.subr.bf16.mxu1 %v5865_v0  ;;  %v5911_v52 = vld [vmem:[#allocation8 + $0x2a8] sm:$0xff]  ;;  %v5913_v0 = vld [vmem:[#allocation8 + $0x2b8] sm:$0xff] }
0x227b   :  { %6131 = vmatpush1.bf16.msra.mxu0 %v5862_v53  ;;  %6295 = vmatpush1.bf16.msra.mxu1 %v5864_v48  ;;  %v5910_v53 = vld [vmem:[#allocation8 + $0x2a0] sm:$0xff]  ;;  %v5912_v48 = vld [vmem:[#allocation8 + $0x2b0] sm:$0xff] }
0x227c   :  { %6132 = vmatprep.subr.bf16.mxu0 %v5867_v21  ;;  %6296 = vmatprep.subr.bf16.mxu1 %v5869_v55  ;;  %v5915_v21 = vld [vmem:[#allocation8 + $0x2c8] sm:$0xff]  ;;  %v5917_v55 = vld [vmem:[#allocation8 + $0x2d8] sm:$0xff] }
0x227f   :  { %6133 = vmatpush1.bf16.msra.mxu0 %v5866_v37  ;;  %6297 = vmatpush1.bf16.msra.mxu1 %v5868_v15  ;;  %v5914_v37 = vld [vmem:[#allocation8 + $0x2c0] sm:$0xff]  ;;  %v5916_v15 = vld [vmem:[#allocation8 + $0x2d0] sm:$0xff] }
0x2280   :  { %6134 = vmatprep.subr.bf16.mxu0 %v5871_v36  ;;  %6298 = vmatprep.subr.bf16.mxu1 %v5873_v45  ;;  %v5919_v36 = vld [vmem:[#allocation8 + $0x2e8] sm:$0xff]  ;;  %v5921_v45 = vld [vmem:[#allocation8 + $0x2f8] sm:$0xff] }
0x2283   :  { %6135 = vmatpush1.bf16.msra.mxu0 %v5870_v46  ;;  %6299 = vmatpush1.bf16.msra.mxu1 %v5872_v24  ;;  %v5918_v46 = vld [vmem:[#allocation8 + $0x2e0] sm:$0xff]  ;;  %v5920_v24 = vld [vmem:[#allocation8 + $0x2f0] sm:$0xff] }
0x2284   :  { %6136 = vmatprep.subr.bf16.mxu0 %v5875_v26  ;;  %6300 = vmatprep.subr.bf16.mxu1 %v5877_v56  ;;  %v5923_v26 = vld [vmem:[#allocation8 + $0x308] sm:$0xff]  ;;  %v5925_v56 = vld [vmem:[#allocation8 + $0x318] sm:$0xff] }
0x2287   :  { %6137 = vmatpush1.bf16.msra.mxu0 %v5874_v22  ;;  %6301 = vmatpush1.bf16.msra.mxu1 %v5876_v14  ;;  %v5922_v22 = vld [vmem:[#allocation8 + $0x300] sm:$0xff]  ;;  %v5924_v14 = vld [vmem:[#allocation8 + $0x310] sm:$0xff] }
0x2288   :  { %6138 = vmatprep.subr.bf16.mxu0 %v5879_v10  ;;  %6302 = vmatprep.subr.bf16.mxu1 %v5881_v25  ;;  %v5927_v10 = vld [vmem:[#allocation8 + $0x328] sm:$0xff]  ;;  %v5929_v25 = vld [vmem:[#allocation8 + $0x338] sm:$0xff] }
0x228b   :  { %6139 = vmatpush1.bf16.msra.mxu0 %v5878_v60  ;;  %6303 = vmatpush1.bf16.msra.mxu1 %v5880_v62  ;;  %v5926_v60 = vld [vmem:[#allocation8 + $0x320] sm:$0xff]  ;;  %v5928_v62 = vld [vmem:[#allocation8 + $0x330] sm:$0xff] }
0x228c   :  { %6140 = vmatprep.subr.bf16.mxu0 %v5883_v1  ;;  %6304 = vmatprep.subr.bf16.mxu1 %v5885_v4  ;;  %v5931_v1 = vld [vmem:[#allocation8 + $0x348] sm:$0xff]  ;;  %v5933_v4 = vld [vmem:[#allocation8 + $0x358] sm:$0xff] }
0x228f   :  { %6141 = vmatpush1.bf16.msra.mxu0 %v5882_v6  ;;  %6305 = vmatpush1.bf16.msra.mxu1 %v5884_v7  ;;  %v5930_v6 = vld [vmem:[#allocation8 + $0x340] sm:$0xff]  ;;  %v5932_v7 = vld [vmem:[#allocation8 + $0x350] sm:$0xff] }
0x2290   :  { %6142 = vmatprep.subr.bf16.mxu0 %v5887_v38  ;;  %6306 = vmatprep.subr.bf16.mxu1 %v5889_v8  ;;  %v5935_v38 = vld [vmem:[#allocation8 + $0x368] sm:$0xff]  ;;  %v5937_v8 = vld [vmem:[#allocation8 + $0x378] sm:$0xff] }
0x2293   :  { %6143 = vmatpush1.bf16.msra.mxu0 %v5886_v9  ;;  %6307 = vmatpush1.bf16.msra.mxu1 %v5888_v61  ;;  %v5934_v9 = vld [vmem:[#allocation8 + $0x360] sm:$0xff]  ;;  %v5936_v61 = vld [vmem:[#allocation8 + $0x370] sm:$0xff] }
0x2294   :  { %6153 = vmatprep.subr.bf16.mxu0 %v5891_v3  ;;  %6317 = vmatprep.subr.bf16.mxu1 %v5893_v57  ;;  %v5939_v3 = vld [vmem:[#allocation8 + $0x388] sm:$0xff]  ;;  %v5941_v57 = vld [vmem:[#allocation8 + $0x398] sm:$0xff] }
0x2296   :  { %6145 = vmatmul.mubr.bf16.vlgmr.msra.gmra.mrb[96].mxu0 %v6083_v11  ;;  %6309 = vmatmul.mubr.bf16.vlgmr.msra.gmra.mrb[112].mxu1 %v6083_v11  ;;  %v5938_v11 = vld [vmem:[#allocation8 + $0x380] sm:$0xff] }
0x2297   :  { %6154 = vmatpush1.bf16.msra.mxu0 %v5890_v12  ;;  %6318 = vmatpush1.bf16.msra.mxu1 %v5892_v30  ;;  %v5940_v12 = vld [vmem:[#allocation8 + $0x390] sm:$0xff]  ;;  %v5943_v30 = vld [vmem:[#allocation8 + $0x3a8] sm:$0xff] }
0x2298   :  { %6155 = vmatprep.subr.bf16.mxu0 %v5895_v18  ;;  %6319 = vmatprep.subr.bf16.mxu1 %v5897_v13  ;;  %v5945_v18 = vld [vmem:[#allocation8 + $0x3b8] sm:$0xff]  ;;  %v5942_v13 = vld [vmem:[#allocation8 + $0x3a0] sm:$0xff] }
0x2299   :  { %6185 = vmatprep.mubr.bf16.mxu0 %v6086_v49  ;;  %6349 = vmatprep.mubr.bf16.mxu1 %v6086_v49  ;;  %v5944_v49 = vld [vmem:[#allocation8 + $0x3b0] sm:$0xff] }
0x229b   :  { %6156 = vmatpush1.bf16.msra.mxu0 %v5894_v16  ;;  %6320 = vmatpush1.bf16.msra.mxu1 %v5896_v33  ;;  %v5947_v16 = vld [vmem:[#allocation8 + $0x3c8] sm:$0xff]  ;;  %v5949_v33 = vld [vmem:[#allocation8 + $0x3d8] sm:$0xff] }
0x229c   :  { %6157 = vmatprep.subr.bf16.mxu0 %v5899_v19  ;;  %6321 = vmatprep.subr.bf16.mxu1 %v5901_v43  ;;  %v5946_v19 = vld [vmem:[#allocation8 + $0x3c0] sm:$0xff]  ;;  %v5948_v43 = vld [vmem:[#allocation8 + $0x3d0] sm:$0xff] }
0x229f   :  { %6158 = vmatpush1.bf16.msra.mxu0 %v5898_v2  ;;  %6322 = vmatpush1.bf16.msra.mxu1 %v5900_v35  ;;  %v5951_v2 = vld [vmem:[#allocation8 + $0x3e8] sm:$0xff]  ;;  %v5953_v35 = vld [vmem:[#allocation8 + $0x3f8] sm:$0xff] }
0x22a0   :  { %6159 = vmatprep.subr.bf16.mxu0 %v5903_v29  ;;  %6323 = vmatprep.subr.bf16.mxu1 %v5905_v44  ;;  %v5950_v29 = vld [vmem:[#allocation8 + $0x3e0] sm:$0xff]  ;;  %v5952_v44 = vld [vmem:[#allocation8 + $0x3f0] sm:$0xff] }
0x22a3   :  { %6160 = vmatpush1.bf16.msra.mxu0 %v5902_v39  ;;  %6324 = vmatpush1.bf16.msra.mxu1 %v5904_v32  ;;  %v5955_v39 = vld [vmem:[#allocation8 + $0x408] sm:$0xff]  ;;  %v5957_v32 = vld [vmem:[#allocation8 + $0x418] sm:$0xff] }
0x22a4   :  { %6161 = vmatprep.subr.bf16.mxu0 %v5907_v40  ;;  %6325 = vmatprep.subr.bf16.mxu1 %v5909_v63  ;;  %v6085_v40 = vpack.c.bf16 %v5817_v5, %v5817_v5  ;;  %v5954_v63 = vld [vmem:[#allocation8 + $0x400] sm:$0xff]  ;;  %v5960_v5 = vld [vmem:[#allocation8 + $0x430] sm:$0xff] }
0x22a7   :  { %6162 = vmatpush1.bf16.msra.mxu0 %v5906_v47  ;;  %6326 = vmatpush1.bf16.msra.mxu1 %v5908_v58  ;;  %v5956_v47 = vld [vmem:[#allocation8 + $0x410] sm:$0xff]  ;;  %v5959_v58 = vld [vmem:[#allocation8 + $0x428] sm:$0xff] }
0x22a8   :  { %6163 = vmatprep.subr.bf16.mxu0 %v5911_v52  ;;  %6327 = vmatprep.subr.bf16.mxu1 %v5913_v0  ;;  %v5961_v52 = vld [vmem:[#allocation8 + $0x438] sm:$0xff]  ;;  %v6088_v0 = vpack.c.bf16 %v5820_v50, %v5820_v50 }
0x22a9   :  { %v5969_v50 = vld [vmem:[#allocation8 + $0x478] sm:$0xff] }
0x22ab   :  { %6164 = vmatpush1.bf16.msra.mxu0 %v5910_v53  ;;  %6328 = vmatpush1.bf16.msra.mxu1 %v5912_v48  ;;  %v5963_v53 = vld [vmem:[#allocation8 + $0x448] sm:$0xff]  ;;  %v5965_v48 = vld [vmem:[#allocation8 + $0x458] sm:$0xff] }
0x22ac   :  { %6165 = vmatprep.subr.bf16.mxu0 %v5915_v21  ;;  %6329 = vmatprep.subr.bf16.mxu1 %v5917_v55  ;;  %v5962_v21 = vld [vmem:[#allocation8 + $0x440] sm:$0xff]  ;;  %v5967_v55 = vld [vmem:[#allocation8 + $0x468] sm:$0xff] }
0x22af   :  { %6166 = vmatpush1.bf16.msra.mxu0 %v5914_v37  ;;  %6330 = vmatpush1.bf16.msra.mxu1 %v5916_v15  ;;  %v5966_v37 = vld [vmem:[#allocation8 + $0x460] sm:$0xff]  ;;  %v5968_v15 = vld [vmem:[#allocation8 + $0x470] sm:$0xff] }
0x22b0   :  { %6167 = vmatprep.subr.bf16.mxu0 %v5919_v36  ;;  %6331 = vmatprep.subr.bf16.mxu1 %v5921_v45  ;;  %v5971_v36 = vld [vmem:[#allocation8 + $0x488] sm:$0xff]  ;;  %v5973_v45 = vld [vmem:[#allocation8 + $0x498] sm:$0xff] }
0x22b3   :  { %6168 = vmatpush1.bf16.msra.mxu0 %v5918_v46  ;;  %6332 = vmatpush1.bf16.msra.mxu1 %v5920_v24  ;;  %v5970_v46 = vld [vmem:[#allocation8 + $0x480] sm:$0xff]  ;;  %v5972_v24 = vld [vmem:[#allocation8 + $0x490] sm:$0xff] }
0x22b4   :  { %6169 = vmatprep.subr.bf16.mxu0 %v5923_v26  ;;  %6333 = vmatprep.subr.bf16.mxu1 %v5925_v56  ;;  %v5975_v26 = vld [vmem:[#allocation8 + $0x4a8] sm:$0xff]  ;;  %v5977_v56 = vld [vmem:[#allocation8 + $0x4b8] sm:$0xff] }
0x22b7   :  { %6170 = vmatpush1.bf16.msra.mxu0 %v5922_v22  ;;  %6334 = vmatpush1.bf16.msra.mxu1 %v5924_v14  ;;  %v5974_v22 = vld [vmem:[#allocation8 + $0x4a0] sm:$0xff]  ;;  %v5976_v14 = vld [vmem:[#allocation8 + $0x4b0] sm:$0xff] }
0x22b8   :  { %6171 = vmatprep.subr.bf16.mxu0 %v5927_v10  ;;  %6335 = vmatprep.subr.bf16.mxu1 %v5929_v25  ;;  %v5979_v10 = vld [vmem:[#allocation8 + $0x4c8] sm:$0xff]  ;;  %v5981_v25 = vld [vmem:[#allocation8 + $0x4d8] sm:$0xff] }
0x22bb   :  { %6172 = vmatpush1.bf16.msra.mxu0 %v5926_v60  ;;  %6336 = vmatpush1.bf16.msra.mxu1 %v5928_v62  ;;  %v5978_v60 = vld [vmem:[#allocation8 + $0x4c0] sm:$0xff]  ;;  %v5980_v62 = vld [vmem:[#allocation8 + $0x4d0] sm:$0xff] }
0x22bc   :  { %6173 = vmatprep.subr.bf16.mxu0 %v5931_v1  ;;  %6337 = vmatprep.subr.bf16.mxu1 %v5933_v4  ;;  %v5983_v1 = vld [vmem:[#allocation8 + $0x4e8] sm:$0xff]  ;;  %v5985_v4 = vld [vmem:[#allocation8 + $0x4f8] sm:$0xff] }
0x22bf   :  { %6174 = vmatpush1.bf16.msra.mxu0 %v5930_v6  ;;  %6338 = vmatpush1.bf16.msra.mxu1 %v5932_v7  ;;  %v5982_v6 = vld [vmem:[#allocation8 + $0x4e0] sm:$0xff]  ;;  %v5984_v7 = vld [vmem:[#allocation8 + $0x4f0] sm:$0xff] }
0x22c0   :  { %6175 = vmatprep.subr.bf16.mxu0 %v5935_v38  ;;  %6339 = vmatprep.subr.bf16.mxu1 %v5937_v8  ;;  %v5987_v38 = vld [vmem:[#allocation8 + $0x508] sm:$0xff]  ;;  %v5989_v8 = vld [vmem:[#allocation8 + $0x518] sm:$0xff] }
0x22c3   :  { %6176 = vmatpush1.bf16.msra.mxu0 %v5934_v9  ;;  %6340 = vmatpush1.bf16.msra.mxu1 %v5936_v61  ;;  %v5986_v9 = vld [vmem:[#allocation8 + $0x500] sm:$0xff]  ;;  %v5988_v61 = vld [vmem:[#allocation8 + $0x510] sm:$0xff] }
0x22c4   :  { %6177 = vmatprep.subr.bf16.mxu0 %v5939_v3  ;;  %6341 = vmatprep.subr.bf16.mxu1 %v5941_v57  ;;  %v5991_v3 = vld [vmem:[#allocation8 + $0x528] sm:$0xff]  ;;  %v5993_v57 = vld [vmem:[#allocation8 + $0x538] sm:$0xff] }
0x22c7   :  { %6178 = vmatpush1.bf16.msra.mxu0 %v5938_v11  ;;  %6342 = vmatpush1.bf16.msra.mxu1 %v5940_v12  ;;  %v5990_v11 = vld [vmem:[#allocation8 + $0x520] sm:$0xff]  ;;  %v5992_v12 = vld [vmem:[#allocation8 + $0x530] sm:$0xff] }
0x22c8   :  { %6179 = vmatprep.subr.bf16.mxu0 %v5943_v30  ;;  %6343 = vmatprep.subr.bf16.mxu1 %v5945_v18  ;;  %v5995_v30 = vld [vmem:[#allocation8 + $0x548] sm:$0xff]  ;;  %v5997_v18 = vld [vmem:[#allocation8 + $0x558] sm:$0xff] }
0x22cb   :  { %6180 = vmatpush1.bf16.msra.mxu0 %v5942_v13  ;;  %6344 = vmatpush1.bf16.msra.mxu1 %v5944_v49  ;;  %v5994_v13 = vld [vmem:[#allocation8 + $0x540] sm:$0xff]  ;;  %v5996_v49 = vld [vmem:[#allocation8 + $0x550] sm:$0xff] }
0x22cc   :  { %6181 = vmatprep.subr.bf16.mxu0 %v5947_v16  ;;  %6345 = vmatprep.subr.bf16.mxu1 %v5949_v33  ;;  %v5999_v16 = vld [vmem:[#allocation8 + $0x568] sm:$0xff]  ;;  %v6001_v33 = vld [vmem:[#allocation8 + $0x578] sm:$0xff] }
0x22cf   :  { %6182 = vmatpush1.bf16.msra.mxu0 %v5946_v19  ;;  %6346 = vmatpush1.bf16.msra.mxu1 %v5948_v43  ;;  %v5998_v19 = vld [vmem:[#allocation8 + $0x560] sm:$0xff]  ;;  %v6000_v43 = vld [vmem:[#allocation8 + $0x570] sm:$0xff] }
0x22d0   :  { %6183 = vmatprep.subr.bf16.mxu0 %v5951_v2  ;;  %6347 = vmatprep.subr.bf16.mxu1 %v5953_v35  ;;  %v6003_v2 = vld [vmem:[#allocation8 + $0x588] sm:$0xff]  ;;  %v6005_v35 = vld [vmem:[#allocation8 + $0x598] sm:$0xff] }
0x22d3   :  { %6184 = vmatpush1.bf16.msra.mxu0 %v5950_v29  ;;  %6348 = vmatpush1.bf16.msra.mxu1 %v5952_v44  ;;  %v6002_v29 = vld [vmem:[#allocation8 + $0x580] sm:$0xff]  ;;  %v6004_v44 = vld [vmem:[#allocation8 + $0x590] sm:$0xff] }
0x22d4   :  { %6194 = vmatprep.subr.bf16.mxu0 %v5955_v39  ;;  %6358 = vmatprep.subr.bf16.mxu1 %v5957_v32  ;;  %v6007_v39 = vld [vmem:[#allocation8 + $0x5a8] sm:$0xff]  ;;  %v6009_v32 = vld [vmem:[#allocation8 + $0x5b8] sm:$0xff] }
0x22d6   :  { %6186 = vmatmul.mubr.bf16.vlgmr.msra.gmra.mrb[96].mxu0 %v6085_v40  ;;  %6350 = vmatmul.mubr.bf16.vlgmr.msra.gmra.mrb[112].mxu1 %v6085_v40  ;;  %v6006_v40 = vld [vmem:[#allocation8 + $0x5a0] sm:$0xff] }
0x22d7   :  { %6195 = vmatpush1.bf16.msra.mxu0 %v5954_v63  ;;  %6359 = vmatpush1.bf16.msra.mxu1 %v5956_v47  ;;  %v6008_v63 = vld [vmem:[#allocation8 + $0x5b0] sm:$0xff]  ;;  %v6011_v47 = vld [vmem:[#allocation8 + $0x5c8] sm:$0xff] }
0x22d8   :  { %6196 = vmatprep.subr.bf16.mxu0 %v5959_v58  ;;  %6360 = vmatprep.subr.bf16.mxu1 %v5961_v52  ;;  %v6013_v58 = vld [vmem:[#allocation8 + $0x5d8] sm:$0xff]  ;;  %v6010_v52 = vld [vmem:[#allocation8 + $0x5c0] sm:$0xff] }
0x22d9   :  { %6226 = vmatprep.mubr.bf16.mxu0 %v6088_v0  ;;  %6390 = vmatprep.mubr.bf16.mxu1 %v6088_v0  ;;  %v6012_v0 = vld [vmem:[#allocation8 + $0x5d0] sm:$0xff] }
0x22db   :  { %6197 = vmatpush1.bf16.msra.mxu0 %v5958_v17  ;;  %6361 = vmatpush1.bf16.msra.mxu1 %v5960_v5  ;;  %v6015_v17 = vld [vmem:[#allocation8 + $0x5e8] sm:$0xff]  ;;  %v6017_v5 = vld [vmem:[#allocation8 + $0x5f8] sm:$0xff] }
0x22dc   :  { %6198 = vmatprep.subr.bf16.mxu0 %v5963_v53  ;;  %6362 = vmatprep.subr.bf16.mxu1 %v5965_v48  ;;  %v6014_v53 = vld [vmem:[#allocation8 + $0x5e0] sm:$0xff]  ;;  %v6016_v48 = vld [vmem:[#allocation8 + $0x5f0] sm:$0xff] }
0x22df   :  { %6199 = vmatpush1.bf16.msra.mxu0 %v5962_v21  ;;  %6363 = vmatpush1.bf16.msra.mxu1 %v5964_v28  ;;  %v6019_v21 = vld [vmem:[#allocation8 + $0x608] sm:$0xff]  ;;  %v6021_v28 = vld [vmem:[#allocation8 + $0x618] sm:$0xff] }
0x22e0   :  { %6200 = vmatprep.subr.bf16.mxu0 %v5967_v55  ;;  %6364 = vmatprep.subr.bf16.mxu1 %v5969_v50  ;;  %v6087_v55 = vpack.c.bf16 %v5819_v31, %v5819_v31  ;;  %v6018_v50 = vld [vmem:[#allocation8 + $0x600] sm:$0xff]  ;;  %v6024_v31 = vld [vmem:[#allocation8 + $0x630] sm:$0xff] }
0x22e3   :  { %6201 = vmatpush1.bf16.msra.mxu0 %v5966_v37  ;;  %6365 = vmatpush1.bf16.msra.mxu1 %v5968_v15  ;;  %v6020_v37 = vld [vmem:[#allocation8 + $0x610] sm:$0xff]  ;;  %v6023_v15 = vld [vmem:[#allocation8 + $0x628] sm:$0xff] }
0x22e4   :  { %6202 = vmatprep.subr.bf16.mxu0 %v5971_v36  ;;  %6366 = vmatprep.subr.bf16.mxu1 %v5973_v45  ;;  %v6025_v36 = vld [vmem:[#allocation8 + $0x638] sm:$0xff]  ;;  %v6090_v45 = vpack.c.bf16 %v5822_v27, %v5822_v27 }
0x22e5   :  { %v6033_v27 = vld [vmem:[#allocation8 + $0x678] sm:$0xff] }
0x22e7   :  { %6203 = vmatpush1.bf16.msra.mxu0 %v5970_v46  ;;  %6367 = vmatpush1.bf16.msra.mxu1 %v5972_v24  ;;  %v6027_v46 = vld [vmem:[#allocation8 + $0x648] sm:$0xff]  ;;  %v6029_v24 = vld [vmem:[#allocation8 + $0x658] sm:$0xff] }
0x22e8   :  { %6204 = vmatprep.subr.bf16.mxu0 %v5975_v26  ;;  %6368 = vmatprep.subr.bf16.mxu1 %v5977_v56  ;;  %v6026_v26 = vld [vmem:[#allocation8 + $0x640] sm:$0xff]  ;;  %v6031_v56 = vld [vmem:[#allocation8 + $0x668] sm:$0xff] }
0x22eb   :  { %6205 = vmatpush1.bf16.msra.mxu0 %v5974_v22  ;;  %6369 = vmatpush1.bf16.msra.mxu1 %v5976_v14  ;;  %v6030_v22 = vld [vmem:[#allocation8 + $0x660] sm:$0xff]  ;;  %v6032_v14 = vld [vmem:[#allocation8 + $0x670] sm:$0xff] }
0x22ec   :  { %6206 = vmatprep.subr.bf16.mxu0 %v5979_v10  ;;  %6370 = vmatprep.subr.bf16.mxu1 %v5981_v25  ;;  %v6035_v10 = vld [vmem:[#allocation8 + $0x688] sm:$0xff]  ;;  %v6037_v25 = vld [vmem:[#allocation8 + $0x698] sm:$0xff] }
0x22ef   :  { %6207 = vmatpush1.bf16.msra.mxu0 %v5978_v60  ;;  %6371 = vmatpush1.bf16.msra.mxu1 %v5980_v62  ;;  %v6034_v60 = vld [vmem:[#allocation8 + $0x680] sm:$0xff]  ;;  %v6036_v62 = vld [vmem:[#allocation8 + $0x690] sm:$0xff] }
0x22f0   :  { %6208 = vmatprep.subr.bf16.mxu0 %v5983_v1  ;;  %6372 = vmatprep.subr.bf16.mxu1 %v5985_v4  ;;  %v6039_v1 = vld [vmem:[#allocation8 + $0x6a8] sm:$0xff]  ;;  %v6041_v4 = vld [vmem:[#allocation8 + $0x6b8] sm:$0xff] }
0x22f3   :  { %6209 = vmatpush1.bf16.msra.mxu0 %v5982_v6  ;;  %6373 = vmatpush1.bf16.msra.mxu1 %v5984_v7  ;;  %v6038_v6 = vld [vmem:[#allocation8 + $0x6a0] sm:$0xff]  ;;  %v6040_v7 = vld [vmem:[#allocation8 + $0x6b0] sm:$0xff] }
0x22f4   :  { %6210 = vmatprep.subr.bf16.mxu0 %v5987_v38  ;;  %6374 = vmatprep.subr.bf16.mxu1 %v5989_v8  ;;  %v6043_v38 = vld [vmem:[#allocation8 + $0x6c8] sm:$0xff]  ;;  %v6045_v8 = vld [vmem:[#allocation8 + $0x6d8] sm:$0xff] }
0x22f7   :  { %6211 = vmatpush1.bf16.msra.mxu0 %v5986_v9  ;;  %6375 = vmatpush1.bf16.msra.mxu1 %v5988_v61  ;;  %v6042_v9 = vld [vmem:[#allocation8 + $0x6c0] sm:$0xff]  ;;  %v6044_v61 = vld [vmem:[#allocation8 + $0x6d0] sm:$0xff] }
0x22f8   :  { %6212 = vmatprep.subr.bf16.mxu0 %v5991_v3  ;;  %6376 = vmatprep.subr.bf16.mxu1 %v5993_v57  ;;  %v6047_v3 = vld [vmem:[#allocation8 + $0x6e8] sm:$0xff]  ;;  %v6049_v57 = vld [vmem:[#allocation8 + $0x6f8] sm:$0xff] }
0x22fb   :  { %6213 = vmatpush1.bf16.msra.mxu0 %v5990_v11  ;;  %6377 = vmatpush1.bf16.msra.mxu1 %v5992_v12  ;;  %v6046_v11 = vld [vmem:[#allocation8 + $0x6e0] sm:$0xff]  ;;  %v6048_v12 = vld [vmem:[#allocation8 + $0x6f0] sm:$0xff] }
0x22fc   :  { %6214 = vmatprep.subr.bf16.mxu0 %v5995_v30  ;;  %6378 = vmatprep.subr.bf16.mxu1 %v5997_v18  ;;  %v6051_v30 = vld [vmem:[#allocation8 + $0x708] sm:$0xff]  ;;  %v6053_v18 = vld [vmem:[#allocation8 + $0x718] sm:$0xff] }
0x22ff   :  { %6215 = vmatpush1.bf16.msra.mxu0 %v5994_v13  ;;  %6379 = vmatpush1.bf16.msra.mxu1 %v5996_v49  ;;  %v6050_v13 = vld [vmem:[#allocation8 + $0x700] sm:$0xff]  ;;  %v6052_v49 = vld [vmem:[#allocation8 + $0x710] sm:$0xff] }
0x2300   :  { %6216 = vmatprep.subr.bf16.mxu0 %v5999_v16  ;;  %6380 = vmatprep.subr.bf16.mxu1 %v6001_v33  ;;  %v6055_v16 = vld [vmem:[#allocation8 + $0x728] sm:$0xff]  ;;  %v6057_v33 = vld [vmem:[#allocation8 + $0x738] sm:$0xff] }
0x2303   :  { %6217 = vmatpush1.bf16.msra.mxu0 %v5998_v19  ;;  %6381 = vmatpush1.bf16.msra.mxu1 %v6000_v43  ;;  %v6054_v19 = vld [vmem:[#allocation8 + $0x720] sm:$0xff]  ;;  %v6056_v43 = vld [vmem:[#allocation8 + $0x730] sm:$0xff] }
0x2304   :  { %6218 = vmatprep.subr.bf16.mxu0 %v6003_v2  ;;  %6382 = vmatprep.subr.bf16.mxu1 %v6005_v35  ;;  %v6059_v2 = vld [vmem:[#allocation8 + $0x748] sm:$0xff]  ;;  %v6061_v35 = vld [vmem:[#allocation8 + $0x758] sm:$0xff] }
0x2307   :  { %6219 = vmatpush1.bf16.msra.mxu0 %v6002_v29  ;;  %6383 = vmatpush1.bf16.msra.mxu1 %v6004_v44  ;;  %v6058_v29 = vld [vmem:[#allocation8 + $0x740] sm:$0xff]  ;;  %v6060_v44 = vld [vmem:[#allocation8 + $0x750] sm:$0xff] }
0x2308   :  { %6220 = vmatprep.subr.bf16.mxu0 %v6007_v39  ;;  %6384 = vmatprep.subr.bf16.mxu1 %v6009_v32  ;;  %v6063_v39 = vld [vmem:[#allocation8 + $0x768] sm:$0xff]  ;;  %v6065_v32 = vld [vmem:[#allocation8 + $0x778] sm:$0xff] }
0x230b   :  { %6221 = vmatpush1.bf16.msra.mxu0 %v6006_v40  ;;  %6385 = vmatpush1.bf16.msra.mxu1 %v6008_v63  ;;  %v6062_v40 = vld [vmem:[#allocation8 + $0x760] sm:$0xff]  ;;  %v6064_v63 = vld [vmem:[#allocation8 + $0x770] sm:$0xff] }
0x230c   :  { %6222 = vmatprep.subr.bf16.mxu0 %v6011_v47  ;;  %6386 = vmatprep.subr.bf16.mxu1 %v6013_v58  ;;  %v6067_v47 = vld [vmem:[#allocation8 + $0x788] sm:$0xff]  ;;  %v6069_v58 = vld [vmem:[#allocation8 + $0x798] sm:$0xff] }
0x230f   :  { %6223 = vmatpush1.bf16.msra.mxu0 %v6010_v52  ;;  %6387 = vmatpush1.bf16.msra.mxu1 %v6012_v0  ;;  %v6066_v52 = vld [vmem:[#allocation8 + $0x780] sm:$0xff]  ;;  %v6068_v0 = vld [vmem:[#allocation8 + $0x790] sm:$0xff] }
0x2310   :  { %6224 = vmatprep.subr.bf16.mxu0 %v6015_v17  ;;  %6388 = vmatprep.subr.bf16.mxu1 %v6017_v5  ;;  %v6071_v17 = vld [vmem:[#allocation8 + $0x7a8] sm:$0xff]  ;;  %v6073_v5 = vld [vmem:[#allocation8 + $0x7b8] sm:$0xff] }
0x2313   :  { %6225 = vmatpush1.bf16.msra.mxu0 %v6014_v53  ;;  %6389 = vmatpush1.bf16.msra.mxu1 %v6016_v48  ;;  %v6070_v53 = vld [vmem:[#allocation8 + $0x7a0] sm:$0xff]  ;;  %v6072_v48 = vld [vmem:[#allocation8 + $0x7b0] sm:$0xff] }
0x2314   :  { %6235 = vmatprep.subr.bf16.mxu0 %v6019_v21  ;;  %6399 = vmatprep.subr.bf16.mxu1 %v6021_v28  ;;  %v6075_v21 = vld [vmem:[#allocation8 + $0x7c8] sm:$0xff]  ;;  %v6077_v28 = vld [vmem:[#allocation8 + $0x7d8] sm:$0xff] }
0x2316   :  { %6227 = vmatmul.mubr.bf16.vlgmr.msra.gmra.mrb[96].mxu0 %v6087_v55  ;;  %6391 = vmatmul.mubr.bf16.vlgmr.msra.gmra.mrb[112].mxu1 %v6087_v55  ;;  %v6074_v55 = vld [vmem:[#allocation8 + $0x7c0] sm:$0xff] }
0x2317   :  { %6236 = vmatpush1.bf16.msra.mxu0 %v6018_v50  ;;  %6400 = vmatpush1.bf16.msra.mxu1 %v6020_v37  ;;  %v6076_v50 = vld [vmem:[#allocation8 + $0x7d0] sm:$0xff]  ;;  %v6079_v37 = vld [vmem:[#allocation8 + $0x7e8] sm:$0xff] }
0x2318   :  { %6237 = vmatprep.subr.bf16.mxu0 %v6023_v15  ;;  %6401 = vmatprep.subr.bf16.mxu1 %v6025_v36  ;;  %v6081_v15 = vld [vmem:[#allocation8 + $0x7f8] sm:$0xff]  ;;  %v6078_v36 = vld [vmem:[#allocation8 + $0x7e0] sm:$0xff] }
0x2319   :  { %6267 = vmatprep.mubr.bf16.mxu0 %v6090_v45  ;;  %6431 = vmatprep.mubr.bf16.mxu1 %v6090_v45  ;;  %v6080_v45 = vld [vmem:[#allocation8 + $0x7f0] sm:$0xff] }
0x231b   :  { %6238 = vmatpush1.bf16.msra.mxu0 %v6022_v59  ;;  %6402 = vmatpush1.bf16.msra.mxu1 %v6024_v31  ;;  %v6089_v59 = vpack.c.bf16 %v5821_v34, %v5821_v34  ;;  %v6082_v31 = vld [vmem:[#allocation48] sm:$0xf] }
0x231c   :  { %6239 = vmatprep.subr.bf16.mxu0 %v6027_v46  ;;  %6403 = vmatprep.subr.bf16.mxu1 %v6029_v24  ;;  %v6095_v46 = vrot.slane %v6082_v31, %v8883_v42  ;;  %v6103_v24 = vrot.slane %v6082_v31, %v8969_v20 }
0x231f   :  { %6240 = vmatpush1.bf16.msra.mxu0 %v6026_v26  ;;  %6404 = vmatpush1.bf16.msra.mxu1 %v6028_v51  ;;  %v6099_v26 = vrot.slane %v6082_v31, %v8880_v41  ;;  %v6107_v51 = vrot.slane %v6082_v31, %v8974_v23 }
0x2320   :  { %6241 = vmatprep.subr.bf16.mxu0 %v6031_v56  ;;  %6405 = vmatprep.subr.bf16.mxu1 %v6033_v27 }
0x2323   :  { %6242 = vmatpush1.bf16.msra.mxu0 %v6030_v22  ;;  %6406 = vmatpush1.bf16.msra.mxu1 %v6032_v14 }
0x2324   :  { %6243 = vmatprep.subr.bf16.mxu0 %v6035_v10  ;;  %6407 = vmatprep.subr.bf16.mxu1 %v6037_v25 }
0x2327   :  { %6244 = vmatpush1.bf16.msra.mxu0 %v6034_v60  ;;  %6408 = vmatpush1.bf16.msra.mxu1 %v6036_v62 }
0x2328   :  { %6245 = vmatprep.subr.bf16.mxu0 %v6039_v1  ;;  %6409 = vmatprep.subr.bf16.mxu1 %v6041_v4 }
0x232b   :  { %6246 = vmatpush1.bf16.msra.mxu0 %v6038_v6  ;;  %6410 = vmatpush1.bf16.msra.mxu1 %v6040_v7 }
0x232c   :  { %6247 = vmatprep.subr.bf16.mxu0 %v6043_v38  ;;  %6411 = vmatprep.subr.bf16.mxu1 %v6045_v8 }
0x232f   :  { %6248 = vmatpush1.bf16.msra.mxu0 %v6042_v9  ;;  %6412 = vmatpush1.bf16.msra.mxu1 %v6044_v61 }
0x2330   :  { %6249 = vmatprep.subr.bf16.mxu0 %v6047_v3  ;;  %6413 = vmatprep.subr.bf16.mxu1 %v6049_v57 }
0x2333   :  { %6250 = vmatpush1.bf16.msra.mxu0 %v6046_v11  ;;  %6414 = vmatpush1.bf16.msra.mxu1 %v6048_v12 }
0x2334   :  { %6251 = vmatprep.subr.bf16.mxu0 %v6051_v30  ;;  %6415 = vmatprep.subr.bf16.mxu1 %v6053_v18 }
0x2337   :  { %6252 = vmatpush1.bf16.msra.mxu0 %v6050_v13  ;;  %6416 = vmatpush1.bf16.msra.mxu1 %v6052_v49 }
0x2338   :  { %6253 = vmatprep.subr.bf16.mxu0 %v6055_v16  ;;  %6417 = vmatprep.subr.bf16.mxu1 %v6057_v33 }
0x233b   :  { %6254 = vmatpush1.bf16.msra.mxu0 %v6054_v19  ;;  %6418 = vmatpush1.bf16.msra.mxu1 %v6056_v43 }
0x233c   :  { %6255 = vmatprep.subr.bf16.mxu0 %v6059_v2  ;;  %6419 = vmatprep.subr.bf16.mxu1 %v6061_v35 }
0x233f   :  { %6256 = vmatpush1.bf16.msra.mxu0 %v6058_v29  ;;  %6420 = vmatpush1.bf16.msra.mxu1 %v6060_v44 }
0x2340   :  { %6257 = vmatprep.subr.bf16.mxu0 %v6063_v39  ;;  %6421 = vmatprep.subr.bf16.mxu1 %v6065_v32 }
0x2343   :  { %6258 = vmatpush1.bf16.msra.mxu0 %v6062_v40  ;;  %6422 = vmatpush1.bf16.msra.mxu1 %v6064_v63 }
0x2344   :  { %6259 = vmatprep.subr.bf16.mxu0 %v6067_v47  ;;  %6423 = vmatprep.subr.bf16.mxu1 %v6069_v58 }
0x2347   :  { %6260 = vmatpush1.bf16.msra.mxu0 %v6066_v52  ;;  %6424 = vmatpush1.bf16.msra.mxu1 %v6068_v0 }
0x2348   :  { %6261 = vmatprep.subr.bf16.mxu0 %v6071_v17  ;;  %6425 = vmatprep.subr.bf16.mxu1 %v6073_v5 }
0x234b   :  { %6262 = vmatpush1.bf16.msra.mxu0 %v6070_v53  ;;  %6426 = vmatpush1.bf16.msra.mxu1 %v6072_v48 }
0x234c   :  { %6263 = vmatprep.subr.bf16.mxu0 %v6075_v21  ;;  %6427 = vmatprep.subr.bf16.mxu1 %v6077_v28 }
0x234f   :  { %6264 = vmatpush1.bf16.msra.mxu0 %v6074_v55  ;;  %6428 = vmatpush1.bf16.msra.mxu1 %v6076_v50 }
0x2350   :  { %6265 = vmatprep.subr.bf16.mxu0 %v6079_v37  ;;  %6429 = vmatprep.subr.bf16.mxu1 %v6081_v15 }
0x2353   :  { %6266 = vmatpush1.bf16.msra.mxu0 %v6078_v36  ;;  %6430 = vmatpush1.bf16.msra.mxu1 %v6080_v45 }
0x2356   :  { %6268 = vmatmul.mubr.bf16.vlgmr.msra.gmra.mrb[96].mxu0 %v6089_v59  ;;  %6432 = vmatmul.mubr.bf16.vlgmr.msra.gmra.mrb[112].mxu1 %v6089_v59 }
0x2429   :  { %v6269_v56 = vpop.f32.mrb[96].mxu0  ;;  %v6433_v27 = vpop.f32.mrb[112].mxu1 }
0x242a   :  { %v9351_v22 = vadd.f32 %v6269_v56, %v6095_v46  ;;  %v9353_v54 = vadd.f32 %v6433_v27, %v6103_v24  ;;  %v6271_v34 = vpop.f32.mrb[97].mxu0  ;;  %v6435_v14 = vpop.f32.mrb[113].mxu1 }
0x242b   :  { %v7242_v10 = vadd.f32 %v6271_v34, %v6099_v26  ;;  %v7244_v25 = vadd.f32 %v6435_v14, %v6107_v51  ;;  %v6273_v60 = vpop.f32.mrb[98].mxu0  ;;  %v6437_v62 = vpop.f32.mrb[114].mxu1 }
0x242c   :  { %v6440_v42 = vmax.f32 %v9351_v22, 0.0  ;;  %v6442_v20 = vmax.f32 %v9353_v54, 0.0  ;;  %v6274_v1 = vpop.f32.mrb[99].mxu0  ;;  %v6438_v41 = vpop.f32.mrb[115].mxu1 }
0x242d   :  { %v6441_v4 = vmax.f32 %v7242_v10, 0.0  ;;  %v6443_v23 = vmax.f32 %v7244_v25, 0.0 }
0x242e   :  { %8352 = dma.done.wait [#allocation10 + $0x7], 4096 }
0x242f   :  { %8353 = vsyncadd [#allocation10 + $0x7], 4294963200  ;;  %v6481_v6 = vpack.c.bf16 %v6441_v4, %v6441_v4  ;;  %v6483_v7 = vpack.c.bf16 %v6443_v23, %v6443_v23  ;;  %v6455_v38 = vld [vmem:[#allocation9 + $0x40] sm:$0xff]  ;;  %v6456_v3 = vld [vmem:[#allocation9 + $0x48] sm:$0xff]  ;;  %v6480_v21 = vpack.c.bf16 %v6440_v42, %v6440_v42  ;;  %v6482_v28 = vpack.c.bf16 %v6442_v20, %v6442_v20 }
0x2430   :  { %v6471_v8 = vld [vmem:[#allocation9 + $0xc0] sm:$0xff]  ;;  %7115 = vmatprep.subr.bf16.mxu0 %v6455_v38  ;;  %v6472_v57 = vld [vmem:[#allocation9 + $0xc8] sm:$0xff]  ;;  %v6457_v30 = vld [vmem:[#allocation9 + $0x50] sm:$0xff] }
0x2431   :  { %6522 = vmatprep.mubr.bf16.mxu0 %v6481_v6  ;;  %6562 = vmatprep.mubr.bf16.mxu1 %v6483_v7  ;;  %v6447_v9 = vld [vmem:[#allocation9] sm:$0xff]  ;;  %v6448_v11 = vld [vmem:[#allocation9 + $0x8] sm:$0xff]  ;;  %v6473_v18 = vld [vmem:[#allocation9 + $0xd0] sm:$0xff] }
0x2432   :  { %7137 = vmatprep.subr.bf16.mxu1 %v6471_v8  ;;  %v6463_v61 = vld [vmem:[#allocation9 + $0x80] sm:$0xff]  ;;  %7116 = vmatpush3.bf16.msra.mxu0 %v6447_v9  ;;  %v6464_v12 = vld [vmem:[#allocation9 + $0x88] sm:$0xff]  ;;  %v6449_v13 = vld [vmem:[#allocation9 + $0x10] sm:$0xff] }
0x2433   :  { %7138 = vmatpush3.bf16.msra.mxu1 %v6463_v61  ;;  %7117 = vmatprep.subr.bf16.mxu0 %v6456_v3  ;;  %v6465_v49 = vld [vmem:[#allocation9 + $0x90] sm:$0xff]  ;;  %v6458_v16 = vld [vmem:[#allocation9 + $0x58] sm:$0xff]  ;;  %v6459_v2 = vld [vmem:[#allocation9 + $0x60] sm:$0xff] }
0x2434   :  { %7139 = vmatprep.subr.bf16.mxu1 %v6472_v57  ;;  %v6474_v33 = vld [vmem:[#allocation9 + $0xd8] sm:$0xff]  ;;  %v6475_v35 = vld [vmem:[#allocation9 + $0xe0] sm:$0xff]  ;;  %v6460_v39 = vld [vmem:[#allocation9 + $0x68] sm:$0xff] }
0x2435   :  { %v6450_v19 = vld [vmem:[#allocation9 + $0x18] sm:$0xff]  ;;  %v6451_v29 = vld [vmem:[#allocation9 + $0x20] sm:$0xff]  ;;  %v6476_v32 = vld [vmem:[#allocation9 + $0xe8] sm:$0xff] }
0x2436   :  { %7118 = vmatpush3.bf16.msra.mxu0 %v6448_v11  ;;  %v6466_v43 = vld [vmem:[#allocation9 + $0x98] sm:$0xff]  ;;  %v6467_v44 = vld [vmem:[#allocation9 + $0xa0] sm:$0xff]  ;;  %v6452_v40 = vld [vmem:[#allocation9 + $0x28] sm:$0xff] }
0x2437   :  { %7140 = vmatpush3.bf16.msra.mxu1 %v6464_v12  ;;  %7119 = vmatprep.subr.bf16.mxu0 %v6457_v30  ;;  %v6468_v63 = vld [vmem:[#allocation9 + $0xa8] sm:$0xff]  ;;  %v6461_v47 = vld [vmem:[#allocation9 + $0x70] sm:$0xff]  ;;  %v6462_v17 = vld [vmem:[#allocation9 + $0x78] sm:$0xff] }
0x2438   :  { %7141 = vmatprep.subr.bf16.mxu1 %v6473_v18  ;;  %v6477_v58 = vld [vmem:[#allocation9 + $0xf0] sm:$0xff]  ;;  %v6478_v5 = vld [vmem:[#allocation9 + $0xf8] sm:$0xff]  ;;  %v6859_v37 = vld [vmem:[#allocation49] ss:$0 sm:$0xff] }
0x2439   :  { %v6453_v52 = vld [vmem:[#allocation9 + $0x30] sm:$0xff]  ;;  %v6454_v53 = vld [vmem:[#allocation9 + $0x38] sm:$0xff] }
0x243a   :  { %7120 = vmatpush3.bf16.msra.mxu0 %v6449_v13  ;;  %v6469_v0 = vld [vmem:[#allocation9 + $0xb0] sm:$0xff]  ;;  %v6470_v48 = vld [vmem:[#allocation9 + $0xb8] sm:$0xff] }
0x243b   :  { %7142 = vmatpush3.bf16.msra.mxu1 %v6465_v49  ;;  %7121 = vmatprep.subr.bf16.mxu0 %v6458_v16 }
0x243c   :  { %7143 = vmatprep.subr.bf16.mxu1 %v6474_v33 }
0x243e   :  { %7122 = vmatpush3.bf16.msra.mxu0 %v6450_v19 }
0x243f   :  { %7144 = vmatpush3.bf16.msra.mxu1 %v6466_v43  ;;  %7123 = vmatprep.subr.bf16.mxu0 %v6459_v2 }
0x2440   :  { %7145 = vmatprep.subr.bf16.mxu1 %v6475_v35 }
0x2442   :  { %7124 = vmatpush3.bf16.msra.mxu0 %v6451_v29 }
0x2443   :  { %7146 = vmatpush3.bf16.msra.mxu1 %v6467_v44  ;;  %7125 = vmatprep.subr.bf16.mxu0 %v6460_v39 }
0x2444   :  { %7147 = vmatprep.subr.bf16.mxu1 %v6476_v32 }
0x2446   :  { %7126 = vmatpush3.bf16.msra.mxu0 %v6452_v40 }
0x2447   :  { %7148 = vmatpush3.bf16.msra.mxu1 %v6468_v63  ;;  %7127 = vmatprep.subr.bf16.mxu0 %v6461_v47 }
0x2448   :  { %7149 = vmatprep.subr.bf16.mxu1 %v6477_v58 }
0x244a   :  { %7128 = vmatpush3.bf16.msra.mxu0 %v6453_v52 }
0x244b   :  { %7150 = vmatpush3.bf16.msra.mxu1 %v6469_v0  ;;  %7129 = vmatprep.subr.bf16.mxu0 %v6462_v17 }
0x244c   :  { %7151 = vmatprep.subr.bf16.mxu1 %v6478_v5 }
0x244e   :  { %7130 = vmatpush3.bf16.msra.mxu0 %v6454_v53 }
0x244f   :  { %7152 = vmatpush3.bf16.msra.mxu1 %v6470_v48 }
0x2451   :  { %6523 = vmatmul.mubr.bf16.vlgmr.msra.gmra.mrb[100].mxu0 %v6480_v21 }
0x2452   :  { %6563 = vmatmul.mubr.bf16.vlgmr.msra.gmra.mrb[116].mxu1 %v6482_v28 }
0x2524   :  { %v7131_v55 = vpop.f32.mrb[100].mxu0 }
0x2525   :  { %v7153_v50 = vpop.f32.mrb[116].mxu1  ;;  %v7132_v15 = vpop.f32.mrb[101].mxu0 }
0x2526   :  { %v7154_v36 = vpop.f32.mrb[117].mxu1  ;;  %v7133_v45 = vadd.f32 %v7132_v15, %v7131_v55  ;;  %v7134_v31 = vpop.f32.mrb[102].mxu0 }
0x2527   :  { %v7155_v59 = vadd.f32 %v7154_v36, %v7153_v50  ;;  %v7156_v46 = vpop.f32.mrb[118].mxu1  ;;  %v7135_v24 = vpop.f32.mrb[103].mxu0 }
0x2528   :  { %v7157_v26 = vpop.f32.mrb[119].mxu1  ;;  %v6525_v51 = vadd.f32 %v7133_v45, %v6859_v37 }
0x252a   :  { %v6565_v56 = vadd.f32 %v7155_v59, %v6525_v51 }
0x252c   :  { %6570 = vst [vmem:[%s8680_s20] sm:$0x3] %v6565_v56 }
0x252d   :  { %6575 = vsyncpa [#allocation12], 1 }
0x252e   :  { %6576 = vsyncpa [#allocation14], 1 }
0x252f   :  { %6577 = vsyncpa [#allocation17], 1 }
0x2530   :  { %6578 = vsyncpa [#allocation20], 1 }
0x2531   :  { %6579 = vsyncpa [#allocation23], 1 }
0x2532   :  { %6580 = vsyncpa [#allocation26], 1 }
0x2533   :  { %6581 = vsyncpa [#allocation29], 1 }
0x2534   :  { %6582 = vsyncpa [#allocation32], 1 }
0x2535   :  { %6583 = vsyncpa [#allocation35], 1 }
0x2536   :  { %6584 = vsyncpa [#allocation38], 1 }
0x2537   :  { %6585 = vsyncpa [#allocation41], 1 }
0x2538   :  { %6586 = vsyncpa [#allocation44], 1 }
0x2539   :  { %6587 = vsyncpa [#allocation47], 1 }
0x253a   :  { %6588 = vsyncpa [#allocation50], 1 }
0x253b   :  { %6589 = vsyncmov [#allocation10] }
0x253e   :  { %s6590_s29 = vpop.sfrf %6589 }
0x253f   :  { %p6860_p8 = scmp.ne.s32.totalorder %s6590_s29, 0 }
0x2541   :  { %6594 = shalt.err (%p6860_p8)  }
0x2542   :  { %6596 = vsyncmov [#allocation10 + $0x1] }
0x2545   :  { %s6597_s20 = vpop.sfrf %6596 }
0x2546   :  { %p6861_p9 = scmp.ne.s32.totalorder %s6597_s20, 0 }
0x2548   :  { %6601 = shalt.err (%p6861_p9)  }
0x2549   :  { %6603 = vsyncmov [#allocation10 + $0x2] }
0x254c   :  { %s6604_s22 = vpop.sfrf %6603 }
0x254d   :  { %p6862_p10 = scmp.ne.s32.totalorder %s6604_s22, 0 }
0x254f   :  { %6608 = shalt.err (%p6862_p10)  }
0x2550   :  { %6610 = vsyncmov [#allocation10 + $0x3] }
0x2553   :  { %s6611_s0 = vpop.sfrf %6610 }
0x2554   :  { %p6863_p11 = scmp.ne.s32.totalorder %s6611_s0, 0 }
0x2556   :  { %6615 = shalt.err (%p6863_p11)  }
0x2557   :  { %6617 = vsyncmov [#allocation10 + $0x4] }
0x255a   :  { %s6618_s3 = vpop.sfrf %6617 }
0x255b   :  { %p6864_p12 = scmp.ne.s32.totalorder %s6618_s3, 0 }
0x255d   :  { %6622 = shalt.err (%p6864_p12)  }
0x255e   :  { %6624 = vsyncmov [#allocation10 + $0x5] }
0x2561   :  { %s6625_s30 = vpop.sfrf %6624 }
0x2562   :  { %p6865_p13 = scmp.ne.s32.totalorder %s6625_s30, 0 }
0x2564   :  { %6629 = shalt.err (%p6865_p13)  }
0x2565   :  { %6631 = vsyncmov [#allocation10 + $0x6] }
0x2568   :  { %s6632_s9 = vpop.sfrf %6631 }
0x2569   :  { %p6866_p0 = scmp.ne.s32.totalorder %s6632_s9, 0 }
0x256b   :  { %6636 = shalt.err (%p6866_p0)  }
0x256c   :  { %6638 = vsyncmov [#allocation10 + $0x7] }
0x256f   :  { %s6639_s28 = vpop.sfrf %6638 }
0x2570   :  { %p6867_p1 = scmp.ne.s32.totalorder %s6639_s28, 0 }
0x2572   :  { %6643 = shalt.err (%p6867_p1)  }

</bundles_post_ra>
